<compile_context>
chip_gen: v7x
topology: tpu7x:2x2x1
jax: 0.10.0
libtpu: 0.0.40
codegen_flags: <defaults>
</compile_context>

<pallas_src>
import jax
import jax.numpy as jnp
from jax.experimental import pallas as pl
from jax.experimental.pallas import tpu as pltpu

SEQ_LEN = 8
N_FEATURES = 4
EMBEDDING_DIM = 32          # encoder hidden = 64, decoder hidden = 64
LANE = 128                  # padded lane width per gate / per hidden slab
GATES = 4 * LANE            # i/f/g/o gate blocks, each 128 lanes wide


# ---------------------------------------------------------------------------
# In-kernel helpers
# ---------------------------------------------------------------------------
def _sigmoid(x):
    # sigmoid(x) == 0.5 * tanh(0.5 * x) + 0.5  (single EUP tanh pass)
    return 0.5 * jnp.tanh(0.5 * x) + 0.5


def _recurrence(xg, whh_ref, hs_ref):
    """Fully-unrolled T-step LSTM recurrence with register-carried h/c.

    xg      : (T, 512) value  - precomputed input-gate projections (+ bias).
    whh_ref : (128, 512) ref  - recurrent weights, lane-aligned gate blocks.
    hs_ref  : optional (T, 128) VMEM ref collecting per-step h.
    Returns the final h as a (1, 128) value.
    """
    T = xg.shape[0]
    L = LANE
    h = jnp.zeros((1, L), jnp.float32)
    c = jnp.zeros((1, L), jnp.float32)
    for t in range(T):
        gates = xg[t:t + 1, :] + jnp.dot(
            h, whh_ref[...], preferred_element_type=jnp.float32)
        i = _sigmoid(gates[:, 0 * L:1 * L])
        f = _sigmoid(gates[:, 1 * L:2 * L])
        g = jnp.tanh(gates[:, 2 * L:3 * L])
        o = _sigmoid(gates[:, 3 * L:4 * L])
        c = f * c + i * g
        h = o * jnp.tanh(c)
        if hs_ref is not None:
            hs_ref[t:t + 1, :] = h      # store only; not on the h/c chain
    return h


def _lstm_layer(x_seq, wih_ref, whh_ref, b_ref, hs_ref):
    """One LSTM layer: whole-sequence input projection + recurrence."""
    xg = jnp.dot(x_seq, wih_ref[...],
                 preferred_element_type=jnp.float32) + b_ref[...]
    return _recurrence(xg, whh_ref, hs_ref)


# ---------------------------------------------------------------------------
# Fused Pallas kernel: full LAE forward pass
# ---------------------------------------------------------------------------
def _lae_kernel(x_ref,
                e1_wih, e1_whh, e1_b,
                e2_wih, e2_whh, e2_b,
                d1_wih, d1_whh, d1_b,
                d2_wih, d2_whh, d2_b,
                lin_w, lin_b,
                out_ref,
                act_a, act_b,
                wih_buf, whh_buf, b_buf, lw_buf, lb_buf, sem):
    """x_ref / enc1 weights arrive via the pallas prologue (VMEM specs);
    enc2 / dec1 / dec2 / linear weights are raw HBM refs prefetched here."""
    # ---- start later-layer weight DMAs, overlapped with enc1's recurrence ----
    copies = []

    def prefetch(src, dst):
        cp = pltpu.make_async_copy(src, dst, sem.at[len(copies)])
        cp.start()
        copies.append(cp)

    hbm_layers = ((e2_wih, e2_whh, e2_b),
                  (d1_wih, d1_whh, d1_b),
                  (d2_wih, d2_whh, d2_b))
    for li, (wih, whh, b) in enumerate(hbm_layers):
        prefetch(wih, wih_buf.at[li])
        prefetch(whh, whh_buf.at[li])
        prefetch(b, b_buf.at[li])
    prefetch(lin_w, lw_buf)
    prefetch(lin_b, lb_buf)

    # ---- Encoder lstm1: n_features -> 2E  (hs1 -> act_a) ----
    _lstm_layer(x_ref[...], e1_wih, e1_whh, e1_b, act_a)

    # ---- Encoder lstm2: 2E -> E, only final h (the embedding) is needed ----
    for cp in copies[0:3]:
        cp.wait()
    emb = _lstm_layer(act_a[...], wih_buf.at[0], whh_buf.at[0], b_buf.at[0],
                      None)

    # ---- Decoder lstm1: input is emb repeated T times; compute its input
    #      projection ONCE (M=1) and broadcast — dec_in never materialized.
    for cp in copies[3:6]:
        cp.wait()
    xg_row = jnp.dot(emb, wih_buf[1],
                     preferred_element_type=jnp.float32) + b_buf[1]
    xg1 = jnp.broadcast_to(xg_row, (SEQ_LEN, GATES))
    _recurrence(xg1, whh_buf.at[1], act_b)                    # hs3 -> act_b

    # ---- Decoder lstm2: E -> 2E  (hs4 -> act_a) ----
    for cp in copies[6:9]:
        cp.wait()
    _lstm_layer(act_b[...], wih_buf.at[2], whh_buf.at[2], b_buf.at[2], act_a)

    # ---- Linear head: lane-dense (T, 128) store; wrapper slices features ----
    for cp in copies[9:11]:
        cp.wait()
    out_ref[...] = (jnp.dot(act_a[...], lw_buf[...],
                            preferred_element_type=jnp.float32) + lb_buf[...])


# ---------------------------------------------------------------------------
# Cost estimate (advisory only)
# ---------------------------------------------------------------------------
_FLOPS = 4 * (2 * SEQ_LEN * LANE * GATES          # input projections
              + SEQ_LEN * 2 * LANE * GATES)       # per-step h @ W_hh
_FLOPS += 2 * SEQ_LEN * LANE * LANE               # linear head
_TRANS = 4 * SEQ_LEN * 5 * LANE                   # tanh passes per step
_BYTES = 4 * (4 * (2 * LANE * GATES + GATES)      # LSTM weights + biases
              + LANE * LANE + LANE                # linear
              + SEQ_LEN * LANE                    # padded input
              + SEQ_LEN * LANE)                   # padded output


# ---------------------------------------------------------------------------
# Wrapper
# ---------------------------------------------------------------------------
def _flatten_params(params):
    flat = []
    for name in ("enc1", "enc2", "dec1", "dec2"):
        flat.extend(params[name])
    flat.append(params["lin_w_t"])
    flat.append(params["lin_b"])
    return flat


@jax.jit
def lae_forward(x, params):
    # Pad features into the 128-lane slab layout expected by the kernel.
    x_p = jnp.zeros((SEQ_LEN, LANE), jnp.float32).at[:, :N_FEATURES].set(x)
    vmem = pl.BlockSpec(memory_space=pltpu.MemorySpace.VMEM)
    hbm = pl.BlockSpec(memory_space=pl.ANY)
    out = pl.pallas_call(
        _lae_kernel,
        out_shape=jax.ShapeDtypeStruct((SEQ_LEN, LANE), jnp.float32),
        # x + enc1 weights ride the prologue DMA; everything else stays in HBM
        # and is prefetched inside the kernel, overlapped with enc1 compute.
        in_specs=[vmem, vmem, vmem, vmem] + [hbm] * 11,
        out_specs=vmem,
        scratch_shapes=[
            pltpu.VMEM((SEQ_LEN, LANE), jnp.float32),        # act_a (hs1/hs4)
            pltpu.VMEM((SEQ_LEN, LANE), jnp.float32),        # act_b (hs3)
            pltpu.VMEM((3, LANE, GATES), jnp.float32),       # wih buf (e2/d1/d2)
            pltpu.VMEM((3, LANE, GATES), jnp.float32),       # whh buf
            pltpu.VMEM((3, 1, GATES), jnp.float32),          # bias buf
            pltpu.VMEM((LANE, LANE), jnp.float32),           # linear W buf
            pltpu.VMEM((1, LANE), jnp.float32),              # linear b buf
            pltpu.SemaphoreType.DMA((11,)),                  # prefetch sems
        ],
        cost_estimate=pl.CostEstimate(
            flops=_FLOPS, transcendentals=_TRANS, bytes_accessed=_BYTES),
    )(x_p, *_flatten_params(params))
    return out[:, :N_FEATURES]


# ---------------------------------------------------------------------------
# Parameter init (PyTorch-style uniform(-1/sqrt(H), 1/sqrt(H))), stored
# pre-transposed and pre-padded into the lane-aligned kernel layout.
# ---------------------------------------------------------------------------
def _init_lstm_params(key, in_dim, hidden):
    k1, k2, k3, k4 = jax.random.split(key, 4)
    bound = 1.0 / (hidden ** 0.5)
    wih_t = jax.random.uniform(k1, (in_dim, 4 * hidden), jnp.float32, -bound, bound)
    whh_t = jax.random.uniform(k2, (hidden, 4 * hidden), jnp.float32, -bound, bound)
    b = (jax.random.uniform(k3, (1, 4 * hidden), jnp.float32, -bound, bound)
         + jax.random.uniform(k4, (1, 4 * hidden), jnp.float32, -bound, bound))

    wih_p = jnp.zeros((LANE, GATES), jnp.float32)
    whh_p = jnp.zeros((LANE, GATES), jnp.float32)
    b_p = jnp.zeros((1, GATES), jnp.float32)
    for gi in range(4):                       # gate order [i, f, g, o]
        src = slice(gi * hidden, (gi + 1) * hidden)
        dst = slice(gi * LANE, gi * LANE + hidden)
        wih_p = wih_p.at[:in_dim, dst].set(wih_t[:, src])
        whh_p = whh_p.at[:hidden, dst].set(whh_t[:, src])
        b_p = b_p.at[:, dst].set(b[:, src])
    return wih_p, whh_p, b_p


def init_lae_params(key, n_features, embedding_dim):
    E = embedding_dim
    H2 = 2 * E
    keys = jax.random.split(key, 6)
    params = {
        # Encoder: lstm1 (n_features -> 2E), lstm2 (2E -> E)
        "enc1": _init_lstm_params(keys[0], n_features, H2),
        "enc2": _init_lstm_params(keys[1], H2, E),
        # Decoder: lstm1 (E -> E), lstm2 (E -> 2E), linear (2E -> n_features)
        "dec1": _init_lstm_params(keys[2], E, E),
        "dec2": _init_lstm_params(keys[3], E, H2),
    }
    bound = 1.0 / (H2 ** 0.5)
    lin_w = jax.random.uniform(keys[4], (H2, n_features), jnp.float32, -bound, bound)
    lin_b = jax.random.uniform(keys[5], (1, n_features), jnp.float32, -bound, bound)
    params["lin_w_t"] = jnp.zeros((LANE, LANE), jnp.float32).at[:H2, :n_features].set(lin_w)
    params["lin_b"] = jnp.zeros((1, LANE), jnp.float32).at[:, :n_features].set(lin_b)
    return params


if __name__ == "__main__":
    key = jax.random.PRNGKey(0)
    k_param, k_in = jax.random.split(key)

    params = init_lae_params(k_param, N_FEATURES, EMBEDDING_DIM)
    # PyTorch module reshapes input to (1, seq_len, n_features); we feed it
    # as (seq_len, n_features) directly.
    x = jax.random.normal(k_in, (SEQ_LEN, N_FEATURES), dtype=jnp.float32)

    y = lae_forward(x, params)
    y = jax.block_until_ready(y)
    assert y.shape == (SEQ_LEN, N_FEATURES), y.shape
    assert jnp.all(jnp.isfinite(y))
    print("KERNEL_OK")
</pallas_src>

<mosaic_0001>
module attributes {stable_mosaic.version = 11 : i64} {
  func.func @_lae_kernel(%arg0: memref<8x128xf32, #tpu.memory_space<vmem>>, %arg1: memref<128x512xf32, #tpu.memory_space<vmem>>, %arg2: memref<128x512xf32, #tpu.memory_space<vmem>>, %arg3: memref<1x512xf32, #tpu.memory_space<vmem>>, %arg4: memref<128x512xf32, #tpu.memory_space<any>>, %arg5: memref<128x512xf32, #tpu.memory_space<any>>, %arg6: memref<1x512xf32, #tpu.memory_space<any>>, %arg7: memref<128x512xf32, #tpu.memory_space<any>>, %arg8: memref<128x512xf32, #tpu.memory_space<any>>, %arg9: memref<1x512xf32, #tpu.memory_space<any>>, %arg10: memref<128x512xf32, #tpu.memory_space<any>>, %arg11: memref<128x512xf32, #tpu.memory_space<any>>, %arg12: memref<1x512xf32, #tpu.memory_space<any>>, %arg13: memref<128x128xf32, #tpu.memory_space<any>>, %arg14: memref<1x128xf32, #tpu.memory_space<any>>, %arg15: memref<8x128xf32, #tpu.memory_space<vmem>>, %arg16: memref<8x128xf32, #tpu.memory_space<vmem>>, %arg17: memref<8x128xf32, #tpu.memory_space<vmem>>, %arg18: memref<3x128x512xf32, #tpu.memory_space<vmem>>, %arg19: memref<3x128x512xf32, #tpu.memory_space<vmem>>, %arg20: memref<3x1x512xf32, #tpu.memory_space<vmem>>, %arg21: memref<128x128xf32, #tpu.memory_space<vmem>>, %arg22: memref<1x128xf32, #tpu.memory_space<vmem>>, %arg23: memref<11x!tpu.dma_semaphore, #tpu.memory_space<semaphore_mem>>) attributes {dimension_semantics = [], scalar_prefetch = 0 : i64, scratch_operands = 8 : i64, tpu.core_type = #tpu.core_type<tc>} {
    %c0_i32 = arith.constant 0 : i32
    %c0_i32_0 = arith.constant 0 : i32
    %c0_i32_1 = arith.constant 0 : i32
    %c0_i32_2 = arith.constant 0 : i32
    %0 = tpu.memref_slice %arg18[%c0_i32, %c0_i32_1, %c0_i32_2] : memref<3x128x512xf32, #tpu.memory_space<vmem>> -> memref<1x128x512xf32, #tpu.memory_space<vmem>>
    %1 = tpu.memref_squeeze %0 : memref<1x128x512xf32, #tpu.memory_space<vmem>> -> memref<128x512xf32, #tpu.memory_space<vmem>>
    %2 = tpu.memref_slice %arg23[%c0_i32_0] : memref<11x!tpu.dma_semaphore, #tpu.memory_space<semaphore_mem>> -> memref<1x!tpu.dma_semaphore, #tpu.memory_space<semaphore_mem>>
    %3 = tpu.memref_squeeze %2 : memref<1x!tpu.dma_semaphore, #tpu.memory_space<semaphore_mem>> -> memref<!tpu.dma_semaphore, #tpu.memory_space<semaphore_mem>>
    tpu.enqueue_dma source(%arg4 : memref<128x512xf32, #tpu.memory_space<any>>) target(%1 : memref<128x512xf32, #tpu.memory_space<vmem>>) target_semaphore(%3 : memref<!tpu.dma_semaphore, #tpu.memory_space<semaphore_mem>>)
    %c0_i32_3 = arith.constant 0 : i32
    %c1_i32 = arith.constant 1 : i32
    %c0_i32_4 = arith.constant 0 : i32
    %c0_i32_5 = arith.constant 0 : i32
    %4 = tpu.memref_slice %arg19[%c0_i32_3, %c0_i32_4, %c0_i32_5] : memref<3x128x512xf32, #tpu.memory_space<vmem>> -> memref<1x128x512xf32, #tpu.memory_space<vmem>>
    %5 = tpu.memref_squeeze %4 : memref<1x128x512xf32, #tpu.memory_space<vmem>> -> memref<128x512xf32, #tpu.memory_space<vmem>>
    %6 = tpu.memref_slice %arg23[%c1_i32] : memref<11x!tpu.dma_semaphore, #tpu.memory_space<semaphore_mem>> -> memref<1x!tpu.dma_semaphore, #tpu.memory_space<semaphore_mem>>
    %7 = tpu.memref_squeeze %6 : memref<1x!tpu.dma_semaphore, #tpu.memory_space<semaphore_mem>> -> memref<!tpu.dma_semaphore, #tpu.memory_space<semaphore_mem>>
    tpu.enqueue_dma source(%arg5 : memref<128x512xf32, #tpu.memory_space<any>>) target(%5 : memref<128x512xf32, #tpu.memory_space<vmem>>) target_semaphore(%7 : memref<!tpu.dma_semaphore, #tpu.memory_space<semaphore_mem>>)
    %c0_i32_6 = arith.constant 0 : i32
    %c2_i32 = arith.constant 2 : i32
    %c0_i32_7 = arith.constant 0 : i32
    %c0_i32_8 = arith.constant 0 : i32
    %8 = tpu.memref_slice %arg20[%c0_i32_6, %c0_i32_7, %c0_i32_8] : memref<3x1x512xf32, #tpu.memory_space<vmem>> -> memref<1x1x512xf32, #tpu.memory_space<vmem>>
    %9 = tpu.memref_squeeze %8 : memref<1x1x512xf32, #tpu.memory_space<vmem>> -> memref<1x512xf32, #tpu.memory_space<vmem>>
    %10 = tpu.memref_slice %arg23[%c2_i32] : memref<11x!tpu.dma_semaphore, #tpu.memory_space<semaphore_mem>> -> memref<1x!tpu.dma_semaphore, #tpu.memory_space<semaphore_mem>>
    %11 = tpu.memref_squeeze %10 : memref<1x!tpu.dma_semaphore, #tpu.memory_space<semaphore_mem>> -> memref<!tpu.dma_semaphore, #tpu.memory_space<semaphore_mem>>
    tpu.enqueue_dma source(%arg6 : memref<1x512xf32, #tpu.memory_space<any>>) target(%9 : memref<1x512xf32, #tpu.memory_space<vmem>>) target_semaphore(%11 : memref<!tpu.dma_semaphore, #tpu.memory_space<semaphore_mem>>)
    %c1_i32_9 = arith.constant 1 : i32
    %c3_i32 = arith.constant 3 : i32
    %c0_i32_10 = arith.constant 0 : i32
    %c0_i32_11 = arith.constant 0 : i32
    %12 = tpu.memref_slice %arg18[%c1_i32_9, %c0_i32_10, %c0_i32_11] : memref<3x128x512xf32, #tpu.memory_space<vmem>> -> memref<1x128x512xf32, #tpu.memory_space<vmem>>
    %13 = tpu.memref_squeeze %12 : memref<1x128x512xf32, #tpu.memory_space<vmem>> -> memref<128x512xf32, #tpu.memory_space<vmem>>
    %14 = tpu.memref_slice %arg23[%c3_i32] : memref<11x!tpu.dma_semaphore, #tpu.memory_space<semaphore_mem>> -> memref<1x!tpu.dma_semaphore, #tpu.memory_space<semaphore_mem>>
    %15 = tpu.memref_squeeze %14 : memref<1x!tpu.dma_semaphore, #tpu.memory_space<semaphore_mem>> -> memref<!tpu.dma_semaphore, #tpu.memory_space<semaphore_mem>>
    tpu.enqueue_dma source(%arg7 : memref<128x512xf32, #tpu.memory_space<any>>) target(%13 : memref<128x512xf32, #tpu.memory_space<vmem>>) target_semaphore(%15 : memref<!tpu.dma_semaphore, #tpu.memory_space<semaphore_mem>>)
    %c1_i32_12 = arith.constant 1 : i32
    %c4_i32 = arith.constant 4 : i32
    %c0_i32_13 = arith.constant 0 : i32
    %c0_i32_14 = arith.constant 0 : i32
    %16 = tpu.memref_slice %arg19[%c1_i32_12, %c0_i32_13, %c0_i32_14] : memref<3x128x512xf32, #tpu.memory_space<vmem>> -> memref<1x128x512xf32, #tpu.memory_space<vmem>>
    %17 = tpu.memref_squeeze %16 : memref<1x128x512xf32, #tpu.memory_space<vmem>> -> memref<128x512xf32, #tpu.memory_space<vmem>>
    %18 = tpu.memref_slice %arg23[%c4_i32] : memref<11x!tpu.dma_semaphore, #tpu.memory_space<semaphore_mem>> -> memref<1x!tpu.dma_semaphore, #tpu.memory_space<semaphore_mem>>
    %19 = tpu.memref_squeeze %18 : memref<1x!tpu.dma_semaphore, #tpu.memory_space<semaphore_mem>> -> memref<!tpu.dma_semaphore, #tpu.memory_space<semaphore_mem>>
    tpu.enqueue_dma source(%arg8 : memref<128x512xf32, #tpu.memory_space<any>>) target(%17 : memref<128x512xf32, #tpu.memory_space<vmem>>) target_semaphore(%19 : memref<!tpu.dma_semaphore, #tpu.memory_space<semaphore_mem>>)
    %c1_i32_15 = arith.constant 1 : i32
    %c5_i32 = arith.constant 5 : i32
    %c0_i32_16 = arith.constant 0 : i32
    %c0_i32_17 = arith.constant 0 : i32
    %20 = tpu.memref_slice %arg20[%c1_i32_15, %c0_i32_16, %c0_i32_17] : memref<3x1x512xf32, #tpu.memory_space<vmem>> -> memref<1x1x512xf32, #tpu.memory_space<vmem>>
    %21 = tpu.memref_squeeze %20 : memref<1x1x512xf32, #tpu.memory_space<vmem>> -> memref<1x512xf32, #tpu.memory_space<vmem>>
    %22 = tpu.memref_slice %arg23[%c5_i32] : memref<11x!tpu.dma_semaphore, #tpu.memory_space<semaphore_mem>> -> memref<1x!tpu.dma_semaphore, #tpu.memory_space<semaphore_mem>>
    %23 = tpu.memref_squeeze %22 : memref<1x!tpu.dma_semaphore, #tpu.memory_space<semaphore_mem>> -> memref<!tpu.dma_semaphore, #tpu.memory_space<semaphore_mem>>
    tpu.enqueue_dma source(%arg9 : memref<1x512xf32, #tpu.memory_space<any>>) target(%21 : memref<1x512xf32, #tpu.memory_space<vmem>>) target_semaphore(%23 : memref<!tpu.dma_semaphore, #tpu.memory_space<semaphore_mem>>)
    %c2_i32_18 = arith.constant 2 : i32
    %c6_i32 = arith.constant 6 : i32
    %c0_i32_19 = arith.constant 0 : i32
    %c0_i32_20 = arith.constant 0 : i32
    %24 = tpu.memref_slice %arg18[%c2_i32_18, %c0_i32_19, %c0_i32_20] : memref<3x128x512xf32, #tpu.memory_space<vmem>> -> memref<1x128x512xf32, #tpu.memory_space<vmem>>
    %25 = tpu.memref_squeeze %24 : memref<1x128x512xf32, #tpu.memory_space<vmem>> -> memref<128x512xf32, #tpu.memory_space<vmem>>
    %26 = tpu.memref_slice %arg23[%c6_i32] : memref<11x!tpu.dma_semaphore, #tpu.memory_space<semaphore_mem>> -> memref<1x!tpu.dma_semaphore, #tpu.memory_space<semaphore_mem>>
    %27 = tpu.memref_squeeze %26 : memref<1x!tpu.dma_semaphore, #tpu.memory_space<semaphore_mem>> -> memref<!tpu.dma_semaphore, #tpu.memory_space<semaphore_mem>>
    tpu.enqueue_dma source(%arg10 : memref<128x512xf32, #tpu.memory_space<any>>) target(%25 : memref<128x512xf32, #tpu.memory_space<vmem>>) target_semaphore(%27 : memref<!tpu.dma_semaphore, #tpu.memory_space<semaphore_mem>>)
    %c2_i32_21 = arith.constant 2 : i32
    %c7_i32 = arith.constant 7 : i32
    %c0_i32_22 = arith.constant 0 : i32
    %c0_i32_23 = arith.constant 0 : i32
    %28 = tpu.memref_slice %arg19[%c2_i32_21, %c0_i32_22, %c0_i32_23] : memref<3x128x512xf32, #tpu.memory_space<vmem>> -> memref<1x128x512xf32, #tpu.memory_space<vmem>>
    %29 = tpu.memref_squeeze %28 : memref<1x128x512xf32, #tpu.memory_space<vmem>> -> memref<128x512xf32, #tpu.memory_space<vmem>>
    %30 = tpu.memref_slice %arg23[%c7_i32] : memref<11x!tpu.dma_semaphore, #tpu.memory_space<semaphore_mem>> -> memref<1x!tpu.dma_semaphore, #tpu.memory_space<semaphore_mem>>
    %31 = tpu.memref_squeeze %30 : memref<1x!tpu.dma_semaphore, #tpu.memory_space<semaphore_mem>> -> memref<!tpu.dma_semaphore, #tpu.memory_space<semaphore_mem>>
    tpu.enqueue_dma source(%arg11 : memref<128x512xf32, #tpu.memory_space<any>>) target(%29 : memref<128x512xf32, #tpu.memory_space<vmem>>) target_semaphore(%31 : memref<!tpu.dma_semaphore, #tpu.memory_space<semaphore_mem>>)
    %c2_i32_24 = arith.constant 2 : i32
    %c8_i32 = arith.constant 8 : i32
    %c0_i32_25 = arith.constant 0 : i32
    %c0_i32_26 = arith.constant 0 : i32
    %32 = tpu.memref_slice %arg20[%c2_i32_24, %c0_i32_25, %c0_i32_26] : memref<3x1x512xf32, #tpu.memory_space<vmem>> -> memref<1x1x512xf32, #tpu.memory_space<vmem>>
    %33 = tpu.memref_squeeze %32 : memref<1x1x512xf32, #tpu.memory_space<vmem>> -> memref<1x512xf32, #tpu.memory_space<vmem>>
    %34 = tpu.memref_slice %arg23[%c8_i32] : memref<11x!tpu.dma_semaphore, #tpu.memory_space<semaphore_mem>> -> memref<1x!tpu.dma_semaphore, #tpu.memory_space<semaphore_mem>>
    %35 = tpu.memref_squeeze %34 : memref<1x!tpu.dma_semaphore, #tpu.memory_space<semaphore_mem>> -> memref<!tpu.dma_semaphore, #tpu.memory_space<semaphore_mem>>
    tpu.enqueue_dma source(%arg12 : memref<1x512xf32, #tpu.memory_space<any>>) target(%33 : memref<1x512xf32, #tpu.memory_space<vmem>>) target_semaphore(%35 : memref<!tpu.dma_semaphore, #tpu.memory_space<semaphore_mem>>)
    %c9_i32 = arith.constant 9 : i32
    %36 = tpu.memref_slice %arg23[%c9_i32] : memref<11x!tpu.dma_semaphore, #tpu.memory_space<semaphore_mem>> -> memref<1x!tpu.dma_semaphore, #tpu.memory_space<semaphore_mem>>
    %37 = tpu.memref_squeeze %36 : memref<1x!tpu.dma_semaphore, #tpu.memory_space<semaphore_mem>> -> memref<!tpu.dma_semaphore, #tpu.memory_space<semaphore_mem>>
    tpu.enqueue_dma source(%arg13 : memref<128x128xf32, #tpu.memory_space<any>>) target(%arg21 : memref<128x128xf32, #tpu.memory_space<vmem>>) target_semaphore(%37 : memref<!tpu.dma_semaphore, #tpu.memory_space<semaphore_mem>>)
    %c10_i32 = arith.constant 10 : i32
    %38 = tpu.memref_slice %arg23[%c10_i32] : memref<11x!tpu.dma_semaphore, #tpu.memory_space<semaphore_mem>> -> memref<1x!tpu.dma_semaphore, #tpu.memory_space<semaphore_mem>>
    %39 = tpu.memref_squeeze %38 : memref<1x!tpu.dma_semaphore, #tpu.memory_space<semaphore_mem>> -> memref<!tpu.dma_semaphore, #tpu.memory_space<semaphore_mem>>
    tpu.enqueue_dma source(%arg14 : memref<1x128xf32, #tpu.memory_space<any>>) target(%arg22 : memref<1x128xf32, #tpu.memory_space<vmem>>) target_semaphore(%39 : memref<!tpu.dma_semaphore, #tpu.memory_space<semaphore_mem>>)
    %c0 = arith.constant 0 : index
    %c0_27 = arith.constant 0 : index
    %40 = vector.load %arg0[%c0, %c0_27] : memref<8x128xf32, #tpu.memory_space<vmem>>, vector<8x128xf32>
    %c0_28 = arith.constant 0 : index
    %c0_29 = arith.constant 0 : index
    %41 = vector.load %arg1[%c0_28, %c0_29] : memref<128x512xf32, #tpu.memory_space<vmem>>, vector<128x512xf32>
    %cst = arith.constant dense<0.000000e+00> : vector<8x512xf32>
    %42 = tpu.matmul %40, %41, %cst {dimension_numbers = #tpu.dot_dimension_numbers<[1], [0], [0], [1], [0, 0, 1, 1], [], []>} : vector<8x128xf32>, vector<128x512xf32>, vector<8x512xf32> -> vector<8x512xf32>
    %c0_30 = arith.constant 0 : index
    %c0_31 = arith.constant 0 : index
    %43 = vector.load %arg3[%c0_30, %c0_31] : memref<1x512xf32, #tpu.memory_space<vmem>>, vector<1x512xf32>
    %44 = vector.broadcast %43 : vector<1x512xf32> to vector<8x512xf32>
    %45 = arith.addf %42, %44 : vector<8x512xf32>
    %cst_32 = arith.constant 0.000000e+00 : f32
    %46 = vector.broadcast %cst_32 : f32 to vector<1x128xf32>
    %cst_33 = arith.constant 0.000000e+00 : f32
    %47 = vector.broadcast %cst_33 : f32 to vector<1x128xf32>
    %48 = vector.extract_strided_slice %45 {offsets = [0, 0], sizes = [1, 512], strides = [1, 1]} : vector<8x512xf32> to vector<1x512xf32>
    %c0_34 = arith.constant 0 : index
    %c0_35 = arith.constant 0 : index
    %49 = vector.load %arg2[%c0_34, %c0_35] : memref<128x512xf32, #tpu.memory_space<vmem>>, vector<128x512xf32>
    %cst_36 = arith.constant dense<0.000000e+00> : vector<1x512xf32>
    %50 = tpu.matmul %46, %49, %cst_36 {dimension_numbers = #tpu.dot_dimension_numbers<[1], [0], [0], [1], [0, 0, 1, 1], [], []>} : vector<1x128xf32>, vector<128x512xf32>, vector<1x512xf32> -> vector<1x512xf32>
    %51 = arith.addf %48, %50 : vector<1x512xf32>
    %52 = vector.extract_strided_slice %51 {offsets = [0, 0], sizes = [1, 128], strides = [1, 1]} : vector<1x512xf32> to vector<1x128xf32>
    %cst_37 = arith.constant 5.000000e-01 : f32
    %53 = vector.broadcast %cst_37 : f32 to vector<1x128xf32>
    %54 = arith.mulf %53, %52 : vector<1x128xf32>
    %55 = math.tanh %54 : vector<1x128xf32>
    %cst_38 = arith.constant 5.000000e-01 : f32
    %56 = vector.broadcast %cst_38 : f32 to vector<1x128xf32>
    %57 = arith.mulf %56, %55 : vector<1x128xf32>
    %cst_39 = arith.constant 5.000000e-01 : f32
    %58 = vector.broadcast %cst_39 : f32 to vector<1x128xf32>
    %59 = arith.addf %57, %58 : vector<1x128xf32>
    %60 = vector.extract_strided_slice %51 {offsets = [0, 128], sizes = [1, 128], strides = [1, 1]} : vector<1x512xf32> to vector<1x128xf32>
    %cst_40 = arith.constant 5.000000e-01 : f32
    %61 = vector.broadcast %cst_40 : f32 to vector<1x128xf32>
    %62 = arith.mulf %61, %60 : vector<1x128xf32>
    %63 = math.tanh %62 : vector<1x128xf32>
    %cst_41 = arith.constant 5.000000e-01 : f32
    %64 = vector.broadcast %cst_41 : f32 to vector<1x128xf32>
    %65 = arith.mulf %64, %63 : vector<1x128xf32>
    %cst_42 = arith.constant 5.000000e-01 : f32
    %66 = vector.broadcast %cst_42 : f32 to vector<1x128xf32>
    %67 = arith.addf %65, %66 : vector<1x128xf32>
    %68 = vector.extract_strided_slice %51 {offsets = [0, 256], sizes = [1, 128], strides = [1, 1]} : vector<1x512xf32> to vector<1x128xf32>
    %69 = math.tanh %68 : vector<1x128xf32>
    %70 = vector.extract_strided_slice %51 {offsets = [0, 384], sizes = [1, 128], strides = [1, 1]} : vector<1x512xf32> to vector<1x128xf32>
    %cst_43 = arith.constant 5.000000e-01 : f32
    %71 = vector.broadcast %cst_43 : f32 to vector<1x128xf32>
    %72 = arith.mulf %71, %70 : vector<1x128xf32>
    %73 = math.tanh %72 : vector<1x128xf32>
    %cst_44 = arith.constant 5.000000e-01 : f32
    %74 = vector.broadcast %cst_44 : f32 to vector<1x128xf32>
    %75 = arith.mulf %74, %73 : vector<1x128xf32>
    %cst_45 = arith.constant 5.000000e-01 : f32
    %76 = vector.broadcast %cst_45 : f32 to vector<1x128xf32>
    %77 = arith.addf %75, %76 : vector<1x128xf32>
    %78 = arith.mulf %67, %47 : vector<1x128xf32>
    %79 = arith.mulf %59, %69 : vector<1x128xf32>
    %80 = arith.addf %78, %79 : vector<1x128xf32>
    %81 = math.tanh %80 : vector<1x128xf32>
    %82 = arith.mulf %77, %81 : vector<1x128xf32>
    %c0_46 = arith.constant 0 : index
    %c0_47 = arith.constant 0 : index
    %83 = vector.load %arg16[%c0_46, %c0_47] : memref<8x128xf32, #tpu.memory_space<vmem>>, vector<1x128xf32>
    tpu.vector_store %arg16[%c0_46, %c0_47], %82 {strides = array<i32>} : memref<8x128xf32, #tpu.memory_space<vmem>>, vector<1x128xf32>,
    %84 = vector.extract_strided_slice %45 {offsets = [1, 0], sizes = [1, 512], strides = [1, 1]} : vector<8x512xf32> to vector<1x512xf32>
    %c0_48 = arith.constant 0 : index
    %c0_49 = arith.constant 0 : index
    %85 = vector.load %arg2[%c0_48, %c0_49] : memref<128x512xf32, #tpu.memory_space<vmem>>, vector<128x512xf32>
    %cst_50 = arith.constant dense<0.000000e+00> : vector<1x512xf32>
    %86 = tpu.matmul %82, %85, %cst_50 {dimension_numbers = #tpu.dot_dimension_numbers<[1], [0], [0], [1], [0, 0, 1, 1], [], []>} : vector<1x128xf32>, vector<128x512xf32>, vector<1x512xf32> -> vector<1x512xf32>
    %87 = arith.addf %84, %86 : vector<1x512xf32>
    %88 = vector.extract_strided_slice %87 {offsets = [0, 0], sizes = [1, 128], strides = [1, 1]} : vector<1x512xf32> to vector<1x128xf32>
    %cst_51 = arith.constant 5.000000e-01 : f32
    %89 = vector.broadcast %cst_51 : f32 to vector<1x128xf32>
    %90 = arith.mulf %89, %88 : vector<1x128xf32>
    %91 = math.tanh %90 : vector<1x128xf32>
    %cst_52 = arith.constant 5.000000e-01 : f32
    %92 = vector.broadcast %cst_52 : f32 to vector<1x128xf32>
    %93 = arith.mulf %92, %91 : vector<1x128xf32>
    %cst_53 = arith.constant 5.000000e-01 : f32
    %94 = vector.broadcast %cst_53 : f32 to vector<1x128xf32>
    %95 = arith.addf %93, %94 : vector<1x128xf32>
    %96 = vector.extract_strided_slice %87 {offsets = [0, 128], sizes = [1, 128], strides = [1, 1]} : vector<1x512xf32> to vector<1x128xf32>
    %cst_54 = arith.constant 5.000000e-01 : f32
    %97 = vector.broadcast %cst_54 : f32 to vector<1x128xf32>
    %98 = arith.mulf %97, %96 : vector<1x128xf32>
    %99 = math.tanh %98 : vector<1x128xf32>
    %cst_55 = arith.constant 5.000000e-01 : f32
    %100 = vector.broadcast %cst_55 : f32 to vector<1x128xf32>
    %101 = arith.mulf %100, %99 : vector<1x128xf32>
    %cst_56 = arith.constant 5.000000e-01 : f32
    %102 = vector.broadcast %cst_56 : f32 to vector<1x128xf32>
    %103 = arith.addf %101, %102 : vector<1x128xf32>
    %104 = vector.extract_strided_slice %87 {offsets = [0, 256], sizes = [1, 128], strides = [1, 1]} : vector<1x512xf32> to vector<1x128xf32>
    %105 = math.tanh %104 : vector<1x128xf32>
    %106 = vector.extract_strided_slice %87 {offsets = [0, 384], sizes = [1, 128], strides = [1, 1]} : vector<1x512xf32> to vector<1x128xf32>
    %cst_57 = arith.constant 5.000000e-01 : f32
    %107 = vector.broadcast %cst_57 : f32 to vector<1x128xf32>
    %108 = arith.mulf %107, %106 : vector<1x128xf32>
    %109 = math.tanh %108 : vector<1x128xf32>
    %cst_58 = arith.constant 5.000000e-01 : f32
    %110 = vector.broadcast %cst_58 : f32 to vector<1x128xf32>
    %111 = arith.mulf %110, %109 : vector<1x128xf32>
    %cst_59 = arith.constant 5.000000e-01 : f32
    %112 = vector.broadcast %cst_59 : f32 to vector<1x128xf32>
    %113 = arith.addf %111, %112 : vector<1x128xf32>
    %114 = arith.mulf %103, %80 : vector<1x128xf32>
    %115 = arith.mulf %95, %105 : vector<1x128xf32>
    %116 = arith.addf %114, %115 : vector<1x128xf32>
    %117 = math.tanh %116 : vector<1x128xf32>
    %118 = arith.mulf %113, %117 : vector<1x128xf32>
    %c1 = arith.constant 1 : index
    %c0_60 = arith.constant 0 : index
    %119 = vector.load %arg16[%c1, %c0_60] : memref<8x128xf32, #tpu.memory_space<vmem>>, vector<1x128xf32>
    tpu.vector_store %arg16[%c1, %c0_60], %118 {strides = array<i32>} : memref<8x128xf32, #tpu.memory_space<vmem>>, vector<1x128xf32>,
    %120 = vector.extract_strided_slice %45 {offsets = [2, 0], sizes = [1, 512], strides = [1, 1]} : vector<8x512xf32> to vector<1x512xf32>
    %c0_61 = arith.constant 0 : index
    %c0_62 = arith.constant 0 : index
    %121 = vector.load %arg2[%c0_61, %c0_62] : memref<128x512xf32, #tpu.memory_space<vmem>>, vector<128x512xf32>
    %cst_63 = arith.constant dense<0.000000e+00> : vector<1x512xf32>
    %122 = tpu.matmul %118, %121, %cst_63 {dimension_numbers = #tpu.dot_dimension_numbers<[1], [0], [0], [1], [0, 0, 1, 1], [], []>} : vector<1x128xf32>, vector<128x512xf32>, vector<1x512xf32> -> vector<1x512xf32>
    %123 = arith.addf %120, %122 : vector<1x512xf32>
    %124 = vector.extract_strided_slice %123 {offsets = [0, 0], sizes = [1, 128], strides = [1, 1]} : vector<1x512xf32> to vector<1x128xf32>
    %cst_64 = arith.constant 5.000000e-01 : f32
    %125 = vector.broadcast %cst_64 : f32 to vector<1x128xf32>
    %126 = arith.mulf %125, %124 : vector<1x128xf32>
    %127 = math.tanh %126 : vector<1x128xf32>
    %cst_65 = arith.constant 5.000000e-01 : f32
    %128 = vector.broadcast %cst_65 : f32 to vector<1x128xf32>
    %129 = arith.mulf %128, %127 : vector<1x128xf32>
    %cst_66 = arith.constant 5.000000e-01 : f32
    %130 = vector.broadcast %cst_66 : f32 to vector<1x128xf32>
    %131 = arith.addf %129, %130 : vector<1x128xf32>
    %132 = vector.extract_strided_slice %123 {offsets = [0, 128], sizes = [1, 128], strides = [1, 1]} : vector<1x512xf32> to vector<1x128xf32>
    %cst_67 = arith.constant 5.000000e-01 : f32
    %133 = vector.broadcast %cst_67 : f32 to vector<1x128xf32>
    %134 = arith.mulf %133, %132 : vector<1x128xf32>
    %135 = math.tanh %134 : vector<1x128xf32>
    %cst_68 = arith.constant 5.000000e-01 : f32
    %136 = vector.broadcast %cst_68 : f32 to vector<1x128xf32>
    %137 = arith.mulf %136, %135 : vector<1x128xf32>
    %cst_69 = arith.constant 5.000000e-01 : f32
    %138 = vector.broadcast %cst_69 : f32 to vector<1x128xf32>
    %139 = arith.addf %137, %138 : vector<1x128xf32>
    %140 = vector.extract_strided_slice %123 {offsets = [0, 256], sizes = [1, 128], strides = [1, 1]} : vector<1x512xf32> to vector<1x128xf32>
    %141 = math.tanh %140 : vector<1x128xf32>
    %142 = vector.extract_strided_slice %123 {offsets = [0, 384], sizes = [1, 128], strides = [1, 1]} : vector<1x512xf32> to vector<1x128xf32>
    %cst_70 = arith.constant 5.000000e-01 : f32
    %143 = vector.broadcast %cst_70 : f32 to vector<1x128xf32>
    %144 = arith.mulf %143, %142 : vector<1x128xf32>
    %145 = math.tanh %144 : vector<1x128xf32>
    %cst_71 = arith.constant 5.000000e-01 : f32
    %146 = vector.broadcast %cst_71 : f32 to vector<1x128xf32>
    %147 = arith.mulf %146, %145 : vector<1x128xf32>
    %cst_72 = arith.constant 5.000000e-01 : f32
    %148 = vector.broadcast %cst_72 : f32 to vector<1x128xf32>
    %149 = arith.addf %147, %148 : vector<1x128xf32>
    %150 = arith.mulf %139, %116 : vector<1x128xf32>
    %151 = arith.mulf %131, %141 : vector<1x128xf32>
    %152 = arith.addf %150, %151 : vector<1x128xf32>
    %153 = math.tanh %152 : vector<1x128xf32>
    %154 = arith.mulf %149, %153 : vector<1x128xf32>
    %c2 = arith.constant 2 : index
    %c0_73 = arith.constant 0 : index
    %155 = vector.load %arg16[%c2, %c0_73] : memref<8x128xf32, #tpu.memory_space<vmem>>, vector<1x128xf32>
    tpu.vector_store %arg16[%c2, %c0_73], %154 {strides = array<i32>} : memref<8x128xf32, #tpu.memory_space<vmem>>, vector<1x128xf32>,
    %156 = vector.extract_strided_slice %45 {offsets = [3, 0], sizes = [1, 512], strides = [1, 1]} : vector<8x512xf32> to vector<1x512xf32>
    %c0_74 = arith.constant 0 : index
    %c0_75 = arith.constant 0 : index
    %157 = vector.load %arg2[%c0_74, %c0_75] : memref<128x512xf32, #tpu.memory_space<vmem>>, vector<128x512xf32>
    %cst_76 = arith.constant dense<0.000000e+00> : vector<1x512xf32>
    %158 = tpu.matmul %154, %157, %cst_76 {dimension_numbers = #tpu.dot_dimension_numbers<[1], [0], [0], [1], [0, 0, 1, 1], [], []>} : vector<1x128xf32>, vector<128x512xf32>, vector<1x512xf32> -> vector<1x512xf32>
    %159 = arith.addf %156, %158 : vector<1x512xf32>
    %160 = vector.extract_strided_slice %159 {offsets = [0, 0], sizes = [1, 128], strides = [1, 1]} : vector<1x512xf32> to vector<1x128xf32>
    %cst_77 = arith.constant 5.000000e-01 : f32
    %161 = vector.broadcast %cst_77 : f32 to vector<1x128xf32>
    %162 = arith.mulf %161, %160 : vector<1x128xf32>
    %163 = math.tanh %162 : vector<1x128xf32>
    %cst_78 = arith.constant 5.000000e-01 : f32
    %164 = vector.broadcast %cst_78 : f32 to vector<1x128xf32>
    %165 = arith.mulf %164, %163 : vector<1x128xf32>
    %cst_79 = arith.constant 5.000000e-01 : f32
    %166 = vector.broadcast %cst_79 : f32 to vector<1x128xf32>
    %167 = arith.addf %165, %166 : vector<1x128xf32>
    %168 = vector.extract_strided_slice %159 {offsets = [0, 128], sizes = [1, 128], strides = [1, 1]} : vector<1x512xf32> to vector<1x128xf32>
    %cst_80 = arith.constant 5.000000e-01 : f32
    %169 = vector.broadcast %cst_80 : f32 to vector<1x128xf32>
    %170 = arith.mulf %169, %168 : vector<1x128xf32>
    %171 = math.tanh %170 : vector<1x128xf32>
    %cst_81 = arith.constant 5.000000e-01 : f32
    %172 = vector.broadcast %cst_81 : f32 to vector<1x128xf32>
    %173 = arith.mulf %172, %171 : vector<1x128xf32>
    %cst_82 = arith.constant 5.000000e-01 : f32
    %174 = vector.broadcast %cst_82 : f32 to vector<1x128xf32>
    %175 = arith.addf %173, %174 : vector<1x128xf32>
    %176 = vector.extract_strided_slice %159 {offsets = [0, 256], sizes = [1, 128], strides = [1, 1]} : vector<1x512xf32> to vector<1x128xf32>
    %177 = math.tanh %176 : vector<1x128xf32>
    %178 = vector.extract_strided_slice %159 {offsets = [0, 384], sizes = [1, 128], strides = [1, 1]} : vector<1x512xf32> to vector<1x128xf32>
    %cst_83 = arith.constant 5.000000e-01 : f32
    %179 = vector.broadcast %cst_83 : f32 to vector<1x128xf32>
    %180 = arith.mulf %179, %178 : vector<1x128xf32>
    %181 = math.tanh %180 : vector<1x128xf32>
    %cst_84 = arith.constant 5.000000e-01 : f32
    %182 = vector.broadcast %cst_84 : f32 to vector<1x128xf32>
    %183 = arith.mulf %182, %181 : vector<1x128xf32>
    %cst_85 = arith.constant 5.000000e-01 : f32
    %184 = vector.broadcast %cst_85 : f32 to vector<1x128xf32>
    %185 = arith.addf %183, %184 : vector<1x128xf32>
    %186 = arith.mulf %175, %152 : vector<1x128xf32>
    %187 = arith.mulf %167, %177 : vector<1x128xf32>
    %188 = arith.addf %186, %187 : vector<1x128xf32>
    %189 = math.tanh %188 : vector<1x128xf32>
    %190 = arith.mulf %185, %189 : vector<1x128xf32>
    %c3 = arith.constant 3 : index
    %c0_86 = arith.constant 0 : index
    %191 = vector.load %arg16[%c3, %c0_86] : memref<8x128xf32, #tpu.memory_space<vmem>>, vector<1x128xf32>
    tpu.vector_store %arg16[%c3, %c0_86], %190 {strides = array<i32>} : memref<8x128xf32, #tpu.memory_space<vmem>>, vector<1x128xf32>,
    %192 = vector.extract_strided_slice %45 {offsets = [4, 0], sizes = [1, 512], strides = [1, 1]} : vector<8x512xf32> to vector<1x512xf32>
    %c0_87 = arith.constant 0 : index
    %c0_88 = arith.constant 0 : index
    %193 = vector.load %arg2[%c0_87, %c0_88] : memref<128x512xf32, #tpu.memory_space<vmem>>, vector<128x512xf32>
    %cst_89 = arith.constant dense<0.000000e+00> : vector<1x512xf32>
    %194 = tpu.matmul %190, %193, %cst_89 {dimension_numbers = #tpu.dot_dimension_numbers<[1], [0], [0], [1], [0, 0, 1, 1], [], []>} : vector<1x128xf32>, vector<128x512xf32>, vector<1x512xf32> -> vector<1x512xf32>
    %195 = arith.addf %192, %194 : vector<1x512xf32>
    %196 = vector.extract_strided_slice %195 {offsets = [0, 0], sizes = [1, 128], strides = [1, 1]} : vector<1x512xf32> to vector<1x128xf32>
    %cst_90 = arith.constant 5.000000e-01 : f32
    %197 = vector.broadcast %cst_90 : f32 to vector<1x128xf32>
    %198 = arith.mulf %197, %196 : vector<1x128xf32>
    %199 = math.tanh %198 : vector<1x128xf32>
    %cst_91 = arith.constant 5.000000e-01 : f32
    %200 = vector.broadcast %cst_91 : f32 to vector<1x128xf32>
    %201 = arith.mulf %200, %199 : vector<1x128xf32>
    %cst_92 = arith.constant 5.000000e-01 : f32
    %202 = vector.broadcast %cst_92 : f32 to vector<1x128xf32>
    %203 = arith.addf %201, %202 : vector<1x128xf32>
    %204 = vector.extract_strided_slice %195 {offsets = [0, 128], sizes = [1, 128], strides = [1, 1]} : vector<1x512xf32> to vector<1x128xf32>
    %cst_93 = arith.constant 5.000000e-01 : f32
    %205 = vector.broadcast %cst_93 : f32 to vector<1x128xf32>
    %206 = arith.mulf %205, %204 : vector<1x128xf32>
    %207 = math.tanh %206 : vector<1x128xf32>
    %cst_94 = arith.constant 5.000000e-01 : f32
    %208 = vector.broadcast %cst_94 : f32 to vector<1x128xf32>
    %209 = arith.mulf %208, %207 : vector<1x128xf32>
    %cst_95 = arith.constant 5.000000e-01 : f32
    %210 = vector.broadcast %cst_95 : f32 to vector<1x128xf32>
    %211 = arith.addf %209, %210 : vector<1x128xf32>
    %212 = vector.extract_strided_slice %195 {offsets = [0, 256], sizes = [1, 128], strides = [1, 1]} : vector<1x512xf32> to vector<1x128xf32>
    %213 = math.tanh %212 : vector<1x128xf32>
    %214 = vector.extract_strided_slice %195 {offsets = [0, 384], sizes = [1, 128], strides = [1, 1]} : vector<1x512xf32> to vector<1x128xf32>
    %cst_96 = arith.constant 5.000000e-01 : f32
    %215 = vector.broadcast %cst_96 : f32 to vector<1x128xf32>
    %216 = arith.mulf %215, %214 : vector<1x128xf32>
    %217 = math.tanh %216 : vector<1x128xf32>
    %cst_97 = arith.constant 5.000000e-01 : f32
    %218 = vector.broadcast %cst_97 : f32 to vector<1x128xf32>
    %219 = arith.mulf %218, %217 : vector<1x128xf32>
    %cst_98 = arith.constant 5.000000e-01 : f32
    %220 = vector.broadcast %cst_98 : f32 to vector<1x128xf32>
    %221 = arith.addf %219, %220 : vector<1x128xf32>
    %222 = arith.mulf %211, %188 : vector<1x128xf32>
    %223 = arith.mulf %203, %213 : vector<1x128xf32>
    %224 = arith.addf %222, %223 : vector<1x128xf32>
    %225 = math.tanh %224 : vector<1x128xf32>
    %226 = arith.mulf %221, %225 : vector<1x128xf32>
    %c4 = arith.constant 4 : index
    %c0_99 = arith.constant 0 : index
    %227 = vector.load %arg16[%c4, %c0_99] : memref<8x128xf32, #tpu.memory_space<vmem>>, vector<1x128xf32>
    tpu.vector_store %arg16[%c4, %c0_99], %226 {strides = array<i32>} : memref<8x128xf32, #tpu.memory_space<vmem>>, vector<1x128xf32>,
    %228 = vector.extract_strided_slice %45 {offsets = [5, 0], sizes = [1, 512], strides = [1, 1]} : vector<8x512xf32> to vector<1x512xf32>
    %c0_100 = arith.constant 0 : index
    %c0_101 = arith.constant 0 : index
    %229 = vector.load %arg2[%c0_100, %c0_101] : memref<128x512xf32, #tpu.memory_space<vmem>>, vector<128x512xf32>
    %cst_102 = arith.constant dense<0.000000e+00> : vector<1x512xf32>
    %230 = tpu.matmul %226, %229, %cst_102 {dimension_numbers = #tpu.dot_dimension_numbers<[1], [0], [0], [1], [0, 0, 1, 1], [], []>} : vector<1x128xf32>, vector<128x512xf32>, vector<1x512xf32> -> vector<1x512xf32>
    %231 = arith.addf %228, %230 : vector<1x512xf32>
    %232 = vector.extract_strided_slice %231 {offsets = [0, 0], sizes = [1, 128], strides = [1, 1]} : vector<1x512xf32> to vector<1x128xf32>
    %cst_103 = arith.constant 5.000000e-01 : f32
    %233 = vector.broadcast %cst_103 : f32 to vector<1x128xf32>
    %234 = arith.mulf %233, %232 : vector<1x128xf32>
    %235 = math.tanh %234 : vector<1x128xf32>
    %cst_104 = arith.constant 5.000000e-01 : f32
    %236 = vector.broadcast %cst_104 : f32 to vector<1x128xf32>
    %237 = arith.mulf %236, %235 : vector<1x128xf32>
    %cst_105 = arith.constant 5.000000e-01 : f32
    %238 = vector.broadcast %cst_105 : f32 to vector<1x128xf32>
    %239 = arith.addf %237, %238 : vector<1x128xf32>
    %240 = vector.extract_strided_slice %231 {offsets = [0, 128], sizes = [1, 128], strides = [1, 1]} : vector<1x512xf32> to vector<1x128xf32>
    %cst_106 = arith.constant 5.000000e-01 : f32
    %241 = vector.broadcast %cst_106 : f32 to vector<1x128xf32>
    %242 = arith.mulf %241, %240 : vector<1x128xf32>
    %243 = math.tanh %242 : vector<1x128xf32>
    %cst_107 = arith.constant 5.000000e-01 : f32
    %244 = vector.broadcast %cst_107 : f32 to vector<1x128xf32>
    %245 = arith.mulf %244, %243 : vector<1x128xf32>
    %cst_108 = arith.constant 5.000000e-01 : f32
    %246 = vector.broadcast %cst_108 : f32 to vector<1x128xf32>
    %247 = arith.addf %245, %246 : vector<1x128xf32>
    %248 = vector.extract_strided_slice %231 {offsets = [0, 256], sizes = [1, 128], strides = [1, 1]} : vector<1x512xf32> to vector<1x128xf32>
    %249 = math.tanh %248 : vector<1x128xf32>
    %250 = vector.extract_strided_slice %231 {offsets = [0, 384], sizes = [1, 128], strides = [1, 1]} : vector<1x512xf32> to vector<1x128xf32>
    %cst_109 = arith.constant 5.000000e-01 : f32
    %251 = vector.broadcast %cst_109 : f32 to vector<1x128xf32>
    %252 = arith.mulf %251, %250 : vector<1x128xf32>
    %253 = math.tanh %252 : vector<1x128xf32>
    %cst_110 = arith.constant 5.000000e-01 : f32
    %254 = vector.broadcast %cst_110 : f32 to vector<1x128xf32>
    %255 = arith.mulf %254, %253 : vector<1x128xf32>
    %cst_111 = arith.constant 5.000000e-01 : f32
    %256 = vector.broadcast %cst_111 : f32 to vector<1x128xf32>
    %257 = arith.addf %255, %256 : vector<1x128xf32>
    %258 = arith.mulf %247, %224 : vector<1x128xf32>
    %259 = arith.mulf %239, %249 : vector<1x128xf32>
    %260 = arith.addf %258, %259 : vector<1x128xf32>
    %261 = math.tanh %260 : vector<1x128xf32>
    %262 = arith.mulf %257, %261 : vector<1x128xf32>
    %c5 = arith.constant 5 : index
    %c0_112 = arith.constant 0 : index
    %263 = vector.load %arg16[%c5, %c0_112] : memref<8x128xf32, #tpu.memory_space<vmem>>, vector<1x128xf32>
    tpu.vector_store %arg16[%c5, %c0_112], %262 {strides = array<i32>} : memref<8x128xf32, #tpu.memory_space<vmem>>, vector<1x128xf32>,
    %264 = vector.extract_strided_slice %45 {offsets = [6, 0], sizes = [1, 512], strides = [1, 1]} : vector<8x512xf32> to vector<1x512xf32>
    %c0_113 = arith.constant 0 : index
    %c0_114 = arith.constant 0 : index
    %265 = vector.load %arg2[%c0_113, %c0_114] : memref<128x512xf32, #tpu.memory_space<vmem>>, vector<128x512xf32>
    %cst_115 = arith.constant dense<0.000000e+00> : vector<1x512xf32>
    %266 = tpu.matmul %262, %265, %cst_115 {dimension_numbers = #tpu.dot_dimension_numbers<[1], [0], [0], [1], [0, 0, 1, 1], [], []>} : vector<1x128xf32>, vector<128x512xf32>, vector<1x512xf32> -> vector<1x512xf32>
    %267 = arith.addf %264, %266 : vector<1x512xf32>
    %268 = vector.extract_strided_slice %267 {offsets = [0, 0], sizes = [1, 128], strides = [1, 1]} : vector<1x512xf32> to vector<1x128xf32>
    %cst_116 = arith.constant 5.000000e-01 : f32
    %269 = vector.broadcast %cst_116 : f32 to vector<1x128xf32>
    %270 = arith.mulf %269, %268 : vector<1x128xf32>
    %271 = math.tanh %270 : vector<1x128xf32>
    %cst_117 = arith.constant 5.000000e-01 : f32
    %272 = vector.broadcast %cst_117 : f32 to vector<1x128xf32>
    %273 = arith.mulf %272, %271 : vector<1x128xf32>
    %cst_118 = arith.constant 5.000000e-01 : f32
    %274 = vector.broadcast %cst_118 : f32 to vector<1x128xf32>
    %275 = arith.addf %273, %274 : vector<1x128xf32>
    %276 = vector.extract_strided_slice %267 {offsets = [0, 128], sizes = [1, 128], strides = [1, 1]} : vector<1x512xf32> to vector<1x128xf32>
    %cst_119 = arith.constant 5.000000e-01 : f32
    %277 = vector.broadcast %cst_119 : f32 to vector<1x128xf32>
    %278 = arith.mulf %277, %276 : vector<1x128xf32>
    %279 = math.tanh %278 : vector<1x128xf32>
    %cst_120 = arith.constant 5.000000e-01 : f32
    %280 = vector.broadcast %cst_120 : f32 to vector<1x128xf32>
    %281 = arith.mulf %280, %279 : vector<1x128xf32>
    %cst_121 = arith.constant 5.000000e-01 : f32
    %282 = vector.broadcast %cst_121 : f32 to vector<1x128xf32>
    %283 = arith.addf %281, %282 : vector<1x128xf32>
    %284 = vector.extract_strided_slice %267 {offsets = [0, 256], sizes = [1, 128], strides = [1, 1]} : vector<1x512xf32> to vector<1x128xf32>
    %285 = math.tanh %284 : vector<1x128xf32>
    %286 = vector.extract_strided_slice %267 {offsets = [0, 384], sizes = [1, 128], strides = [1, 1]} : vector<1x512xf32> to vector<1x128xf32>
    %cst_122 = arith.constant 5.000000e-01 : f32
    %287 = vector.broadcast %cst_122 : f32 to vector<1x128xf32>
    %288 = arith.mulf %287, %286 : vector<1x128xf32>
    %289 = math.tanh %288 : vector<1x128xf32>
    %cst_123 = arith.constant 5.000000e-01 : f32
    %290 = vector.broadcast %cst_123 : f32 to vector<1x128xf32>
    %291 = arith.mulf %290, %289 : vector<1x128xf32>
    %cst_124 = arith.constant 5.000000e-01 : f32
    %292 = vector.broadcast %cst_124 : f32 to vector<1x128xf32>
    %293 = arith.addf %291, %292 : vector<1x128xf32>
    %294 = arith.mulf %283, %260 : vector<1x128xf32>
    %295 = arith.mulf %275, %285 : vector<1x128xf32>
    %296 = arith.addf %294, %295 : vector<1x128xf32>
    %297 = math.tanh %296 : vector<1x128xf32>
    %298 = arith.mulf %293, %297 : vector<1x128xf32>
    %c6 = arith.constant 6 : index
    %c0_125 = arith.constant 0 : index
    %299 = vector.load %arg16[%c6, %c0_125] : memref<8x128xf32, #tpu.memory_space<vmem>>, vector<1x128xf32>
    tpu.vector_store %arg16[%c6, %c0_125], %298 {strides = array<i32>} : memref<8x128xf32, #tpu.memory_space<vmem>>, vector<1x128xf32>,
    %300 = vector.extract_strided_slice %45 {offsets = [7, 0], sizes = [1, 512], strides = [1, 1]} : vector<8x512xf32> to vector<1x512xf32>
    %c0_126 = arith.constant 0 : index
    %c0_127 = arith.constant 0 : index
    %301 = vector.load %arg2[%c0_126, %c0_127] : memref<128x512xf32, #tpu.memory_space<vmem>>, vector<128x512xf32>
    %cst_128 = arith.constant dense<0.000000e+00> : vector<1x512xf32>
    %302 = tpu.matmul %298, %301, %cst_128 {dimension_numbers = #tpu.dot_dimension_numbers<[1], [0], [0], [1], [0, 0, 1, 1], [], []>} : vector<1x128xf32>, vector<128x512xf32>, vector<1x512xf32> -> vector<1x512xf32>
    %303 = arith.addf %300, %302 : vector<1x512xf32>
    %304 = vector.extract_strided_slice %303 {offsets = [0, 0], sizes = [1, 128], strides = [1, 1]} : vector<1x512xf32> to vector<1x128xf32>
    %cst_129 = arith.constant 5.000000e-01 : f32
    %305 = vector.broadcast %cst_129 : f32 to vector<1x128xf32>
    %306 = arith.mulf %305, %304 : vector<1x128xf32>
    %307 = math.tanh %306 : vector<1x128xf32>
    %cst_130 = arith.constant 5.000000e-01 : f32
    %308 = vector.broadcast %cst_130 : f32 to vector<1x128xf32>
    %309 = arith.mulf %308, %307 : vector<1x128xf32>
    %cst_131 = arith.constant 5.000000e-01 : f32
    %310 = vector.broadcast %cst_131 : f32 to vector<1x128xf32>
    %311 = arith.addf %309, %310 : vector<1x128xf32>
    %312 = vector.extract_strided_slice %303 {offsets = [0, 128], sizes = [1, 128], strides = [1, 1]} : vector<1x512xf32> to vector<1x128xf32>
    %cst_132 = arith.constant 5.000000e-01 : f32
    %313 = vector.broadcast %cst_132 : f32 to vector<1x128xf32>
    %314 = arith.mulf %313, %312 : vector<1x128xf32>
    %315 = math.tanh %314 : vector<1x128xf32>
    %cst_133 = arith.constant 5.000000e-01 : f32
    %316 = vector.broadcast %cst_133 : f32 to vector<1x128xf32>
    %317 = arith.mulf %316, %315 : vector<1x128xf32>
    %cst_134 = arith.constant 5.000000e-01 : f32
    %318 = vector.broadcast %cst_134 : f32 to vector<1x128xf32>
    %319 = arith.addf %317, %318 : vector<1x128xf32>
    %320 = vector.extract_strided_slice %303 {offsets = [0, 256], sizes = [1, 128], strides = [1, 1]} : vector<1x512xf32> to vector<1x128xf32>
    %321 = math.tanh %320 : vector<1x128xf32>
    %322 = vector.extract_strided_slice %303 {offsets = [0, 384], sizes = [1, 128], strides = [1, 1]} : vector<1x512xf32> to vector<1x128xf32>
    %cst_135 = arith.constant 5.000000e-01 : f32
    %323 = vector.broadcast %cst_135 : f32 to vector<1x128xf32>
    %324 = arith.mulf %323, %322 : vector<1x128xf32>
    %325 = math.tanh %324 : vector<1x128xf32>
    %cst_136 = arith.constant 5.000000e-01 : f32
    %326 = vector.broadcast %cst_136 : f32 to vector<1x128xf32>
    %327 = arith.mulf %326, %325 : vector<1x128xf32>
    %cst_137 = arith.constant 5.000000e-01 : f32
    %328 = vector.broadcast %cst_137 : f32 to vector<1x128xf32>
    %329 = arith.addf %327, %328 : vector<1x128xf32>
    %330 = arith.mulf %319, %296 : vector<1x128xf32>
    %331 = arith.mulf %311, %321 : vector<1x128xf32>
    %332 = arith.addf %330, %331 : vector<1x128xf32>
    %333 = math.tanh %332 : vector<1x128xf32>
    %334 = arith.mulf %329, %333 : vector<1x128xf32>
    %c7 = arith.constant 7 : index
    %c0_138 = arith.constant 0 : index
    %335 = vector.load %arg16[%c7, %c0_138] : memref<8x128xf32, #tpu.memory_space<vmem>>, vector<1x128xf32>
    tpu.vector_store %arg16[%c7, %c0_138], %334 {strides = array<i32>} : memref<8x128xf32, #tpu.memory_space<vmem>>, vector<1x128xf32>,
    %c0_i32_139 = arith.constant 0 : i32
    %c0_i32_140 = arith.constant 0 : i32
    %c0_i32_141 = arith.constant 0 : i32
    %c0_i32_142 = arith.constant 0 : i32
    %336 = tpu.memref_slice %arg18[%c0_i32_139, %c0_i32_141, %c0_i32_142] : memref<3x128x512xf32, #tpu.memory_space<vmem>> -> memref<1x128x512xf32, #tpu.memory_space<vmem>>
    %337 = tpu.memref_squeeze %336 : memref<1x128x512xf32, #tpu.memory_space<vmem>> -> memref<128x512xf32, #tpu.memory_space<vmem>>
    %338 = tpu.memref_slice %arg23[%c0_i32_140] : memref<11x!tpu.dma_semaphore, #tpu.memory_space<semaphore_mem>> -> memref<1x!tpu.dma_semaphore, #tpu.memory_space<semaphore_mem>>
    %339 = tpu.memref_squeeze %338 : memref<1x!tpu.dma_semaphore, #tpu.memory_space<semaphore_mem>> -> memref<!tpu.dma_semaphore, #tpu.memory_space<semaphore_mem>>
    tpu.wait_dma2 semaphore(%339 : memref<!tpu.dma_semaphore, #tpu.memory_space<semaphore_mem>>) src(%arg4 : memref<128x512xf32, #tpu.memory_space<any>>) dst(%337 : memref<128x512xf32, #tpu.memory_space<vmem>>)
    %c0_i32_143 = arith.constant 0 : i32
    %c1_i32_144 = arith.constant 1 : i32
    %c0_i32_145 = arith.constant 0 : i32
    %c0_i32_146 = arith.constant 0 : i32
    %340 = tpu.memref_slice %arg19[%c0_i32_143, %c0_i32_145, %c0_i32_146] : memref<3x128x512xf32, #tpu.memory_space<vmem>> -> memref<1x128x512xf32, #tpu.memory_space<vmem>>
    %341 = tpu.memref_squeeze %340 : memref<1x128x512xf32, #tpu.memory_space<vmem>> -> memref<128x512xf32, #tpu.memory_space<vmem>>
    %342 = tpu.memref_slice %arg23[%c1_i32_144] : memref<11x!tpu.dma_semaphore, #tpu.memory_space<semaphore_mem>> -> memref<1x!tpu.dma_semaphore, #tpu.memory_space<semaphore_mem>>
    %343 = tpu.memref_squeeze %342 : memref<1x!tpu.dma_semaphore, #tpu.memory_space<semaphore_mem>> -> memref<!tpu.dma_semaphore, #tpu.memory_space<semaphore_mem>>
    tpu.wait_dma2 semaphore(%343 : memref<!tpu.dma_semaphore, #tpu.memory_space<semaphore_mem>>) src(%arg5 : memref<128x512xf32, #tpu.memory_space<any>>) dst(%341 : memref<128x512xf32, #tpu.memory_space<vmem>>)
    %c0_i32_147 = arith.constant 0 : i32
    %c2_i32_148 = arith.constant 2 : i32
    %c0_i32_149 = arith.constant 0 : i32
    %c0_i32_150 = arith.constant 0 : i32
    %344 = tpu.memref_slice %arg20[%c0_i32_147, %c0_i32_149, %c0_i32_150] : memref<3x1x512xf32, #tpu.memory_space<vmem>> -> memref<1x1x512xf32, #tpu.memory_space<vmem>>
    %345 = tpu.memref_squeeze %344 : memref<1x1x512xf32, #tpu.memory_space<vmem>> -> memref<1x512xf32, #tpu.memory_space<vmem>>
    %346 = tpu.memref_slice %arg23[%c2_i32_148] : memref<11x!tpu.dma_semaphore, #tpu.memory_space<semaphore_mem>> -> memref<1x!tpu.dma_semaphore, #tpu.memory_space<semaphore_mem>>
    %347 = tpu.memref_squeeze %346 : memref<1x!tpu.dma_semaphore, #tpu.memory_space<semaphore_mem>> -> memref<!tpu.dma_semaphore, #tpu.memory_space<semaphore_mem>>
    tpu.wait_dma2 semaphore(%347 : memref<!tpu.dma_semaphore, #tpu.memory_space<semaphore_mem>>) src(%arg6 : memref<1x512xf32, #tpu.memory_space<any>>) dst(%345 : memref<1x512xf32, #tpu.memory_space<vmem>>)
    %c0_151 = arith.constant 0 : index
    %c0_152 = arith.constant 0 : index
    %348 = vector.load %arg16[%c0_151, %c0_152] : memref<8x128xf32, #tpu.memory_space<vmem>>, vector<8x128xf32>
    %c0_153 = arith.constant 0 : index
    %c0_154 = arith.constant 0 : index
    %c0_155 = arith.constant 0 : index
    %349 = vector.load %arg18[%c0_153, %c0_154, %c0_155] : memref<3x128x512xf32, #tpu.memory_space<vmem>>, vector<1x128x512xf32>
    %350 = vector.shape_cast %349 : vector<1x128x512xf32> to vector<128x512xf32>
    %cst_156 = arith.constant dense<0.000000e+00> : vector<8x512xf32>
    %351 = tpu.matmul %348, %350, %cst_156 {dimension_numbers = #tpu.dot_dimension_numbers<[1], [0], [0], [1], [0, 0, 1, 1], [], []>} : vector<8x128xf32>, vector<128x512xf32>, vector<8x512xf32> -> vector<8x512xf32>
    %c0_157 = arith.constant 0 : index
    %c0_158 = arith.constant 0 : index
    %c0_159 = arith.constant 0 : index
    %352 = vector.load %arg20[%c0_157, %c0_158, %c0_159] : memref<3x1x512xf32, #tpu.memory_space<vmem>>, vector<1x1x512xf32>
    %353 = vector.shape_cast %352 : vector<1x1x512xf32> to vector<1x512xf32>
    %354 = vector.broadcast %353 : vector<1x512xf32> to vector<8x512xf32>
    %355 = arith.addf %351, %354 : vector<8x512xf32>
    %cst_160 = arith.constant 0.000000e+00 : f32
    %356 = vector.broadcast %cst_160 : f32 to vector<1x128xf32>
    %cst_161 = arith.constant 0.000000e+00 : f32
    %357 = vector.broadcast %cst_161 : f32 to vector<1x128xf32>
    %358 = vector.extract_strided_slice %355 {offsets = [0, 0], sizes = [1, 512], strides = [1, 1]} : vector<8x512xf32> to vector<1x512xf32>
    %c0_162 = arith.constant 0 : index
    %c0_163 = arith.constant 0 : index
    %c0_164 = arith.constant 0 : index
    %359 = vector.load %arg19[%c0_162, %c0_163, %c0_164] : memref<3x128x512xf32, #tpu.memory_space<vmem>>, vector<1x128x512xf32>
    %360 = vector.shape_cast %359 : vector<1x128x512xf32> to vector<128x512xf32>
    %cst_165 = arith.constant dense<0.000000e+00> : vector<1x512xf32>
    %361 = tpu.matmul %356, %360, %cst_165 {dimension_numbers = #tpu.dot_dimension_numbers<[1], [0], [0], [1], [0, 0, 1, 1], [], []>} : vector<1x128xf32>, vector<128x512xf32>, vector<1x512xf32> -> vector<1x512xf32>
    %362 = arith.addf %358, %361 : vector<1x512xf32>
    %363 = vector.extract_strided_slice %362 {offsets = [0, 0], sizes = [1, 128], strides = [1, 1]} : vector<1x512xf32> to vector<1x128xf32>
    %cst_166 = arith.constant 5.000000e-01 : f32
    %364 = vector.broadcast %cst_166 : f32 to vector<1x128xf32>
    %365 = arith.mulf %364, %363 : vector<1x128xf32>
    %366 = math.tanh %365 : vector<1x128xf32>
    %cst_167 = arith.constant 5.000000e-01 : f32
    %367 = vector.broadcast %cst_167 : f32 to vector<1x128xf32>
    %368 = arith.mulf %367, %366 : vector<1x128xf32>
    %cst_168 = arith.constant 5.000000e-01 : f32
    %369 = vector.broadcast %cst_168 : f32 to vector<1x128xf32>
    %370 = arith.addf %368, %369 : vector<1x128xf32>
    %371 = vector.extract_strided_slice %362 {offsets = [0, 128], sizes = [1, 128], strides = [1, 1]} : vector<1x512xf32> to vector<1x128xf32>
    %cst_169 = arith.constant 5.000000e-01 : f32
    %372 = vector.broadcast %cst_169 : f32 to vector<1x128xf32>
    %373 = arith.mulf %372, %371 : vector<1x128xf32>
    %374 = math.tanh %373 : vector<1x128xf32>
    %cst_170 = arith.constant 5.000000e-01 : f32
    %375 = vector.broadcast %cst_170 : f32 to vector<1x128xf32>
    %376 = arith.mulf %375, %374 : vector<1x128xf32>
    %cst_171 = arith.constant 5.000000e-01 : f32
    %377 = vector.broadcast %cst_171 : f32 to vector<1x128xf32>
    %378 = arith.addf %376, %377 : vector<1x128xf32>
    %379 = vector.extract_strided_slice %362 {offsets = [0, 256], sizes = [1, 128], strides = [1, 1]} : vector<1x512xf32> to vector<1x128xf32>
    %380 = math.tanh %379 : vector<1x128xf32>
    %381 = vector.extract_strided_slice %362 {offsets = [0, 384], sizes = [1, 128], strides = [1, 1]} : vector<1x512xf32> to vector<1x128xf32>
    %cst_172 = arith.constant 5.000000e-01 : f32
    %382 = vector.broadcast %cst_172 : f32 to vector<1x128xf32>
    %383 = arith.mulf %382, %381 : vector<1x128xf32>
    %384 = math.tanh %383 : vector<1x128xf32>
    %cst_173 = arith.constant 5.000000e-01 : f32
    %385 = vector.broadcast %cst_173 : f32 to vector<1x128xf32>
    %386 = arith.mulf %385, %384 : vector<1x128xf32>
    %cst_174 = arith.constant 5.000000e-01 : f32
    %387 = vector.broadcast %cst_174 : f32 to vector<1x128xf32>
    %388 = arith.addf %386, %387 : vector<1x128xf32>
    %389 = arith.mulf %378, %357 : vector<1x128xf32>
    %390 = arith.mulf %370, %380 : vector<1x128xf32>
    %391 = arith.addf %389, %390 : vector<1x128xf32>
    %392 = math.tanh %391 : vector<1x128xf32>
    %393 = arith.mulf %388, %392 : vector<1x128xf32>
    %394 = vector.extract_strided_slice %355 {offsets = [1, 0], sizes = [1, 512], strides = [1, 1]} : vector<8x512xf32> to vector<1x512xf32>
    %c0_175 = arith.constant 0 : index
    %c0_176 = arith.constant 0 : index
    %c0_177 = arith.constant 0 : index
    %395 = vector.load %arg19[%c0_175, %c0_176, %c0_177] : memref<3x128x512xf32, #tpu.memory_space<vmem>>, vector<1x128x512xf32>
    %396 = vector.shape_cast %395 : vector<1x128x512xf32> to vector<128x512xf32>
    %cst_178 = arith.constant dense<0.000000e+00> : vector<1x512xf32>
    %397 = tpu.matmul %393, %396, %cst_178 {dimension_numbers = #tpu.dot_dimension_numbers<[1], [0], [0], [1], [0, 0, 1, 1], [], []>} : vector<1x128xf32>, vector<128x512xf32>, vector<1x512xf32> -> vector<1x512xf32>
    %398 = arith.addf %394, %397 : vector<1x512xf32>
    %399 = vector.extract_strided_slice %398 {offsets = [0, 0], sizes = [1, 128], strides = [1, 1]} : vector<1x512xf32> to vector<1x128xf32>
    %cst_179 = arith.constant 5.000000e-01 : f32
    %400 = vector.broadcast %cst_179 : f32 to vector<1x128xf32>
    %401 = arith.mulf %400, %399 : vector<1x128xf32>
    %402 = math.tanh %401 : vector<1x128xf32>
    %cst_180 = arith.constant 5.000000e-01 : f32
    %403 = vector.broadcast %cst_180 : f32 to vector<1x128xf32>
    %404 = arith.mulf %403, %402 : vector<1x128xf32>
    %cst_181 = arith.constant 5.000000e-01 : f32
    %405 = vector.broadcast %cst_181 : f32 to vector<1x128xf32>
    %406 = arith.addf %404, %405 : vector<1x128xf32>
    %407 = vector.extract_strided_slice %398 {offsets = [0, 128], sizes = [1, 128], strides = [1, 1]} : vector<1x512xf32> to vector<1x128xf32>
    %cst_182 = arith.constant 5.000000e-01 : f32
    %408 = vector.broadcast %cst_182 : f32 to vector<1x128xf32>
    %409 = arith.mulf %408, %407 : vector<1x128xf32>
    %410 = math.tanh %409 : vector<1x128xf32>
    %cst_183 = arith.constant 5.000000e-01 : f32
    %411 = vector.broadcast %cst_183 : f32 to vector<1x128xf32>
    %412 = arith.mulf %411, %410 : vector<1x128xf32>
    %cst_184 = arith.constant 5.000000e-01 : f32
    %413 = vector.broadcast %cst_184 : f32 to vector<1x128xf32>
    %414 = arith.addf %412, %413 : vector<1x128xf32>
    %415 = vector.extract_strided_slice %398 {offsets = [0, 256], sizes = [1, 128], strides = [1, 1]} : vector<1x512xf32> to vector<1x128xf32>
    %416 = math.tanh %415 : vector<1x128xf32>
    %417 = vector.extract_strided_slice %398 {offsets = [0, 384], sizes = [1, 128], strides = [1, 1]} : vector<1x512xf32> to vector<1x128xf32>
    %cst_185 = arith.constant 5.000000e-01 : f32
    %418 = vector.broadcast %cst_185 : f32 to vector<1x128xf32>
    %419 = arith.mulf %418, %417 : vector<1x128xf32>
    %420 = math.tanh %419 : vector<1x128xf32>
    %cst_186 = arith.constant 5.000000e-01 : f32
    %421 = vector.broadcast %cst_186 : f32 to vector<1x128xf32>
    %422 = arith.mulf %421, %420 : vector<1x128xf32>
    %cst_187 = arith.constant 5.000000e-01 : f32
    %423 = vector.broadcast %cst_187 : f32 to vector<1x128xf32>
    %424 = arith.addf %422, %423 : vector<1x128xf32>
    %425 = arith.mulf %414, %391 : vector<1x128xf32>
    %426 = arith.mulf %406, %416 : vector<1x128xf32>
    %427 = arith.addf %425, %426 : vector<1x128xf32>
    %428 = math.tanh %427 : vector<1x128xf32>
    %429 = arith.mulf %424, %428 : vector<1x128xf32>
    %430 = vector.extract_strided_slice %355 {offsets = [2, 0], sizes = [1, 512], strides = [1, 1]} : vector<8x512xf32> to vector<1x512xf32>
    %c0_188 = arith.constant 0 : index
    %c0_189 = arith.constant 0 : index
    %c0_190 = arith.constant 0 : index
    %431 = vector.load %arg19[%c0_188, %c0_189, %c0_190] : memref<3x128x512xf32, #tpu.memory_space<vmem>>, vector<1x128x512xf32>
    %432 = vector.shape_cast %431 : vector<1x128x512xf32> to vector<128x512xf32>
    %cst_191 = arith.constant dense<0.000000e+00> : vector<1x512xf32>
    %433 = tpu.matmul %429, %432, %cst_191 {dimension_numbers = #tpu.dot_dimension_numbers<[1], [0], [0], [1], [0, 0, 1, 1], [], []>} : vector<1x128xf32>, vector<128x512xf32>, vector<1x512xf32> -> vector<1x512xf32>
    %434 = arith.addf %430, %433 : vector<1x512xf32>
    %435 = vector.extract_strided_slice %434 {offsets = [0, 0], sizes = [1, 128], strides = [1, 1]} : vector<1x512xf32> to vector<1x128xf32>
    %cst_192 = arith.constant 5.000000e-01 : f32
    %436 = vector.broadcast %cst_192 : f32 to vector<1x128xf32>
    %437 = arith.mulf %436, %435 : vector<1x128xf32>
    %438 = math.tanh %437 : vector<1x128xf32>
    %cst_193 = arith.constant 5.000000e-01 : f32
    %439 = vector.broadcast %cst_193 : f32 to vector<1x128xf32>
    %440 = arith.mulf %439, %438 : vector<1x128xf32>
    %cst_194 = arith.constant 5.000000e-01 : f32
    %441 = vector.broadcast %cst_194 : f32 to vector<1x128xf32>
    %442 = arith.addf %440, %441 : vector<1x128xf32>
    %443 = vector.extract_strided_slice %434 {offsets = [0, 128], sizes = [1, 128], strides = [1, 1]} : vector<1x512xf32> to vector<1x128xf32>
    %cst_195 = arith.constant 5.000000e-01 : f32
    %444 = vector.broadcast %cst_195 : f32 to vector<1x128xf32>
    %445 = arith.mulf %444, %443 : vector<1x128xf32>
    %446 = math.tanh %445 : vector<1x128xf32>
    %cst_196 = arith.constant 5.000000e-01 : f32
    %447 = vector.broadcast %cst_196 : f32 to vector<1x128xf32>
    %448 = arith.mulf %447, %446 : vector<1x128xf32>
    %cst_197 = arith.constant 5.000000e-01 : f32
    %449 = vector.broadcast %cst_197 : f32 to vector<1x128xf32>
    %450 = arith.addf %448, %449 : vector<1x128xf32>
    %451 = vector.extract_strided_slice %434 {offsets = [0, 256], sizes = [1, 128], strides = [1, 1]} : vector<1x512xf32> to vector<1x128xf32>
    %452 = math.tanh %451 : vector<1x128xf32>
    %453 = vector.extract_strided_slice %434 {offsets = [0, 384], sizes = [1, 128], strides = [1, 1]} : vector<1x512xf32> to vector<1x128xf32>
    %cst_198 = arith.constant 5.000000e-01 : f32
    %454 = vector.broadcast %cst_198 : f32 to vector<1x128xf32>
    %455 = arith.mulf %454, %453 : vector<1x128xf32>
    %456 = math.tanh %455 : vector<1x128xf32>
    %cst_199 = arith.constant 5.000000e-01 : f32
    %457 = vector.broadcast %cst_199 : f32 to vector<1x128xf32>
    %458 = arith.mulf %457, %456 : vector<1x128xf32>
    %cst_200 = arith.constant 5.000000e-01 : f32
    %459 = vector.broadcast %cst_200 : f32 to vector<1x128xf32>
    %460 = arith.addf %458, %459 : vector<1x128xf32>
    %461 = arith.mulf %450, %427 : vector<1x128xf32>
    %462 = arith.mulf %442, %452 : vector<1x128xf32>
    %463 = arith.addf %461, %462 : vector<1x128xf32>
    %464 = math.tanh %463 : vector<1x128xf32>
    %465 = arith.mulf %460, %464 : vector<1x128xf32>
    %466 = vector.extract_strided_slice %355 {offsets = [3, 0], sizes = [1, 512], strides = [1, 1]} : vector<8x512xf32> to vector<1x512xf32>
    %c0_201 = arith.constant 0 : index
    %c0_202 = arith.constant 0 : index
    %c0_203 = arith.constant 0 : index
    %467 = vector.load %arg19[%c0_201, %c0_202, %c0_203] : memref<3x128x512xf32, #tpu.memory_space<vmem>>, vector<1x128x512xf32>
    %468 = vector.shape_cast %467 : vector<1x128x512xf32> to vector<128x512xf32>
    %cst_204 = arith.constant dense<0.000000e+00> : vector<1x512xf32>
    %469 = tpu.matmul %465, %468, %cst_204 {dimension_numbers = #tpu.dot_dimension_numbers<[1], [0], [0], [1], [0, 0, 1, 1], [], []>} : vector<1x128xf32>, vector<128x512xf32>, vector<1x512xf32> -> vector<1x512xf32>
    %470 = arith.addf %466, %469 : vector<1x512xf32>
    %471 = vector.extract_strided_slice %470 {offsets = [0, 0], sizes = [1, 128], strides = [1, 1]} : vector<1x512xf32> to vector<1x128xf32>
    %cst_205 = arith.constant 5.000000e-01 : f32
    %472 = vector.broadcast %cst_205 : f32 to vector<1x128xf32>
    %473 = arith.mulf %472, %471 : vector<1x128xf32>
    %474 = math.tanh %473 : vector<1x128xf32>
    %cst_206 = arith.constant 5.000000e-01 : f32
    %475 = vector.broadcast %cst_206 : f32 to vector<1x128xf32>
    %476 = arith.mulf %475, %474 : vector<1x128xf32>
    %cst_207 = arith.constant 5.000000e-01 : f32
    %477 = vector.broadcast %cst_207 : f32 to vector<1x128xf32>
    %478 = arith.addf %476, %477 : vector<1x128xf32>
    %479 = vector.extract_strided_slice %470 {offsets = [0, 128], sizes = [1, 128], strides = [1, 1]} : vector<1x512xf32> to vector<1x128xf32>
    %cst_208 = arith.constant 5.000000e-01 : f32
    %480 = vector.broadcast %cst_208 : f32 to vector<1x128xf32>
    %481 = arith.mulf %480, %479 : vector<1x128xf32>
    %482 = math.tanh %481 : vector<1x128xf32>
    %cst_209 = arith.constant 5.000000e-01 : f32
    %483 = vector.broadcast %cst_209 : f32 to vector<1x128xf32>
    %484 = arith.mulf %483, %482 : vector<1x128xf32>
    %cst_210 = arith.constant 5.000000e-01 : f32
    %485 = vector.broadcast %cst_210 : f32 to vector<1x128xf32>
    %486 = arith.addf %484, %485 : vector<1x128xf32>
    %487 = vector.extract_strided_slice %470 {offsets = [0, 256], sizes = [1, 128], strides = [1, 1]} : vector<1x512xf32> to vector<1x128xf32>
    %488 = math.tanh %487 : vector<1x128xf32>
    %489 = vector.extract_strided_slice %470 {offsets = [0, 384], sizes = [1, 128], strides = [1, 1]} : vector<1x512xf32> to vector<1x128xf32>
    %cst_211 = arith.constant 5.000000e-01 : f32
    %490 = vector.broadcast %cst_211 : f32 to vector<1x128xf32>
    %491 = arith.mulf %490, %489 : vector<1x128xf32>
    %492 = math.tanh %491 : vector<1x128xf32>
    %cst_212 = arith.constant 5.000000e-01 : f32
    %493 = vector.broadcast %cst_212 : f32 to vector<1x128xf32>
    %494 = arith.mulf %493, %492 : vector<1x128xf32>
    %cst_213 = arith.constant 5.000000e-01 : f32
    %495 = vector.broadcast %cst_213 : f32 to vector<1x128xf32>
    %496 = arith.addf %494, %495 : vector<1x128xf32>
    %497 = arith.mulf %486, %463 : vector<1x128xf32>
    %498 = arith.mulf %478, %488 : vector<1x128xf32>
    %499 = arith.addf %497, %498 : vector<1x128xf32>
    %500 = math.tanh %499 : vector<1x128xf32>
    %501 = arith.mulf %496, %500 : vector<1x128xf32>
    %502 = vector.extract_strided_slice %355 {offsets = [4, 0], sizes = [1, 512], strides = [1, 1]} : vector<8x512xf32> to vector<1x512xf32>
    %c0_214 = arith.constant 0 : index
    %c0_215 = arith.constant 0 : index
    %c0_216 = arith.constant 0 : index
    %503 = vector.load %arg19[%c0_214, %c0_215, %c0_216] : memref<3x128x512xf32, #tpu.memory_space<vmem>>, vector<1x128x512xf32>
    %504 = vector.shape_cast %503 : vector<1x128x512xf32> to vector<128x512xf32>
    %cst_217 = arith.constant dense<0.000000e+00> : vector<1x512xf32>
    %505 = tpu.matmul %501, %504, %cst_217 {dimension_numbers = #tpu.dot_dimension_numbers<[1], [0], [0], [1], [0, 0, 1, 1], [], []>} : vector<1x128xf32>, vector<128x512xf32>, vector<1x512xf32> -> vector<1x512xf32>
    %506 = arith.addf %502, %505 : vector<1x512xf32>
    %507 = vector.extract_strided_slice %506 {offsets = [0, 0], sizes = [1, 128], strides = [1, 1]} : vector<1x512xf32> to vector<1x128xf32>
    %cst_218 = arith.constant 5.000000e-01 : f32
    %508 = vector.broadcast %cst_218 : f32 to vector<1x128xf32>
    %509 = arith.mulf %508, %507 : vector<1x128xf32>
    %510 = math.tanh %509 : vector<1x128xf32>
    %cst_219 = arith.constant 5.000000e-01 : f32
    %511 = vector.broadcast %cst_219 : f32 to vector<1x128xf32>
    %512 = arith.mulf %511, %510 : vector<1x128xf32>
    %cst_220 = arith.constant 5.000000e-01 : f32
    %513 = vector.broadcast %cst_220 : f32 to vector<1x128xf32>
    %514 = arith.addf %512, %513 : vector<1x128xf32>
    %515 = vector.extract_strided_slice %506 {offsets = [0, 128], sizes = [1, 128], strides = [1, 1]} : vector<1x512xf32> to vector<1x128xf32>
    %cst_221 = arith.constant 5.000000e-01 : f32
    %516 = vector.broadcast %cst_221 : f32 to vector<1x128xf32>
    %517 = arith.mulf %516, %515 : vector<1x128xf32>
    %518 = math.tanh %517 : vector<1x128xf32>
    %cst_222 = arith.constant 5.000000e-01 : f32
    %519 = vector.broadcast %cst_222 : f32 to vector<1x128xf32>
    %520 = arith.mulf %519, %518 : vector<1x128xf32>
    %cst_223 = arith.constant 5.000000e-01 : f32
    %521 = vector.broadcast %cst_223 : f32 to vector<1x128xf32>
    %522 = arith.addf %520, %521 : vector<1x128xf32>
    %523 = vector.extract_strided_slice %506 {offsets = [0, 256], sizes = [1, 128], strides = [1, 1]} : vector<1x512xf32> to vector<1x128xf32>
    %524 = math.tanh %523 : vector<1x128xf32>
    %525 = vector.extract_strided_slice %506 {offsets = [0, 384], sizes = [1, 128], strides = [1, 1]} : vector<1x512xf32> to vector<1x128xf32>
    %cst_224 = arith.constant 5.000000e-01 : f32
    %526 = vector.broadcast %cst_224 : f32 to vector<1x128xf32>
    %527 = arith.mulf %526, %525 : vector<1x128xf32>
    %528 = math.tanh %527 : vector<1x128xf32>
    %cst_225 = arith.constant 5.000000e-01 : f32
    %529 = vector.broadcast %cst_225 : f32 to vector<1x128xf32>
    %530 = arith.mulf %529, %528 : vector<1x128xf32>
    %cst_226 = arith.constant 5.000000e-01 : f32
    %531 = vector.broadcast %cst_226 : f32 to vector<1x128xf32>
    %532 = arith.addf %530, %531 : vector<1x128xf32>
    %533 = arith.mulf %522, %499 : vector<1x128xf32>
    %534 = arith.mulf %514, %524 : vector<1x128xf32>
    %535 = arith.addf %533, %534 : vector<1x128xf32>
    %536 = math.tanh %535 : vector<1x128xf32>
    %537 = arith.mulf %532, %536 : vector<1x128xf32>
    %538 = vector.extract_strided_slice %355 {offsets = [5, 0], sizes = [1, 512], strides = [1, 1]} : vector<8x512xf32> to vector<1x512xf32>
    %c0_227 = arith.constant 0 : index
    %c0_228 = arith.constant 0 : index
    %c0_229 = arith.constant 0 : index
    %539 = vector.load %arg19[%c0_227, %c0_228, %c0_229] : memref<3x128x512xf32, #tpu.memory_space<vmem>>, vector<1x128x512xf32>
    %540 = vector.shape_cast %539 : vector<1x128x512xf32> to vector<128x512xf32>
    %cst_230 = arith.constant dense<0.000000e+00> : vector<1x512xf32>
    %541 = tpu.matmul %537, %540, %cst_230 {dimension_numbers = #tpu.dot_dimension_numbers<[1], [0], [0], [1], [0, 0, 1, 1], [], []>} : vector<1x128xf32>, vector<128x512xf32>, vector<1x512xf32> -> vector<1x512xf32>
    %542 = arith.addf %538, %541 : vector<1x512xf32>
    %543 = vector.extract_strided_slice %542 {offsets = [0, 0], sizes = [1, 128], strides = [1, 1]} : vector<1x512xf32> to vector<1x128xf32>
    %cst_231 = arith.constant 5.000000e-01 : f32
    %544 = vector.broadcast %cst_231 : f32 to vector<1x128xf32>
    %545 = arith.mulf %544, %543 : vector<1x128xf32>
    %546 = math.tanh %545 : vector<1x128xf32>
    %cst_232 = arith.constant 5.000000e-01 : f32
    %547 = vector.broadcast %cst_232 : f32 to vector<1x128xf32>
    %548 = arith.mulf %547, %546 : vector<1x128xf32>
    %cst_233 = arith.constant 5.000000e-01 : f32
    %549 = vector.broadcast %cst_233 : f32 to vector<1x128xf32>
    %550 = arith.addf %548, %549 : vector<1x128xf32>
    %551 = vector.extract_strided_slice %542 {offsets = [0, 128], sizes = [1, 128], strides = [1, 1]} : vector<1x512xf32> to vector<1x128xf32>
    %cst_234 = arith.constant 5.000000e-01 : f32
    %552 = vector.broadcast %cst_234 : f32 to vector<1x128xf32>
    %553 = arith.mulf %552, %551 : vector<1x128xf32>
    %554 = math.tanh %553 : vector<1x128xf32>
    %cst_235 = arith.constant 5.000000e-01 : f32
    %555 = vector.broadcast %cst_235 : f32 to vector<1x128xf32>
    %556 = arith.mulf %555, %554 : vector<1x128xf32>
    %cst_236 = arith.constant 5.000000e-01 : f32
    %557 = vector.broadcast %cst_236 : f32 to vector<1x128xf32>
    %558 = arith.addf %556, %557 : vector<1x128xf32>
    %559 = vector.extract_strided_slice %542 {offsets = [0, 256], sizes = [1, 128], strides = [1, 1]} : vector<1x512xf32> to vector<1x128xf32>
    %560 = math.tanh %559 : vector<1x128xf32>
    %561 = vector.extract_strided_slice %542 {offsets = [0, 384], sizes = [1, 128], strides = [1, 1]} : vector<1x512xf32> to vector<1x128xf32>
    %cst_237 = arith.constant 5.000000e-01 : f32
    %562 = vector.broadcast %cst_237 : f32 to vector<1x128xf32>
    %563 = arith.mulf %562, %561 : vector<1x128xf32>
    %564 = math.tanh %563 : vector<1x128xf32>
    %cst_238 = arith.constant 5.000000e-01 : f32
    %565 = vector.broadcast %cst_238 : f32 to vector<1x128xf32>
    %566 = arith.mulf %565, %564 : vector<1x128xf32>
    %cst_239 = arith.constant 5.000000e-01 : f32
    %567 = vector.broadcast %cst_239 : f32 to vector<1x128xf32>
    %568 = arith.addf %566, %567 : vector<1x128xf32>
    %569 = arith.mulf %558, %535 : vector<1x128xf32>
    %570 = arith.mulf %550, %560 : vector<1x128xf32>
    %571 = arith.addf %569, %570 : vector<1x128xf32>
    %572 = math.tanh %571 : vector<1x128xf32>
    %573 = arith.mulf %568, %572 : vector<1x128xf32>
    %574 = vector.extract_strided_slice %355 {offsets = [6, 0], sizes = [1, 512], strides = [1, 1]} : vector<8x512xf32> to vector<1x512xf32>
    %c0_240 = arith.constant 0 : index
    %c0_241 = arith.constant 0 : index
    %c0_242 = arith.constant 0 : index
    %575 = vector.load %arg19[%c0_240, %c0_241, %c0_242] : memref<3x128x512xf32, #tpu.memory_space<vmem>>, vector<1x128x512xf32>
    %576 = vector.shape_cast %575 : vector<1x128x512xf32> to vector<128x512xf32>
    %cst_243 = arith.constant dense<0.000000e+00> : vector<1x512xf32>
    %577 = tpu.matmul %573, %576, %cst_243 {dimension_numbers = #tpu.dot_dimension_numbers<[1], [0], [0], [1], [0, 0, 1, 1], [], []>} : vector<1x128xf32>, vector<128x512xf32>, vector<1x512xf32> -> vector<1x512xf32>
    %578 = arith.addf %574, %577 : vector<1x512xf32>
    %579 = vector.extract_strided_slice %578 {offsets = [0, 0], sizes = [1, 128], strides = [1, 1]} : vector<1x512xf32> to vector<1x128xf32>
    %cst_244 = arith.constant 5.000000e-01 : f32
    %580 = vector.broadcast %cst_244 : f32 to vector<1x128xf32>
    %581 = arith.mulf %580, %579 : vector<1x128xf32>
    %582 = math.tanh %581 : vector<1x128xf32>
    %cst_245 = arith.constant 5.000000e-01 : f32
    %583 = vector.broadcast %cst_245 : f32 to vector<1x128xf32>
    %584 = arith.mulf %583, %582 : vector<1x128xf32>
    %cst_246 = arith.constant 5.000000e-01 : f32
    %585 = vector.broadcast %cst_246 : f32 to vector<1x128xf32>
    %586 = arith.addf %584, %585 : vector<1x128xf32>
    %587 = vector.extract_strided_slice %578 {offsets = [0, 128], sizes = [1, 128], strides = [1, 1]} : vector<1x512xf32> to vector<1x128xf32>
    %cst_247 = arith.constant 5.000000e-01 : f32
    %588 = vector.broadcast %cst_247 : f32 to vector<1x128xf32>
    %589 = arith.mulf %588, %587 : vector<1x128xf32>
    %590 = math.tanh %589 : vector<1x128xf32>
    %cst_248 = arith.constant 5.000000e-01 : f32
    %591 = vector.broadcast %cst_248 : f32 to vector<1x128xf32>
    %592 = arith.mulf %591, %590 : vector<1x128xf32>
    %cst_249 = arith.constant 5.000000e-01 : f32
    %593 = vector.broadcast %cst_249 : f32 to vector<1x128xf32>
    %594 = arith.addf %592, %593 : vector<1x128xf32>
    %595 = vector.extract_strided_slice %578 {offsets = [0, 256], sizes = [1, 128], strides = [1, 1]} : vector<1x512xf32> to vector<1x128xf32>
    %596 = math.tanh %595 : vector<1x128xf32>
    %597 = vector.extract_strided_slice %578 {offsets = [0, 384], sizes = [1, 128], strides = [1, 1]} : vector<1x512xf32> to vector<1x128xf32>
    %cst_250 = arith.constant 5.000000e-01 : f32
    %598 = vector.broadcast %cst_250 : f32 to vector<1x128xf32>
    %599 = arith.mulf %598, %597 : vector<1x128xf32>
    %600 = math.tanh %599 : vector<1x128xf32>
    %cst_251 = arith.constant 5.000000e-01 : f32
    %601 = vector.broadcast %cst_251 : f32 to vector<1x128xf32>
    %602 = arith.mulf %601, %600 : vector<1x128xf32>
    %cst_252 = arith.constant 5.000000e-01 : f32
    %603 = vector.broadcast %cst_252 : f32 to vector<1x128xf32>
    %604 = arith.addf %602, %603 : vector<1x128xf32>
    %605 = arith.mulf %594, %571 : vector<1x128xf32>
    %606 = arith.mulf %586, %596 : vector<1x128xf32>
    %607 = arith.addf %605, %606 : vector<1x128xf32>
    %608 = math.tanh %607 : vector<1x128xf32>
    %609 = arith.mulf %604, %608 : vector<1x128xf32>
    %610 = vector.extract_strided_slice %355 {offsets = [7, 0], sizes = [1, 512], strides = [1, 1]} : vector<8x512xf32> to vector<1x512xf32>
    %c0_253 = arith.constant 0 : index
    %c0_254 = arith.constant 0 : index
    %c0_255 = arith.constant 0 : index
    %611 = vector.load %arg19[%c0_253, %c0_254, %c0_255] : memref<3x128x512xf32, #tpu.memory_space<vmem>>, vector<1x128x512xf32>
    %612 = vector.shape_cast %611 : vector<1x128x512xf32> to vector<128x512xf32>
    %cst_256 = arith.constant dense<0.000000e+00> : vector<1x512xf32>
    %613 = tpu.matmul %609, %612, %cst_256 {dimension_numbers = #tpu.dot_dimension_numbers<[1], [0], [0], [1], [0, 0, 1, 1], [], []>} : vector<1x128xf32>, vector<128x512xf32>, vector<1x512xf32> -> vector<1x512xf32>
    %614 = arith.addf %610, %613 : vector<1x512xf32>
    %615 = vector.extract_strided_slice %614 {offsets = [0, 0], sizes = [1, 128], strides = [1, 1]} : vector<1x512xf32> to vector<1x128xf32>
    %cst_257 = arith.constant 5.000000e-01 : f32
    %616 = vector.broadcast %cst_257 : f32 to vector<1x128xf32>
    %617 = arith.mulf %616, %615 : vector<1x128xf32>
    %618 = math.tanh %617 : vector<1x128xf32>
    %cst_258 = arith.constant 5.000000e-01 : f32
    %619 = vector.broadcast %cst_258 : f32 to vector<1x128xf32>
    %620 = arith.mulf %619, %618 : vector<1x128xf32>
    %cst_259 = arith.constant 5.000000e-01 : f32
    %621 = vector.broadcast %cst_259 : f32 to vector<1x128xf32>
    %622 = arith.addf %620, %621 : vector<1x128xf32>
    %623 = vector.extract_strided_slice %614 {offsets = [0, 128], sizes = [1, 128], strides = [1, 1]} : vector<1x512xf32> to vector<1x128xf32>
    %cst_260 = arith.constant 5.000000e-01 : f32
    %624 = vector.broadcast %cst_260 : f32 to vector<1x128xf32>
    %625 = arith.mulf %624, %623 : vector<1x128xf32>
    %626 = math.tanh %625 : vector<1x128xf32>
    %cst_261 = arith.constant 5.000000e-01 : f32
    %627 = vector.broadcast %cst_261 : f32 to vector<1x128xf32>
    %628 = arith.mulf %627, %626 : vector<1x128xf32>
    %cst_262 = arith.constant 5.000000e-01 : f32
    %629 = vector.broadcast %cst_262 : f32 to vector<1x128xf32>
    %630 = arith.addf %628, %629 : vector<1x128xf32>
    %631 = vector.extract_strided_slice %614 {offsets = [0, 256], sizes = [1, 128], strides = [1, 1]} : vector<1x512xf32> to vector<1x128xf32>
    %632 = math.tanh %631 : vector<1x128xf32>
    %633 = vector.extract_strided_slice %614 {offsets = [0, 384], sizes = [1, 128], strides = [1, 1]} : vector<1x512xf32> to vector<1x128xf32>
    %cst_263 = arith.constant 5.000000e-01 : f32
    %634 = vector.broadcast %cst_263 : f32 to vector<1x128xf32>
    %635 = arith.mulf %634, %633 : vector<1x128xf32>
    %636 = math.tanh %635 : vector<1x128xf32>
    %cst_264 = arith.constant 5.000000e-01 : f32
    %637 = vector.broadcast %cst_264 : f32 to vector<1x128xf32>
    %638 = arith.mulf %637, %636 : vector<1x128xf32>
    %cst_265 = arith.constant 5.000000e-01 : f32
    %639 = vector.broadcast %cst_265 : f32 to vector<1x128xf32>
    %640 = arith.addf %638, %639 : vector<1x128xf32>
    %641 = arith.mulf %630, %607 : vector<1x128xf32>
    %642 = arith.mulf %622, %632 : vector<1x128xf32>
    %643 = arith.addf %641, %642 : vector<1x128xf32>
    %644 = math.tanh %643 : vector<1x128xf32>
    %645 = arith.mulf %640, %644 : vector<1x128xf32>
    %c1_i32_266 = arith.constant 1 : i32
    %c3_i32_267 = arith.constant 3 : i32
    %c0_i32_268 = arith.constant 0 : i32
    %c0_i32_269 = arith.constant 0 : i32
    %646 = tpu.memref_slice %arg18[%c1_i32_266, %c0_i32_268, %c0_i32_269] : memref<3x128x512xf32, #tpu.memory_space<vmem>> -> memref<1x128x512xf32, #tpu.memory_space<vmem>>
    %647 = tpu.memref_squeeze %646 : memref<1x128x512xf32, #tpu.memory_space<vmem>> -> memref<128x512xf32, #tpu.memory_space<vmem>>
    %648 = tpu.memref_slice %arg23[%c3_i32_267] : memref<11x!tpu.dma_semaphore, #tpu.memory_space<semaphore_mem>> -> memref<1x!tpu.dma_semaphore, #tpu.memory_space<semaphore_mem>>
    %649 = tpu.memref_squeeze %648 : memref<1x!tpu.dma_semaphore, #tpu.memory_space<semaphore_mem>> -> memref<!tpu.dma_semaphore, #tpu.memory_space<semaphore_mem>>
    tpu.wait_dma2 semaphore(%649 : memref<!tpu.dma_semaphore, #tpu.memory_space<semaphore_mem>>) src(%arg7 : memref<128x512xf32, #tpu.memory_space<any>>) dst(%647 : memref<128x512xf32, #tpu.memory_space<vmem>>)
    %c1_i32_270 = arith.constant 1 : i32
    %c4_i32_271 = arith.constant 4 : i32
    %c0_i32_272 = arith.constant 0 : i32
    %c0_i32_273 = arith.constant 0 : i32
    %650 = tpu.memref_slice %arg19[%c1_i32_270, %c0_i32_272, %c0_i32_273] : memref<3x128x512xf32, #tpu.memory_space<vmem>> -> memref<1x128x512xf32, #tpu.memory_space<vmem>>
    %651 = tpu.memref_squeeze %650 : memref<1x128x512xf32, #tpu.memory_space<vmem>> -> memref<128x512xf32, #tpu.memory_space<vmem>>
    %652 = tpu.memref_slice %arg23[%c4_i32_271] : memref<11x!tpu.dma_semaphore, #tpu.memory_space<semaphore_mem>> -> memref<1x!tpu.dma_semaphore, #tpu.memory_space<semaphore_mem>>
    %653 = tpu.memref_squeeze %652 : memref<1x!tpu.dma_semaphore, #tpu.memory_space<semaphore_mem>> -> memref<!tpu.dma_semaphore, #tpu.memory_space<semaphore_mem>>
    tpu.wait_dma2 semaphore(%653 : memref<!tpu.dma_semaphore, #tpu.memory_space<semaphore_mem>>) src(%arg8 : memref<128x512xf32, #tpu.memory_space<any>>) dst(%651 : memref<128x512xf32, #tpu.memory_space<vmem>>)
    %c1_i32_274 = arith.constant 1 : i32
    %c5_i32_275 = arith.constant 5 : i32
    %c0_i32_276 = arith.constant 0 : i32
    %c0_i32_277 = arith.constant 0 : i32
    %654 = tpu.memref_slice %arg20[%c1_i32_274, %c0_i32_276, %c0_i32_277] : memref<3x1x512xf32, #tpu.memory_space<vmem>> -> memref<1x1x512xf32, #tpu.memory_space<vmem>>
    %655 = tpu.memref_squeeze %654 : memref<1x1x512xf32, #tpu.memory_space<vmem>> -> memref<1x512xf32, #tpu.memory_space<vmem>>
    %656 = tpu.memref_slice %arg23[%c5_i32_275] : memref<11x!tpu.dma_semaphore, #tpu.memory_space<semaphore_mem>> -> memref<1x!tpu.dma_semaphore, #tpu.memory_space<semaphore_mem>>
    %657 = tpu.memref_squeeze %656 : memref<1x!tpu.dma_semaphore, #tpu.memory_space<semaphore_mem>> -> memref<!tpu.dma_semaphore, #tpu.memory_space<semaphore_mem>>
    tpu.wait_dma2 semaphore(%657 : memref<!tpu.dma_semaphore, #tpu.memory_space<semaphore_mem>>) src(%arg9 : memref<1x512xf32, #tpu.memory_space<any>>) dst(%655 : memref<1x512xf32, #tpu.memory_space<vmem>>)
    %c1_278 = arith.constant 1 : index
    %c0_279 = arith.constant 0 : index
    %c0_280 = arith.constant 0 : index
    %658 = vector.load %arg18[%c1_278, %c0_279, %c0_280] : memref<3x128x512xf32, #tpu.memory_space<vmem>>, vector<1x128x512xf32>
    %659 = vector.shape_cast %658 : vector<1x128x512xf32> to vector<128x512xf32>
    %cst_281 = arith.constant dense<0.000000e+00> : vector<1x512xf32>
    %660 = tpu.matmul %645, %659, %cst_281 {dimension_numbers = #tpu.dot_dimension_numbers<[1], [0], [0], [1], [0, 0, 1, 1], [], []>} : vector<1x128xf32>, vector<128x512xf32>, vector<1x512xf32> -> vector<1x512xf32>
    %c1_282 = arith.constant 1 : index
    %c0_283 = arith.constant 0 : index
    %c0_284 = arith.constant 0 : index
    %661 = vector.load %arg20[%c1_282, %c0_283, %c0_284] : memref<3x1x512xf32, #tpu.memory_space<vmem>>, vector<1x1x512xf32>
    %662 = vector.shape_cast %661 : vector<1x1x512xf32> to vector<1x512xf32>
    %663 = arith.addf %660, %662 : vector<1x512xf32>
    %664 = vector.shape_cast %663 : vector<1x512xf32> to vector<1x512xf32>
    %665 = vector.broadcast %664 : vector<1x512xf32> to vector<8x512xf32>
    %cst_285 = arith.constant 0.000000e+00 : f32
    %666 = vector.broadcast %cst_285 : f32 to vector<1x128xf32>
    %cst_286 = arith.constant 0.000000e+00 : f32
    %667 = vector.broadcast %cst_286 : f32 to vector<1x128xf32>
    %668 = vector.extract_strided_slice %665 {offsets = [0, 0], sizes = [1, 512], strides = [1, 1]} : vector<8x512xf32> to vector<1x512xf32>
    %c1_287 = arith.constant 1 : index
    %c0_288 = arith.constant 0 : index
    %c0_289 = arith.constant 0 : index
    %669 = vector.load %arg19[%c1_287, %c0_288, %c0_289] : memref<3x128x512xf32, #tpu.memory_space<vmem>>, vector<1x128x512xf32>
    %670 = vector.shape_cast %669 : vector<1x128x512xf32> to vector<128x512xf32>
    %cst_290 = arith.constant dense<0.000000e+00> : vector<1x512xf32>
    %671 = tpu.matmul %666, %670, %cst_290 {dimension_numbers = #tpu.dot_dimension_numbers<[1], [0], [0], [1], [0, 0, 1, 1], [], []>} : vector<1x128xf32>, vector<128x512xf32>, vector<1x512xf32> -> vector<1x512xf32>
    %672 = arith.addf %668, %671 : vector<1x512xf32>
    %673 = vector.extract_strided_slice %672 {offsets = [0, 0], sizes = [1, 128], strides = [1, 1]} : vector<1x512xf32> to vector<1x128xf32>
    %cst_291 = arith.constant 5.000000e-01 : f32
    %674 = vector.broadcast %cst_291 : f32 to vector<1x128xf32>
    %675 = arith.mulf %674, %673 : vector<1x128xf32>
    %676 = math.tanh %675 : vector<1x128xf32>
    %cst_292 = arith.constant 5.000000e-01 : f32
    %677 = vector.broadcast %cst_292 : f32 to vector<1x128xf32>
    %678 = arith.mulf %677, %676 : vector<1x128xf32>
    %cst_293 = arith.constant 5.000000e-01 : f32
    %679 = vector.broadcast %cst_293 : f32 to vector<1x128xf32>
    %680 = arith.addf %678, %679 : vector<1x128xf32>
    %681 = vector.extract_strided_slice %672 {offsets = [0, 128], sizes = [1, 128], strides = [1, 1]} : vector<1x512xf32> to vector<1x128xf32>
    %cst_294 = arith.constant 5.000000e-01 : f32
    %682 = vector.broadcast %cst_294 : f32 to vector<1x128xf32>
    %683 = arith.mulf %682, %681 : vector<1x128xf32>
    %684 = math.tanh %683 : vector<1x128xf32>
    %cst_295 = arith.constant 5.000000e-01 : f32
    %685 = vector.broadcast %cst_295 : f32 to vector<1x128xf32>
    %686 = arith.mulf %685, %684 : vector<1x128xf32>
    %cst_296 = arith.constant 5.000000e-01 : f32
    %687 = vector.broadcast %cst_296 : f32 to vector<1x128xf32>
    %688 = arith.addf %686, %687 : vector<1x128xf32>
    %689 = vector.extract_strided_slice %672 {offsets = [0, 256], sizes = [1, 128], strides = [1, 1]} : vector<1x512xf32> to vector<1x128xf32>
    %690 = math.tanh %689 : vector<1x128xf32>
    %691 = vector.extract_strided_slice %672 {offsets = [0, 384], sizes = [1, 128], strides = [1, 1]} : vector<1x512xf32> to vector<1x128xf32>
    %cst_297 = arith.constant 5.000000e-01 : f32
    %692 = vector.broadcast %cst_297 : f32 to vector<1x128xf32>
    %693 = arith.mulf %692, %691 : vector<1x128xf32>
    %694 = math.tanh %693 : vector<1x128xf32>
    %cst_298 = arith.constant 5.000000e-01 : f32
    %695 = vector.broadcast %cst_298 : f32 to vector<1x128xf32>
    %696 = arith.mulf %695, %694 : vector<1x128xf32>
    %cst_299 = arith.constant 5.000000e-01 : f32
    %697 = vector.broadcast %cst_299 : f32 to vector<1x128xf32>
    %698 = arith.addf %696, %697 : vector<1x128xf32>
    %699 = arith.mulf %688, %667 : vector<1x128xf32>
    %700 = arith.mulf %680, %690 : vector<1x128xf32>
    %701 = arith.addf %699, %700 : vector<1x128xf32>
    %702 = math.tanh %701 : vector<1x128xf32>
    %703 = arith.mulf %698, %702 : vector<1x128xf32>
    %c0_300 = arith.constant 0 : index
    %c0_301 = arith.constant 0 : index
    %704 = vector.load %arg17[%c0_300, %c0_301] : memref<8x128xf32, #tpu.memory_space<vmem>>, vector<1x128xf32>
    tpu.vector_store %arg17[%c0_300, %c0_301], %703 {strides = array<i32>} : memref<8x128xf32, #tpu.memory_space<vmem>>, vector<1x128xf32>,
    %705 = vector.extract_strided_slice %665 {offsets = [1, 0], sizes = [1, 512], strides = [1, 1]} : vector<8x512xf32> to vector<1x512xf32>
    %c1_302 = arith.constant 1 : index
    %c0_303 = arith.constant 0 : index
    %c0_304 = arith.constant 0 : index
    %706 = vector.load %arg19[%c1_302, %c0_303, %c0_304] : memref<3x128x512xf32, #tpu.memory_space<vmem>>, vector<1x128x512xf32>
    %707 = vector.shape_cast %706 : vector<1x128x512xf32> to vector<128x512xf32>
    %cst_305 = arith.constant dense<0.000000e+00> : vector<1x512xf32>
    %708 = tpu.matmul %703, %707, %cst_305 {dimension_numbers = #tpu.dot_dimension_numbers<[1], [0], [0], [1], [0, 0, 1, 1], [], []>} : vector<1x128xf32>, vector<128x512xf32>, vector<1x512xf32> -> vector<1x512xf32>
    %709 = arith.addf %705, %708 : vector<1x512xf32>
    %710 = vector.extract_strided_slice %709 {offsets = [0, 0], sizes = [1, 128], strides = [1, 1]} : vector<1x512xf32> to vector<1x128xf32>
    %cst_306 = arith.constant 5.000000e-01 : f32
    %711 = vector.broadcast %cst_306 : f32 to vector<1x128xf32>
    %712 = arith.mulf %711, %710 : vector<1x128xf32>
    %713 = math.tanh %712 : vector<1x128xf32>
    %cst_307 = arith.constant 5.000000e-01 : f32
    %714 = vector.broadcast %cst_307 : f32 to vector<1x128xf32>
    %715 = arith.mulf %714, %713 : vector<1x128xf32>
    %cst_308 = arith.constant 5.000000e-01 : f32
    %716 = vector.broadcast %cst_308 : f32 to vector<1x128xf32>
    %717 = arith.addf %715, %716 : vector<1x128xf32>
    %718 = vector.extract_strided_slice %709 {offsets = [0, 128], sizes = [1, 128], strides = [1, 1]} : vector<1x512xf32> to vector<1x128xf32>
    %cst_309 = arith.constant 5.000000e-01 : f32
    %719 = vector.broadcast %cst_309 : f32 to vector<1x128xf32>
    %720 = arith.mulf %719, %718 : vector<1x128xf32>
    %721 = math.tanh %720 : vector<1x128xf32>
    %cst_310 = arith.constant 5.000000e-01 : f32
    %722 = vector.broadcast %cst_310 : f32 to vector<1x128xf32>
    %723 = arith.mulf %722, %721 : vector<1x128xf32>
    %cst_311 = arith.constant 5.000000e-01 : f32
    %724 = vector.broadcast %cst_311 : f32 to vector<1x128xf32>
    %725 = arith.addf %723, %724 : vector<1x128xf32>
    %726 = vector.extract_strided_slice %709 {offsets = [0, 256], sizes = [1, 128], strides = [1, 1]} : vector<1x512xf32> to vector<1x128xf32>
    %727 = math.tanh %726 : vector<1x128xf32>
    %728 = vector.extract_strided_slice %709 {offsets = [0, 384], sizes = [1, 128], strides = [1, 1]} : vector<1x512xf32> to vector<1x128xf32>
    %cst_312 = arith.constant 5.000000e-01 : f32
    %729 = vector.broadcast %cst_312 : f32 to vector<1x128xf32>
    %730 = arith.mulf %729, %728 : vector<1x128xf32>
    %731 = math.tanh %730 : vector<1x128xf32>
    %cst_313 = arith.constant 5.000000e-01 : f32
    %732 = vector.broadcast %cst_313 : f32 to vector<1x128xf32>
    %733 = arith.mulf %732, %731 : vector<1x128xf32>
    %cst_314 = arith.constant 5.000000e-01 : f32
    %734 = vector.broadcast %cst_314 : f32 to vector<1x128xf32>
    %735 = arith.addf %733, %734 : vector<1x128xf32>
    %736 = arith.mulf %725, %701 : vector<1x128xf32>
    %737 = arith.mulf %717, %727 : vector<1x128xf32>
    %738 = arith.addf %736, %737 : vector<1x128xf32>
    %739 = math.tanh %738 : vector<1x128xf32>
    %740 = arith.mulf %735, %739 : vector<1x128xf32>
    %c1_315 = arith.constant 1 : index
    %c0_316 = arith.constant 0 : index
    %741 = vector.load %arg17[%c1_315, %c0_316] : memref<8x128xf32, #tpu.memory_space<vmem>>, vector<1x128xf32>
    tpu.vector_store %arg17[%c1_315, %c0_316], %740 {strides = array<i32>} : memref<8x128xf32, #tpu.memory_space<vmem>>, vector<1x128xf32>,
    %742 = vector.extract_strided_slice %665 {offsets = [2, 0], sizes = [1, 512], strides = [1, 1]} : vector<8x512xf32> to vector<1x512xf32>
    %c1_317 = arith.constant 1 : index
    %c0_318 = arith.constant 0 : index
    %c0_319 = arith.constant 0 : index
    %743 = vector.load %arg19[%c1_317, %c0_318, %c0_319] : memref<3x128x512xf32, #tpu.memory_space<vmem>>, vector<1x128x512xf32>
    %744 = vector.shape_cast %743 : vector<1x128x512xf32> to vector<128x512xf32>
    %cst_320 = arith.constant dense<0.000000e+00> : vector<1x512xf32>
    %745 = tpu.matmul %740, %744, %cst_320 {dimension_numbers = #tpu.dot_dimension_numbers<[1], [0], [0], [1], [0, 0, 1, 1], [], []>} : vector<1x128xf32>, vector<128x512xf32>, vector<1x512xf32> -> vector<1x512xf32>
    %746 = arith.addf %742, %745 : vector<1x512xf32>
    %747 = vector.extract_strided_slice %746 {offsets = [0, 0], sizes = [1, 128], strides = [1, 1]} : vector<1x512xf32> to vector<1x128xf32>
    %cst_321 = arith.constant 5.000000e-01 : f32
    %748 = vector.broadcast %cst_321 : f32 to vector<1x128xf32>
    %749 = arith.mulf %748, %747 : vector<1x128xf32>
    %750 = math.tanh %749 : vector<1x128xf32>
    %cst_322 = arith.constant 5.000000e-01 : f32
    %751 = vector.broadcast %cst_322 : f32 to vector<1x128xf32>
    %752 = arith.mulf %751, %750 : vector<1x128xf32>
    %cst_323 = arith.constant 5.000000e-01 : f32
    %753 = vector.broadcast %cst_323 : f32 to vector<1x128xf32>
    %754 = arith.addf %752, %753 : vector<1x128xf32>
    %755 = vector.extract_strided_slice %746 {offsets = [0, 128], sizes = [1, 128], strides = [1, 1]} : vector<1x512xf32> to vector<1x128xf32>
    %cst_324 = arith.constant 5.000000e-01 : f32
    %756 = vector.broadcast %cst_324 : f32 to vector<1x128xf32>
    %757 = arith.mulf %756, %755 : vector<1x128xf32>
    %758 = math.tanh %757 : vector<1x128xf32>
    %cst_325 = arith.constant 5.000000e-01 : f32
    %759 = vector.broadcast %cst_325 : f32 to vector<1x128xf32>
    %760 = arith.mulf %759, %758 : vector<1x128xf32>
    %cst_326 = arith.constant 5.000000e-01 : f32
    %761 = vector.broadcast %cst_326 : f32 to vector<1x128xf32>
    %762 = arith.addf %760, %761 : vector<1x128xf32>
    %763 = vector.extract_strided_slice %746 {offsets = [0, 256], sizes = [1, 128], strides = [1, 1]} : vector<1x512xf32> to vector<1x128xf32>
    %764 = math.tanh %763 : vector<1x128xf32>
    %765 = vector.extract_strided_slice %746 {offsets = [0, 384], sizes = [1, 128], strides = [1, 1]} : vector<1x512xf32> to vector<1x128xf32>
    %cst_327 = arith.constant 5.000000e-01 : f32
    %766 = vector.broadcast %cst_327 : f32 to vector<1x128xf32>
    %767 = arith.mulf %766, %765 : vector<1x128xf32>
    %768 = math.tanh %767 : vector<1x128xf32>
    %cst_328 = arith.constant 5.000000e-01 : f32
    %769 = vector.broadcast %cst_328 : f32 to vector<1x128xf32>
    %770 = arith.mulf %769, %768 : vector<1x128xf32>
    %cst_329 = arith.constant 5.000000e-01 : f32
    %771 = vector.broadcast %cst_329 : f32 to vector<1x128xf32>
    %772 = arith.addf %770, %771 : vector<1x128xf32>
    %773 = arith.mulf %762, %738 : vector<1x128xf32>
    %774 = arith.mulf %754, %764 : vector<1x128xf32>
    %775 = arith.addf %773, %774 : vector<1x128xf32>
    %776 = math.tanh %775 : vector<1x128xf32>
    %777 = arith.mulf %772, %776 : vector<1x128xf32>
    %c2_330 = arith.constant 2 : index
    %c0_331 = arith.constant 0 : index
    %778 = vector.load %arg17[%c2_330, %c0_331] : memref<8x128xf32, #tpu.memory_space<vmem>>, vector<1x128xf32>
    tpu.vector_store %arg17[%c2_330, %c0_331], %777 {strides = array<i32>} : memref<8x128xf32, #tpu.memory_space<vmem>>, vector<1x128xf32>,
    %779 = vector.extract_strided_slice %665 {offsets = [3, 0], sizes = [1, 512], strides = [1, 1]} : vector<8x512xf32> to vector<1x512xf32>
    %c1_332 = arith.constant 1 : index
    %c0_333 = arith.constant 0 : index
    %c0_334 = arith.constant 0 : index
    %780 = vector.load %arg19[%c1_332, %c0_333, %c0_334] : memref<3x128x512xf32, #tpu.memory_space<vmem>>, vector<1x128x512xf32>
    %781 = vector.shape_cast %780 : vector<1x128x512xf32> to vector<128x512xf32>
    %cst_335 = arith.constant dense<0.000000e+00> : vector<1x512xf32>
    %782 = tpu.matmul %777, %781, %cst_335 {dimension_numbers = #tpu.dot_dimension_numbers<[1], [0], [0], [1], [0, 0, 1, 1], [], []>} : vector<1x128xf32>, vector<128x512xf32>, vector<1x512xf32> -> vector<1x512xf32>
    %783 = arith.addf %779, %782 : vector<1x512xf32>
    %784 = vector.extract_strided_slice %783 {offsets = [0, 0], sizes = [1, 128], strides = [1, 1]} : vector<1x512xf32> to vector<1x128xf32>
    %cst_336 = arith.constant 5.000000e-01 : f32
    %785 = vector.broadcast %cst_336 : f32 to vector<1x128xf32>
    %786 = arith.mulf %785, %784 : vector<1x128xf32>
    %787 = math.tanh %786 : vector<1x128xf32>
    %cst_337 = arith.constant 5.000000e-01 : f32
    %788 = vector.broadcast %cst_337 : f32 to vector<1x128xf32>
    %789 = arith.mulf %788, %787 : vector<1x128xf32>
    %cst_338 = arith.constant 5.000000e-01 : f32
    %790 = vector.broadcast %cst_338 : f32 to vector<1x128xf32>
    %791 = arith.addf %789, %790 : vector<1x128xf32>
    %792 = vector.extract_strided_slice %783 {offsets = [0, 128], sizes = [1, 128], strides = [1, 1]} : vector<1x512xf32> to vector<1x128xf32>
    %cst_339 = arith.constant 5.000000e-01 : f32
    %793 = vector.broadcast %cst_339 : f32 to vector<1x128xf32>
    %794 = arith.mulf %793, %792 : vector<1x128xf32>
    %795 = math.tanh %794 : vector<1x128xf32>
    %cst_340 = arith.constant 5.000000e-01 : f32
    %796 = vector.broadcast %cst_340 : f32 to vector<1x128xf32>
    %797 = arith.mulf %796, %795 : vector<1x128xf32>
    %cst_341 = arith.constant 5.000000e-01 : f32
    %798 = vector.broadcast %cst_341 : f32 to vector<1x128xf32>
    %799 = arith.addf %797, %798 : vector<1x128xf32>
    %800 = vector.extract_strided_slice %783 {offsets = [0, 256], sizes = [1, 128], strides = [1, 1]} : vector<1x512xf32> to vector<1x128xf32>
    %801 = math.tanh %800 : vector<1x128xf32>
    %802 = vector.extract_strided_slice %783 {offsets = [0, 384], sizes = [1, 128], strides = [1, 1]} : vector<1x512xf32> to vector<1x128xf32>
    %cst_342 = arith.constant 5.000000e-01 : f32
    %803 = vector.broadcast %cst_342 : f32 to vector<1x128xf32>
    %804 = arith.mulf %803, %802 : vector<1x128xf32>
    %805 = math.tanh %804 : vector<1x128xf32>
    %cst_343 = arith.constant 5.000000e-01 : f32
    %806 = vector.broadcast %cst_343 : f32 to vector<1x128xf32>
    %807 = arith.mulf %806, %805 : vector<1x128xf32>
    %cst_344 = arith.constant 5.000000e-01 : f32
    %808 = vector.broadcast %cst_344 : f32 to vector<1x128xf32>
    %809 = arith.addf %807, %808 : vector<1x128xf32>
    %810 = arith.mulf %799, %775 : vector<1x128xf32>
    %811 = arith.mulf %791, %801 : vector<1x128xf32>
    %812 = arith.addf %810, %811 : vector<1x128xf32>
    %813 = math.tanh %812 : vector<1x128xf32>
    %814 = arith.mulf %809, %813 : vector<1x128xf32>
    %c3_345 = arith.constant 3 : index
    %c0_346 = arith.constant 0 : index
    %815 = vector.load %arg17[%c3_345, %c0_346] : memref<8x128xf32, #tpu.memory_space<vmem>>, vector<1x128xf32>
    tpu.vector_store %arg17[%c3_345, %c0_346], %814 {strides = array<i32>} : memref<8x128xf32, #tpu.memory_space<vmem>>, vector<1x128xf32>,
    %816 = vector.extract_strided_slice %665 {offsets = [4, 0], sizes = [1, 512], strides = [1, 1]} : vector<8x512xf32> to vector<1x512xf32>
    %c1_347 = arith.constant 1 : index
    %c0_348 = arith.constant 0 : index
    %c0_349 = arith.constant 0 : index
    %817 = vector.load %arg19[%c1_347, %c0_348, %c0_349] : memref<3x128x512xf32, #tpu.memory_space<vmem>>, vector<1x128x512xf32>
    %818 = vector.shape_cast %817 : vector<1x128x512xf32> to vector<128x512xf32>
    %cst_350 = arith.constant dense<0.000000e+00> : vector<1x512xf32>
    %819 = tpu.matmul %814, %818, %cst_350 {dimension_numbers = #tpu.dot_dimension_numbers<[1], [0], [0], [1], [0, 0, 1, 1], [], []>} : vector<1x128xf32>, vector<128x512xf32>, vector<1x512xf32> -> vector<1x512xf32>
    %820 = arith.addf %816, %819 : vector<1x512xf32>
    %821 = vector.extract_strided_slice %820 {offsets = [0, 0], sizes = [1, 128], strides = [1, 1]} : vector<1x512xf32> to vector<1x128xf32>
    %cst_351 = arith.constant 5.000000e-01 : f32
    %822 = vector.broadcast %cst_351 : f32 to vector<1x128xf32>
    %823 = arith.mulf %822, %821 : vector<1x128xf32>
    %824 = math.tanh %823 : vector<1x128xf32>
    %cst_352 = arith.constant 5.000000e-01 : f32
    %825 = vector.broadcast %cst_352 : f32 to vector<1x128xf32>
    %826 = arith.mulf %825, %824 : vector<1x128xf32>
    %cst_353 = arith.constant 5.000000e-01 : f32
    %827 = vector.broadcast %cst_353 : f32 to vector<1x128xf32>
    %828 = arith.addf %826, %827 : vector<1x128xf32>
    %829 = vector.extract_strided_slice %820 {offsets = [0, 128], sizes = [1, 128], strides = [1, 1]} : vector<1x512xf32> to vector<1x128xf32>
    %cst_354 = arith.constant 5.000000e-01 : f32
    %830 = vector.broadcast %cst_354 : f32 to vector<1x128xf32>
    %831 = arith.mulf %830, %829 : vector<1x128xf32>
    %832 = math.tanh %831 : vector<1x128xf32>
    %cst_355 = arith.constant 5.000000e-01 : f32
    %833 = vector.broadcast %cst_355 : f32 to vector<1x128xf32>
    %834 = arith.mulf %833, %832 : vector<1x128xf32>
    %cst_356 = arith.constant 5.000000e-01 : f32
    %835 = vector.broadcast %cst_356 : f32 to vector<1x128xf32>
    %836 = arith.addf %834, %835 : vector<1x128xf32>
    %837 = vector.extract_strided_slice %820 {offsets = [0, 256], sizes = [1, 128], strides = [1, 1]} : vector<1x512xf32> to vector<1x128xf32>
    %838 = math.tanh %837 : vector<1x128xf32>
    %839 = vector.extract_strided_slice %820 {offsets = [0, 384], sizes = [1, 128], strides = [1, 1]} : vector<1x512xf32> to vector<1x128xf32>
    %cst_357 = arith.constant 5.000000e-01 : f32
    %840 = vector.broadcast %cst_357 : f32 to vector<1x128xf32>
    %841 = arith.mulf %840, %839 : vector<1x128xf32>
    %842 = math.tanh %841 : vector<1x128xf32>
    %cst_358 = arith.constant 5.000000e-01 : f32
    %843 = vector.broadcast %cst_358 : f32 to vector<1x128xf32>
    %844 = arith.mulf %843, %842 : vector<1x128xf32>
    %cst_359 = arith.constant 5.000000e-01 : f32
    %845 = vector.broadcast %cst_359 : f32 to vector<1x128xf32>
    %846 = arith.addf %844, %845 : vector<1x128xf32>
    %847 = arith.mulf %836, %812 : vector<1x128xf32>
    %848 = arith.mulf %828, %838 : vector<1x128xf32>
    %849 = arith.addf %847, %848 : vector<1x128xf32>
    %850 = math.tanh %849 : vector<1x128xf32>
    %851 = arith.mulf %846, %850 : vector<1x128xf32>
    %c4_360 = arith.constant 4 : index
    %c0_361 = arith.constant 0 : index
    %852 = vector.load %arg17[%c4_360, %c0_361] : memref<8x128xf32, #tpu.memory_space<vmem>>, vector<1x128xf32>
    tpu.vector_store %arg17[%c4_360, %c0_361], %851 {strides = array<i32>} : memref<8x128xf32, #tpu.memory_space<vmem>>, vector<1x128xf32>,
    %853 = vector.extract_strided_slice %665 {offsets = [5, 0], sizes = [1, 512], strides = [1, 1]} : vector<8x512xf32> to vector<1x512xf32>
    %c1_362 = arith.constant 1 : index
    %c0_363 = arith.constant 0 : index
    %c0_364 = arith.constant 0 : index
    %854 = vector.load %arg19[%c1_362, %c0_363, %c0_364] : memref<3x128x512xf32, #tpu.memory_space<vmem>>, vector<1x128x512xf32>
    %855 = vector.shape_cast %854 : vector<1x128x512xf32> to vector<128x512xf32>
    %cst_365 = arith.constant dense<0.000000e+00> : vector<1x512xf32>
    %856 = tpu.matmul %851, %855, %cst_365 {dimension_numbers = #tpu.dot_dimension_numbers<[1], [0], [0], [1], [0, 0, 1, 1], [], []>} : vector<1x128xf32>, vector<128x512xf32>, vector<1x512xf32> -> vector<1x512xf32>
    %857 = arith.addf %853, %856 : vector<1x512xf32>
    %858 = vector.extract_strided_slice %857 {offsets = [0, 0], sizes = [1, 128], strides = [1, 1]} : vector<1x512xf32> to vector<1x128xf32>
    %cst_366 = arith.constant 5.000000e-01 : f32
    %859 = vector.broadcast %cst_366 : f32 to vector<1x128xf32>
    %860 = arith.mulf %859, %858 : vector<1x128xf32>
    %861 = math.tanh %860 : vector<1x128xf32>
    %cst_367 = arith.constant 5.000000e-01 : f32
    %862 = vector.broadcast %cst_367 : f32 to vector<1x128xf32>
    %863 = arith.mulf %862, %861 : vector<1x128xf32>
    %cst_368 = arith.constant 5.000000e-01 : f32
    %864 = vector.broadcast %cst_368 : f32 to vector<1x128xf32>
    %865 = arith.addf %863, %864 : vector<1x128xf32>
    %866 = vector.extract_strided_slice %857 {offsets = [0, 128], sizes = [1, 128], strides = [1, 1]} : vector<1x512xf32> to vector<1x128xf32>
    %cst_369 = arith.constant 5.000000e-01 : f32
    %867 = vector.broadcast %cst_369 : f32 to vector<1x128xf32>
    %868 = arith.mulf %867, %866 : vector<1x128xf32>
    %869 = math.tanh %868 : vector<1x128xf32>
    %cst_370 = arith.constant 5.000000e-01 : f32
    %870 = vector.broadcast %cst_370 : f32 to vector<1x128xf32>
    %871 = arith.mulf %870, %869 : vector<1x128xf32>
    %cst_371 = arith.constant 5.000000e-01 : f32
    %872 = vector.broadcast %cst_371 : f32 to vector<1x128xf32>
    %873 = arith.addf %871, %872 : vector<1x128xf32>
    %874 = vector.extract_strided_slice %857 {offsets = [0, 256], sizes = [1, 128], strides = [1, 1]} : vector<1x512xf32> to vector<1x128xf32>
    %875 = math.tanh %874 : vector<1x128xf32>
    %876 = vector.extract_strided_slice %857 {offsets = [0, 384], sizes = [1, 128], strides = [1, 1]} : vector<1x512xf32> to vector<1x128xf32>
    %cst_372 = arith.constant 5.000000e-01 : f32
    %877 = vector.broadcast %cst_372 : f32 to vector<1x128xf32>
    %878 = arith.mulf %877, %876 : vector<1x128xf32>
    %879 = math.tanh %878 : vector<1x128xf32>
    %cst_373 = arith.constant 5.000000e-01 : f32
    %880 = vector.broadcast %cst_373 : f32 to vector<1x128xf32>
    %881 = arith.mulf %880, %879 : vector<1x128xf32>
    %cst_374 = arith.constant 5.000000e-01 : f32
    %882 = vector.broadcast %cst_374 : f32 to vector<1x128xf32>
    %883 = arith.addf %881, %882 : vector<1x128xf32>
    %884 = arith.mulf %873, %849 : vector<1x128xf32>
    %885 = arith.mulf %865, %875 : vector<1x128xf32>
    %886 = arith.addf %884, %885 : vector<1x128xf32>
    %887 = math.tanh %886 : vector<1x128xf32>
    %888 = arith.mulf %883, %887 : vector<1x128xf32>
    %c5_375 = arith.constant 5 : index
    %c0_376 = arith.constant 0 : index
    %889 = vector.load %arg17[%c5_375, %c0_376] : memref<8x128xf32, #tpu.memory_space<vmem>>, vector<1x128xf32>
    tpu.vector_store %arg17[%c5_375, %c0_376], %888 {strides = array<i32>} : memref<8x128xf32, #tpu.memory_space<vmem>>, vector<1x128xf32>,
    %890 = vector.extract_strided_slice %665 {offsets = [6, 0], sizes = [1, 512], strides = [1, 1]} : vector<8x512xf32> to vector<1x512xf32>
    %c1_377 = arith.constant 1 : index
    %c0_378 = arith.constant 0 : index
    %c0_379 = arith.constant 0 : index
    %891 = vector.load %arg19[%c1_377, %c0_378, %c0_379] : memref<3x128x512xf32, #tpu.memory_space<vmem>>, vector<1x128x512xf32>
    %892 = vector.shape_cast %891 : vector<1x128x512xf32> to vector<128x512xf32>
    %cst_380 = arith.constant dense<0.000000e+00> : vector<1x512xf32>
    %893 = tpu.matmul %888, %892, %cst_380 {dimension_numbers = #tpu.dot_dimension_numbers<[1], [0], [0], [1], [0, 0, 1, 1], [], []>} : vector<1x128xf32>, vector<128x512xf32>, vector<1x512xf32> -> vector<1x512xf32>
    %894 = arith.addf %890, %893 : vector<1x512xf32>
    %895 = vector.extract_strided_slice %894 {offsets = [0, 0], sizes = [1, 128], strides = [1, 1]} : vector<1x512xf32> to vector<1x128xf32>
    %cst_381 = arith.constant 5.000000e-01 : f32
    %896 = vector.broadcast %cst_381 : f32 to vector<1x128xf32>
    %897 = arith.mulf %896, %895 : vector<1x128xf32>
    %898 = math.tanh %897 : vector<1x128xf32>
    %cst_382 = arith.constant 5.000000e-01 : f32
    %899 = vector.broadcast %cst_382 : f32 to vector<1x128xf32>
    %900 = arith.mulf %899, %898 : vector<1x128xf32>
    %cst_383 = arith.constant 5.000000e-01 : f32
    %901 = vector.broadcast %cst_383 : f32 to vector<1x128xf32>
    %902 = arith.addf %900, %901 : vector<1x128xf32>
    %903 = vector.extract_strided_slice %894 {offsets = [0, 128], sizes = [1, 128], strides = [1, 1]} : vector<1x512xf32> to vector<1x128xf32>
    %cst_384 = arith.constant 5.000000e-01 : f32
    %904 = vector.broadcast %cst_384 : f32 to vector<1x128xf32>
    %905 = arith.mulf %904, %903 : vector<1x128xf32>
    %906 = math.tanh %905 : vector<1x128xf32>
    %cst_385 = arith.constant 5.000000e-01 : f32
    %907 = vector.broadcast %cst_385 : f32 to vector<1x128xf32>
    %908 = arith.mulf %907, %906 : vector<1x128xf32>
    %cst_386 = arith.constant 5.000000e-01 : f32
    %909 = vector.broadcast %cst_386 : f32 to vector<1x128xf32>
    %910 = arith.addf %908, %909 : vector<1x128xf32>
    %911 = vector.extract_strided_slice %894 {offsets = [0, 256], sizes = [1, 128], strides = [1, 1]} : vector<1x512xf32> to vector<1x128xf32>
    %912 = math.tanh %911 : vector<1x128xf32>
    %913 = vector.extract_strided_slice %894 {offsets = [0, 384], sizes = [1, 128], strides = [1, 1]} : vector<1x512xf32> to vector<1x128xf32>
    %cst_387 = arith.constant 5.000000e-01 : f32
    %914 = vector.broadcast %cst_387 : f32 to vector<1x128xf32>
    %915 = arith.mulf %914, %913 : vector<1x128xf32>
    %916 = math.tanh %915 : vector<1x128xf32>
    %cst_388 = arith.constant 5.000000e-01 : f32
    %917 = vector.broadcast %cst_388 : f32 to vector<1x128xf32>
    %918 = arith.mulf %917, %916 : vector<1x128xf32>
    %cst_389 = arith.constant 5.000000e-01 : f32
    %919 = vector.broadcast %cst_389 : f32 to vector<1x128xf32>
    %920 = arith.addf %918, %919 : vector<1x128xf32>
    %921 = arith.mulf %910, %886 : vector<1x128xf32>
    %922 = arith.mulf %902, %912 : vector<1x128xf32>
    %923 = arith.addf %921, %922 : vector<1x128xf32>
    %924 = math.tanh %923 : vector<1x128xf32>
    %925 = arith.mulf %920, %924 : vector<1x128xf32>
    %c6_390 = arith.constant 6 : index
    %c0_391 = arith.constant 0 : index
    %926 = vector.load %arg17[%c6_390, %c0_391] : memref<8x128xf32, #tpu.memory_space<vmem>>, vector<1x128xf32>
    tpu.vector_store %arg17[%c6_390, %c0_391], %925 {strides = array<i32>} : memref<8x128xf32, #tpu.memory_space<vmem>>, vector<1x128xf32>,
    %927 = vector.extract_strided_slice %665 {offsets = [7, 0], sizes = [1, 512], strides = [1, 1]} : vector<8x512xf32> to vector<1x512xf32>
    %c1_392 = arith.constant 1 : index
    %c0_393 = arith.constant 0 : index
    %c0_394 = arith.constant 0 : index
    %928 = vector.load %arg19[%c1_392, %c0_393, %c0_394] : memref<3x128x512xf32, #tpu.memory_space<vmem>>, vector<1x128x512xf32>
    %929 = vector.shape_cast %928 : vector<1x128x512xf32> to vector<128x512xf32>
    %cst_395 = arith.constant dense<0.000000e+00> : vector<1x512xf32>
    %930 = tpu.matmul %925, %929, %cst_395 {dimension_numbers = #tpu.dot_dimension_numbers<[1], [0], [0], [1], [0, 0, 1, 1], [], []>} : vector<1x128xf32>, vector<128x512xf32>, vector<1x512xf32> -> vector<1x512xf32>
    %931 = arith.addf %927, %930 : vector<1x512xf32>
    %932 = vector.extract_strided_slice %931 {offsets = [0, 0], sizes = [1, 128], strides = [1, 1]} : vector<1x512xf32> to vector<1x128xf32>
    %cst_396 = arith.constant 5.000000e-01 : f32
    %933 = vector.broadcast %cst_396 : f32 to vector<1x128xf32>
    %934 = arith.mulf %933, %932 : vector<1x128xf32>
    %935 = math.tanh %934 : vector<1x128xf32>
    %cst_397 = arith.constant 5.000000e-01 : f32
    %936 = vector.broadcast %cst_397 : f32 to vector<1x128xf32>
    %937 = arith.mulf %936, %935 : vector<1x128xf32>
    %cst_398 = arith.constant 5.000000e-01 : f32
    %938 = vector.broadcast %cst_398 : f32 to vector<1x128xf32>
    %939 = arith.addf %937, %938 : vector<1x128xf32>
    %940 = vector.extract_strided_slice %931 {offsets = [0, 128], sizes = [1, 128], strides = [1, 1]} : vector<1x512xf32> to vector<1x128xf32>
    %cst_399 = arith.constant 5.000000e-01 : f32
    %941 = vector.broadcast %cst_399 : f32 to vector<1x128xf32>
    %942 = arith.mulf %941, %940 : vector<1x128xf32>
    %943 = math.tanh %942 : vector<1x128xf32>
    %cst_400 = arith.constant 5.000000e-01 : f32
    %944 = vector.broadcast %cst_400 : f32 to vector<1x128xf32>
    %945 = arith.mulf %944, %943 : vector<1x128xf32>
    %cst_401 = arith.constant 5.000000e-01 : f32
    %946 = vector.broadcast %cst_401 : f32 to vector<1x128xf32>
    %947 = arith.addf %945, %946 : vector<1x128xf32>
    %948 = vector.extract_strided_slice %931 {offsets = [0, 256], sizes = [1, 128], strides = [1, 1]} : vector<1x512xf32> to vector<1x128xf32>
    %949 = math.tanh %948 : vector<1x128xf32>
    %950 = vector.extract_strided_slice %931 {offsets = [0, 384], sizes = [1, 128], strides = [1, 1]} : vector<1x512xf32> to vector<1x128xf32>
    %cst_402 = arith.constant 5.000000e-01 : f32
    %951 = vector.broadcast %cst_402 : f32 to vector<1x128xf32>
    %952 = arith.mulf %951, %950 : vector<1x128xf32>
    %953 = math.tanh %952 : vector<1x128xf32>
    %cst_403 = arith.constant 5.000000e-01 : f32
    %954 = vector.broadcast %cst_403 : f32 to vector<1x128xf32>
    %955 = arith.mulf %954, %953 : vector<1x128xf32>
    %cst_404 = arith.constant 5.000000e-01 : f32
    %956 = vector.broadcast %cst_404 : f32 to vector<1x128xf32>
    %957 = arith.addf %955, %956 : vector<1x128xf32>
    %958 = arith.mulf %947, %923 : vector<1x128xf32>
    %959 = arith.mulf %939, %949 : vector<1x128xf32>
    %960 = arith.addf %958, %959 : vector<1x128xf32>
    %961 = math.tanh %960 : vector<1x128xf32>
    %962 = arith.mulf %957, %961 : vector<1x128xf32>
    %c7_405 = arith.constant 7 : index
    %c0_406 = arith.constant 0 : index
    %963 = vector.load %arg17[%c7_405, %c0_406] : memref<8x128xf32, #tpu.memory_space<vmem>>, vector<1x128xf32>
    tpu.vector_store %arg17[%c7_405, %c0_406], %962 {strides = array<i32>} : memref<8x128xf32, #tpu.memory_space<vmem>>, vector<1x128xf32>,
    %c2_i32_407 = arith.constant 2 : i32
    %c6_i32_408 = arith.constant 6 : i32
    %c0_i32_409 = arith.constant 0 : i32
    %c0_i32_410 = arith.constant 0 : i32
    %964 = tpu.memref_slice %arg18[%c2_i32_407, %c0_i32_409, %c0_i32_410] : memref<3x128x512xf32, #tpu.memory_space<vmem>> -> memref<1x128x512xf32, #tpu.memory_space<vmem>>
    %965 = tpu.memref_squeeze %964 : memref<1x128x512xf32, #tpu.memory_space<vmem>> -> memref<128x512xf32, #tpu.memory_space<vmem>>
    %966 = tpu.memref_slice %arg23[%c6_i32_408] : memref<11x!tpu.dma_semaphore, #tpu.memory_space<semaphore_mem>> -> memref<1x!tpu.dma_semaphore, #tpu.memory_space<semaphore_mem>>
    %967 = tpu.memref_squeeze %966 : memref<1x!tpu.dma_semaphore, #tpu.memory_space<semaphore_mem>> -> memref<!tpu.dma_semaphore, #tpu.memory_space<semaphore_mem>>
    tpu.wait_dma2 semaphore(%967 : memref<!tpu.dma_semaphore, #tpu.memory_space<semaphore_mem>>) src(%arg10 : memref<128x512xf32, #tpu.memory_space<any>>) dst(%965 : memref<128x512xf32, #tpu.memory_space<vmem>>)
    %c2_i32_411 = arith.constant 2 : i32
    %c7_i32_412 = arith.constant 7 : i32
    %c0_i32_413 = arith.constant 0 : i32
    %c0_i32_414 = arith.constant 0 : i32
    %968 = tpu.memref_slice %arg19[%c2_i32_411, %c0_i32_413, %c0_i32_414] : memref<3x128x512xf32, #tpu.memory_space<vmem>> -> memref<1x128x512xf32, #tpu.memory_space<vmem>>
    %969 = tpu.memref_squeeze %968 : memref<1x128x512xf32, #tpu.memory_space<vmem>> -> memref<128x512xf32, #tpu.memory_space<vmem>>
    %970 = tpu.memref_slice %arg23[%c7_i32_412] : memref<11x!tpu.dma_semaphore, #tpu.memory_space<semaphore_mem>> -> memref<1x!tpu.dma_semaphore, #tpu.memory_space<semaphore_mem>>
    %971 = tpu.memref_squeeze %970 : memref<1x!tpu.dma_semaphore, #tpu.memory_space<semaphore_mem>> -> memref<!tpu.dma_semaphore, #tpu.memory_space<semaphore_mem>>
    tpu.wait_dma2 semaphore(%971 : memref<!tpu.dma_semaphore, #tpu.memory_space<semaphore_mem>>) src(%arg11 : memref<128x512xf32, #tpu.memory_space<any>>) dst(%969 : memref<128x512xf32, #tpu.memory_space<vmem>>)
    %c2_i32_415 = arith.constant 2 : i32
    %c8_i32_416 = arith.constant 8 : i32
    %c0_i32_417 = arith.constant 0 : i32
    %c0_i32_418 = arith.constant 0 : i32
    %972 = tpu.memref_slice %arg20[%c2_i32_415, %c0_i32_417, %c0_i32_418] : memref<3x1x512xf32, #tpu.memory_space<vmem>> -> memref<1x1x512xf32, #tpu.memory_space<vmem>>
    %973 = tpu.memref_squeeze %972 : memref<1x1x512xf32, #tpu.memory_space<vmem>> -> memref<1x512xf32, #tpu.memory_space<vmem>>
    %974 = tpu.memref_slice %arg23[%c8_i32_416] : memref<11x!tpu.dma_semaphore, #tpu.memory_space<semaphore_mem>> -> memref<1x!tpu.dma_semaphore, #tpu.memory_space<semaphore_mem>>
    %975 = tpu.memref_squeeze %974 : memref<1x!tpu.dma_semaphore, #tpu.memory_space<semaphore_mem>> -> memref<!tpu.dma_semaphore, #tpu.memory_space<semaphore_mem>>
    tpu.wait_dma2 semaphore(%975 : memref<!tpu.dma_semaphore, #tpu.memory_space<semaphore_mem>>) src(%arg12 : memref<1x512xf32, #tpu.memory_space<any>>) dst(%973 : memref<1x512xf32, #tpu.memory_space<vmem>>)
    %c0_419 = arith.constant 0 : index
    %c0_420 = arith.constant 0 : index
    %976 = vector.load %arg17[%c0_419, %c0_420] : memref<8x128xf32, #tpu.memory_space<vmem>>, vector<8x128xf32>
    %c2_421 = arith.constant 2 : index
    %c0_422 = arith.constant 0 : index
    %c0_423 = arith.constant 0 : index
    %977 = vector.load %arg18[%c2_421, %c0_422, %c0_423] : memref<3x128x512xf32, #tpu.memory_space<vmem>>, vector<1x128x512xf32>
    %978 = vector.shape_cast %977 : vector<1x128x512xf32> to vector<128x512xf32>
    %cst_424 = arith.constant dense<0.000000e+00> : vector<8x512xf32>
    %979 = tpu.matmul %976, %978, %cst_424 {dimension_numbers = #tpu.dot_dimension_numbers<[1], [0], [0], [1], [0, 0, 1, 1], [], []>} : vector<8x128xf32>, vector<128x512xf32>, vector<8x512xf32> -> vector<8x512xf32>
    %c2_425 = arith.constant 2 : index
    %c0_426 = arith.constant 0 : index
    %c0_427 = arith.constant 0 : index
    %980 = vector.load %arg20[%c2_425, %c0_426, %c0_427] : memref<3x1x512xf32, #tpu.memory_space<vmem>>, vector<1x1x512xf32>
    %981 = vector.shape_cast %980 : vector<1x1x512xf32> to vector<1x512xf32>
    %982 = vector.broadcast %981 : vector<1x512xf32> to vector<8x512xf32>
    %983 = arith.addf %979, %982 : vector<8x512xf32>
    %cst_428 = arith.constant 0.000000e+00 : f32
    %984 = vector.broadcast %cst_428 : f32 to vector<1x128xf32>
    %cst_429 = arith.constant 0.000000e+00 : f32
    %985 = vector.broadcast %cst_429 : f32 to vector<1x128xf32>
    %986 = vector.extract_strided_slice %983 {offsets = [0, 0], sizes = [1, 512], strides = [1, 1]} : vector<8x512xf32> to vector<1x512xf32>
    %c2_430 = arith.constant 2 : index
    %c0_431 = arith.constant 0 : index
    %c0_432 = arith.constant 0 : index
    %987 = vector.load %arg19[%c2_430, %c0_431, %c0_432] : memref<3x128x512xf32, #tpu.memory_space<vmem>>, vector<1x128x512xf32>
    %988 = vector.shape_cast %987 : vector<1x128x512xf32> to vector<128x512xf32>
    %cst_433 = arith.constant dense<0.000000e+00> : vector<1x512xf32>
    %989 = tpu.matmul %984, %988, %cst_433 {dimension_numbers = #tpu.dot_dimension_numbers<[1], [0], [0], [1], [0, 0, 1, 1], [], []>} : vector<1x128xf32>, vector<128x512xf32>, vector<1x512xf32> -> vector<1x512xf32>
    %990 = arith.addf %986, %989 : vector<1x512xf32>
    %991 = vector.extract_strided_slice %990 {offsets = [0, 0], sizes = [1, 128], strides = [1, 1]} : vector<1x512xf32> to vector<1x128xf32>
    %cst_434 = arith.constant 5.000000e-01 : f32
    %992 = vector.broadcast %cst_434 : f32 to vector<1x128xf32>
    %993 = arith.mulf %992, %991 : vector<1x128xf32>
    %994 = math.tanh %993 : vector<1x128xf32>
    %cst_435 = arith.constant 5.000000e-01 : f32
    %995 = vector.broadcast %cst_435 : f32 to vector<1x128xf32>
    %996 = arith.mulf %995, %994 : vector<1x128xf32>
    %cst_436 = arith.constant 5.000000e-01 : f32
    %997 = vector.broadcast %cst_436 : f32 to vector<1x128xf32>
    %998 = arith.addf %996, %997 : vector<1x128xf32>
    %999 = vector.extract_strided_slice %990 {offsets = [0, 128], sizes = [1, 128], strides = [1, 1]} : vector<1x512xf32> to vector<1x128xf32>
    %cst_437 = arith.constant 5.000000e-01 : f32
    %1000 = vector.broadcast %cst_437 : f32 to vector<1x128xf32>
    %1001 = arith.mulf %1000, %999 : vector<1x128xf32>
    %1002 = math.tanh %1001 : vector<1x128xf32>
    %cst_438 = arith.constant 5.000000e-01 : f32
    %1003 = vector.broadcast %cst_438 : f32 to vector<1x128xf32>
    %1004 = arith.mulf %1003, %1002 : vector<1x128xf32>
    %cst_439 = arith.constant 5.000000e-01 : f32
    %1005 = vector.broadcast %cst_439 : f32 to vector<1x128xf32>
    %1006 = arith.addf %1004, %1005 : vector<1x128xf32>
    %1007 = vector.extract_strided_slice %990 {offsets = [0, 256], sizes = [1, 128], strides = [1, 1]} : vector<1x512xf32> to vector<1x128xf32>
    %1008 = math.tanh %1007 : vector<1x128xf32>
    %1009 = vector.extract_strided_slice %990 {offsets = [0, 384], sizes = [1, 128], strides = [1, 1]} : vector<1x512xf32> to vector<1x128xf32>
    %cst_440 = arith.constant 5.000000e-01 : f32
    %1010 = vector.broadcast %cst_440 : f32 to vector<1x128xf32>
    %1011 = arith.mulf %1010, %1009 : vector<1x128xf32>
    %1012 = math.tanh %1011 : vector<1x128xf32>
    %cst_441 = arith.constant 5.000000e-01 : f32
    %1013 = vector.broadcast %cst_441 : f32 to vector<1x128xf32>
    %1014 = arith.mulf %1013, %1012 : vector<1x128xf32>
    %cst_442 = arith.constant 5.000000e-01 : f32
    %1015 = vector.broadcast %cst_442 : f32 to vector<1x128xf32>
    %1016 = arith.addf %1014, %1015 : vector<1x128xf32>
    %1017 = arith.mulf %1006, %985 : vector<1x128xf32>
    %1018 = arith.mulf %998, %1008 : vector<1x128xf32>
    %1019 = arith.addf %1017, %1018 : vector<1x128xf32>
    %1020 = math.tanh %1019 : vector<1x128xf32>
    %1021 = arith.mulf %1016, %1020 : vector<1x128xf32>
    %c0_443 = arith.constant 0 : index
    %c0_444 = arith.constant 0 : index
    %1022 = vector.load %arg16[%c0_443, %c0_444] : memref<8x128xf32, #tpu.memory_space<vmem>>, vector<1x128xf32>
    tpu.vector_store %arg16[%c0_443, %c0_444], %1021 {strides = array<i32>} : memref<8x128xf32, #tpu.memory_space<vmem>>, vector<1x128xf32>,
    %1023 = vector.extract_strided_slice %983 {offsets = [1, 0], sizes = [1, 512], strides = [1, 1]} : vector<8x512xf32> to vector<1x512xf32>
    %c2_445 = arith.constant 2 : index
    %c0_446 = arith.constant 0 : index
    %c0_447 = arith.constant 0 : index
    %1024 = vector.load %arg19[%c2_445, %c0_446, %c0_447] : memref<3x128x512xf32, #tpu.memory_space<vmem>>, vector<1x128x512xf32>
    %1025 = vector.shape_cast %1024 : vector<1x128x512xf32> to vector<128x512xf32>
    %cst_448 = arith.constant dense<0.000000e+00> : vector<1x512xf32>
    %1026 = tpu.matmul %1021, %1025, %cst_448 {dimension_numbers = #tpu.dot_dimension_numbers<[1], [0], [0], [1], [0, 0, 1, 1], [], []>} : vector<1x128xf32>, vector<128x512xf32>, vector<1x512xf32> -> vector<1x512xf32>
    %1027 = arith.addf %1023, %1026 : vector<1x512xf32>
    %1028 = vector.extract_strided_slice %1027 {offsets = [0, 0], sizes = [1, 128], strides = [1, 1]} : vector<1x512xf32> to vector<1x128xf32>
    %cst_449 = arith.constant 5.000000e-01 : f32
    %1029 = vector.broadcast %cst_449 : f32 to vector<1x128xf32>
    %1030 = arith.mulf %1029, %1028 : vector<1x128xf32>
    %1031 = math.tanh %1030 : vector<1x128xf32>
    %cst_450 = arith.constant 5.000000e-01 : f32
    %1032 = vector.broadcast %cst_450 : f32 to vector<1x128xf32>
    %1033 = arith.mulf %1032, %1031 : vector<1x128xf32>
    %cst_451 = arith.constant 5.000000e-01 : f32
    %1034 = vector.broadcast %cst_451 : f32 to vector<1x128xf32>
    %1035 = arith.addf %1033, %1034 : vector<1x128xf32>
    %1036 = vector.extract_strided_slice %1027 {offsets = [0, 128], sizes = [1, 128], strides = [1, 1]} : vector<1x512xf32> to vector<1x128xf32>
    %cst_452 = arith.constant 5.000000e-01 : f32
    %1037 = vector.broadcast %cst_452 : f32 to vector<1x128xf32>
    %1038 = arith.mulf %1037, %1036 : vector<1x128xf32>
    %1039 = math.tanh %1038 : vector<1x128xf32>
    %cst_453 = arith.constant 5.000000e-01 : f32
    %1040 = vector.broadcast %cst_453 : f32 to vector<1x128xf32>
    %1041 = arith.mulf %1040, %1039 : vector<1x128xf32>
    %cst_454 = arith.constant 5.000000e-01 : f32
    %1042 = vector.broadcast %cst_454 : f32 to vector<1x128xf32>
    %1043 = arith.addf %1041, %1042 : vector<1x128xf32>
    %1044 = vector.extract_strided_slice %1027 {offsets = [0, 256], sizes = [1, 128], strides = [1, 1]} : vector<1x512xf32> to vector<1x128xf32>
    %1045 = math.tanh %1044 : vector<1x128xf32>
    %1046 = vector.extract_strided_slice %1027 {offsets = [0, 384], sizes = [1, 128], strides = [1, 1]} : vector<1x512xf32> to vector<1x128xf32>
    %cst_455 = arith.constant 5.000000e-01 : f32
    %1047 = vector.broadcast %cst_455 : f32 to vector<1x128xf32>
    %1048 = arith.mulf %1047, %1046 : vector<1x128xf32>
    %1049 = math.tanh %1048 : vector<1x128xf32>
    %cst_456 = arith.constant 5.000000e-01 : f32
    %1050 = vector.broadcast %cst_456 : f32 to vector<1x128xf32>
    %1051 = arith.mulf %1050, %1049 : vector<1x128xf32>
    %cst_457 = arith.constant 5.000000e-01 : f32
    %1052 = vector.broadcast %cst_457 : f32 to vector<1x128xf32>
    %1053 = arith.addf %1051, %1052 : vector<1x128xf32>
    %1054 = arith.mulf %1043, %1019 : vector<1x128xf32>
    %1055 = arith.mulf %1035, %1045 : vector<1x128xf32>
    %1056 = arith.addf %1054, %1055 : vector<1x128xf32>
    %1057 = math.tanh %1056 : vector<1x128xf32>
    %1058 = arith.mulf %1053, %1057 : vector<1x128xf32>
    %c1_458 = arith.constant 1 : index
    %c0_459 = arith.constant 0 : index
    %1059 = vector.load %arg16[%c1_458, %c0_459] : memref<8x128xf32, #tpu.memory_space<vmem>>, vector<1x128xf32>
    tpu.vector_store %arg16[%c1_458, %c0_459], %1058 {strides = array<i32>} : memref<8x128xf32, #tpu.memory_space<vmem>>, vector<1x128xf32>,
    %1060 = vector.extract_strided_slice %983 {offsets = [2, 0], sizes = [1, 512], strides = [1, 1]} : vector<8x512xf32> to vector<1x512xf32>
    %c2_460 = arith.constant 2 : index
    %c0_461 = arith.constant 0 : index
    %c0_462 = arith.constant 0 : index
    %1061 = vector.load %arg19[%c2_460, %c0_461, %c0_462] : memref<3x128x512xf32, #tpu.memory_space<vmem>>, vector<1x128x512xf32>
    %1062 = vector.shape_cast %1061 : vector<1x128x512xf32> to vector<128x512xf32>
    %cst_463 = arith.constant dense<0.000000e+00> : vector<1x512xf32>
    %1063 = tpu.matmul %1058, %1062, %cst_463 {dimension_numbers = #tpu.dot_dimension_numbers<[1], [0], [0], [1], [0, 0, 1, 1], [], []>} : vector<1x128xf32>, vector<128x512xf32>, vector<1x512xf32> -> vector<1x512xf32>
    %1064 = arith.addf %1060, %1063 : vector<1x512xf32>
    %1065 = vector.extract_strided_slice %1064 {offsets = [0, 0], sizes = [1, 128], strides = [1, 1]} : vector<1x512xf32> to vector<1x128xf32>
    %cst_464 = arith.constant 5.000000e-01 : f32
    %1066 = vector.broadcast %cst_464 : f32 to vector<1x128xf32>
    %1067 = arith.mulf %1066, %1065 : vector<1x128xf32>
    %1068 = math.tanh %1067 : vector<1x128xf32>
    %cst_465 = arith.constant 5.000000e-01 : f32
    %1069 = vector.broadcast %cst_465 : f32 to vector<1x128xf32>
    %1070 = arith.mulf %1069, %1068 : vector<1x128xf32>
    %cst_466 = arith.constant 5.000000e-01 : f32
    %1071 = vector.broadcast %cst_466 : f32 to vector<1x128xf32>
    %1072 = arith.addf %1070, %1071 : vector<1x128xf32>
    %1073 = vector.extract_strided_slice %1064 {offsets = [0, 128], sizes = [1, 128], strides = [1, 1]} : vector<1x512xf32> to vector<1x128xf32>
    %cst_467 = arith.constant 5.000000e-01 : f32
    %1074 = vector.broadcast %cst_467 : f32 to vector<1x128xf32>
    %1075 = arith.mulf %1074, %1073 : vector<1x128xf32>
    %1076 = math.tanh %1075 : vector<1x128xf32>
    %cst_468 = arith.constant 5.000000e-01 : f32
    %1077 = vector.broadcast %cst_468 : f32 to vector<1x128xf32>
    %1078 = arith.mulf %1077, %1076 : vector<1x128xf32>
    %cst_469 = arith.constant 5.000000e-01 : f32
    %1079 = vector.broadcast %cst_469 : f32 to vector<1x128xf32>
    %1080 = arith.addf %1078, %1079 : vector<1x128xf32>
    %1081 = vector.extract_strided_slice %1064 {offsets = [0, 256], sizes = [1, 128], strides = [1, 1]} : vector<1x512xf32> to vector<1x128xf32>
    %1082 = math.tanh %1081 : vector<1x128xf32>
    %1083 = vector.extract_strided_slice %1064 {offsets = [0, 384], sizes = [1, 128], strides = [1, 1]} : vector<1x512xf32> to vector<1x128xf32>
    %cst_470 = arith.constant 5.000000e-01 : f32
    %1084 = vector.broadcast %cst_470 : f32 to vector<1x128xf32>
    %1085 = arith.mulf %1084, %1083 : vector<1x128xf32>
    %1086 = math.tanh %1085 : vector<1x128xf32>
    %cst_471 = arith.constant 5.000000e-01 : f32
    %1087 = vector.broadcast %cst_471 : f32 to vector<1x128xf32>
    %1088 = arith.mulf %1087, %1086 : vector<1x128xf32>
    %cst_472 = arith.constant 5.000000e-01 : f32
    %1089 = vector.broadcast %cst_472 : f32 to vector<1x128xf32>
    %1090 = arith.addf %1088, %1089 : vector<1x128xf32>
    %1091 = arith.mulf %1080, %1056 : vector<1x128xf32>
    %1092 = arith.mulf %1072, %1082 : vector<1x128xf32>
    %1093 = arith.addf %1091, %1092 : vector<1x128xf32>
    %1094 = math.tanh %1093 : vector<1x128xf32>
    %1095 = arith.mulf %1090, %1094 : vector<1x128xf32>
    %c2_473 = arith.constant 2 : index
    %c0_474 = arith.constant 0 : index
    %1096 = vector.load %arg16[%c2_473, %c0_474] : memref<8x128xf32, #tpu.memory_space<vmem>>, vector<1x128xf32>
    tpu.vector_store %arg16[%c2_473, %c0_474], %1095 {strides = array<i32>} : memref<8x128xf32, #tpu.memory_space<vmem>>, vector<1x128xf32>,
    %1097 = vector.extract_strided_slice %983 {offsets = [3, 0], sizes = [1, 512], strides = [1, 1]} : vector<8x512xf32> to vector<1x512xf32>
    %c2_475 = arith.constant 2 : index
    %c0_476 = arith.constant 0 : index
    %c0_477 = arith.constant 0 : index
    %1098 = vector.load %arg19[%c2_475, %c0_476, %c0_477] : memref<3x128x512xf32, #tpu.memory_space<vmem>>, vector<1x128x512xf32>
    %1099 = vector.shape_cast %1098 : vector<1x128x512xf32> to vector<128x512xf32>
    %cst_478 = arith.constant dense<0.000000e+00> : vector<1x512xf32>
    %1100 = tpu.matmul %1095, %1099, %cst_478 {dimension_numbers = #tpu.dot_dimension_numbers<[1], [0], [0], [1], [0, 0, 1, 1], [], []>} : vector<1x128xf32>, vector<128x512xf32>, vector<1x512xf32> -> vector<1x512xf32>
    %1101 = arith.addf %1097, %1100 : vector<1x512xf32>
    %1102 = vector.extract_strided_slice %1101 {offsets = [0, 0], sizes = [1, 128], strides = [1, 1]} : vector<1x512xf32> to vector<1x128xf32>
    %cst_479 = arith.constant 5.000000e-01 : f32
    %1103 = vector.broadcast %cst_479 : f32 to vector<1x128xf32>
    %1104 = arith.mulf %1103, %1102 : vector<1x128xf32>
    %1105 = math.tanh %1104 : vector<1x128xf32>
    %cst_480 = arith.constant 5.000000e-01 : f32
    %1106 = vector.broadcast %cst_480 : f32 to vector<1x128xf32>
    %1107 = arith.mulf %1106, %1105 : vector<1x128xf32>
    %cst_481 = arith.constant 5.000000e-01 : f32
    %1108 = vector.broadcast %cst_481 : f32 to vector<1x128xf32>
    %1109 = arith.addf %1107, %1108 : vector<1x128xf32>
    %1110 = vector.extract_strided_slice %1101 {offsets = [0, 128], sizes = [1, 128], strides = [1, 1]} : vector<1x512xf32> to vector<1x128xf32>
    %cst_482 = arith.constant 5.000000e-01 : f32
    %1111 = vector.broadcast %cst_482 : f32 to vector<1x128xf32>
    %1112 = arith.mulf %1111, %1110 : vector<1x128xf32>
    %1113 = math.tanh %1112 : vector<1x128xf32>
    %cst_483 = arith.constant 5.000000e-01 : f32
    %1114 = vector.broadcast %cst_483 : f32 to vector<1x128xf32>
    %1115 = arith.mulf %1114, %1113 : vector<1x128xf32>
    %cst_484 = arith.constant 5.000000e-01 : f32
    %1116 = vector.broadcast %cst_484 : f32 to vector<1x128xf32>
    %1117 = arith.addf %1115, %1116 : vector<1x128xf32>
    %1118 = vector.extract_strided_slice %1101 {offsets = [0, 256], sizes = [1, 128], strides = [1, 1]} : vector<1x512xf32> to vector<1x128xf32>
    %1119 = math.tanh %1118 : vector<1x128xf32>
    %1120 = vector.extract_strided_slice %1101 {offsets = [0, 384], sizes = [1, 128], strides = [1, 1]} : vector<1x512xf32> to vector<1x128xf32>
    %cst_485 = arith.constant 5.000000e-01 : f32
    %1121 = vector.broadcast %cst_485 : f32 to vector<1x128xf32>
    %1122 = arith.mulf %1121, %1120 : vector<1x128xf32>
    %1123 = math.tanh %1122 : vector<1x128xf32>
    %cst_486 = arith.constant 5.000000e-01 : f32
    %1124 = vector.broadcast %cst_486 : f32 to vector<1x128xf32>
    %1125 = arith.mulf %1124, %1123 : vector<1x128xf32>
    %cst_487 = arith.constant 5.000000e-01 : f32
    %1126 = vector.broadcast %cst_487 : f32 to vector<1x128xf32>
    %1127 = arith.addf %1125, %1126 : vector<1x128xf32>
    %1128 = arith.mulf %1117, %1093 : vector<1x128xf32>
    %1129 = arith.mulf %1109, %1119 : vector<1x128xf32>
    %1130 = arith.addf %1128, %1129 : vector<1x128xf32>
    %1131 = math.tanh %1130 : vector<1x128xf32>
    %1132 = arith.mulf %1127, %1131 : vector<1x128xf32>
    %c3_488 = arith.constant 3 : index
    %c0_489 = arith.constant 0 : index
    %1133 = vector.load %arg16[%c3_488, %c0_489] : memref<8x128xf32, #tpu.memory_space<vmem>>, vector<1x128xf32>
    tpu.vector_store %arg16[%c3_488, %c0_489], %1132 {strides = array<i32>} : memref<8x128xf32, #tpu.memory_space<vmem>>, vector<1x128xf32>,
    %1134 = vector.extract_strided_slice %983 {offsets = [4, 0], sizes = [1, 512], strides = [1, 1]} : vector<8x512xf32> to vector<1x512xf32>
    %c2_490 = arith.constant 2 : index
    %c0_491 = arith.constant 0 : index
    %c0_492 = arith.constant 0 : index
    %1135 = vector.load %arg19[%c2_490, %c0_491, %c0_492] : memref<3x128x512xf32, #tpu.memory_space<vmem>>, vector<1x128x512xf32>
    %1136 = vector.shape_cast %1135 : vector<1x128x512xf32> to vector<128x512xf32>
    %cst_493 = arith.constant dense<0.000000e+00> : vector<1x512xf32>
    %1137 = tpu.matmul %1132, %1136, %cst_493 {dimension_numbers = #tpu.dot_dimension_numbers<[1], [0], [0], [1], [0, 0, 1, 1], [], []>} : vector<1x128xf32>, vector<128x512xf32>, vector<1x512xf32> -> vector<1x512xf32>
    %1138 = arith.addf %1134, %1137 : vector<1x512xf32>
    %1139 = vector.extract_strided_slice %1138 {offsets = [0, 0], sizes = [1, 128], strides = [1, 1]} : vector<1x512xf32> to vector<1x128xf32>
    %cst_494 = arith.constant 5.000000e-01 : f32
    %1140 = vector.broadcast %cst_494 : f32 to vector<1x128xf32>
    %1141 = arith.mulf %1140, %1139 : vector<1x128xf32>
    %1142 = math.tanh %1141 : vector<1x128xf32>
    %cst_495 = arith.constant 5.000000e-01 : f32
    %1143 = vector.broadcast %cst_495 : f32 to vector<1x128xf32>
    %1144 = arith.mulf %1143, %1142 : vector<1x128xf32>
    %cst_496 = arith.constant 5.000000e-01 : f32
    %1145 = vector.broadcast %cst_496 : f32 to vector<1x128xf32>
    %1146 = arith.addf %1144, %1145 : vector<1x128xf32>
    %1147 = vector.extract_strided_slice %1138 {offsets = [0, 128], sizes = [1, 128], strides = [1, 1]} : vector<1x512xf32> to vector<1x128xf32>
    %cst_497 = arith.constant 5.000000e-01 : f32
    %1148 = vector.broadcast %cst_497 : f32 to vector<1x128xf32>
    %1149 = arith.mulf %1148, %1147 : vector<1x128xf32>
    %1150 = math.tanh %1149 : vector<1x128xf32>
    %cst_498 = arith.constant 5.000000e-01 : f32
    %1151 = vector.broadcast %cst_498 : f32 to vector<1x128xf32>
    %1152 = arith.mulf %1151, %1150 : vector<1x128xf32>
    %cst_499 = arith.constant 5.000000e-01 : f32
    %1153 = vector.broadcast %cst_499 : f32 to vector<1x128xf32>
    %1154 = arith.addf %1152, %1153 : vector<1x128xf32>
    %1155 = vector.extract_strided_slice %1138 {offsets = [0, 256], sizes = [1, 128], strides = [1, 1]} : vector<1x512xf32> to vector<1x128xf32>
    %1156 = math.tanh %1155 : vector<1x128xf32>
    %1157 = vector.extract_strided_slice %1138 {offsets = [0, 384], sizes = [1, 128], strides = [1, 1]} : vector<1x512xf32> to vector<1x128xf32>
    %cst_500 = arith.constant 5.000000e-01 : f32
    %1158 = vector.broadcast %cst_500 : f32 to vector<1x128xf32>
    %1159 = arith.mulf %1158, %1157 : vector<1x128xf32>
    %1160 = math.tanh %1159 : vector<1x128xf32>
    %cst_501 = arith.constant 5.000000e-01 : f32
    %1161 = vector.broadcast %cst_501 : f32 to vector<1x128xf32>
    %1162 = arith.mulf %1161, %1160 : vector<1x128xf32>
    %cst_502 = arith.constant 5.000000e-01 : f32
    %1163 = vector.broadcast %cst_502 : f32 to vector<1x128xf32>
    %1164 = arith.addf %1162, %1163 : vector<1x128xf32>
    %1165 = arith.mulf %1154, %1130 : vector<1x128xf32>
    %1166 = arith.mulf %1146, %1156 : vector<1x128xf32>
    %1167 = arith.addf %1165, %1166 : vector<1x128xf32>
    %1168 = math.tanh %1167 : vector<1x128xf32>
    %1169 = arith.mulf %1164, %1168 : vector<1x128xf32>
    %c4_503 = arith.constant 4 : index
    %c0_504 = arith.constant 0 : index
    %1170 = vector.load %arg16[%c4_503, %c0_504] : memref<8x128xf32, #tpu.memory_space<vmem>>, vector<1x128xf32>
    tpu.vector_store %arg16[%c4_503, %c0_504], %1169 {strides = array<i32>} : memref<8x128xf32, #tpu.memory_space<vmem>>, vector<1x128xf32>,
    %1171 = vector.extract_strided_slice %983 {offsets = [5, 0], sizes = [1, 512], strides = [1, 1]} : vector<8x512xf32> to vector<1x512xf32>
    %c2_505 = arith.constant 2 : index
    %c0_506 = arith.constant 0 : index
    %c0_507 = arith.constant 0 : index
    %1172 = vector.load %arg19[%c2_505, %c0_506, %c0_507] : memref<3x128x512xf32, #tpu.memory_space<vmem>>, vector<1x128x512xf32>
    %1173 = vector.shape_cast %1172 : vector<1x128x512xf32> to vector<128x512xf32>
    %cst_508 = arith.constant dense<0.000000e+00> : vector<1x512xf32>
    %1174 = tpu.matmul %1169, %1173, %cst_508 {dimension_numbers = #tpu.dot_dimension_numbers<[1], [0], [0], [1], [0, 0, 1, 1], [], []>} : vector<1x128xf32>, vector<128x512xf32>, vector<1x512xf32> -> vector<1x512xf32>
    %1175 = arith.addf %1171, %1174 : vector<1x512xf32>
    %1176 = vector.extract_strided_slice %1175 {offsets = [0, 0], sizes = [1, 128], strides = [1, 1]} : vector<1x512xf32> to vector<1x128xf32>
    %cst_509 = arith.constant 5.000000e-01 : f32
    %1177 = vector.broadcast %cst_509 : f32 to vector<1x128xf32>
    %1178 = arith.mulf %1177, %1176 : vector<1x128xf32>
    %1179 = math.tanh %1178 : vector<1x128xf32>
    %cst_510 = arith.constant 5.000000e-01 : f32
    %1180 = vector.broadcast %cst_510 : f32 to vector<1x128xf32>
    %1181 = arith.mulf %1180, %1179 : vector<1x128xf32>
    %cst_511 = arith.constant 5.000000e-01 : f32
    %1182 = vector.broadcast %cst_511 : f32 to vector<1x128xf32>
    %1183 = arith.addf %1181, %1182 : vector<1x128xf32>
    %1184 = vector.extract_strided_slice %1175 {offsets = [0, 128], sizes = [1, 128], strides = [1, 1]} : vector<1x512xf32> to vector<1x128xf32>
    %cst_512 = arith.constant 5.000000e-01 : f32
    %1185 = vector.broadcast %cst_512 : f32 to vector<1x128xf32>
    %1186 = arith.mulf %1185, %1184 : vector<1x128xf32>
    %1187 = math.tanh %1186 : vector<1x128xf32>
    %cst_513 = arith.constant 5.000000e-01 : f32
    %1188 = vector.broadcast %cst_513 : f32 to vector<1x128xf32>
    %1189 = arith.mulf %1188, %1187 : vector<1x128xf32>
    %cst_514 = arith.constant 5.000000e-01 : f32
    %1190 = vector.broadcast %cst_514 : f32 to vector<1x128xf32>
    %1191 = arith.addf %1189, %1190 : vector<1x128xf32>
    %1192 = vector.extract_strided_slice %1175 {offsets = [0, 256], sizes = [1, 128], strides = [1, 1]} : vector<1x512xf32> to vector<1x128xf32>
    %1193 = math.tanh %1192 : vector<1x128xf32>
    %1194 = vector.extract_strided_slice %1175 {offsets = [0, 384], sizes = [1, 128], strides = [1, 1]} : vector<1x512xf32> to vector<1x128xf32>
    %cst_515 = arith.constant 5.000000e-01 : f32
    %1195 = vector.broadcast %cst_515 : f32 to vector<1x128xf32>
    %1196 = arith.mulf %1195, %1194 : vector<1x128xf32>
    %1197 = math.tanh %1196 : vector<1x128xf32>
    %cst_516 = arith.constant 5.000000e-01 : f32
    %1198 = vector.broadcast %cst_516 : f32 to vector<1x128xf32>
    %1199 = arith.mulf %1198, %1197 : vector<1x128xf32>
    %cst_517 = arith.constant 5.000000e-01 : f32
    %1200 = vector.broadcast %cst_517 : f32 to vector<1x128xf32>
    %1201 = arith.addf %1199, %1200 : vector<1x128xf32>
    %1202 = arith.mulf %1191, %1167 : vector<1x128xf32>
    %1203 = arith.mulf %1183, %1193 : vector<1x128xf32>
    %1204 = arith.addf %1202, %1203 : vector<1x128xf32>
    %1205 = math.tanh %1204 : vector<1x128xf32>
    %1206 = arith.mulf %1201, %1205 : vector<1x128xf32>
    %c5_518 = arith.constant 5 : index
    %c0_519 = arith.constant 0 : index
    %1207 = vector.load %arg16[%c5_518, %c0_519] : memref<8x128xf32, #tpu.memory_space<vmem>>, vector<1x128xf32>
    tpu.vector_store %arg16[%c5_518, %c0_519], %1206 {strides = array<i32>} : memref<8x128xf32, #tpu.memory_space<vmem>>, vector<1x128xf32>,
    %1208 = vector.extract_strided_slice %983 {offsets = [6, 0], sizes = [1, 512], strides = [1, 1]} : vector<8x512xf32> to vector<1x512xf32>
    %c2_520 = arith.constant 2 : index
    %c0_521 = arith.constant 0 : index
    %c0_522 = arith.constant 0 : index
    %1209 = vector.load %arg19[%c2_520, %c0_521, %c0_522] : memref<3x128x512xf32, #tpu.memory_space<vmem>>, vector<1x128x512xf32>
    %1210 = vector.shape_cast %1209 : vector<1x128x512xf32> to vector<128x512xf32>
    %cst_523 = arith.constant dense<0.000000e+00> : vector<1x512xf32>
    %1211 = tpu.matmul %1206, %1210, %cst_523 {dimension_numbers = #tpu.dot_dimension_numbers<[1], [0], [0], [1], [0, 0, 1, 1], [], []>} : vector<1x128xf32>, vector<128x512xf32>, vector<1x512xf32> -> vector<1x512xf32>
    %1212 = arith.addf %1208, %1211 : vector<1x512xf32>
    %1213 = vector.extract_strided_slice %1212 {offsets = [0, 0], sizes = [1, 128], strides = [1, 1]} : vector<1x512xf32> to vector<1x128xf32>
    %cst_524 = arith.constant 5.000000e-01 : f32
    %1214 = vector.broadcast %cst_524 : f32 to vector<1x128xf32>
    %1215 = arith.mulf %1214, %1213 : vector<1x128xf32>
    %1216 = math.tanh %1215 : vector<1x128xf32>
    %cst_525 = arith.constant 5.000000e-01 : f32
    %1217 = vector.broadcast %cst_525 : f32 to vector<1x128xf32>
    %1218 = arith.mulf %1217, %1216 : vector<1x128xf32>
    %cst_526 = arith.constant 5.000000e-01 : f32
    %1219 = vector.broadcast %cst_526 : f32 to vector<1x128xf32>
    %1220 = arith.addf %1218, %1219 : vector<1x128xf32>
    %1221 = vector.extract_strided_slice %1212 {offsets = [0, 128], sizes = [1, 128], strides = [1, 1]} : vector<1x512xf32> to vector<1x128xf32>
    %cst_527 = arith.constant 5.000000e-01 : f32
    %1222 = vector.broadcast %cst_527 : f32 to vector<1x128xf32>
    %1223 = arith.mulf %1222, %1221 : vector<1x128xf32>
    %1224 = math.tanh %1223 : vector<1x128xf32>
    %cst_528 = arith.constant 5.000000e-01 : f32
    %1225 = vector.broadcast %cst_528 : f32 to vector<1x128xf32>
    %1226 = arith.mulf %1225, %1224 : vector<1x128xf32>
    %cst_529 = arith.constant 5.000000e-01 : f32
    %1227 = vector.broadcast %cst_529 : f32 to vector<1x128xf32>
    %1228 = arith.addf %1226, %1227 : vector<1x128xf32>
    %1229 = vector.extract_strided_slice %1212 {offsets = [0, 256], sizes = [1, 128], strides = [1, 1]} : vector<1x512xf32> to vector<1x128xf32>
    %1230 = math.tanh %1229 : vector<1x128xf32>
    %1231 = vector.extract_strided_slice %1212 {offsets = [0, 384], sizes = [1, 128], strides = [1, 1]} : vector<1x512xf32> to vector<1x128xf32>
    %cst_530 = arith.constant 5.000000e-01 : f32
    %1232 = vector.broadcast %cst_530 : f32 to vector<1x128xf32>
    %1233 = arith.mulf %1232, %1231 : vector<1x128xf32>
    %1234 = math.tanh %1233 : vector<1x128xf32>
    %cst_531 = arith.constant 5.000000e-01 : f32
    %1235 = vector.broadcast %cst_531 : f32 to vector<1x128xf32>
    %1236 = arith.mulf %1235, %1234 : vector<1x128xf32>
    %cst_532 = arith.constant 5.000000e-01 : f32
    %1237 = vector.broadcast %cst_532 : f32 to vector<1x128xf32>
    %1238 = arith.addf %1236, %1237 : vector<1x128xf32>
    %1239 = arith.mulf %1228, %1204 : vector<1x128xf32>
    %1240 = arith.mulf %1220, %1230 : vector<1x128xf32>
    %1241 = arith.addf %1239, %1240 : vector<1x128xf32>
    %1242 = math.tanh %1241 : vector<1x128xf32>
    %1243 = arith.mulf %1238, %1242 : vector<1x128xf32>
    %c6_533 = arith.constant 6 : index
    %c0_534 = arith.constant 0 : index
    %1244 = vector.load %arg16[%c6_533, %c0_534] : memref<8x128xf32, #tpu.memory_space<vmem>>, vector<1x128xf32>
    tpu.vector_store %arg16[%c6_533, %c0_534], %1243 {strides = array<i32>} : memref<8x128xf32, #tpu.memory_space<vmem>>, vector<1x128xf32>,
    %1245 = vector.extract_strided_slice %983 {offsets = [7, 0], sizes = [1, 512], strides = [1, 1]} : vector<8x512xf32> to vector<1x512xf32>
    %c2_535 = arith.constant 2 : index
    %c0_536 = arith.constant 0 : index
    %c0_537 = arith.constant 0 : index
    %1246 = vector.load %arg19[%c2_535, %c0_536, %c0_537] : memref<3x128x512xf32, #tpu.memory_space<vmem>>, vector<1x128x512xf32>
    %1247 = vector.shape_cast %1246 : vector<1x128x512xf32> to vector<128x512xf32>
    %cst_538 = arith.constant dense<0.000000e+00> : vector<1x512xf32>
    %1248 = tpu.matmul %1243, %1247, %cst_538 {dimension_numbers = #tpu.dot_dimension_numbers<[1], [0], [0], [1], [0, 0, 1, 1], [], []>} : vector<1x128xf32>, vector<128x512xf32>, vector<1x512xf32> -> vector<1x512xf32>
    %1249 = arith.addf %1245, %1248 : vector<1x512xf32>
    %1250 = vector.extract_strided_slice %1249 {offsets = [0, 0], sizes = [1, 128], strides = [1, 1]} : vector<1x512xf32> to vector<1x128xf32>
    %cst_539 = arith.constant 5.000000e-01 : f32
    %1251 = vector.broadcast %cst_539 : f32 to vector<1x128xf32>
    %1252 = arith.mulf %1251, %1250 : vector<1x128xf32>
    %1253 = math.tanh %1252 : vector<1x128xf32>
    %cst_540 = arith.constant 5.000000e-01 : f32
    %1254 = vector.broadcast %cst_540 : f32 to vector<1x128xf32>
    %1255 = arith.mulf %1254, %1253 : vector<1x128xf32>
    %cst_541 = arith.constant 5.000000e-01 : f32
    %1256 = vector.broadcast %cst_541 : f32 to vector<1x128xf32>
    %1257 = arith.addf %1255, %1256 : vector<1x128xf32>
    %1258 = vector.extract_strided_slice %1249 {offsets = [0, 128], sizes = [1, 128], strides = [1, 1]} : vector<1x512xf32> to vector<1x128xf32>
    %cst_542 = arith.constant 5.000000e-01 : f32
    %1259 = vector.broadcast %cst_542 : f32 to vector<1x128xf32>
    %1260 = arith.mulf %1259, %1258 : vector<1x128xf32>
    %1261 = math.tanh %1260 : vector<1x128xf32>
    %cst_543 = arith.constant 5.000000e-01 : f32
    %1262 = vector.broadcast %cst_543 : f32 to vector<1x128xf32>
    %1263 = arith.mulf %1262, %1261 : vector<1x128xf32>
    %cst_544 = arith.constant 5.000000e-01 : f32
    %1264 = vector.broadcast %cst_544 : f32 to vector<1x128xf32>
    %1265 = arith.addf %1263, %1264 : vector<1x128xf32>
    %1266 = vector.extract_strided_slice %1249 {offsets = [0, 256], sizes = [1, 128], strides = [1, 1]} : vector<1x512xf32> to vector<1x128xf32>
    %1267 = math.tanh %1266 : vector<1x128xf32>
    %1268 = vector.extract_strided_slice %1249 {offsets = [0, 384], sizes = [1, 128], strides = [1, 1]} : vector<1x512xf32> to vector<1x128xf32>
    %cst_545 = arith.constant 5.000000e-01 : f32
    %1269 = vector.broadcast %cst_545 : f32 to vector<1x128xf32>
    %1270 = arith.mulf %1269, %1268 : vector<1x128xf32>
    %1271 = math.tanh %1270 : vector<1x128xf32>
    %cst_546 = arith.constant 5.000000e-01 : f32
    %1272 = vector.broadcast %cst_546 : f32 to vector<1x128xf32>
    %1273 = arith.mulf %1272, %1271 : vector<1x128xf32>
    %cst_547 = arith.constant 5.000000e-01 : f32
    %1274 = vector.broadcast %cst_547 : f32 to vector<1x128xf32>
    %1275 = arith.addf %1273, %1274 : vector<1x128xf32>
    %1276 = arith.mulf %1265, %1241 : vector<1x128xf32>
    %1277 = arith.mulf %1257, %1267 : vector<1x128xf32>
    %1278 = arith.addf %1276, %1277 : vector<1x128xf32>
    %1279 = math.tanh %1278 : vector<1x128xf32>
    %1280 = arith.mulf %1275, %1279 : vector<1x128xf32>
    %c7_548 = arith.constant 7 : index
    %c0_549 = arith.constant 0 : index
    %1281 = vector.load %arg16[%c7_548, %c0_549] : memref<8x128xf32, #tpu.memory_space<vmem>>, vector<1x128xf32>
    tpu.vector_store %arg16[%c7_548, %c0_549], %1280 {strides = array<i32>} : memref<8x128xf32, #tpu.memory_space<vmem>>, vector<1x128xf32>,
    %c9_i32_550 = arith.constant 9 : i32
    %1282 = tpu.memref_slice %arg23[%c9_i32_550] : memref<11x!tpu.dma_semaphore, #tpu.memory_space<semaphore_mem>> -> memref<1x!tpu.dma_semaphore, #tpu.memory_space<semaphore_mem>>
    %1283 = tpu.memref_squeeze %1282 : memref<1x!tpu.dma_semaphore, #tpu.memory_space<semaphore_mem>> -> memref<!tpu.dma_semaphore, #tpu.memory_space<semaphore_mem>>
    tpu.wait_dma2 semaphore(%1283 : memref<!tpu.dma_semaphore, #tpu.memory_space<semaphore_mem>>) src(%arg13 : memref<128x128xf32, #tpu.memory_space<any>>) dst(%arg21 : memref<128x128xf32, #tpu.memory_space<vmem>>)
    %c10_i32_551 = arith.constant 10 : i32
    %1284 = tpu.memref_slice %arg23[%c10_i32_551] : memref<11x!tpu.dma_semaphore, #tpu.memory_space<semaphore_mem>> -> memref<1x!tpu.dma_semaphore, #tpu.memory_space<semaphore_mem>>
    %1285 = tpu.memref_squeeze %1284 : memref<1x!tpu.dma_semaphore, #tpu.memory_space<semaphore_mem>> -> memref<!tpu.dma_semaphore, #tpu.memory_space<semaphore_mem>>
    tpu.wait_dma2 semaphore(%1285 : memref<!tpu.dma_semaphore, #tpu.memory_space<semaphore_mem>>) src(%arg14 : memref<1x128xf32, #tpu.memory_space<any>>) dst(%arg22 : memref<1x128xf32, #tpu.memory_space<vmem>>)
    %c0_552 = arith.constant 0 : index
    %c0_553 = arith.constant 0 : index
    %1286 = vector.load %arg16[%c0_552, %c0_553] : memref<8x128xf32, #tpu.memory_space<vmem>>, vector<8x128xf32>
    %c0_554 = arith.constant 0 : index
    %c0_555 = arith.constant 0 : index
    %1287 = vector.load %arg21[%c0_554, %c0_555] : memref<128x128xf32, #tpu.memory_space<vmem>>, vector<128x128xf32>
    %cst_556 = arith.constant dense<0.000000e+00> : vector<8x128xf32>
    %1288 = tpu.matmul %1286, %1287, %cst_556 {dimension_numbers = #tpu.dot_dimension_numbers<[1], [0], [0], [1], [0, 0, 1, 1], [], []>} : vector<8x128xf32>, vector<128x128xf32>, vector<8x128xf32> -> vector<8x128xf32>
    %c0_557 = arith.constant 0 : index
    %c0_558 = arith.constant 0 : index
    %1289 = vector.load %arg22[%c0_557, %c0_558] : memref<1x128xf32, #tpu.memory_space<vmem>>, vector<1x128xf32>
    %1290 = vector.broadcast %1289 : vector<1x128xf32> to vector<8x128xf32>
    %1291 = arith.addf %1288, %1290 : vector<8x128xf32>
    %c0_559 = arith.constant 0 : index
    %c0_560 = arith.constant 0 : index
    %1292 = vector.load %arg15[%c0_559, %c0_560] : memref<8x128xf32, #tpu.memory_space<vmem>>, vector<8x128xf32>
    tpu.vector_store %arg15[%c0_559, %c0_560], %1291 {strides = array<i32>} : memref<8x128xf32, #tpu.memory_space<vmem>>, vector<8x128xf32>,
    return
  }
}

</mosaic_0001>

<bundles_post_ra>
// kernel: lae_forward.1
= control target key start
LH: loop header
LB: loop body
LE: loop exit
PB: predicated region body
PF: predicated region fallthrough
CT: control target
= control target key end

     0   :  { %20 = vsyncpa [#allocation11], 0  ;;  %s13769_s0 = inlined_call_operand.vmem [shape: f32[8,128], index: 0, kind: input, shape index: {}]   ;;  %s13770_s1 = inlined_call_operand.hbm [shape: f32[128,512], index: 1, kind: input, shape index: {}]   ;;  %s13771_s2 = inlined_call_operand.hbm [shape: f32[128,512], index: 2, kind: input, shape index: {}]   ;;  %s13772_s3 = inlined_call_operand.vmem [shape: f32[1,512], index: 3, kind: input, shape index: {}]   ;;  %s13773_s4 = inlined_call_operand.hbm [shape: f32[128,512], index: 4, kind: input, shape index: {}]   ;;  %s13774_s5 = inlined_call_operand.hbm [shape: f32[128,512], index: 5, kind: input, shape index: {}]   ;;  %s13775_s6 = inlined_call_operand.vmem [shape: f32[1,512], index: 6, kind: input, shape index: {}]   ;;  %s13776_s7 = inlined_call_operand.hbm [shape: f32[128,512], index: 7, kind: input, shape index: {}]   ;;  %s13777_s8 = inlined_call_operand.hbm [shape: f32[128,512], index: 8, kind: input, shape index: {}]   ;;  %s13778_s9 = inlined_call_operand.vmem [shape: f32[1,512], index: 9, kind: input, shape index: {}]   ;;  %s13779_s10 = inlined_call_operand.hbm [shape: f32[128,512], index: 10, kind: input, shape index: {}]   ;;  %s13780_s11 = inlined_call_operand.hbm [shape: f32[128,512], index: 11, kind: input, shape index: {}]   ;;  %s13781_s12 = inlined_call_operand.vmem [shape: f32[1,512], index: 12, kind: input, shape index: {}]   ;;  %s13782_s13 = inlined_call_operand.hbm [shape: f32[128,128], index: 13, kind: input, shape index: {}]   ;;  %s13783_s14 = inlined_call_operand.vmem [shape: f32[1,128], index: 14, kind: input, shape index: {}]   ;;  %s13784_s15 = inlined_call_operand.vmem [shape: f32[8,128], index: 15, kind: output, shape index: {}]  }
   0x1   :  { %21 = vsyncpa [#allocation13], 0  ;;  %s11680_s18 = smov [#allocation10]   ;;  %s11456_s22 = scalar_lea.hbm %s13770_s1, 8192 }
   0x2   :  { %s29_s19 = sshll.u32 %s11680_s18, 4  ;;  %p11457_p0 = scmp.ne.s32.totalorder %s13770_s1, %s11456_s22  ;;  %s30_s19 = int_to_ptr.vmem [resolvable:$true] %s29_s19 }
   0x3   :  { %p11460_p1 = scmp.lt.u32.totalorder %s11456_s22, %s13770_s1 }
   0x5   :  { %p11462_p2 = pnand %p11460_p1, %p11457_p0 }
   0x7   :  { %11465 = shalt.err (!%p11462_p2)
}
   0x8   :  { %s11466_s27 = scalar_lea.vmem %s30_s19, 8192  ;;  %p11471_p4 = scmp.lt.s32.totalorder %s30_s19, %s30_s19 }
   0x9   :  { %p11467_p3 = scmp.ne.s32.totalorder %s30_s19, %s11466_s27  ;;  %p11472_p5 = scmp.lt.s32.totalorder %s11466_s27, %s11466_s27 }
   0xb   :  { %p11473_p6 = por %p11472_p5, %p11471_p4 }
   0xd   :  { %p11474_p7 = pnand %p11473_p6, %p11467_p3 }
   0xf   :  { %11477 = shalt.err (!%p11474_p7)
}
  0x10   :  { %s11681_s28 = smov 512   ;;  %s11682_s29 = smov 32  }
  0x11   :  { %35 = dma.hbm_to_vmem [thread:$0]  %s13770_s1, 8192, %s30_s19, [#allocation11], %s11681_s28, %s11681_s28, %s11682_s29  }
  0x12   :  { %s11683_s17 = smov [#allocation12]   ;;  %s11478_s22 = scalar_lea.hbm %s13771_s2, 8192 }
  0x13   :  { %s41_s18 = sshll.u32 %s11683_s17, 4  ;;  %p11479_p8 = scmp.ne.s32.totalorder %s13771_s2, %s11478_s22  ;;  %s42_s18 = int_to_ptr.vmem [resolvable:$true] %s41_s18 }
  0x14   :  { %p11482_p9 = scmp.lt.u32.totalorder %s11478_s22, %s13771_s2 }
  0x16   :  { %p11484_p10 = pnand %p11482_p9, %p11479_p8 }
  0x18   :  { %11487 = shalt.err (!%p11484_p10)
}
  0x19   :  { %s11488_s27 = scalar_lea.vmem %s42_s18, 8192  ;;  %p11493_p12 = scmp.lt.s32.totalorder %s42_s18, %s42_s18 }
  0x1a   :  { %p11489_p11 = scmp.ne.s32.totalorder %s42_s18, %s11488_s27  ;;  %p11494_p13 = scmp.lt.s32.totalorder %s11488_s27, %s11488_s27 }
  0x1c   :  { %p11495_p0 = por %p11494_p13, %p11493_p12 }
  0x1e   :  { %p11496_p1 = pnand %p11495_p0, %p11489_p11 }
  0x20   :  { %11499 = shalt.err (!%p11496_p1)
}
  0x21   :  { %47 = dma.hbm_to_vmem [thread:$0]  %s13771_s2, 8192, %s42_s18, [#allocation13], %s11681_s28, %s11681_s28, %s11682_s29  }
  0x22   :  { %11654 = dma.done.wait [#allocation11], 8192  }
  0x23   :  { %11655 = vsyncadd [#allocation11], 4294959104 }
  0x24   :  { %11656 = dma.done.wait [#allocation13], 8192  }
  0x25   :  { %11657 = vsyncadd [#allocation13], 4294959104  ;;  %s11684_s30 = smov [#allocation4]   ;;  %s11685_s17 = smov [#allocation5]  }
  0x26   :  { %s63_s16 = sshll.u32 %s11684_s30, 4  ;;  %s75_s20 = sshll.u32 %s11685_s17, 4  ;;  %s11798_s16 = int_to_ptr.vmem [resolvable:$true] %s63_s16  ;;  %s11800_s20 = int_to_ptr.vmem [resolvable:$true] %s75_s20 }
  0x27   :  { %s11500_s23 = scalar_lea.hbm %s13773_s4, 8192 }
  0x28   :  { %p11501_p2 = scmp.ne.s32.totalorder %s13773_s4, %s11500_s23  ;;  %p11504_p3 = scmp.lt.u32.totalorder %s11500_s23, %s13773_s4 }
  0x2a   :  { %p11506_p4 = pnand %p11504_p3, %p11501_p2 }
  0x2c   :  { %11509 = shalt.err (!%p11506_p4)  }
  0x2d   :  { %s11510_s29 = scalar_lea.vmem %s11798_s16, 8192  ;;  %s11814_s18 = scalar_lea.vmem %s11798_s16, 24576 }
  0x2e   :  { %p11511_p5 = scmp.ne.s32.totalorder %s11798_s16, %s11510_s29  ;;  %p11515_p6 = scmp.lt.s32.totalorder %s11798_s16, %s11798_s16 }
  0x2f   :  { %p11516_p7 = scmp.lt.s32.totalorder %s11814_s18, %s11510_s29 }
  0x31   :  { %p11517_p8 = por %p11516_p7, %p11515_p6 }
  0x33   :  { %p11518_p9 = pnand %p11517_p8, %p11511_p5 }
  0x35   :  { %11521 = shalt.err (!%p11518_p9)  }
  0x36   :  { %66 = dma.hbm_to_vmem [thread:$0]  %s13773_s4, 8192, %s11798_s16, [#allocation9] }
  0x37   :  { %s11522_s30 = scalar_lea.hbm %s13774_s5, 8192 }
  0x38   :  { %p11523_p10 = scmp.ne.s32.totalorder %s13774_s5, %s11522_s30  ;;  %p11526_p11 = scmp.lt.u32.totalorder %s11522_s30, %s13774_s5 }
  0x3a   :  { %p11528_p12 = pnand %p11526_p11, %p11523_p10 }
  0x3c   :  { %11531 = shalt.err (!%p11528_p12)  }
  0x3d   :  { %s11532_s24 = scalar_lea.vmem %s11800_s20, 8192  ;;  %s11835_s4 = scalar_lea.vmem %s11800_s20, 24576 }
  0x3e   :  { %p11533_p13 = scmp.ne.s32.totalorder %s11800_s20, %s11532_s24  ;;  %p11537_p0 = scmp.lt.s32.totalorder %s11800_s20, %s11800_s20 }
  0x3f   :  { %p11538_p1 = scmp.lt.s32.totalorder %s11835_s4, %s11532_s24 }
  0x41   :  { %p11539_p2 = por %p11538_p1, %p11537_p0 }
  0x43   :  { %p11540_p3 = pnand %p11539_p2, %p11533_p13 }
  0x45   :  { %11543 = shalt.err (!%p11540_p3)  }
  0x46   :  { %78 = dma.hbm_to_vmem [thread:$0]  %s13774_s5, 8192, %s11800_s20, [#allocation9 + $0x1]  ;;  %v97_v0 = vld [vmem:[%s13775_s6] sm:$0xf] }
  0x47   :  { %98 = vst [vmem:[#allocation6] sm:$0xf] %v97_v0 }
  0x48   :  { %123 = vsyncadd [#allocation9 + $0x2], 64  ;;  %v169_v1 = vld [vmem:[%s13778_s9] sm:$0xf]  ;;  %s11686_s1 = smov [#allocation4 + $0x200]   ;;  %s11687_s30 = smov [#allocation5 + $0x200]  }
  0x49   :  { %s133_s19 = sshll.u32 %s11686_s1, 4  ;;  %s146_s17 = sshll.u32 %s11687_s30, 4  ;;  %170 = vst [vmem:[#allocation6 + $0x4] sm:$0xf] %v169_v1  ;;  %s134_s19 = int_to_ptr.vmem [resolvable:$true] %s133_s19  ;;  %s147_s17 = int_to_ptr.vmem [resolvable:$true] %s146_s17 }
  0x4a   :  { %s11544_s5 = scalar_lea.hbm %s13776_s7, 8192 }
  0x4b   :  { %p11545_p4 = scmp.ne.s32.totalorder %s13776_s7, %s11544_s5  ;;  %p11548_p5 = scmp.lt.u32.totalorder %s11544_s5, %s13776_s7 }
  0x4d   :  { %p11550_p6 = pnand %p11548_p5, %p11545_p4 }
  0x4f   :  { %11553 = shalt.err (!%p11550_p6)  }
  0x50   :  { %s11554_s9 = scalar_lea.vmem %s134_s19, 8192  ;;  %p11559_p8 = scmp.lt.s32.totalorder %s134_s19, %s11798_s16 }
  0x51   :  { %p11555_p7 = scmp.ne.s32.totalorder %s134_s19, %s11554_s9  ;;  %p11560_p9 = scmp.lt.s32.totalorder %s11814_s18, %s11554_s9 }
  0x53   :  { %p11561_p10 = por %p11560_p9, %p11559_p8 }
  0x55   :  { %p11562_p11 = pnand %p11561_p10, %p11555_p7 }
  0x57   :  { %11565 = shalt.err (!%p11562_p11)  }
  0x58   :  { %136 = dma.hbm_to_vmem [thread:$0]  %s13776_s7, 8192, %s134_s19, [#allocation9 + $0x3] }
  0x59   :  { %s11566_s27 = scalar_lea.hbm %s13777_s8, 8192 }
  0x5a   :  { %p11567_p12 = scmp.ne.s32.totalorder %s13777_s8, %s11566_s27  ;;  %p11570_p13 = scmp.lt.u32.totalorder %s11566_s27, %s13777_s8 }
  0x5c   :  { %p11572_p0 = pnand %p11570_p13, %p11567_p12 }
  0x5e   :  { %11575 = shalt.err (!%p11572_p0)  }
  0x5f   :  { %s11576_s5 = scalar_lea.vmem %s147_s17, 8192  ;;  %p11581_p2 = scmp.lt.s32.totalorder %s147_s17, %s11800_s20 }
  0x60   :  { %p11577_p1 = scmp.ne.s32.totalorder %s147_s17, %s11576_s5  ;;  %p11582_p3 = scmp.lt.s32.totalorder %s11835_s4, %s11576_s5 }
  0x62   :  { %p11583_p4 = por %p11582_p3, %p11581_p2 }
  0x64   :  { %p11584_p5 = pnand %p11583_p4, %p11577_p1 }
  0x66   :  { %11587 = shalt.err (!%p11584_p5)  }
  0x67   :  { %149 = dma.hbm_to_vmem [thread:$0]  %s13777_s8, 8192, %s147_s17, [#allocation9 + $0x4] }
  0x68   :  { %195 = vsyncadd [#allocation9 + $0x5], 64  ;;  %v241_v2 = vld [vmem:[%s13781_s12] sm:$0xf]  ;;  %s11688_s6 = smov [#allocation4 + $0x400]   ;;  %s11689_s9 = smov [#allocation5 + $0x400]  }
  0x69   :  { %s205_s25 = sshll.u32 %s11688_s6, 4  ;;  %s218_s2 = sshll.u32 %s11689_s9, 4  ;;  %242 = vst [vmem:[#allocation6 + $0x8] sm:$0xf] %v241_v2  ;;  %s206_s25 = int_to_ptr.vmem [resolvable:$true] %s205_s25  ;;  %s219_s2 = int_to_ptr.vmem [resolvable:$true] %s218_s2 }
  0x6a   :  { %s11588_s26 = scalar_lea.hbm %s13779_s10, 8192 }
  0x6b   :  { %p11589_p6 = scmp.ne.s32.totalorder %s13779_s10, %s11588_s26  ;;  %p11592_p7 = scmp.lt.u32.totalorder %s11588_s26, %s13779_s10 }
  0x6d   :  { %p11594_p8 = pnand %p11592_p7, %p11589_p6 }
  0x6f   :  { %11597 = shalt.err (!%p11594_p8)  }
  0x70   :  { %s11598_s12 = scalar_lea.vmem %s206_s25, 8192  ;;  %p11603_p10 = scmp.lt.s32.totalorder %s206_s25, %s11798_s16 }
  0x71   :  { %p11599_p9 = scmp.ne.s32.totalorder %s206_s25, %s11598_s12  ;;  %p11604_p11 = scmp.lt.s32.totalorder %s11814_s18, %s11598_s12 }
  0x73   :  { %p11605_p12 = por %p11604_p11, %p11603_p10 }
  0x75   :  { %p11606_p13 = pnand %p11605_p12, %p11599_p9 }
  0x77   :  { %11609 = shalt.err (!%p11606_p13)  }
  0x78   :  { %208 = dma.hbm_to_vmem [thread:$0]  %s13779_s10, 8192, %s206_s25, [#allocation9 + $0x6] }
  0x79   :  { %s11610_s7 = scalar_lea.hbm %s13780_s11, 8192 }
  0x7a   :  { %p11611_p0 = scmp.ne.s32.totalorder %s13780_s11, %s11610_s7  ;;  %p11614_p1 = scmp.lt.u32.totalorder %s11610_s7, %s13780_s11 }
  0x7c   :  { %p11616_p2 = pnand %p11614_p1, %p11611_p0 }
  0x7e   :  { %11619 = shalt.err (!%p11616_p2)  }
  0x7f   :  { %s11620_s16 = scalar_lea.vmem %s219_s2, 8192  ;;  %p11625_p4 = scmp.lt.s32.totalorder %s219_s2, %s11800_s20 }
  0x80   :  { %p11621_p3 = scmp.ne.s32.totalorder %s219_s2, %s11620_s16  ;;  %p11626_p5 = scmp.lt.s32.totalorder %s11835_s4, %s11620_s16 }
  0x82   :  { %p11627_p6 = por %p11626_p5, %p11625_p4 }
  0x84   :  { %p11628_p7 = pnand %p11627_p6, %p11621_p3 }
  0x86   :  { %11631 = shalt.err (!%p11628_p7)  }
  0x87   :  { %221 = dma.hbm_to_vmem [thread:$0]  %s13780_s11, 8192, %s219_s2, [#allocation9 + $0x7] }
  0x88   :  { %267 = vsyncadd [#allocation9 + $0x8], 64  ;;  %v298_v3 = vld [vmem:[%s13783_s14] sm:$0x1]  ;;  %s11690_s28 = smov [#allocation7]   ;;  %s11632_s20 = scalar_lea.hbm %s13782_s13, 2048 }
  0x89   :  { %s276_s29 = sshll.u32 %s11690_s28, 4  ;;  %299 = vst [vmem:[#allocation8] sm:$0x1] %v298_v3  ;;  %p11633_p8 = scmp.ne.s32.totalorder %s13782_s13, %s11632_s20  ;;  %s277_s29 = int_to_ptr.vmem [resolvable:$true] %s276_s29 }
  0x8a   :  { %p11636_p9 = scmp.lt.u32.totalorder %s11632_s20, %s13782_s13 }
  0x8c   :  { %p11638_p10 = pnand %p11636_p9, %p11633_p8 }
  0x8e   :  { %11641 = shalt.err (!%p11638_p10)  }
  0x8f   :  { %s11642_s11 = scalar_lea.vmem %s277_s29, 2048  ;;  %p11647_p12 = scmp.lt.s32.totalorder %s277_s29, %s277_s29 }
  0x90   :  { %p11643_p11 = scmp.ne.s32.totalorder %s277_s29, %s11642_s11  ;;  %p11648_p13 = scmp.lt.s32.totalorder %s11642_s11, %s11642_s11 }
  0x92   :  { %p11649_p0 = por %p11648_p13, %p11647_p12 }
  0x94   :  { %p11650_p1 = pnand %p11649_p0, %p11643_p11 }
  0x96   :  { %11653 = shalt.err (!%p11650_p1)  }
  0x97   :  { %279 = dma.hbm_to_vmem [thread:$0]  %s13782_s13, 2048, %s277_s29, [#allocation9 + $0x9] }
  0x98   :  { %324 = vsyncadd [#allocation9 + $0xa], 16  ;;  %v327_v4 = vld [vmem:[#allocation10 + $0x8] sm:$0xff]  ;;  %v329_v7 = vld [vmem:[#allocation10 + $0x18] sm:$0xff]  ;;  %v11691_v10 = vmov 0.0  }
  0x99   :  { %v331_v5 = vld [vmem:[#allocation10 + $0x28] sm:$0xff]  ;;  %v333_v8 = vld [vmem:[#allocation10 + $0x38] sm:$0xff]  ;;  %v326_v9 = vld [vmem:[#allocation10] sm:$0xff]  ;;  %476 = vmatprep.mubr.f32.mxu0 %v11691_v10  ;;  %547 = vmatprep.mubr.f32.mxu1 %v11691_v10 }
  0x9a   :  { %v8794_v6 = vpack.c.bf16 %v331_v5, %v327_v4  ;;  %v8826_v11 = vpack.c.bf16 %v333_v8, %v329_v7  ;;  %v330_v12 = vld [vmem:[#allocation10 + $0x20] sm:$0xff]  ;;  %v328_v13 = vld [vmem:[#allocation10 + $0x10] sm:$0xff]  ;;  %v335_v17 = vld [vmem:[#allocation10 + $0x48] sm:$0xff] }
  0x9b   :  { %v332_v14 = vld [vmem:[#allocation10 + $0x30] sm:$0xff]  ;;  %v8796_v15 = vpack.c.bf16 %v330_v12, %v326_v9  ;;  %v339_v18 = vld [vmem:[#allocation10 + $0x68] sm:$0xff]  ;;  %v337_v19 = vld [vmem:[#allocation10 + $0x58] sm:$0xff] }
  0x9c   :  { %8795 = vmatprep.subr.bf16.mxu0 %v8794_v6  ;;  %v8828_v16 = vpack.c.bf16 %v332_v14, %v328_v13  ;;  %8827 = vmatprep.subr.bf16.mxu1 %v8826_v11  ;;  %v8798_v20 = vpack.c.bf16 %v339_v18, %v335_v17  ;;  %v341_v21 = vld [vmem:[#allocation10 + $0x78] sm:$0xff]  ;;  %v334_v22 = vld [vmem:[#allocation10 + $0x40] sm:$0xff]  ;;  %v336_v26 = vld [vmem:[#allocation10 + $0x50] sm:$0xff] }
  0x9d   :  { %v338_v23 = vld [vmem:[#allocation10 + $0x60] sm:$0xff]  ;;  %8797 = vmatpush1.bf16.msra.mxu0 %v8796_v15  ;;  %v8830_v24 = vpack.c.bf16 %v341_v21, %v337_v19  ;;  %v340_v27 = vld [vmem:[#allocation10 + $0x70] sm:$0xff]  ;;  %v343_v28 = vld [vmem:[#allocation10 + $0x88] sm:$0xff] }
  0x9e   :  { %8829 = vmatpush1.bf16.msra.mxu1 %v8828_v16  ;;  %v8800_v25 = vpack.c.bf16 %v338_v23, %v334_v22  ;;  %8799 = vmatprep.subr.bf16.mxu0 %v8798_v20  ;;  %v8832_v29 = vpack.c.bf16 %v340_v27, %v336_v26  ;;  %v347_v30 = vld [vmem:[#allocation10 + $0xa8] sm:$0xff]  ;;  %v345_v31 = vld [vmem:[#allocation10 + $0x98] sm:$0xff]  ;;  %v342_v35 = vld [vmem:[#allocation10 + $0x80] sm:$0xff] }
  0x9f   :  { %v349_v32 = vld [vmem:[#allocation10 + $0xb8] sm:$0xff]  ;;  %8831 = vmatprep.subr.bf16.mxu1 %v8830_v24  ;;  %v8802_v33 = vpack.c.bf16 %v347_v30, %v343_v28  ;;  %v346_v36 = vld [vmem:[#allocation10 + $0xa0] sm:$0xff]  ;;  %v344_v37 = vld [vmem:[#allocation10 + $0x90] sm:$0xff] }
  0xa0   :  { %v8834_v34 = vpack.c.bf16 %v349_v32, %v345_v31  ;;  %v348_v38 = vld [vmem:[#allocation10 + $0xb0] sm:$0xff]  ;;  %v351_v39 = vld [vmem:[#allocation10 + $0xc8] sm:$0xff]  ;;  %v8804_v41 = vpack.c.bf16 %v346_v36, %v342_v35  ;;  %v353_v43 = vld [vmem:[#allocation10 + $0xd8] sm:$0xff] }
  0xa1   :  { %v355_v40 = vld [vmem:[#allocation10 + $0xe8] sm:$0xff]  ;;  %8801 = vmatpush1.bf16.msra.mxu0 %v8800_v25  ;;  %v8836_v42 = vpack.c.bf16 %v348_v38, %v344_v37  ;;  %v357_v44 = vld [vmem:[#allocation10 + $0xf8] sm:$0xff]  ;;  %v350_v45 = vld [vmem:[#allocation10 + $0xc0] sm:$0xff] }
  0xa2   :  { %8833 = vmatpush1.bf16.msra.mxu1 %v8832_v29  ;;  %8803 = vmatprep.subr.bf16.mxu0 %v8802_v33  ;;  %v8806_v46 = vpack.c.bf16 %v355_v40, %v351_v39  ;;  %v8838_v47 = vpack.c.bf16 %v357_v44, %v353_v43  ;;  %v354_v48 = vld [vmem:[#allocation10 + $0xe0] sm:$0xff]  ;;  %v352_v49 = vld [vmem:[#allocation10 + $0xd0] sm:$0xff]  ;;  %v359_v51 = vld [vmem:[#allocation10 + $0x108] sm:$0xff] }
  0xa3   :  { %8835 = vmatprep.subr.bf16.mxu1 %v8834_v34  ;;  %v356_v50 = vld [vmem:[#allocation10 + $0xf0] sm:$0xff]  ;;  %v363_v52 = vld [vmem:[#allocation10 + $0x128] sm:$0xff]  ;;  %v361_v53 = vld [vmem:[#allocation10 + $0x118] sm:$0xff]  ;;  %v8808_v55 = vpack.c.bf16 %v354_v48, %v350_v45 }
  0xa4   :  { %v365_v54 = vld [vmem:[#allocation10 + $0x138] sm:$0xff]  ;;  %v8840_v56 = vpack.c.bf16 %v356_v50, %v352_v49  ;;  %v358_v57 = vld [vmem:[#allocation10 + $0x100] sm:$0xff]  ;;  %v8810_v59 = vpack.c.bf16 %v363_v52, %v359_v51  ;;  %v360_v61 = vld [vmem:[#allocation10 + $0x110] sm:$0xff] }
  0xa5   :  { %8805 = vmatpush1.bf16.msra.mxu0 %v8804_v41  ;;  %v362_v58 = vld [vmem:[#allocation10 + $0x120] sm:$0xff]  ;;  %v8842_v60 = vpack.c.bf16 %v365_v54, %v361_v53  ;;  %v364_v62 = vld [vmem:[#allocation10 + $0x130] sm:$0xff]  ;;  %v367_v63 = vld [vmem:[#allocation10 + $0x148] sm:$0xff] }
  0xa6   :  { %8837 = vmatpush1.bf16.msra.mxu1 %v8836_v42  ;;  %8807 = vmatprep.subr.bf16.mxu0 %v8806_v46  ;;  %v371_v0 = vld [vmem:[#allocation10 + $0x168] sm:$0xff]  ;;  %v369_v1 = vld [vmem:[#allocation10 + $0x158] sm:$0xff]  ;;  %v8812_v3 = vpack.c.bf16 %v362_v58, %v358_v57  ;;  %v8844_v4 = vpack.c.bf16 %v364_v62, %v360_v61  ;;  %v366_v5 = vld [vmem:[#allocation10 + $0x140] sm:$0xff] }
  0xa7   :  { %8839 = vmatprep.subr.bf16.mxu1 %v8838_v47  ;;  %v373_v2 = vld [vmem:[#allocation10 + $0x178] sm:$0xff]  ;;  %v370_v6 = vld [vmem:[#allocation10 + $0x160] sm:$0xff]  ;;  %v8814_v7 = vpack.c.bf16 %v371_v0, %v367_v63  ;;  %v368_v9 = vld [vmem:[#allocation10 + $0x150] sm:$0xff] }
  0xa8   :  { %v8846_v8 = vpack.c.bf16 %v373_v2, %v369_v1  ;;  %v372_v11 = vld [vmem:[#allocation10 + $0x170] sm:$0xff]  ;;  %v375_v12 = vld [vmem:[#allocation10 + $0x188] sm:$0xff]  ;;  %v377_v14 = vld [vmem:[#allocation10 + $0x198] sm:$0xff]  ;;  %v8816_v16 = vpack.c.bf16 %v370_v6, %v366_v5 }
  0xa9   :  { %8809 = vmatpush1.bf16.msra.mxu0 %v8808_v55  ;;  %v379_v13 = vld [vmem:[#allocation10 + $0x1a8] sm:$0xff]  ;;  %v381_v15 = vld [vmem:[#allocation10 + $0x1b8] sm:$0xff]  ;;  %v8848_v17 = vpack.c.bf16 %v372_v11, %v368_v9  ;;  %v374_v18 = vld [vmem:[#allocation10 + $0x180] sm:$0xff] }
  0xaa   :  { %8841 = vmatpush1.bf16.msra.mxu1 %v8840_v56  ;;  %8811 = vmatprep.subr.bf16.mxu0 %v8810_v59  ;;  %v378_v19 = vld [vmem:[#allocation10 + $0x1a0] sm:$0xff]  ;;  %v8818_v20 = vpack.c.bf16 %v379_v13, %v375_v12  ;;  %v8850_v21 = vpack.c.bf16 %v381_v15, %v377_v14  ;;  %v376_v22 = vld [vmem:[#allocation10 + $0x190] sm:$0xff]  ;;  %v383_v24 = vld [vmem:[#allocation10 + $0x1c8] sm:$0xff] }
  0xab   :  { %8843 = vmatprep.subr.bf16.mxu1 %v8842_v60  ;;  %v380_v23 = vld [vmem:[#allocation10 + $0x1b0] sm:$0xff]  ;;  %v387_v25 = vld [vmem:[#allocation10 + $0x1e8] sm:$0xff]  ;;  %v385_v26 = vld [vmem:[#allocation10 + $0x1d8] sm:$0xff]  ;;  %v8820_v28 = vpack.c.bf16 %v378_v19, %v374_v18 }
  0xac   :  { %v389_v27 = vld [vmem:[#allocation10 + $0x1f8] sm:$0xff]  ;;  %v8852_v29 = vpack.c.bf16 %v380_v23, %v376_v22  ;;  %v382_v30 = vld [vmem:[#allocation10 + $0x1c0] sm:$0xff]  ;;  %v8822_v32 = vpack.c.bf16 %v387_v25, %v383_v24  ;;  %v384_v34 = vld [vmem:[#allocation10 + $0x1d0] sm:$0xff] }
  0xad   :  { %8813 = vmatpush1.bf16.msra.mxu0 %v8812_v3  ;;  %v386_v31 = vld [vmem:[#allocation10 + $0x1e0] sm:$0xff]  ;;  %v8854_v33 = vpack.c.bf16 %v389_v27, %v385_v26  ;;  %v388_v35 = vld [vmem:[#allocation10 + $0x1f0] sm:$0xff]  ;;  %v555_v36 = vld [vmem:[#allocation12 + $0x8] sm:$0xff] }
  0xae   :  { %8845 = vmatpush1.bf16.msra.mxu1 %v8844_v4  ;;  %8815 = vmatprep.subr.bf16.mxu0 %v8814_v7  ;;  %v559_v37 = vld [vmem:[#allocation12 + $0x28] sm:$0xff]  ;;  %v557_v38 = vld [vmem:[#allocation12 + $0x18] sm:$0xff]  ;;  %v8824_v40 = vpack.c.bf16 %v386_v31, %v382_v30  ;;  %v8856_v41 = vpack.c.bf16 %v388_v35, %v384_v34  ;;  %v554_v42 = vld [vmem:[#allocation12] sm:$0xff] }
  0xaf   :  { %8847 = vmatprep.subr.bf16.mxu1 %v8846_v8  ;;  %v561_v39 = vld [vmem:[#allocation12 + $0x38] sm:$0xff]  ;;  %v558_v43 = vld [vmem:[#allocation12 + $0x20] sm:$0xff]  ;;  %v11926_v44 = vpack.c.bf16 %v559_v37, %v555_v36  ;;  %v556_v46 = vld [vmem:[#allocation12 + $0x10] sm:$0xff] }
  0xb0   :  { %v11928_v45 = vpack.c.bf16 %v561_v39, %v557_v38  ;;  %v560_v47 = vld [vmem:[#allocation12 + $0x30] sm:$0xff]  ;;  %v563_v48 = vld [vmem:[#allocation12 + $0x48] sm:$0xff]  ;;  %v565_v50 = vld [vmem:[#allocation12 + $0x58] sm:$0xff]  ;;  %v11933_v53 = vpack.c.bf16 %v558_v43, %v554_v42 }
  0xb1   :  { %8817 = vmatpush1.bf16.msra.mxu0 %v8816_v16  ;;  %v567_v49 = vld [vmem:[#allocation12 + $0x68] sm:$0xff]  ;;  %v569_v51 = vld [vmem:[#allocation12 + $0x78] sm:$0xff]  ;;  %v11935_v54 = vpack.c.bf16 %v560_v47, %v556_v46  ;;  %v562_v55 = vld [vmem:[#allocation12 + $0x40] sm:$0xff] }
  0xb2   :  { %8849 = vmatpush1.bf16.msra.mxu1 %v8848_v17  ;;  %8819 = vmatprep.subr.bf16.mxu0 %v8818_v20  ;;  %v325_v52 = vld [vmem:[%s13769_s0] sm:$0xff]  ;;  %v11939_v57 = vpack.c.bf16 %v567_v49, %v563_v48  ;;  %v11941_v58 = vpack.c.bf16 %v569_v51, %v565_v50  ;;  %v564_v59 = vld [vmem:[#allocation12 + $0x50] sm:$0xff]  ;;  %v573_v63 = vld [vmem:[#allocation12 + $0x98] sm:$0xff] }
  0xb3   :  { %8851 = vmatprep.subr.bf16.mxu1 %v8850_v21  ;;  %v566_v56 = vld [vmem:[#allocation12 + $0x60] sm:$0xff]  ;;  %v568_v60 = vld [vmem:[#allocation12 + $0x70] sm:$0xff]  ;;  %v571_v61 = vld [vmem:[#allocation12 + $0x88] sm:$0xff] }
  0xb4   :  { %v575_v62 = vld [vmem:[#allocation12 + $0xa8] sm:$0xff]  ;;  %v577_v0 = vld [vmem:[#allocation12 + $0xb8] sm:$0xff]  ;;  %v11945_v1 = vpack.c.bf16 %v566_v56, %v562_v55  ;;  %v11947_v2 = vpack.c.bf16 %v568_v60, %v564_v59  ;;  %v570_v3 = vld [vmem:[#allocation12 + $0x80] sm:$0xff] }
  0xb5   :  { %8821 = vmatpush1.bf16.msra.mxu0 %v8820_v28  ;;  %v574_v4 = vld [vmem:[#allocation12 + $0xa0] sm:$0xff]  ;;  %v11951_v5 = vpack.c.bf16 %v575_v62, %v571_v61  ;;  %v11953_v6 = vpack.c.bf16 %v577_v0, %v573_v63  ;;  %v572_v7 = vld [vmem:[#allocation12 + $0x90] sm:$0xff]  ;;  %v579_v9 = vld [vmem:[#allocation12 + $0xc8] sm:$0xff] }
  0xb6   :  { %8853 = vmatpush1.bf16.msra.mxu1 %v8852_v29  ;;  %8823 = vmatprep.subr.bf16.mxu0 %v8822_v32  ;;  %v576_v8 = vld [vmem:[#allocation12 + $0xb0] sm:$0xff]  ;;  %v583_v11 = vld [vmem:[#allocation12 + $0xe8] sm:$0xff]  ;;  %v581_v12 = vld [vmem:[#allocation12 + $0xd8] sm:$0xff]  ;;  %v11959_v14 = vpack.c.bf16 %v574_v4, %v570_v3 }
  0xb7   :  { %8855 = vmatprep.subr.bf16.mxu1 %v8854_v33  ;;  %v585_v13 = vld [vmem:[#allocation12 + $0xf8] sm:$0xff]  ;;  %v11961_v15 = vpack.c.bf16 %v576_v8, %v572_v7  ;;  %v578_v16 = vld [vmem:[#allocation12 + $0xc0] sm:$0xff]  ;;  %v11965_v18 = vpack.c.bf16 %v583_v11, %v579_v9  ;;  %v580_v20 = vld [vmem:[#allocation12 + $0xd0] sm:$0xff] }
  0xb8   :  { %v582_v17 = vld [vmem:[#allocation12 + $0xe0] sm:$0xff]  ;;  %v11967_v19 = vpack.c.bf16 %v585_v13, %v581_v12  ;;  %v584_v21 = vld [vmem:[#allocation12 + $0xf0] sm:$0xff]  ;;  %v587_v22 = vld [vmem:[#allocation12 + $0x108] sm:$0xff] }
  0xb9   :  { %8825 = vmatpush1.bf16.msra.mxu0 %v8824_v40  ;;  %v591_v23 = vld [vmem:[#allocation12 + $0x128] sm:$0xff]  ;;  %v589_v24 = vld [vmem:[#allocation12 + $0x118] sm:$0xff]  ;;  %v11971_v26 = vpack.c.bf16 %v582_v17, %v578_v16  ;;  %v11973_v27 = vpack.c.bf16 %v584_v21, %v580_v20  ;;  %v586_v28 = vld [vmem:[#allocation12 + $0x100] sm:$0xff] }
  0xba   :  { %8857 = vmatpush1.bf16.msra.mxu1 %v8856_v41  ;;  %8859 = vmatprep.subr.bf16.mxu0 %v11926_v44  ;;  %v593_v25 = vld [vmem:[#allocation12 + $0x138] sm:$0xff]  ;;  %v590_v29 = vld [vmem:[#allocation12 + $0x120] sm:$0xff]  ;;  %v11977_v30 = vpack.c.bf16 %v591_v23, %v587_v22  ;;  %v588_v32 = vld [vmem:[#allocation12 + $0x110] sm:$0xff] }
  0xbb   :  { %8891 = vmatprep.subr.bf16.mxu1 %v11928_v45  ;;  %v11979_v31 = vpack.c.bf16 %v593_v25, %v589_v24  ;;  %v592_v33 = vld [vmem:[#allocation12 + $0x130] sm:$0xff]  ;;  %v595_v34 = vld [vmem:[#allocation12 + $0x148] sm:$0xff]  ;;  %v597_v36 = vld [vmem:[#allocation12 + $0x158] sm:$0xff]  ;;  %v11983_v38 = vpack.c.bf16 %v590_v29, %v586_v28  ;;  %v392_v29 = vlaneseq }
  0xbc   :  { %477 = vmatmul.mubr.f32.vlgmr.msra.gmra.mrb[0].mxu0 %v325_v52  ;;  %v599_v35 = vld [vmem:[#allocation12 + $0x168] sm:$0xff]  ;;  %v601_v37 = vld [vmem:[#allocation12 + $0x178] sm:$0xff]  ;;  %v11985_v39 = vpack.c.bf16 %v592_v33, %v588_v32  ;;  %v594_v40 = vld [vmem:[#allocation12 + $0x140] sm:$0xff] }
  0xbd   :  { %548 = vmatmul.mubr.f32.vlgmr.msra.gmra.mrb[0].mxu1 %v325_v52  ;;  %8861 = vmatpush1.bf16.msra.mxu0 %v11933_v53  ;;  %v598_v41 = vld [vmem:[#allocation12 + $0x160] sm:$0xff]  ;;  %v11989_v42 = vpack.c.bf16 %v599_v35, %v595_v34  ;;  %v11991_v43 = vpack.c.bf16 %v601_v37, %v597_v36  ;;  %v596_v46 = vld [vmem:[#allocation12 + $0x150] sm:$0xff]  ;;  %v603_v48 = vld [vmem:[#allocation12 + $0x188] sm:$0xff]  ;;  %v393_v32 = vshrl.u32 %v392_v29, 7 }
  0xbe   :  { %8893 = vmatpush1.bf16.msra.mxu1 %v11935_v54  ;;  %8863 = vmatprep.subr.bf16.mxu0 %v11939_v57  ;;  %v600_v47 = vld [vmem:[#allocation12 + $0x170] sm:$0xff]  ;;  %v607_v49 = vld [vmem:[#allocation12 + $0x1a8] sm:$0xff]  ;;  %v605_v50 = vld [vmem:[#allocation12 + $0x198] sm:$0xff]  ;;  %v11995_v52 = vpack.c.bf16 %v598_v41, %v594_v40 }
  0xbf   :  { %8895 = vmatprep.subr.bf16.mxu1 %v11941_v58  ;;  %682 = vmatprep.mubr.f32.mxu0 %v11691_v10  ;;  %v609_v51 = vld [vmem:[#allocation12 + $0x1b8] sm:$0xff]  ;;  %v11997_v55 = vpack.c.bf16 %v600_v47, %v596_v46  ;;  %v602_v56 = vld [vmem:[#allocation12 + $0x180] sm:$0xff]  ;;  %v12001_v60 = vpack.c.bf16 %v607_v49, %v603_v48  ;;  %v604_v62 = vld [vmem:[#allocation12 + $0x190] sm:$0xff]  ;;  %v12065_v33 = vsub.s32 0, %v393_v32  ;;  %v12070_v35 = vsub.s32 1, %v393_v32 }
  0xc0   :  { %753 = vmatprep.mubr.f32.mxu1 %v11691_v10  ;;  %v606_v59 = vld [vmem:[#allocation12 + $0x1a0] sm:$0xff]  ;;  %v12003_v61 = vpack.c.bf16 %v609_v51, %v605_v50  ;;  %v608_v63 = vld [vmem:[#allocation12 + $0x1b0] sm:$0xff]  ;;  %v611_v0 = vld [vmem:[#allocation12 + $0x1c8] sm:$0xff]  ;;  %v12073_v37 = vsub.s32 2, %v393_v32  ;;  %v12079_v47 = vsub.s32 3, %v393_v32 }
  0xc1   :  { %8865 = vmatpush1.bf16.msra.mxu0 %v11945_v1  ;;  %v615_v3 = vld [vmem:[#allocation12 + $0x1e8] sm:$0xff]  ;;  %v613_v4 = vld [vmem:[#allocation12 + $0x1d8] sm:$0xff]  ;;  %v12007_v8 = vpack.c.bf16 %v606_v59, %v602_v56  ;;  %v12009_v9 = vpack.c.bf16 %v608_v63, %v604_v62  ;;  %v610_v11 = vld [vmem:[#allocation12 + $0x1c0] sm:$0xff] }
  0xc2   :  { %8897 = vmatpush1.bf16.msra.mxu1 %v11947_v2  ;;  %8867 = vmatprep.subr.bf16.mxu0 %v11951_v5  ;;  %v617_v7 = vld [vmem:[#allocation12 + $0x1f8] sm:$0xff]  ;;  %v12013_v12 = vpack.c.bf16 %v615_v3, %v611_v0  ;;  %v614_v16 = vld [vmem:[#allocation12 + $0x1e0] sm:$0xff]  ;;  %v612_v17 = vld [vmem:[#allocation12 + $0x1d0] sm:$0xff] }
  0xc3   :  { %8899 = vmatprep.subr.bf16.mxu1 %v11953_v6  ;;  %v12015_v13 = vpack.c.bf16 %v617_v7, %v613_v4  ;;  %v616_v20 = vld [vmem:[#allocation12 + $0x1f0] sm:$0xff]  ;;  %v12019_v21 = vpack.c.bf16 %v614_v16, %v610_v11  ;;  %v390_v34 = vld [vmem:[%s13772_s3] sm:$0xf] }
  0xc4   :  { %v12021_v22 = vpack.c.bf16 %v616_v20, %v612_v17  ;;  %v395_v36 = vrot.slane %v390_v34, %v12065_v33  ;;  %v399_v40 = vrot.slane %v390_v34, %v12070_v35  ;;  %v403_v46 = vrot.slane %v390_v34, %v12073_v37 }
  0xc5   :  { %8869 = vmatpush1.bf16.msra.mxu0 %v11959_v14  ;;  %v407_v0 = vrot.slane %v390_v34, %v12079_v47 }
  0xc6   :  { %8901 = vmatpush1.bf16.msra.mxu1 %v11961_v15  ;;  %8871 = vmatprep.subr.bf16.mxu0 %v11965_v18 }
  0xc7   :  { %8903 = vmatprep.subr.bf16.mxu1 %v11967_v19 }
  0xc9   :  { %8873 = vmatpush1.bf16.msra.mxu0 %v11971_v26 }
  0xca   :  { %8905 = vmatpush1.bf16.msra.mxu1 %v11973_v27  ;;  %8875 = vmatprep.subr.bf16.mxu0 %v11977_v30 }
  0xcb   :  { %8907 = vmatprep.subr.bf16.mxu1 %v11979_v31 }
  0xcd   :  { %8877 = vmatpush1.bf16.msra.mxu0 %v11983_v38 }
  0xce   :  { %8909 = vmatpush1.bf16.msra.mxu1 %v11985_v39  ;;  %8879 = vmatprep.subr.bf16.mxu0 %v11989_v42 }
  0xcf   :  { %8911 = vmatprep.subr.bf16.mxu1 %v11991_v43 }
  0xd1   :  { %8881 = vmatpush1.bf16.msra.mxu0 %v11995_v52 }
  0xd2   :  { %8913 = vmatpush1.bf16.msra.mxu1 %v11997_v55  ;;  %8883 = vmatprep.subr.bf16.mxu0 %v12001_v60 }
  0xd3   :  { %8915 = vmatprep.subr.bf16.mxu1 %v12003_v61 }
  0xd5   :  { %8885 = vmatpush1.bf16.msra.mxu0 %v12007_v8 }
  0xd6   :  { %8917 = vmatpush1.bf16.msra.mxu1 %v12009_v9  ;;  %8887 = vmatprep.subr.bf16.mxu0 %v12013_v12 }
  0xd7   :  { %8919 = vmatprep.subr.bf16.mxu1 %v12015_v13 }
  0xd9   :  { %8889 = vmatpush1.bf16.msra.mxu0 %v12019_v21 }
  0xda   :  { %8921 = vmatpush1.bf16.msra.mxu1 %v12021_v22  ;;  %8923 = vmatprep.subr.bf16.mxu0 %v11926_v44 }
  0xdb   :  { %8955 = vmatprep.subr.bf16.mxu1 %v11928_v45 }
  0xdc   :  { %683 = vmatmul.mubr.f32.vlgmr.msra.gmra.mrb[2].mxu0 %v11691_v10 }
  0xdd   :  { %754 = vmatmul.mubr.f32.vlgmr.msra.gmra.mrb[2].mxu1 %v11691_v10  ;;  %8925 = vmatpush1.bf16.msra.mxu0 %v11933_v53 }
  0xde   :  { %8957 = vmatpush1.bf16.msra.mxu1 %v11935_v54  ;;  %8927 = vmatprep.subr.bf16.mxu0 %v11939_v57 }
  0xdf   :  { %8959 = vmatprep.subr.bf16.mxu1 %v11941_v58  ;;  %911 = vmatprep.mubr.f32.mxu0 %v11691_v10 }
  0xe0   :  { %982 = vmatprep.mubr.f32.mxu1 %v11691_v10 }
  0xe1   :  { %8929 = vmatpush1.bf16.msra.mxu0 %v11945_v1 }
  0xe2   :  { %8961 = vmatpush1.bf16.msra.mxu1 %v11947_v2  ;;  %8931 = vmatprep.subr.bf16.mxu0 %v11951_v5 }
  0xe3   :  { %8963 = vmatprep.subr.bf16.mxu1 %v11953_v6 }
  0xe5   :  { %8933 = vmatpush1.bf16.msra.mxu0 %v11959_v14 }
  0xe6   :  { %8965 = vmatpush1.bf16.msra.mxu1 %v11961_v15  ;;  %8935 = vmatprep.subr.bf16.mxu0 %v11965_v18 }
  0xe7   :  { %8967 = vmatprep.subr.bf16.mxu1 %v11967_v19 }
  0xe9   :  { %8937 = vmatpush1.bf16.msra.mxu0 %v11971_v26 }
  0xea   :  { %8969 = vmatpush1.bf16.msra.mxu1 %v11973_v27  ;;  %8939 = vmatprep.subr.bf16.mxu0 %v11977_v30 }
  0xeb   :  { %8971 = vmatprep.subr.bf16.mxu1 %v11979_v31 }
  0xed   :  { %8941 = vmatpush1.bf16.msra.mxu0 %v11983_v38 }
  0xee   :  { %8973 = vmatpush1.bf16.msra.mxu1 %v11985_v39  ;;  %8943 = vmatprep.subr.bf16.mxu0 %v11989_v42 }
  0xef   :  { %8975 = vmatprep.subr.bf16.mxu1 %v11991_v43 }
  0xf1   :  { %8945 = vmatpush1.bf16.msra.mxu0 %v11995_v52 }
  0xf2   :  { %8977 = vmatpush1.bf16.msra.mxu1 %v11997_v55  ;;  %8947 = vmatprep.subr.bf16.mxu0 %v12001_v60 }
  0xf3   :  { %8979 = vmatprep.subr.bf16.mxu1 %v12003_v61 }
  0xf5   :  { %8949 = vmatpush1.bf16.msra.mxu0 %v12007_v8 }
  0xf6   :  { %8981 = vmatpush1.bf16.msra.mxu1 %v12009_v9  ;;  %8951 = vmatprep.subr.bf16.mxu0 %v12013_v12 }
  0xf7   :  { %8983 = vmatprep.subr.bf16.mxu1 %v12015_v13 }
  0xf9   :  { %8953 = vmatpush1.bf16.msra.mxu0 %v12019_v21 }
  0xfa   :  { %8985 = vmatpush1.bf16.msra.mxu1 %v12021_v22  ;;  %8987 = vmatprep.subr.bf16.mxu0 %v11926_v44 }
  0xfb   :  { %9019 = vmatprep.subr.bf16.mxu1 %v11928_v45 }
 0x18f   :  { %v478_v23 = vpop.f32.mrb[0].mxu0 }
 0x190   :  { %v549_v24 = vpop.f32.mrb[0].mxu1  ;;  %v480_v25 = vpop.f32.mrb[1].mxu0  ;;  %v12076_v41 = vadd.f32 %v478_v23, %v395_v36 }
 0x191   :  { %v551_v28 = vpop.f32.mrb[1].mxu1  ;;  %v12081_v48 = vadd.f32 %v480_v25, %v399_v40  ;;  %v12085_v63 = vadd.f32 %v549_v24, %v403_v46 }
 0x192   :  { %v12089_v11 = vadd.f32 %v551_v28, %v407_v0 }
 0x1af   :  { %v684_v49 = vpop.f32.mrb[2].mxu0 }
 0x1b0   :  { %v755_v50 = vpop.f32.mrb[2].mxu1  ;;  %v760_v51 = vadd.f32 %v684_v49, %v12076_v41  ;;  %v686_v56 = vpop.f32.mrb[3].mxu0 }
 0x1b1   :  { %v757_v59 = vpop.f32.mrb[3].mxu1  ;;  %v761_v62 = vadd.f32 %v686_v56, %v12081_v48  ;;  %v762_v7 = vadd.f32 %v755_v50, %v12085_v63 }
 0x1b2   :  { %v764_v3 = vmul.f32 0.5, %v760_v51  ;;  %v763_v16 = vadd.f32 %v757_v59, %v12089_v11 }
 0x1b3   :  { %v768_v4 = vmul.f32 0.5, %v761_v62 }
 0x1b4   :  { %11136 = vtanh.f32 %v764_v3  ;;  %v773_v17 = vmul.f32 0.5, %v763_v16 }
 0x1b5   :  { %11138 = vtanh.f32 %v768_v4 }
 0x1b6   :  { %11140 = vtanh.f32 %v762_v7 }
 0x1b7   :  { %11142 = vtanh.f32 %v773_v17 }
 0x1be   :  { %v11137_v20 = vpop.eup %11136 }
 0x1bf   :  { %v11139_v23 = vpop.eup %11138  ;;  %v766_v25 = vmul.f32 0.5, %v11137_v20 }
 0x1c0   :  { %v770_v29 = vmul.f32 0.5, %v11139_v23  ;;  %v11141_v32 = vpop.eup %11140 }
 0x1c1   :  { %v767_v24 = vadd.f32 0.5, %v766_v25  ;;  %v11143_v28 = vpop.eup %11142 }
 0x1c2   :  { %v771_v34 = vadd.f32 0.5, %v770_v29  ;;  %v775_v49 = vmul.f32 0.5, %v11143_v28 }
 0x1c3   :  { %v778_v36 = vmul.f32 %v11141_v32, %v767_v24 }
 0x1c4   :  { %v777_v40 = vmul.f32 0.0, %v771_v34  ;;  %v776_v50 = vadd.f32 0.5, %v775_v49 }
 0x1c6   :  { %v12092_v46 = vadd.f32 %v778_v36, %v777_v40 }
 0x1c8   :  { %11144 = vtanh.f32 %v12092_v46 }
 0x1d2   :  { %v11145_v51 = vpop.eup %11144 }
 0x1d3   :  { %v781_v56 = vmul.f32 %v11145_v51, %v776_v50  ;;  %v1019_v50 = vrot.slane %v12092_v46, 7 }
 0x1d5   :  { %782 = vst [vmem:[#allocation2] sm:$0x1] %v781_v56  ;;  %912 = vmatmul.mubr.f32.vlgmr.msra.gmra.mrb[4].mxu0 %v781_v56  ;;  %983 = vmatmul.mubr.f32.vlgmr.msra.gmra.mrb[4].mxu1 %v781_v56 }
 0x1d6   :  { %8989 = vmatpush1.bf16.msra.mxu0 %v11933_v53  ;;  %9021 = vmatpush1.bf16.msra.mxu1 %v11935_v54 }
 0x1d7   :  { %8991 = vmatprep.subr.bf16.mxu0 %v11939_v57  ;;  %9023 = vmatprep.subr.bf16.mxu1 %v11941_v58 }
 0x1d8   :  { %1158 = vmatprep.mubr.f32.mxu0 %v11691_v10  ;;  %1229 = vmatprep.mubr.f32.mxu1 %v11691_v10 }
 0x1da   :  { %8993 = vmatpush1.bf16.msra.mxu0 %v11945_v1  ;;  %9025 = vmatpush1.bf16.msra.mxu1 %v11947_v2 }
 0x1db   :  { %8995 = vmatprep.subr.bf16.mxu0 %v11951_v5  ;;  %9027 = vmatprep.subr.bf16.mxu1 %v11953_v6 }
 0x1de   :  { %8997 = vmatpush1.bf16.msra.mxu0 %v11959_v14  ;;  %9029 = vmatpush1.bf16.msra.mxu1 %v11961_v15 }
 0x1df   :  { %8999 = vmatprep.subr.bf16.mxu0 %v11965_v18  ;;  %9031 = vmatprep.subr.bf16.mxu1 %v11967_v19 }
 0x1e2   :  { %9001 = vmatpush1.bf16.msra.mxu0 %v11971_v26  ;;  %9033 = vmatpush1.bf16.msra.mxu1 %v11973_v27 }
 0x1e3   :  { %9003 = vmatprep.subr.bf16.mxu0 %v11977_v30  ;;  %9035 = vmatprep.subr.bf16.mxu1 %v11979_v31 }
 0x1e6   :  { %9005 = vmatpush1.bf16.msra.mxu0 %v11983_v38  ;;  %9037 = vmatpush1.bf16.msra.mxu1 %v11985_v39 }
 0x1e7   :  { %9007 = vmatprep.subr.bf16.mxu0 %v11989_v42  ;;  %9039 = vmatprep.subr.bf16.mxu1 %v11991_v43 }
 0x1ea   :  { %9009 = vmatpush1.bf16.msra.mxu0 %v11995_v52  ;;  %9041 = vmatpush1.bf16.msra.mxu1 %v11997_v55 }
 0x1eb   :  { %9011 = vmatprep.subr.bf16.mxu0 %v12001_v60  ;;  %9043 = vmatprep.subr.bf16.mxu1 %v12003_v61 }
 0x1ee   :  { %9013 = vmatpush1.bf16.msra.mxu0 %v12007_v8  ;;  %9045 = vmatpush1.bf16.msra.mxu1 %v12009_v9 }
 0x1ef   :  { %9015 = vmatprep.subr.bf16.mxu0 %v12013_v12  ;;  %9047 = vmatprep.subr.bf16.mxu1 %v12015_v13 }
 0x1f2   :  { %9017 = vmatpush1.bf16.msra.mxu0 %v12019_v21  ;;  %9049 = vmatpush1.bf16.msra.mxu1 %v12021_v22 }
 0x1f3   :  { %9051 = vmatprep.subr.bf16.mxu0 %v11926_v44  ;;  %9083 = vmatprep.subr.bf16.mxu1 %v11928_v45 }
 0x2a8   :  { %v913_v59 = vpop.f32.mrb[4].mxu0  ;;  %v984_v62 = vpop.f32.mrb[4].mxu1 }
 0x2a9   :  { %v993_v0 = vrot.slane %v913_v59, 7  ;;  %v915_v3 = vpop.f32.mrb[5].mxu0  ;;  %v986_v4 = vpop.f32.mrb[5].mxu1  ;;  %v995_v17 = vrot.slane %v984_v62, 7 }
 0x2aa   :  { %v994_v7 = vrot.slane %v915_v3, 7  ;;  %v996_v24 = vrot.slane %v986_v4, 7 }
 0x2ab   :  { %v1001_v16 = vadd.f32 %v993_v0, %v12076_v41  ;;  %v1003_v29 = vadd.f32 %v995_v17, %v12085_v63 }
 0x2ac   :  { %v1002_v20 = vadd.f32 %v994_v7, %v12081_v48  ;;  %v1004_v44 = vadd.f32 %v996_v24, %v12089_v11 }
 0x2ad   :  { %v1005_v23 = vmul.f32 0.5, %v1001_v16 }
 0x2ae   :  { %v1009_v25 = vmul.f32 0.5, %v1002_v20  ;;  %v1014_v45 = vmul.f32 0.5, %v1004_v44  ;;  %v1528_v44 = vld [vmem:[#allocation12 + $0x38] sm:$0xff] }
 0x2af   :  { %11146 = vtanh.f32 %v1005_v23  ;;  %v1522_v23 = vld [vmem:[#allocation12 + $0x8] sm:$0xff] }
 0x2b0   :  { %11148 = vtanh.f32 %v1009_v25  ;;  %v1526_v25 = vld [vmem:[#allocation12 + $0x28] sm:$0xff] }
 0x2b1   :  { %11150 = vtanh.f32 %v1003_v29  ;;  %v1524_v29 = vld [vmem:[#allocation12 + $0x18] sm:$0xff]  ;;  %v12179_v24 = vpack.c.bf16 %v1526_v25, %v1522_v23  ;;  %v1557_v23 = vld [vmem:[#allocation12 + $0x120] sm:$0xff] }
 0x2b2   :  { %11152 = vtanh.f32 %v1014_v45  ;;  %v1521_v45 = vld [vmem:[#allocation12] sm:$0xff] }
 0x2b9   :  { %v11147_v32 = vpop.eup %11146 }
 0x2ba   :  { %v11149_v34 = vpop.eup %11148  ;;  %v1007_v36 = vmul.f32 0.5, %v11147_v32  ;;  %v1525_v32 = vld [vmem:[#allocation12 + $0x20] sm:$0xff] }
 0x2bb   :  { %v1011_v40 = vmul.f32 0.5, %v11149_v34  ;;  %v11151_v49 = vpop.eup %11150  ;;  %v12181_v34 = vpack.c.bf16 %v1528_v44, %v1524_v29  ;;  %v1555_v44 = vld [vmem:[#allocation12 + $0x110] sm:$0xff] }
 0x2bc   :  { %v1008_v28 = vadd.f32 0.5, %v1007_v36  ;;  %v11153_v0 = vpop.eup %11152  ;;  %v12183_v36 = vpack.c.bf16 %v1525_v32, %v1521_v45  ;;  %v1559_v45 = vld [vmem:[#allocation12 + $0x130] sm:$0xff] }
 0x2bd   :  { %v1012_v51 = vadd.f32 0.5, %v1011_v40  ;;  %v1016_v3 = vmul.f32 0.5, %v11153_v0  ;;  %v1523_v40 = vld [vmem:[#allocation12 + $0x10] sm:$0xff]  ;;  %v1529_v0 = vld [vmem:[#allocation12 + $0x40] sm:$0xff]  ;;  %v12234_v32 = vpack.c.bf16 %v1559_v45, %v1555_v44 }
 0x2be   :  { %v1022_v56 = vmul.f32 %v11151_v49, %v1008_v28  ;;  %v1527_v28 = vld [vmem:[#allocation12 + $0x30] sm:$0xff] }
 0x2bf   :  { %v1021_v59 = vmul.f32 %v1019_v50, %v1012_v51  ;;  %v1017_v4 = vadd.f32 0.5, %v1016_v3  ;;  %v12186_v49 = vpack.c.bf16 %v1527_v28, %v1523_v40  ;;  %v1530_v50 = vld [vmem:[#allocation12 + $0x48] sm:$0xff]  ;;  %v1533_v3 = vld [vmem:[#allocation12 + $0x60] sm:$0xff]  ;;  %v1579_v45 = vld [vmem:[#allocation12 + $0x1d0] sm:$0xff] }
 0x2c0   :  { %v1534_v51 = vld [vmem:[#allocation12 + $0x68] sm:$0xff] }
 0x2c1   :  { %v12134_v62 = vadd.f32 %v1022_v56, %v1021_v59  ;;  %v1532_v56 = vld [vmem:[#allocation12 + $0x58] sm:$0xff]  ;;  %v12191_v59 = vpack.c.bf16 %v1534_v51, %v1530_v50  ;;  %v1562_v40 = vld [vmem:[#allocation12 + $0x148] sm:$0xff] }
 0x2c2   :  { %v1566_v28 = vld [vmem:[#allocation12 + $0x168] sm:$0xff]  ;;  %v1564_v50 = vld [vmem:[#allocation12 + $0x158] sm:$0xff] }
 0x2c3   :  { %11154 = vtanh.f32 %v12134_v62  ;;  %v12239_v51 = vpack.c.bf16 %v1566_v28, %v1562_v40  ;;  %v1583_v40 = vld [vmem:[#allocation12 + $0x1f0] sm:$0xff] }
 0x2c4   :  { %v12270_v28 = vpack.c.bf16 %v1583_v40, %v1579_v45 }
 0x2cd   :  { %v11155_v7 = vpop.eup %11154 }
 0x2ce   :  { %v1025_v16 = vmul.f32 %v11155_v7, %v1017_v4  ;;  %v12195_v7 = vpack.c.bf16 %v1533_v3, %v1529_v0  ;;  %v1565_v0 = vld [vmem:[#allocation12 + $0x160] sm:$0xff] }
 0x2d0   :  { %1026 = vst [vmem:[#allocation2] sm:$0x2] %v1025_v16  ;;  %v1092_v17 = vrot.slane %v1025_v16, 1  ;;  %v1531_v16 = vld [vmem:[#allocation12 + $0x50] sm:$0xff] }
 0x2d2   :  { %1159 = vmatmul.mubr.f32.vlgmr.msra.gmra.mrb[6].mxu0 %v1092_v17  ;;  %1230 = vmatmul.mubr.f32.vlgmr.msra.gmra.mrb[6].mxu1 %v1092_v17  ;;  %v1535_v17 = vld [vmem:[#allocation12 + $0x70] sm:$0xff] }
 0x2d3   :  { %9053 = vmatpush1.bf16.msra.mxu0 %v11933_v53  ;;  %9085 = vmatpush1.bf16.msra.mxu1 %v11935_v54 }
 0x2d4   :  { %9055 = vmatprep.subr.bf16.mxu0 %v11939_v57  ;;  %9087 = vmatprep.subr.bf16.mxu1 %v11941_v58 }
 0x2d5   :  { %1405 = vmatprep.mubr.f32.mxu0 %v11691_v10  ;;  %1476 = vmatprep.mubr.f32.mxu1 %v11691_v10 }
 0x2d7   :  { %9057 = vmatpush1.bf16.msra.mxu0 %v11945_v1  ;;  %9089 = vmatpush1.bf16.msra.mxu1 %v11947_v2 }
 0x2d8   :  { %9059 = vmatprep.subr.bf16.mxu0 %v11951_v5  ;;  %9091 = vmatprep.subr.bf16.mxu1 %v11953_v6 }
 0x2db   :  { %9061 = vmatpush1.bf16.msra.mxu0 %v11959_v14  ;;  %9093 = vmatpush1.bf16.msra.mxu1 %v11961_v15 }
 0x2dc   :  { %9063 = vmatprep.subr.bf16.mxu0 %v11965_v18  ;;  %9095 = vmatprep.subr.bf16.mxu1 %v11967_v19 }
 0x2df   :  { %9065 = vmatpush1.bf16.msra.mxu0 %v11971_v26  ;;  %9097 = vmatpush1.bf16.msra.mxu1 %v11973_v27 }
 0x2e0   :  { %9067 = vmatprep.subr.bf16.mxu0 %v11977_v30  ;;  %9099 = vmatprep.subr.bf16.mxu1 %v11979_v31 }
 0x2e3   :  { %9069 = vmatpush1.bf16.msra.mxu0 %v11983_v38  ;;  %9101 = vmatpush1.bf16.msra.mxu1 %v11985_v39 }
 0x2e4   :  { %9071 = vmatprep.subr.bf16.mxu0 %v11989_v42  ;;  %9103 = vmatprep.subr.bf16.mxu1 %v11991_v43 }
 0x2e7   :  { %9073 = vmatpush1.bf16.msra.mxu0 %v11995_v52  ;;  %9105 = vmatpush1.bf16.msra.mxu1 %v11997_v55 }
 0x2e8   :  { %9075 = vmatprep.subr.bf16.mxu0 %v12001_v60  ;;  %9107 = vmatprep.subr.bf16.mxu1 %v12003_v61  ;;  %v1266_v60 = vrot.slane %v12134_v62, 7  ;;  %v1536_v62 = vld [vmem:[#allocation12 + $0x78] sm:$0xff] }
 0x2e9   :  { %v12193_v4 = vpack.c.bf16 %v1536_v62, %v1532_v56  ;;  %v1568_v56 = vld [vmem:[#allocation12 + $0x178] sm:$0xff]  ;;  %v1561_v62 = vld [vmem:[#allocation12 + $0x140] sm:$0xff] }
 0x2ea   :  { %v12241_v3 = vpack.c.bf16 %v1568_v56, %v1564_v50 }
 0x2eb   :  { %9077 = vmatpush1.bf16.msra.mxu0 %v12007_v8  ;;  %9109 = vmatpush1.bf16.msra.mxu1 %v12009_v9 }
 0x2ec   :  { %9079 = vmatprep.subr.bf16.mxu0 %v12013_v12  ;;  %9111 = vmatprep.subr.bf16.mxu1 %v12015_v13 }
 0x2ef   :  { %9081 = vmatpush1.bf16.msra.mxu0 %v12019_v21  ;;  %9113 = vmatpush1.bf16.msra.mxu1 %v12021_v22 }
 0x2f0   :  { %9115 = vmatprep.subr.bf16.mxu0 %v12179_v24  ;;  %9147 = vmatprep.subr.bf16.mxu1 %v12181_v34 }
 0x3a5   :  { %v1160_v53 = vpop.f32.mrb[6].mxu0  ;;  %v1231_v54 = vpop.f32.mrb[6].mxu1 }
 0x3a6   :  { %v1240_v57 = vrot.slane %v1160_v53, 6  ;;  %v1162_v58 = vpop.f32.mrb[7].mxu0  ;;  %v1233_v1 = vpop.f32.mrb[7].mxu1  ;;  %v1242_v6 = vrot.slane %v1231_v54, 6  ;;  %v12198_v53 = vpack.c.bf16 %v1535_v17, %v1531_v16  ;;  %v1538_v54 = vld [vmem:[#allocation12 + $0x88] sm:$0xff]  ;;  %v12243_v16 = vpack.c.bf16 %v1565_v0, %v1561_v62  ;;  %v1563_v17 = vld [vmem:[#allocation12 + $0x150] sm:$0xff] }
 0x3a7   :  { %v1241_v2 = vrot.slane %v1162_v58, 6  ;;  %v1243_v26 = vrot.slane %v1233_v1, 6  ;;  %v1540_v58 = vld [vmem:[#allocation12 + $0x98] sm:$0xff] }
 0x3a8   :  { %v1248_v5 = vadd.f32 %v1240_v57, %v12076_v41  ;;  %v1250_v19 = vadd.f32 %v1242_v6, %v12085_v63  ;;  %v1542_v57 = vld [vmem:[#allocation12 + $0xa8] sm:$0xff]  ;;  %v1541_v6 = vld [vmem:[#allocation12 + $0xa0] sm:$0xff] }
 0x3a9   :  { %v1249_v14 = vadd.f32 %v1241_v2, %v12081_v48  ;;  %v1251_v27 = vadd.f32 %v1243_v26, %v12089_v11  ;;  %v12203_v1 = vpack.c.bf16 %v1542_v57, %v1538_v54  ;;  %v1544_v2 = vld [vmem:[#allocation12 + $0xb8] sm:$0xff]  ;;  %v1567_v54 = vld [vmem:[#allocation12 + $0x170] sm:$0xff] }
 0x3aa   :  { %v1252_v15 = vmul.f32 0.5, %v1248_v5  ;;  %v1537_v5 = vld [vmem:[#allocation12 + $0x80] sm:$0xff]  ;;  %v12246_v57 = vpack.c.bf16 %v1567_v54, %v1563_v17 }
 0x3ab   :  { %v1256_v18 = vmul.f32 0.5, %v1249_v14  ;;  %v1261_v30 = vmul.f32 0.5, %v1251_v27  ;;  %v12205_v14 = vpack.c.bf16 %v1544_v2, %v1540_v58  ;;  %v1546_v27 = vld [vmem:[#allocation12 + $0xc8] sm:$0xff] }
 0x3ac   :  { %11156 = vtanh.f32 %v1252_v15  ;;  %v12207_v15 = vpack.c.bf16 %v1541_v6, %v1537_v5  ;;  %v1570_v58 = vld [vmem:[#allocation12 + $0x188] sm:$0xff]  ;;  %v1572_v5 = vld [vmem:[#allocation12 + $0x198] sm:$0xff] }
 0x3ad   :  { %11158 = vtanh.f32 %v1256_v18  ;;  %v1539_v18 = vld [vmem:[#allocation12 + $0x90] sm:$0xff]  ;;  %v1574_v2 = vld [vmem:[#allocation12 + $0x1a8] sm:$0xff] }
 0x3ae   :  { %11160 = vtanh.f32 %v1250_v19  ;;  %v1543_v19 = vld [vmem:[#allocation12 + $0xb0] sm:$0xff]  ;;  %v12251_v6 = vpack.c.bf16 %v1574_v2, %v1570_v58 }
 0x3af   :  { %11162 = vtanh.f32 %v1261_v30  ;;  %v12210_v26 = vpack.c.bf16 %v1543_v19, %v1539_v18  ;;  %v1550_v30 = vld [vmem:[#allocation12 + $0xe8] sm:$0xff]  ;;  %v1576_v18 = vld [vmem:[#allocation12 + $0x1b8] sm:$0xff]  ;;  %v1569_v19 = vld [vmem:[#allocation12 + $0x180] sm:$0xff] }
 0x3b6   :  { %v11157_v31 = vpop.eup %11156 }
 0x3b7   :  { %v11159_v38 = vpop.eup %11158  ;;  %v1254_v39 = vmul.f32 0.5, %v11157_v31  ;;  %v1548_v31 = vld [vmem:[#allocation12 + $0xd8] sm:$0xff] }
 0x3b8   :  { %v1258_v42 = vmul.f32 0.5, %v11159_v38  ;;  %v11161_v52 = vpop.eup %11160  ;;  %v12215_v38 = vpack.c.bf16 %v1550_v30, %v1546_v27  ;;  %v1573_v27 = vld [vmem:[#allocation12 + $0x1a0] sm:$0xff]  ;;  %v12253_v30 = vpack.c.bf16 %v1576_v18, %v1572_v5 }
 0x3b9   :  { %v1255_v43 = vadd.f32 0.5, %v1254_v39  ;;  %v11163_v12 = vpop.eup %11162  ;;  %v1552_v39 = vld [vmem:[#allocation12 + $0xf8] sm:$0xff] }
 0x3ba   :  { %v1259_v55 = vadd.f32 0.5, %v1258_v42  ;;  %v1263_v13 = vmul.f32 0.5, %v11163_v12  ;;  %v1545_v42 = vld [vmem:[#allocation12 + $0xc0] sm:$0xff]  ;;  %v1554_v12 = vld [vmem:[#allocation12 + $0x108] sm:$0xff] }
 0x3bb   :  { %v1269_v61 = vmul.f32 %v11161_v52, %v1255_v43  ;;  %v1549_v43 = vld [vmem:[#allocation12 + $0xe0] sm:$0xff]  ;;  %v12217_v52 = vpack.c.bf16 %v1552_v39, %v1548_v31  ;;  %v12255_v31 = vpack.c.bf16 %v1573_v27, %v1569_v19  ;;  %v1571_v39 = vld [vmem:[#allocation12 + $0x190] sm:$0xff] }
 0x3bc   :  { %v1268_v8 = vmul.f32 %v1266_v60, %v1259_v55  ;;  %v1264_v21 = vadd.f32 0.5, %v1263_v13  ;;  %v12219_v55 = vpack.c.bf16 %v1549_v43, %v1545_v42  ;;  %v1547_v60 = vld [vmem:[#allocation12 + $0xd0] sm:$0xff]  ;;  %v1558_v13 = vld [vmem:[#allocation12 + $0x128] sm:$0xff] }
 0x3bd   :  { %v1575_v42 = vld [vmem:[#allocation12 + $0x1b0] sm:$0xff] }
 0x3be   :  { %v12174_v9 = vadd.f32 %v1269_v61, %v1268_v8  ;;  %v1551_v61 = vld [vmem:[#allocation12 + $0xf0] sm:$0xff]  ;;  %v12258_v43 = vpack.c.bf16 %v1575_v42, %v1571_v39 }
 0x3bf   :  { %v12222_v8 = vpack.c.bf16 %v1551_v61, %v1547_v60  ;;  %v1578_v60 = vld [vmem:[#allocation12 + $0x1c8] sm:$0xff] }
 0x3c0   :  { %11164 = vtanh.f32 %v12174_v9  ;;  %v1582_v61 = vld [vmem:[#allocation12 + $0x1e8] sm:$0xff] }
 0x3ca   :  { %v11165_v22 = vpop.eup %11164 }
 0x3cb   :  { %v1272_v46 = vmul.f32 %v11165_v22, %v1264_v21  ;;  %v1556_v21 = vld [vmem:[#allocation12 + $0x118] sm:$0xff]  ;;  %v12227_v22 = vpack.c.bf16 %v1558_v13, %v1554_v12  ;;  %v12263_v13 = vpack.c.bf16 %v1582_v61, %v1578_v60 }
 0x3cc   :  { %v1580_v12 = vld [vmem:[#allocation12 + $0x1d8] sm:$0xff] }
 0x3cd   :  { %1273 = vst [vmem:[#allocation2] sm:$0x4] %v1272_v46  ;;  %v1339_v20 = vrot.slane %v1272_v46, 2  ;;  %v1560_v46 = vld [vmem:[#allocation12 + $0x138] sm:$0xff] }
 0x3ce   :  { %v12229_v25 = vpack.c.bf16 %v1560_v46, %v1556_v21  ;;  %v1584_v21 = vld [vmem:[#allocation12 + $0x1f8] sm:$0xff]  ;;  %v1577_v46 = vld [vmem:[#allocation12 + $0x1c0] sm:$0xff] }
 0x3cf   :  { %1406 = vmatmul.mubr.f32.vlgmr.msra.gmra.mrb[8].mxu0 %v1339_v20  ;;  %1477 = vmatmul.mubr.f32.vlgmr.msra.gmra.mrb[8].mxu1 %v1339_v20  ;;  %v1553_v20 = vld [vmem:[#allocation12 + $0x100] sm:$0xff] }
 0x3d0   :  { %1652 = vmatprep.mubr.f32.mxu0 %v11691_v10  ;;  %1723 = vmatprep.mubr.f32.mxu1 %v11691_v10  ;;  %v12231_v29 = vpack.c.bf16 %v1557_v23, %v1553_v20  ;;  %v1581_v20 = vld [vmem:[#allocation12 + $0x1e0] sm:$0xff]  ;;  %v12265_v23 = vpack.c.bf16 %v1584_v21, %v1580_v12 }
 0x3d1   :  { %9117 = vmatpush1.bf16.msra.mxu0 %v12183_v36  ;;  %9149 = vmatpush1.bf16.msra.mxu1 %v12186_v49  ;;  %v12267_v44 = vpack.c.bf16 %v1581_v20, %v1577_v46 }
 0x3d2   :  { %9119 = vmatprep.subr.bf16.mxu0 %v12191_v59  ;;  %9151 = vmatprep.subr.bf16.mxu1 %v12193_v4 }
 0x3d5   :  { %9121 = vmatpush1.bf16.msra.mxu0 %v12195_v7  ;;  %9153 = vmatpush1.bf16.msra.mxu1 %v12198_v53 }
 0x3d6   :  { %9123 = vmatprep.subr.bf16.mxu0 %v12203_v1  ;;  %9155 = vmatprep.subr.bf16.mxu1 %v12205_v14 }
 0x3d9   :  { %9125 = vmatpush1.bf16.msra.mxu0 %v12207_v15  ;;  %9157 = vmatpush1.bf16.msra.mxu1 %v12210_v26 }
 0x3da   :  { %9127 = vmatprep.subr.bf16.mxu0 %v12215_v38  ;;  %9159 = vmatprep.subr.bf16.mxu1 %v12217_v52 }
 0x3dd   :  { %9129 = vmatpush1.bf16.msra.mxu0 %v12219_v55  ;;  %9161 = vmatpush1.bf16.msra.mxu1 %v12222_v8 }
 0x3de   :  { %9131 = vmatprep.subr.bf16.mxu0 %v12227_v22  ;;  %9163 = vmatprep.subr.bf16.mxu1 %v12229_v25 }
 0x3e1   :  { %9133 = vmatpush1.bf16.msra.mxu0 %v12231_v29  ;;  %9165 = vmatpush1.bf16.msra.mxu1 %v12234_v32 }
 0x3e2   :  { %9135 = vmatprep.subr.bf16.mxu0 %v12239_v51  ;;  %9167 = vmatprep.subr.bf16.mxu1 %v12241_v3 }
 0x3e5   :  { %9137 = vmatpush1.bf16.msra.mxu0 %v12243_v16  ;;  %9169 = vmatpush1.bf16.msra.mxu1 %v12246_v57 }
 0x3e6   :  { %9139 = vmatprep.subr.bf16.mxu0 %v12251_v6  ;;  %9171 = vmatprep.subr.bf16.mxu1 %v12253_v30 }
 0x3e9   :  { %9141 = vmatpush1.bf16.msra.mxu0 %v12255_v31  ;;  %9173 = vmatpush1.bf16.msra.mxu1 %v12258_v43 }
 0x3ea   :  { %9143 = vmatprep.subr.bf16.mxu0 %v12263_v13  ;;  %9175 = vmatprep.subr.bf16.mxu1 %v12265_v23 }
 0x3ed   :  { %9145 = vmatpush1.bf16.msra.mxu0 %v12267_v44  ;;  %9177 = vmatpush1.bf16.msra.mxu1 %v12270_v28 }
 0x3ee   :  { %9179 = vmatprep.subr.bf16.mxu0 %v12179_v24  ;;  %9211 = vmatprep.subr.bf16.mxu1 %v12181_v34 }
 0x4a2   :  { %v1407_v50 = vpop.f32.mrb[8].mxu0  ;;  %v1478_v56 = vpop.f32.mrb[8].mxu1 }
 0x4a3   :  { %v1487_v62 = vrot.slane %v1407_v50, 5  ;;  %v1409_v0 = vpop.f32.mrb[9].mxu0  ;;  %v1480_v17 = vpop.f32.mrb[9].mxu1  ;;  %v1489_v2 = vrot.slane %v1478_v56, 5  ;;  %v1513_v50 = vrot.slane %v12174_v9, 7 }
 0x4a4   :  { %v1488_v54 = vrot.slane %v1409_v0, 5  ;;  %v1490_v39 = vrot.slane %v1480_v17, 5 }
 0x4a5   :  { %v1495_v58 = vadd.f32 %v1487_v62, %v12076_v41  ;;  %v1497_v27 = vadd.f32 %v1489_v2, %v12085_v63 }
 0x4a6   :  { %v1496_v5 = vadd.f32 %v1488_v54, %v12081_v48  ;;  %v1498_v42 = vadd.f32 %v1490_v39, %v12089_v11 }
 0x4a7   :  { %v1499_v18 = vmul.f32 0.5, %v1495_v58 }
 0x4a8   :  { %v1503_v19 = vmul.f32 0.5, %v1496_v5  ;;  %v1508_v60 = vmul.f32 0.5, %v1498_v42 }
 0x4a9   :  { %11166 = vtanh.f32 %v1499_v18 }
 0x4aa   :  { %11168 = vtanh.f32 %v1503_v19 }
 0x4ab   :  { %11170 = vtanh.f32 %v1497_v27 }
 0x4ac   :  { %11172 = vtanh.f32 %v1508_v60 }
 0x4b3   :  { %v11167_v61 = vpop.eup %11166 }
 0x4b4   :  { %v11169_v12 = vpop.eup %11168  ;;  %v1501_v21 = vmul.f32 0.5, %v11167_v61 }
 0x4b5   :  { %v1505_v46 = vmul.f32 0.5, %v11169_v12  ;;  %v11171_v45 = vpop.eup %11170 }
 0x4b6   :  { %v1502_v20 = vadd.f32 0.5, %v1501_v21  ;;  %v11173_v17 = vpop.eup %11172 }
 0x4b7   :  { %v1506_v40 = vadd.f32 0.5, %v1505_v46  ;;  %v1510_v54 = vmul.f32 0.5, %v11173_v17 }
 0x4b8   :  { %v1516_v56 = vmul.f32 %v11171_v45, %v1502_v20 }
 0x4b9   :  { %v1515_v62 = vmul.f32 %v1513_v50, %v1506_v40  ;;  %v1511_v58 = vadd.f32 0.5, %v1510_v54 }
 0x4bb   :  { %v12282_v0 = vadd.f32 %v1516_v56, %v1515_v62 }
 0x4bd   :  { %11174 = vtanh.f32 %v12282_v0 }
 0x4c7   :  { %v11175_v2 = vpop.eup %11174 }
 0x4c8   :  { %v1519_v5 = vmul.f32 %v11175_v2, %v1511_v58 }
 0x4ca   :  { %1520 = vst [vmem:[#allocation2] sm:$0x8] %v1519_v5  ;;  %v1586_v18 = vrot.slane %v1519_v5, 3 }
 0x4cc   :  { %1653 = vmatmul.mubr.f32.vlgmr.msra.gmra.mrb[10].mxu0 %v1586_v18  ;;  %1724 = vmatmul.mubr.f32.vlgmr.msra.gmra.mrb[10].mxu1 %v1586_v18 }
 0x4cd   :  { %9181 = vmatpush1.bf16.msra.mxu0 %v12183_v36  ;;  %9213 = vmatpush1.bf16.msra.mxu1 %v12186_v49 }
 0x4ce   :  { %9183 = vmatprep.subr.bf16.mxu0 %v12191_v59  ;;  %9215 = vmatprep.subr.bf16.mxu1 %v12193_v4 }
 0x4cf   :  { %1899 = vmatprep.mubr.f32.mxu0 %v11691_v10  ;;  %1970 = vmatprep.mubr.f32.mxu1 %v11691_v10 }
 0x4d1   :  { %9185 = vmatpush1.bf16.msra.mxu0 %v12195_v7  ;;  %9217 = vmatpush1.bf16.msra.mxu1 %v12198_v53 }
 0x4d2   :  { %9187 = vmatprep.subr.bf16.mxu0 %v12203_v1  ;;  %9219 = vmatprep.subr.bf16.mxu1 %v12205_v14 }
 0x4d5   :  { %9189 = vmatpush1.bf16.msra.mxu0 %v12207_v15  ;;  %9221 = vmatpush1.bf16.msra.mxu1 %v12210_v26 }
 0x4d6   :  { %9191 = vmatprep.subr.bf16.mxu0 %v12215_v38  ;;  %9223 = vmatprep.subr.bf16.mxu1 %v12217_v52 }
 0x4d9   :  { %9193 = vmatpush1.bf16.msra.mxu0 %v12219_v55  ;;  %9225 = vmatpush1.bf16.msra.mxu1 %v12222_v8 }
 0x4da   :  { %9195 = vmatprep.subr.bf16.mxu0 %v12227_v22  ;;  %9227 = vmatprep.subr.bf16.mxu1 %v12229_v25 }
 0x4dd   :  { %9197 = vmatpush1.bf16.msra.mxu0 %v12231_v29  ;;  %9229 = vmatpush1.bf16.msra.mxu1 %v12234_v32 }
 0x4de   :  { %9199 = vmatprep.subr.bf16.mxu0 %v12239_v51  ;;  %9231 = vmatprep.subr.bf16.mxu1 %v12241_v3 }
 0x4e1   :  { %9201 = vmatpush1.bf16.msra.mxu0 %v12243_v16  ;;  %9233 = vmatpush1.bf16.msra.mxu1 %v12246_v57 }
 0x4e2   :  { %9203 = vmatprep.subr.bf16.mxu0 %v12251_v6  ;;  %9235 = vmatprep.subr.bf16.mxu1 %v12253_v30 }
 0x4e5   :  { %9205 = vmatpush1.bf16.msra.mxu0 %v12255_v31  ;;  %9237 = vmatpush1.bf16.msra.mxu1 %v12258_v43 }
 0x4e6   :  { %9207 = vmatprep.subr.bf16.mxu0 %v12263_v13  ;;  %9239 = vmatprep.subr.bf16.mxu1 %v12265_v23 }
 0x4e9   :  { %9209 = vmatpush1.bf16.msra.mxu0 %v12267_v44  ;;  %9241 = vmatpush1.bf16.msra.mxu1 %v12270_v28 }
 0x4ea   :  { %9243 = vmatprep.subr.bf16.mxu0 %v12179_v24  ;;  %9275 = vmatprep.subr.bf16.mxu1 %v12181_v34 }
 0x59f   :  { %v1654_v9 = vpop.f32.mrb[10].mxu0  ;;  %v1725_v19 = vpop.f32.mrb[10].mxu1 }
 0x5a0   :  { %v1734_v27 = vrot.slane %v1654_v9, 4  ;;  %v1656_v39 = vpop.f32.mrb[11].mxu0  ;;  %v1727_v42 = vpop.f32.mrb[11].mxu1  ;;  %v1736_v12 = vrot.slane %v1725_v19, 4  ;;  %v1760_v9 = vrot.slane %v12282_v0, 7 }
 0x5a1   :  { %v1735_v60 = vrot.slane %v1656_v39, 4  ;;  %v1737_v40 = vrot.slane %v1727_v42, 4 }
 0x5a2   :  { %v1742_v61 = vadd.f32 %v1734_v27, %v12076_v41  ;;  %v1744_v45 = vadd.f32 %v1736_v12, %v12085_v63 }
 0x5a3   :  { %v1743_v21 = vadd.f32 %v1735_v60, %v12081_v48  ;;  %v1745_v50 = vadd.f32 %v1737_v40, %v12089_v11 }
 0x5a4   :  { %v1746_v46 = vmul.f32 0.5, %v1742_v61 }
 0x5a5   :  { %v1750_v20 = vmul.f32 0.5, %v1743_v21  ;;  %v1755_v56 = vmul.f32 0.5, %v1745_v50 }
 0x5a6   :  { %11176 = vtanh.f32 %v1746_v46 }
 0x5a7   :  { %11178 = vtanh.f32 %v1750_v20 }
 0x5a8   :  { %11180 = vtanh.f32 %v1744_v45 }
 0x5a9   :  { %11182 = vtanh.f32 %v1755_v56 }
 0x5b0   :  { %v11177_v62 = vpop.eup %11176 }
 0x5b1   :  { %v11179_v17 = vpop.eup %11178  ;;  %v1748_v54 = vmul.f32 0.5, %v11177_v62 }
 0x5b2   :  { %v1752_v58 = vmul.f32 0.5, %v11179_v17  ;;  %v11181_v5 = vpop.eup %11180 }
 0x5b3   :  { %v1749_v2 = vadd.f32 0.5, %v1748_v54  ;;  %v11183_v42 = vpop.eup %11182 }
 0x5b4   :  { %v1753_v18 = vadd.f32 0.5, %v1752_v58  ;;  %v1757_v60 = vmul.f32 0.5, %v11183_v42 }
 0x5b5   :  { %v1763_v19 = vmul.f32 %v11181_v5, %v1749_v2 }
 0x5b6   :  { %v1762_v27 = vmul.f32 %v1760_v9, %v1753_v18  ;;  %v1758_v61 = vadd.f32 0.5, %v1757_v60 }
 0x5b8   :  { %v12324_v39 = vadd.f32 %v1763_v19, %v1762_v27 }
 0x5ba   :  { %11184 = vtanh.f32 %v12324_v39 }
 0x5c4   :  { %v11185_v12 = vpop.eup %11184 }
 0x5c5   :  { %v1766_v21 = vmul.f32 %v11185_v12, %v1758_v61 }
 0x5c7   :  { %1767 = vst [vmem:[#allocation2] sm:$0x10] %v1766_v21  ;;  %v1833_v46 = vrot.slane %v1766_v21, 4  ;;  %v2007_v21 = vrot.slane %v12324_v39, 7 }
 0x5c9   :  { %1900 = vmatmul.mubr.f32.vlgmr.msra.gmra.mrb[12].mxu0 %v1833_v46  ;;  %1971 = vmatmul.mubr.f32.vlgmr.msra.gmra.mrb[12].mxu1 %v1833_v46 }
 0x5ca   :  { %9245 = vmatpush1.bf16.msra.mxu0 %v12183_v36  ;;  %9277 = vmatpush1.bf16.msra.mxu1 %v12186_v49 }
 0x5cb   :  { %9247 = vmatprep.subr.bf16.mxu0 %v12191_v59  ;;  %9279 = vmatprep.subr.bf16.mxu1 %v12193_v4 }
 0x5cc   :  { %2146 = vmatprep.mubr.f32.mxu0 %v11691_v10  ;;  %2217 = vmatprep.mubr.f32.mxu1 %v11691_v10 }
 0x5ce   :  { %9249 = vmatpush1.bf16.msra.mxu0 %v12195_v7  ;;  %9281 = vmatpush1.bf16.msra.mxu1 %v12198_v53 }
 0x5cf   :  { %9251 = vmatprep.subr.bf16.mxu0 %v12203_v1  ;;  %9283 = vmatprep.subr.bf16.mxu1 %v12205_v14 }
 0x5d2   :  { %9253 = vmatpush1.bf16.msra.mxu0 %v12207_v15  ;;  %9285 = vmatpush1.bf16.msra.mxu1 %v12210_v26 }
 0x5d3   :  { %9255 = vmatprep.subr.bf16.mxu0 %v12215_v38  ;;  %9287 = vmatprep.subr.bf16.mxu1 %v12217_v52 }
 0x5d6   :  { %9257 = vmatpush1.bf16.msra.mxu0 %v12219_v55  ;;  %9289 = vmatpush1.bf16.msra.mxu1 %v12222_v8 }
 0x5d7   :  { %9259 = vmatprep.subr.bf16.mxu0 %v12227_v22  ;;  %9291 = vmatprep.subr.bf16.mxu1 %v12229_v25 }
 0x5da   :  { %9261 = vmatpush1.bf16.msra.mxu0 %v12231_v29  ;;  %9293 = vmatpush1.bf16.msra.mxu1 %v12234_v32 }
 0x5db   :  { %9263 = vmatprep.subr.bf16.mxu0 %v12239_v51  ;;  %9295 = vmatprep.subr.bf16.mxu1 %v12241_v3 }
 0x5de   :  { %9265 = vmatpush1.bf16.msra.mxu0 %v12243_v16  ;;  %9297 = vmatpush1.bf16.msra.mxu1 %v12246_v57 }
 0x5df   :  { %9267 = vmatprep.subr.bf16.mxu0 %v12251_v6  ;;  %9299 = vmatprep.subr.bf16.mxu1 %v12253_v30 }
 0x5e2   :  { %9269 = vmatpush1.bf16.msra.mxu0 %v12255_v31  ;;  %9301 = vmatpush1.bf16.msra.mxu1 %v12258_v43 }
 0x5e3   :  { %9271 = vmatprep.subr.bf16.mxu0 %v12263_v13  ;;  %9303 = vmatprep.subr.bf16.mxu1 %v12265_v23 }
 0x5e6   :  { %9273 = vmatpush1.bf16.msra.mxu0 %v12267_v44  ;;  %9305 = vmatpush1.bf16.msra.mxu1 %v12270_v28 }
 0x5e7   :  { %9307 = vmatprep.subr.bf16.mxu0 %v12179_v24  ;;  %9339 = vmatprep.subr.bf16.mxu1 %v12181_v34 }
 0x69c   :  { %v1901_v0 = vpop.f32.mrb[12].mxu0  ;;  %v1972_v20 = vpop.f32.mrb[12].mxu1 }
 0x69d   :  { %v1981_v45 = vrot.slane %v1901_v0, 3  ;;  %v1903_v40 = vpop.f32.mrb[13].mxu0  ;;  %v1974_v50 = vpop.f32.mrb[13].mxu1  ;;  %v1983_v17 = vrot.slane %v1972_v20, 3 }
 0x69e   :  { %v1982_v56 = vrot.slane %v1903_v40, 3  ;;  %v1984_v18 = vrot.slane %v1974_v50, 3 }
 0x69f   :  { %v1989_v62 = vadd.f32 %v1981_v45, %v12076_v41  ;;  %v1991_v5 = vadd.f32 %v1983_v17, %v12085_v63 }
 0x6a0   :  { %v1990_v54 = vadd.f32 %v1982_v56, %v12081_v48  ;;  %v1992_v24 = vadd.f32 %v1984_v18, %v12089_v11 }
 0x6a1   :  { %v1993_v58 = vmul.f32 0.5, %v1989_v62 }
 0x6a2   :  { %v1997_v2 = vmul.f32 0.5, %v1990_v54  ;;  %v2002_v34 = vmul.f32 0.5, %v1992_v24 }
 0x6a3   :  { %11186 = vtanh.f32 %v1993_v58 }
 0x6a4   :  { %11188 = vtanh.f32 %v1997_v2 }
 0x6a5   :  { %11190 = vtanh.f32 %v1991_v5 }
 0x6a6   :  { %11192 = vtanh.f32 %v2002_v34 }
 0x6ad   :  { %v11187_v9 = vpop.eup %11186 }
 0x6ae   :  { %v11189_v19 = vpop.eup %11188  ;;  %v1995_v27 = vmul.f32 0.5, %v11187_v9 }
 0x6af   :  { %v1999_v42 = vmul.f32 0.5, %v11189_v19  ;;  %v11191_v61 = vpop.eup %11190 }
 0x6b0   :  { %v1996_v60 = vadd.f32 0.5, %v1995_v27  ;;  %v11193_v45 = vpop.eup %11192 }
 0x6b1   :  { %v2000_v12 = vadd.f32 0.5, %v1999_v42  ;;  %v2004_v40 = vmul.f32 0.5, %v11193_v45 }
 0x6b2   :  { %v2010_v46 = vmul.f32 %v11191_v61, %v1996_v60 }
 0x6b3   :  { %v2009_v0 = vmul.f32 %v2007_v21, %v2000_v12  ;;  %v2005_v50 = vadd.f32 0.5, %v2004_v40 }
 0x6b5   :  { %v12366_v20 = vadd.f32 %v2010_v46, %v2009_v0 }
 0x6b7   :  { %11194 = vtanh.f32 %v12366_v20 }
 0x6c1   :  { %v11195_v56 = vpop.eup %11194 }
 0x6c2   :  { %v2013_v62 = vmul.f32 %v11195_v56, %v2005_v50 }
 0x6c4   :  { %2014 = vst [vmem:[#allocation2] sm:$0x20] %v2013_v62  ;;  %v2080_v17 = vrot.slane %v2013_v62, 5 }
 0x6c6   :  { %2147 = vmatmul.mubr.f32.vlgmr.msra.gmra.mrb[14].mxu0 %v2080_v17  ;;  %2218 = vmatmul.mubr.f32.vlgmr.msra.gmra.mrb[14].mxu1 %v2080_v17 }
 0x6c7   :  { %9309 = vmatpush1.bf16.msra.mxu0 %v12183_v36  ;;  %9341 = vmatpush1.bf16.msra.mxu1 %v12186_v49 }
 0x6c8   :  { %9311 = vmatprep.subr.bf16.mxu0 %v12191_v59  ;;  %9343 = vmatprep.subr.bf16.mxu1 %v12193_v4 }
 0x6c9   :  { %2393 = vmatprep.mubr.f32.mxu0 %v11691_v10  ;;  %2464 = vmatprep.mubr.f32.mxu1 %v11691_v10 }
 0x6cb   :  { %9313 = vmatpush1.bf16.msra.mxu0 %v12195_v7  ;;  %9345 = vmatpush1.bf16.msra.mxu1 %v12198_v53 }
 0x6cc   :  { %9315 = vmatprep.subr.bf16.mxu0 %v12203_v1  ;;  %9347 = vmatprep.subr.bf16.mxu1 %v12205_v14 }
 0x6cf   :  { %9317 = vmatpush1.bf16.msra.mxu0 %v12207_v15  ;;  %9349 = vmatpush1.bf16.msra.mxu1 %v12210_v26 }
 0x6d0   :  { %9319 = vmatprep.subr.bf16.mxu0 %v12215_v38  ;;  %9351 = vmatprep.subr.bf16.mxu1 %v12217_v52 }
 0x6d3   :  { %9321 = vmatpush1.bf16.msra.mxu0 %v12219_v55  ;;  %9353 = vmatpush1.bf16.msra.mxu1 %v12222_v8 }
 0x6d4   :  { %9323 = vmatprep.subr.bf16.mxu0 %v12227_v22  ;;  %9355 = vmatprep.subr.bf16.mxu1 %v12229_v25 }
 0x6d7   :  { %9325 = vmatpush1.bf16.msra.mxu0 %v12231_v29  ;;  %9357 = vmatpush1.bf16.msra.mxu1 %v12234_v32 }
 0x6d8   :  { %9327 = vmatprep.subr.bf16.mxu0 %v12239_v51  ;;  %9359 = vmatprep.subr.bf16.mxu1 %v12241_v3 }
 0x6db   :  { %9329 = vmatpush1.bf16.msra.mxu0 %v12243_v16  ;;  %9361 = vmatpush1.bf16.msra.mxu1 %v12246_v57 }
 0x6dc   :  { %9331 = vmatprep.subr.bf16.mxu0 %v12251_v6  ;;  %9363 = vmatprep.subr.bf16.mxu1 %v12253_v30  ;;  %v2254_v6 = vrot.slane %v12366_v20, 7 }
 0x6df   :  { %9333 = vmatpush1.bf16.msra.mxu0 %v12255_v31  ;;  %9365 = vmatpush1.bf16.msra.mxu1 %v12258_v43 }
 0x6e0   :  { %9335 = vmatprep.subr.bf16.mxu0 %v12263_v13  ;;  %9367 = vmatprep.subr.bf16.mxu1 %v12265_v23 }
 0x6e3   :  { %9337 = vmatpush1.bf16.msra.mxu0 %v12267_v44  ;;  %9369 = vmatpush1.bf16.msra.mxu1 %v12270_v28 }
 0x799   :  { %v2148_v36 = vpop.f32.mrb[14].mxu0  ;;  %v2219_v49 = vpop.f32.mrb[14].mxu1 }
 0x79a   :  { %v2228_v59 = vrot.slane %v2148_v36, 2  ;;  %v2150_v4 = vpop.f32.mrb[15].mxu0  ;;  %v2221_v7 = vpop.f32.mrb[15].mxu1  ;;  %v2230_v14 = vrot.slane %v2219_v49, 2 }
 0x79b   :  { %v2229_v53 = vrot.slane %v2150_v4, 2  ;;  %v2231_v55 = vrot.slane %v2221_v7, 2 }
 0x79c   :  { %v2236_v1 = vadd.f32 %v2228_v59, %v12076_v41  ;;  %v2238_v52 = vadd.f32 %v2230_v14, %v12085_v63 }
 0x79d   :  { %v2237_v15 = vadd.f32 %v2229_v53, %v12081_v48  ;;  %v2239_v8 = vadd.f32 %v2231_v55, %v12089_v11 }
 0x79e   :  { %v2240_v26 = vmul.f32 0.5, %v2236_v1 }
 0x79f   :  { %v2244_v38 = vmul.f32 0.5, %v2237_v15  ;;  %v2249_v22 = vmul.f32 0.5, %v2239_v8 }
 0x7a0   :  { %11196 = vtanh.f32 %v2240_v26 }
 0x7a1   :  { %11198 = vtanh.f32 %v2244_v38 }
 0x7a2   :  { %11200 = vtanh.f32 %v2238_v52 }
 0x7a3   :  { %11202 = vtanh.f32 %v2249_v22 }
 0x7aa   :  { %v11197_v25 = vpop.eup %11196 }
 0x7ab   :  { %v11199_v29 = vpop.eup %11198  ;;  %v2242_v32 = vmul.f32 0.5, %v11197_v25 }
 0x7ac   :  { %v2246_v51 = vmul.f32 0.5, %v11199_v29  ;;  %v11201_v16 = vpop.eup %11200 }
 0x7ad   :  { %v2243_v3 = vadd.f32 0.5, %v2242_v32  ;;  %v11203_v13 = vpop.eup %11202 }
 0x7ae   :  { %v2247_v57 = vadd.f32 0.5, %v2246_v51  ;;  %v2251_v23 = vmul.f32 0.5, %v11203_v13 }
 0x7af   :  { %v2257_v30 = vmul.f32 %v11201_v16, %v2243_v3 }
 0x7b0   :  { %v2256_v31 = vmul.f32 %v2254_v6, %v2247_v57  ;;  %v2252_v44 = vadd.f32 0.5, %v2251_v23 }
 0x7b2   :  { %v2258_v43 = vadd.f32 %v2257_v30, %v2256_v31 }
 0x7b4   :  { %11204 = vtanh.f32 %v2258_v43 }
 0x7be   :  { %v11205_v28 = vpop.eup %11204 }
 0x7bf   :  { %v2260_v39 = vmul.f32 %v11205_v28, %v2252_v44 }
 0x7c1   :  { %2261 = vst [vmem:[#allocation2] sm:$0x40] %v2260_v39  ;;  %v2327_v54 = vrot.slane %v2260_v39, 6 }
 0x7c3   :  { %2394 = vmatmul.mubr.f32.vlgmr.msra.gmra.mrb[16].mxu0 %v2327_v54  ;;  %2465 = vmatmul.mubr.f32.vlgmr.msra.gmra.mrb[16].mxu1 %v2327_v54 }
 0x896   :  { %v2395_v58 = vpop.f32.mrb[16].mxu0  ;;  %v2466_v2 = vpop.f32.mrb[16].mxu1 }
 0x897   :  { %v2475_v5 = vrot.slane %v2395_v58, 1  ;;  %v2397_v18 = vpop.f32.mrb[17].mxu0  ;;  %v2468_v24 = vpop.f32.mrb[17].mxu1  ;;  %v2477_v19 = vrot.slane %v2466_v2, 1 }
 0x898   :  { %v2476_v34 = vrot.slane %v2397_v18, 1  ;;  %v2478_v12 = vrot.slane %v2468_v24, 1 }
 0x899   :  { %v2483_v9 = vadd.f32 %v2475_v5, %v12076_v41  ;;  %v2485_v61 = vadd.f32 %v2477_v19, %v12085_v63 }
 0x89a   :  { %v2484_v27 = vadd.f32 %v2476_v34, %v12081_v48  ;;  %v2486_v21 = vadd.f32 %v2478_v12, %v12089_v11  ;;  %v2501_v48 = vrot.slane %v2258_v43, 7 }
 0x89b   :  { %v2487_v42 = vmul.f32 0.5, %v2483_v9 }
 0x89c   :  { %v2491_v60 = vmul.f32 0.5, %v2484_v27  ;;  %v2496_v46 = vmul.f32 0.5, %v2486_v21 }
 0x89d   :  { %11206 = vtanh.f32 %v2487_v42 }
 0x89e   :  { %11208 = vtanh.f32 %v2491_v60 }
 0x89f   :  { %11210 = vtanh.f32 %v2485_v61 }
 0x8a0   :  { %11212 = vtanh.f32 %v2496_v46 }
 0x8a7   :  { %v11207_v0 = vpop.eup %11206 }
 0x8a8   :  { %v11209_v20 = vpop.eup %11208  ;;  %v2489_v45 = vmul.f32 0.5, %v11207_v0 }
 0x8a9   :  { %v2493_v40 = vmul.f32 0.5, %v11209_v20  ;;  %v11211_v50 = vpop.eup %11210 }
 0x8aa   :  { %v2490_v41 = vadd.f32 0.5, %v2489_v45  ;;  %v11213_v63 = vpop.eup %11212 }
 0x8ab   :  { %v2494_v56 = vadd.f32 0.5, %v2493_v40  ;;  %v2498_v49 = vmul.f32 0.5, %v11213_v63 }
 0x8ac   :  { %v2504_v62 = vmul.f32 %v11211_v50, %v2490_v41 }
 0x8ad   :  { %v2503_v17 = vmul.f32 %v2501_v48, %v2494_v56  ;;  %v2499_v59 = vadd.f32 0.5, %v2498_v49 }
 0x8af   :  { %v2505_v36 = vadd.f32 %v2504_v62, %v2503_v17 }
 0x8b1   :  { %11214 = vtanh.f32 %v2505_v36 }
 0x8bb   :  { %v11215_v4 = vpop.eup %11214 }
 0x8bc   :  { %v2507_v7 = vmul.f32 %v11215_v4, %v2499_v59 }
 0x8be   :  { %2508 = vst [vmem:[#allocation2] sm:$0x80] %v2507_v7 }
 0x8bf   :  { %11658 = dma.done.wait [#allocation9], 8192 }
 0x8c0   :  { %11659 = vsyncadd [#allocation9], 4294959104 }
 0x8c1   :  { %11660 = dma.done.wait [#allocation9 + $0x1], 8192 }
 0x8c2   :  { %11661 = vsyncadd [#allocation9 + $0x1], 4294959104 }
 0x8c3   :  { %11662 = dma.done.wait [#allocation9 + $0x2], 64 }
 0x8c4   :  { %11663 = vsyncadd [#allocation9 + $0x2], 4294967232  ;;  %2669 = vmatprep.mubr.f32.mxu0 %v11691_v10  ;;  %2740 = vmatprep.mubr.f32.mxu1 %v11691_v10  ;;  %v2520_v11 = vld [vmem:[#allocation4 + $0x8] sm:$0xff]  ;;  %v2522_v1 = vld [vmem:[#allocation4 + $0x18] sm:$0xff] }
 0x8c5   :  { %v2524_v53 = vld [vmem:[#allocation4 + $0x28] sm:$0xff]  ;;  %v2526_v15 = vld [vmem:[#allocation4 + $0x38] sm:$0xff]  ;;  %v2519_v26 = vld [vmem:[#allocation4] sm:$0xff] }
 0x8c6   :  { %v9370_v14 = vpack.c.bf16 %v2524_v53, %v2520_v11  ;;  %v2523_v38 = vld [vmem:[#allocation4 + $0x20] sm:$0xff]  ;;  %v9402_v52 = vpack.c.bf16 %v2526_v15, %v2522_v1  ;;  %v2521_v8 = vld [vmem:[#allocation4 + $0x10] sm:$0xff]  ;;  %v2528_v25 = vld [vmem:[#allocation4 + $0x48] sm:$0xff] }
 0x8c7   :  { %v9372_v55 = vpack.c.bf16 %v2523_v38, %v2519_v26  ;;  %v2525_v22 = vld [vmem:[#allocation4 + $0x30] sm:$0xff]  ;;  %v2532_v32 = vld [vmem:[#allocation4 + $0x68] sm:$0xff]  ;;  %v2530_v51 = vld [vmem:[#allocation4 + $0x58] sm:$0xff] }
 0x8c8   :  { %9371 = vmatprep.subr.bf16.mxu0 %v9370_v14  ;;  %v9404_v29 = vpack.c.bf16 %v2525_v22, %v2521_v8  ;;  %v2534_v3 = vld [vmem:[#allocation4 + $0x78] sm:$0xff]  ;;  %9403 = vmatprep.subr.bf16.mxu1 %v9402_v52  ;;  %v9374_v16 = vpack.c.bf16 %v2532_v32, %v2528_v25  ;;  %v2527_v6 = vld [vmem:[#allocation4 + $0x40] sm:$0xff]  ;;  %v2529_v31 = vld [vmem:[#allocation4 + $0x50] sm:$0xff] }
 0x8c9   :  { %9373 = vmatpush1.bf16.msra.mxu0 %v9372_v55  ;;  %v9406_v57 = vpack.c.bf16 %v2534_v3, %v2530_v51  ;;  %v2531_v30 = vld [vmem:[#allocation4 + $0x60] sm:$0xff]  ;;  %v2533_v13 = vld [vmem:[#allocation4 + $0x70] sm:$0xff]  ;;  %v2536_v23 = vld [vmem:[#allocation4 + $0x88] sm:$0xff] }
 0x8ca   :  { %9405 = vmatpush1.bf16.msra.mxu1 %v9404_v29  ;;  %v9376_v43 = vpack.c.bf16 %v2531_v30, %v2527_v6  ;;  %v2540_v44 = vld [vmem:[#allocation4 + $0xa8] sm:$0xff]  ;;  %9375 = vmatprep.subr.bf16.mxu0 %v9374_v16  ;;  %v9408_v28 = vpack.c.bf16 %v2533_v13, %v2529_v31  ;;  %v2538_v54 = vld [vmem:[#allocation4 + $0x98] sm:$0xff]  ;;  %v2535_v2 = vld [vmem:[#allocation4 + $0x80] sm:$0xff] }
 0x8cb   :  { %9407 = vmatprep.subr.bf16.mxu1 %v9406_v57  ;;  %v9378_v39 = vpack.c.bf16 %v2540_v44, %v2536_v23  ;;  %v2542_v58 = vld [vmem:[#allocation4 + $0xb8] sm:$0xff]  ;;  %v2539_v18 = vld [vmem:[#allocation4 + $0xa0] sm:$0xff]  ;;  %v2537_v24 = vld [vmem:[#allocation4 + $0x90] sm:$0xff] }
 0x8cc   :  { %v9410_v5 = vpack.c.bf16 %v2542_v58, %v2538_v54  ;;  %v2541_v34 = vld [vmem:[#allocation4 + $0xb0] sm:$0xff]  ;;  %v9380_v9 = vpack.c.bf16 %v2539_v18, %v2535_v2  ;;  %v2544_v19 = vld [vmem:[#allocation4 + $0xc8] sm:$0xff]  ;;  %v2546_v42 = vld [vmem:[#allocation4 + $0xd8] sm:$0xff] }
 0x8cd   :  { %9377 = vmatpush1.bf16.msra.mxu0 %v9376_v43  ;;  %v2548_v27 = vld [vmem:[#allocation4 + $0xe8] sm:$0xff]  ;;  %v9412_v60 = vpack.c.bf16 %v2541_v34, %v2537_v24  ;;  %v2550_v12 = vld [vmem:[#allocation4 + $0xf8] sm:$0xff]  ;;  %v2543_v21 = vld [vmem:[#allocation4 + $0xc0] sm:$0xff] }
 0x8ce   :  { %9409 = vmatpush1.bf16.msra.mxu1 %v9408_v28  ;;  %9379 = vmatprep.subr.bf16.mxu0 %v9378_v39  ;;  %v9382_v61 = vpack.c.bf16 %v2548_v27, %v2544_v19  ;;  %v2547_v46 = vld [vmem:[#allocation4 + $0xe0] sm:$0xff]  ;;  %v9414_v0 = vpack.c.bf16 %v2550_v12, %v2546_v42  ;;  %v2545_v20 = vld [vmem:[#allocation4 + $0xd0] sm:$0xff]  ;;  %v2552_v40 = vld [vmem:[#allocation4 + $0x108] sm:$0xff] }
 0x8cf   :  { %9411 = vmatprep.subr.bf16.mxu1 %v9410_v5  ;;  %v2549_v45 = vld [vmem:[#allocation4 + $0xf0] sm:$0xff]  ;;  %v2556_v41 = vld [vmem:[#allocation4 + $0x128] sm:$0xff]  ;;  %v2554_v50 = vld [vmem:[#allocation4 + $0x118] sm:$0xff]  ;;  %v9384_v48 = vpack.c.bf16 %v2547_v46, %v2543_v21 }
 0x8d0   :  { %v2558_v56 = vld [vmem:[#allocation4 + $0x138] sm:$0xff]  ;;  %v9416_v62 = vpack.c.bf16 %v2549_v45, %v2545_v20  ;;  %v9386_v17 = vpack.c.bf16 %v2556_v41, %v2552_v40  ;;  %v2551_v36 = vld [vmem:[#allocation4 + $0x100] sm:$0xff]  ;;  %v2553_v49 = vld [vmem:[#allocation4 + $0x110] sm:$0xff] }
 0x8d1   :  { %9381 = vmatpush1.bf16.msra.mxu0 %v9380_v9  ;;  %v2555_v63 = vld [vmem:[#allocation4 + $0x120] sm:$0xff]  ;;  %v9418_v59 = vpack.c.bf16 %v2558_v56, %v2554_v50  ;;  %v2557_v4 = vld [vmem:[#allocation4 + $0x130] sm:$0xff]  ;;  %v2560_v7 = vld [vmem:[#allocation4 + $0x148] sm:$0xff] }
 0x8d2   :  { %9413 = vmatpush1.bf16.msra.mxu1 %v9412_v60  ;;  %9383 = vmatprep.subr.bf16.mxu0 %v9382_v61  ;;  %v2564_v11 = vld [vmem:[#allocation4 + $0x168] sm:$0xff]  ;;  %v2562_v53 = vld [vmem:[#allocation4 + $0x158] sm:$0xff]  ;;  %v9388_v14 = vpack.c.bf16 %v2555_v63, %v2551_v36  ;;  %v9420_v15 = vpack.c.bf16 %v2557_v4, %v2553_v49  ;;  %v2559_v38 = vld [vmem:[#allocation4 + $0x140] sm:$0xff] }
 0x8d3   :  { %9415 = vmatprep.subr.bf16.mxu1 %v9414_v0  ;;  %v2566_v1 = vld [vmem:[#allocation4 + $0x178] sm:$0xff]  ;;  %v9390_v26 = vpack.c.bf16 %v2564_v11, %v2560_v7  ;;  %v2563_v52 = vld [vmem:[#allocation4 + $0x160] sm:$0xff]  ;;  %v2561_v55 = vld [vmem:[#allocation4 + $0x150] sm:$0xff] }
 0x8d4   :  { %v9422_v8 = vpack.c.bf16 %v2566_v1, %v2562_v53  ;;  %v2565_v22 = vld [vmem:[#allocation4 + $0x170] sm:$0xff]  ;;  %v2568_v25 = vld [vmem:[#allocation4 + $0x188] sm:$0xff]  ;;  %v2570_v32 = vld [vmem:[#allocation4 + $0x198] sm:$0xff]  ;;  %v9392_v3 = vpack.c.bf16 %v2563_v52, %v2559_v38 }
 0x8d5   :  { %9385 = vmatpush1.bf16.msra.mxu0 %v9384_v48  ;;  %v2572_v29 = vld [vmem:[#allocation4 + $0x1a8] sm:$0xff]  ;;  %v2574_v51 = vld [vmem:[#allocation4 + $0x1b8] sm:$0xff]  ;;  %v9424_v16 = vpack.c.bf16 %v2565_v22, %v2561_v55  ;;  %v2567_v6 = vld [vmem:[#allocation4 + $0x180] sm:$0xff] }
 0x8d6   :  { %9417 = vmatpush1.bf16.msra.mxu1 %v9416_v62  ;;  %9387 = vmatprep.subr.bf16.mxu0 %v9386_v17  ;;  %v9394_v57 = vpack.c.bf16 %v2572_v29, %v2568_v25  ;;  %v2571_v30 = vld [vmem:[#allocation4 + $0x1a0] sm:$0xff]  ;;  %v2569_v31 = vld [vmem:[#allocation4 + $0x190] sm:$0xff]  ;;  %v9426_v43 = vpack.c.bf16 %v2574_v51, %v2570_v32  ;;  %v2576_v23 = vld [vmem:[#allocation4 + $0x1c8] sm:$0xff] }
 0x8d7   :  { %9419 = vmatprep.subr.bf16.mxu1 %v9418_v59  ;;  %v2573_v13 = vld [vmem:[#allocation4 + $0x1b0] sm:$0xff]  ;;  %v2580_v44 = vld [vmem:[#allocation4 + $0x1e8] sm:$0xff]  ;;  %v2578_v28 = vld [vmem:[#allocation4 + $0x1d8] sm:$0xff]  ;;  %v9396_v54 = vpack.c.bf16 %v2571_v30, %v2567_v6 }
 0x8d8   :  { %v2582_v39 = vld [vmem:[#allocation4 + $0x1f8] sm:$0xff]  ;;  %v9428_v58 = vpack.c.bf16 %v2573_v13, %v2569_v31  ;;  %v9398_v2 = vpack.c.bf16 %v2580_v44, %v2576_v23  ;;  %v2575_v5 = vld [vmem:[#allocation4 + $0x1c0] sm:$0xff]  ;;  %v2577_v24 = vld [vmem:[#allocation4 + $0x1d0] sm:$0xff] }
 0x8d9   :  { %9389 = vmatpush1.bf16.msra.mxu0 %v9388_v14  ;;  %v2579_v18 = vld [vmem:[#allocation4 + $0x1e0] sm:$0xff]  ;;  %v9430_v34 = vpack.c.bf16 %v2582_v39, %v2578_v28  ;;  %v2581_v9 = vld [vmem:[#allocation4 + $0x1f0] sm:$0xff]  ;;  %v2748_v19 = vld [vmem:[#allocation5 + $0x8] sm:$0xff] }
 0x8da   :  { %9421 = vmatpush1.bf16.msra.mxu1 %v9420_v15  ;;  %9391 = vmatprep.subr.bf16.mxu0 %v9390_v26  ;;  %v2752_v27 = vld [vmem:[#allocation5 + $0x28] sm:$0xff]  ;;  %v2750_v42 = vld [vmem:[#allocation5 + $0x18] sm:$0xff]  ;;  %v9400_v61 = vpack.c.bf16 %v2579_v18, %v2575_v5  ;;  %v9432_v12 = vpack.c.bf16 %v2581_v9, %v2577_v24  ;;  %v2747_v46 = vld [vmem:[#allocation5] sm:$0xff] }
 0x8db   :  { %9423 = vmatprep.subr.bf16.mxu1 %v9422_v8  ;;  %v2754_v60 = vld [vmem:[#allocation5 + $0x38] sm:$0xff]  ;;  %v12412_v21 = vpack.c.bf16 %v2752_v27, %v2748_v19  ;;  %v2751_v0 = vld [vmem:[#allocation5 + $0x20] sm:$0xff]  ;;  %v2749_v20 = vld [vmem:[#allocation5 + $0x10] sm:$0xff] }
 0x8dc   :  { %v12414_v45 = vpack.c.bf16 %v2754_v60, %v2750_v42  ;;  %v2753_v40 = vld [vmem:[#allocation5 + $0x30] sm:$0xff]  ;;  %v2756_v41 = vld [vmem:[#allocation5 + $0x48] sm:$0xff]  ;;  %v2758_v56 = vld [vmem:[#allocation5 + $0x58] sm:$0xff]  ;;  %v12416_v17 = vpack.c.bf16 %v2751_v0, %v2747_v46 }
 0x8dd   :  { %9393 = vmatpush1.bf16.msra.mxu0 %v9392_v3  ;;  %v2760_v50 = vld [vmem:[#allocation5 + $0x68] sm:$0xff]  ;;  %v2762_v48 = vld [vmem:[#allocation5 + $0x78] sm:$0xff]  ;;  %v2518_v62 = vld [vmem:[#allocation2] sm:$0xff]  ;;  %v12419_v36 = vpack.c.bf16 %v2753_v40, %v2749_v20 }
 0x8de   :  { %9425 = vmatpush1.bf16.msra.mxu1 %v9424_v16  ;;  %9395 = vmatprep.subr.bf16.mxu0 %v9394_v57  ;;  %v12421_v63 = vpack.c.bf16 %v2760_v50, %v2756_v41  ;;  %v2755_v49 = vld [vmem:[#allocation5 + $0x40] sm:$0xff]  ;;  %v2757_v4 = vld [vmem:[#allocation5 + $0x50] sm:$0xff]  ;;  %v12424_v7 = vpack.c.bf16 %v2762_v48, %v2758_v56  ;;  %v2764_v53 = vld [vmem:[#allocation5 + $0x88] sm:$0xff] }
 0x8df   :  { %9427 = vmatprep.subr.bf16.mxu1 %v9426_v43  ;;  %v2759_v59 = vld [vmem:[#allocation5 + $0x60] sm:$0xff]  ;;  %v2761_v11 = vld [vmem:[#allocation5 + $0x70] sm:$0xff]  ;;  %v2768_v1 = vld [vmem:[#allocation5 + $0xa8] sm:$0xff] }
 0x8e0   :  { %v2766_v14 = vld [vmem:[#allocation5 + $0x98] sm:$0xff]  ;;  %v12427_v26 = vpack.c.bf16 %v2759_v59, %v2755_v49  ;;  %v12431_v38 = vpack.c.bf16 %v2761_v11, %v2757_v4  ;;  %v12433_v52 = vpack.c.bf16 %v2768_v1, %v2764_v53  ;;  %v2763_v55 = vld [vmem:[#allocation5 + $0x80] sm:$0xff]  ;;  %v2765_v22 = vld [vmem:[#allocation5 + $0x90] sm:$0xff] }
 0x8e1   :  { %9397 = vmatpush1.bf16.msra.mxu0 %v9396_v54  ;;  %v2770_v15 = vld [vmem:[#allocation5 + $0xb8] sm:$0xff]  ;;  %v2767_v8 = vld [vmem:[#allocation5 + $0xa0] sm:$0xff]  ;;  %v2769_v29 = vld [vmem:[#allocation5 + $0xb0] sm:$0xff] }
 0x8e2   :  { %9429 = vmatpush1.bf16.msra.mxu1 %v9428_v58  ;;  %9399 = vmatprep.subr.bf16.mxu0 %v9398_v2  ;;  %v12436_v25 = vpack.c.bf16 %v2770_v15, %v2766_v14  ;;  %v2772_v32 = vld [vmem:[#allocation5 + $0xc8] sm:$0xff]  ;;  %v2774_v3 = vld [vmem:[#allocation5 + $0xd8] sm:$0xff]  ;;  %v12441_v57 = vpack.c.bf16 %v2767_v8, %v2763_v55  ;;  %v12445_v6 = vpack.c.bf16 %v2769_v29, %v2765_v22  ;;  %v2771_v31 = vld [vmem:[#allocation5 + $0xc0] sm:$0xff] }
 0x8e3   :  { %9431 = vmatprep.subr.bf16.mxu1 %v9430_v34  ;;  %v2776_v51 = vld [vmem:[#allocation5 + $0xe8] sm:$0xff]  ;;  %v2778_v16 = vld [vmem:[#allocation5 + $0xf8] sm:$0xff]  ;;  %v2775_v43 = vld [vmem:[#allocation5 + $0xe0] sm:$0xff] }
 0x8e4   :  { %v12447_v30 = vpack.c.bf16 %v2776_v51, %v2772_v32  ;;  %v2773_v13 = vld [vmem:[#allocation5 + $0xd0] sm:$0xff]  ;;  %v12450_v23 = vpack.c.bf16 %v2778_v16, %v2774_v3  ;;  %v2780_v28 = vld [vmem:[#allocation5 + $0x108] sm:$0xff]  ;;  %v2782_v54 = vld [vmem:[#allocation5 + $0x118] sm:$0xff]  ;;  %v12453_v2 = vpack.c.bf16 %v2775_v43, %v2771_v31 }
 0x8e5   :  { %9401 = vmatpush1.bf16.msra.mxu0 %v9400_v61  ;;  %v2777_v44 = vld [vmem:[#allocation5 + $0xf0] sm:$0xff]  ;;  %v2784_v39 = vld [vmem:[#allocation5 + $0x128] sm:$0xff]  ;;  %v2786_v58 = vld [vmem:[#allocation5 + $0x138] sm:$0xff] }
 0x8e6   :  { %9433 = vmatpush1.bf16.msra.mxu1 %v9432_v12  ;;  %9435 = vmatprep.subr.bf16.mxu0 %v12412_v21  ;;  %v12457_v5 = vpack.c.bf16 %v2777_v44, %v2773_v13  ;;  %v12459_v18 = vpack.c.bf16 %v2784_v39, %v2780_v28  ;;  %v2779_v24 = vld [vmem:[#allocation5 + $0x100] sm:$0xff]  ;;  %v2781_v9 = vld [vmem:[#allocation5 + $0x110] sm:$0xff]  ;;  %v12462_v19 = vpack.c.bf16 %v2786_v58, %v2782_v54  ;;  %v2788_v42 = vld [vmem:[#allocation5 + $0x148] sm:$0xff] }
 0x8e7   :  { %9467 = vmatprep.subr.bf16.mxu1 %v12414_v45  ;;  %v2783_v34 = vld [vmem:[#allocation5 + $0x120] sm:$0xff]  ;;  %v2785_v27 = vld [vmem:[#allocation5 + $0x130] sm:$0xff]  ;;  %v2792_v60 = vld [vmem:[#allocation5 + $0x168] sm:$0xff] }
 0x8e8   :  { %2670 = vmatmul.mubr.f32.vlgmr.msra.gmra.mrb[18].mxu0 %v2518_v62  ;;  %v2790_v61 = vld [vmem:[#allocation5 + $0x158] sm:$0xff]  ;;  %v12465_v46 = vpack.c.bf16 %v2783_v34, %v2779_v24  ;;  %v12469_v0 = vpack.c.bf16 %v2785_v27, %v2781_v9  ;;  %v12471_v20 = vpack.c.bf16 %v2792_v60, %v2788_v42  ;;  %v2787_v40 = vld [vmem:[#allocation5 + $0x140] sm:$0xff]  ;;  %v2789_v50 = vld [vmem:[#allocation5 + $0x150] sm:$0xff] }
 0x8e9   :  { %2741 = vmatmul.mubr.f32.vlgmr.msra.gmra.mrb[18].mxu1 %v2518_v62  ;;  %9437 = vmatpush1.bf16.msra.mxu0 %v12416_v17  ;;  %v2794_v12 = vld [vmem:[#allocation5 + $0x178] sm:$0xff]  ;;  %v2791_v41 = vld [vmem:[#allocation5 + $0x160] sm:$0xff]  ;;  %v2793_v48 = vld [vmem:[#allocation5 + $0x170] sm:$0xff] }
 0x8ea   :  { %9469 = vmatpush1.bf16.msra.mxu1 %v12419_v36  ;;  %9439 = vmatprep.subr.bf16.mxu0 %v12421_v63  ;;  %v12474_v56 = vpack.c.bf16 %v2794_v12, %v2790_v61  ;;  %v2796_v62 = vld [vmem:[#allocation5 + $0x188] sm:$0xff]  ;;  %v2798_v59 = vld [vmem:[#allocation5 + $0x198] sm:$0xff]  ;;  %v12477_v11 = vpack.c.bf16 %v2791_v41, %v2787_v40  ;;  %v12481_v53 = vpack.c.bf16 %v2793_v48, %v2789_v50  ;;  %v2795_v14 = vld [vmem:[#allocation5 + $0x180] sm:$0xff] }
 0x8eb   :  { %9471 = vmatprep.subr.bf16.mxu1 %v12424_v7  ;;  %2875 = vmatprep.mubr.f32.mxu0 %v11691_v10  ;;  %v2800_v49 = vld [vmem:[#allocation5 + $0x1a8] sm:$0xff]  ;;  %v2802_v4 = vld [vmem:[#allocation5 + $0x1b8] sm:$0xff]  ;;  %v2799_v15 = vld [vmem:[#allocation5 + $0x1a0] sm:$0xff] }
 0x8ec   :  { %2946 = vmatprep.mubr.f32.mxu1 %v11691_v10  ;;  %v12483_v1 = vpack.c.bf16 %v2800_v49, %v2796_v62  ;;  %v2797_v55 = vld [vmem:[#allocation5 + $0x190] sm:$0xff]  ;;  %v12486_v8 = vpack.c.bf16 %v2802_v4, %v2798_v59  ;;  %v2804_v29 = vld [vmem:[#allocation5 + $0x1c8] sm:$0xff]  ;;  %v2806_v51 = vld [vmem:[#allocation5 + $0x1d8] sm:$0xff]  ;;  %v12489_v16 = vpack.c.bf16 %v2799_v15, %v2795_v14 }
 0x8ed   :  { %9441 = vmatpush1.bf16.msra.mxu0 %v12427_v26  ;;  %v2801_v22 = vld [vmem:[#allocation5 + $0x1b0] sm:$0xff]  ;;  %v2808_v32 = vld [vmem:[#allocation5 + $0x1e8] sm:$0xff]  ;;  %v2810_v3 = vld [vmem:[#allocation5 + $0x1f8] sm:$0xff] }
 0x8ee   :  { %9473 = vmatpush1.bf16.msra.mxu1 %v12431_v38  ;;  %9443 = vmatprep.subr.bf16.mxu0 %v12433_v52  ;;  %v12493_v31 = vpack.c.bf16 %v2801_v22, %v2797_v55  ;;  %v12495_v43 = vpack.c.bf16 %v2808_v32, %v2804_v29  ;;  %v2803_v13 = vld [vmem:[#allocation5 + $0x1c0] sm:$0xff]  ;;  %v12498_v28 = vpack.c.bf16 %v2810_v3, %v2806_v51  ;;  %v2805_v39 = vld [vmem:[#allocation5 + $0x1d0] sm:$0xff] }
 0x8ef   :  { %9475 = vmatprep.subr.bf16.mxu1 %v12436_v25  ;;  %v2807_v44 = vld [vmem:[#allocation5 + $0x1e0] sm:$0xff]  ;;  %v2809_v54 = vld [vmem:[#allocation5 + $0x1f0] sm:$0xff] }
 0x8f0   :  { %v12501_v58 = vpack.c.bf16 %v2807_v44, %v2803_v13  ;;  %v12505_v24 = vpack.c.bf16 %v2809_v54, %v2805_v39  ;;  %v2583_v60 = vld [vmem:[#allocation6] sm:$0xf] }
 0x8f1   :  { %9445 = vmatpush1.bf16.msra.mxu0 %v12441_v57  ;;  %v2588_v61 = vrot.slane %v2583_v60, %v12065_v33  ;;  %v2592_v12 = vrot.slane %v2583_v60, %v12070_v35  ;;  %v2596_v41 = vrot.slane %v2583_v60, %v12073_v37  ;;  %v2600_v55 = vrot.slane %v2583_v60, %v12079_v47 }
 0x8f2   :  { %9477 = vmatpush1.bf16.msra.mxu1 %v12445_v6  ;;  %9447 = vmatprep.subr.bf16.mxu0 %v12447_v30 }
 0x8f3   :  { %9479 = vmatprep.subr.bf16.mxu1 %v12450_v23 }
 0x8f5   :  { %9449 = vmatpush1.bf16.msra.mxu0 %v12453_v2 }
 0x8f6   :  { %9481 = vmatpush1.bf16.msra.mxu1 %v12457_v5  ;;  %9451 = vmatprep.subr.bf16.mxu0 %v12459_v18 }
 0x8f7   :  { %9483 = vmatprep.subr.bf16.mxu1 %v12462_v19 }
 0x8f9   :  { %9453 = vmatpush1.bf16.msra.mxu0 %v12465_v46 }
 0x8fa   :  { %9485 = vmatpush1.bf16.msra.mxu1 %v12469_v0  ;;  %9455 = vmatprep.subr.bf16.mxu0 %v12471_v20 }
 0x8fb   :  { %9487 = vmatprep.subr.bf16.mxu1 %v12474_v56 }
 0x8fd   :  { %9457 = vmatpush1.bf16.msra.mxu0 %v12477_v11 }
 0x8fe   :  { %9489 = vmatpush1.bf16.msra.mxu1 %v12481_v53  ;;  %9459 = vmatprep.subr.bf16.mxu0 %v12483_v1 }
 0x8ff   :  { %9491 = vmatprep.subr.bf16.mxu1 %v12486_v8 }
 0x901   :  { %9461 = vmatpush1.bf16.msra.mxu0 %v12489_v16 }
 0x902   :  { %9493 = vmatpush1.bf16.msra.mxu1 %v12493_v31  ;;  %9463 = vmatprep.subr.bf16.mxu0 %v12495_v43 }
 0x903   :  { %9495 = vmatprep.subr.bf16.mxu1 %v12498_v28 }
 0x905   :  { %9465 = vmatpush1.bf16.msra.mxu0 %v12501_v58 }
 0x906   :  { %9497 = vmatpush1.bf16.msra.mxu1 %v12505_v24  ;;  %9499 = vmatprep.subr.bf16.mxu0 %v12412_v21 }
 0x907   :  { %9531 = vmatprep.subr.bf16.mxu1 %v12414_v45 }
 0x908   :  { %2876 = vmatmul.mubr.f32.vlgmr.msra.gmra.mrb[20].mxu0 %v11691_v10 }
 0x909   :  { %2947 = vmatmul.mubr.f32.vlgmr.msra.gmra.mrb[20].mxu1 %v11691_v10  ;;  %9501 = vmatpush1.bf16.msra.mxu0 %v12416_v17 }
 0x90a   :  { %9533 = vmatpush1.bf16.msra.mxu1 %v12419_v36  ;;  %9503 = vmatprep.subr.bf16.mxu0 %v12421_v63 }
 0x90b   :  { %9535 = vmatprep.subr.bf16.mxu1 %v12424_v7  ;;  %3039 = vmatprep.mubr.f32.mxu0 %v11691_v10 }
 0x90c   :  { %3110 = vmatprep.mubr.f32.mxu1 %v11691_v10 }
 0x90d   :  { %9505 = vmatpush1.bf16.msra.mxu0 %v12427_v26 }
 0x90e   :  { %9537 = vmatpush1.bf16.msra.mxu1 %v12431_v38  ;;  %9507 = vmatprep.subr.bf16.mxu0 %v12433_v52 }
 0x90f   :  { %9539 = vmatprep.subr.bf16.mxu1 %v12436_v25 }
 0x911   :  { %9509 = vmatpush1.bf16.msra.mxu0 %v12441_v57 }
 0x912   :  { %9541 = vmatpush1.bf16.msra.mxu1 %v12445_v6  ;;  %9511 = vmatprep.subr.bf16.mxu0 %v12447_v30 }
 0x913   :  { %9543 = vmatprep.subr.bf16.mxu1 %v12450_v23 }
 0x915   :  { %9513 = vmatpush1.bf16.msra.mxu0 %v12453_v2 }
 0x916   :  { %9545 = vmatpush1.bf16.msra.mxu1 %v12457_v5  ;;  %9515 = vmatprep.subr.bf16.mxu0 %v12459_v18 }
 0x917   :  { %9547 = vmatprep.subr.bf16.mxu1 %v12462_v19 }
 0x919   :  { %9517 = vmatpush1.bf16.msra.mxu0 %v12465_v46 }
 0x91a   :  { %9549 = vmatpush1.bf16.msra.mxu1 %v12469_v0  ;;  %9519 = vmatprep.subr.bf16.mxu0 %v12471_v20 }
 0x91b   :  { %9551 = vmatprep.subr.bf16.mxu1 %v12474_v56 }
 0x91d   :  { %9521 = vmatpush1.bf16.msra.mxu0 %v12477_v11 }
 0x91e   :  { %9553 = vmatpush1.bf16.msra.mxu1 %v12481_v53  ;;  %9523 = vmatprep.subr.bf16.mxu0 %v12483_v1 }
 0x91f   :  { %9555 = vmatprep.subr.bf16.mxu1 %v12486_v8 }
 0x921   :  { %9525 = vmatpush1.bf16.msra.mxu0 %v12489_v16 }
 0x922   :  { %9557 = vmatpush1.bf16.msra.mxu1 %v12493_v31  ;;  %9527 = vmatprep.subr.bf16.mxu0 %v12495_v43 }
 0x923   :  { %9559 = vmatprep.subr.bf16.mxu1 %v12498_v28 }
 0x925   :  { %9529 = vmatpush1.bf16.msra.mxu0 %v12501_v58 }
 0x926   :  { %9561 = vmatpush1.bf16.msra.mxu1 %v12505_v24  ;;  %9563 = vmatprep.subr.bf16.mxu0 %v12412_v21 }
 0x927   :  { %9595 = vmatprep.subr.bf16.mxu1 %v12414_v45 }
 0x9bb   :  { %v2671_v34 = vpop.f32.mrb[18].mxu0 }
 0x9bc   :  { %v2673_v9 = vpop.f32.mrb[19].mxu0  ;;  %v2742_v27 = vpop.f32.mrb[18].mxu1  ;;  %v12550_v40 = vadd.f32 %v2671_v34, %v2588_v61 }
 0x9bd   :  { %v2744_v42 = vpop.f32.mrb[19].mxu1  ;;  %v12553_v50 = vadd.f32 %v2673_v9, %v2592_v12  ;;  %v12557_v15 = vadd.f32 %v2742_v27, %v2596_v41 }
 0x9be   :  { %v12561_v51 = vadd.f32 %v2744_v42, %v2600_v55 }
 0x9db   :  { %v2877_v48 = vpop.f32.mrb[20].mxu0 }
 0x9dc   :  { %v2953_v62 = vadd.f32 %v2877_v48, %v12550_v40  ;;  %v2948_v49 = vpop.f32.mrb[20].mxu1  ;;  %v2879_v59 = vpop.f32.mrb[21].mxu0 }
 0x9dd   :  { %v2954_v4 = vadd.f32 %v2879_v59, %v12553_v50  ;;  %v2950_v14 = vpop.f32.mrb[21].mxu1  ;;  %v2955_v32 = vadd.f32 %v2948_v49, %v12557_v15 }
 0x9de   :  { %v2957_v22 = vmul.f32 0.5, %v2953_v62  ;;  %v2956_v3 = vadd.f32 %v2950_v14, %v12561_v51 }
 0x9df   :  { %v2961_v29 = vmul.f32 0.5, %v2954_v4 }
 0x9e0   :  { %11216 = vtanh.f32 %v2957_v22  ;;  %v2966_v13 = vmul.f32 0.5, %v2956_v3 }
 0x9e1   :  { %11218 = vtanh.f32 %v2961_v29 }
 0x9e2   :  { %11220 = vtanh.f32 %v2955_v32 }
 0x9e3   :  { %11222 = vtanh.f32 %v2966_v13 }
 0x9ea   :  { %v11217_v44 = vpop.eup %11216 }
 0x9eb   :  { %v11219_v39 = vpop.eup %11218  ;;  %v2959_v54 = vmul.f32 0.5, %v11217_v44 }
 0x9ec   :  { %v2963_v34 = vmul.f32 0.5, %v11219_v39  ;;  %v11221_v27 = vpop.eup %11220 }
 0x9ed   :  { %v2960_v9 = vadd.f32 0.5, %v2959_v54  ;;  %v11223_v42 = vpop.eup %11222 }
 0x9ee   :  { %v2964_v60 = vadd.f32 0.5, %v2963_v34  ;;  %v2968_v48 = vmul.f32 0.5, %v11223_v42 }
 0x9ef   :  { %v2971_v61 = vmul.f32 %v11221_v27, %v2960_v9 }
 0x9f0   :  { %v2970_v12 = vmul.f32 0.0, %v2964_v60  ;;  %v2969_v62 = vadd.f32 0.5, %v2968_v48 }
 0x9f2   :  { %v12564_v41 = vadd.f32 %v2971_v61, %v2970_v12 }
 0x9f4   :  { %11224 = vtanh.f32 %v12564_v41 }
 0x9fe   :  { %v11225_v49 = vpop.eup %11224 }
 0x9ff   :  { %v2974_v59 = vmul.f32 %v11225_v49, %v2969_v62 }
 0xa01   :  { %3040 = vmatmul.mubr.f32.vlgmr.msra.gmra.mrb[22].mxu0 %v2974_v59  ;;  %3111 = vmatmul.mubr.f32.vlgmr.msra.gmra.mrb[22].mxu1 %v2974_v59  ;;  %v3147_v59 = vrot.slane %v12564_v41, 7 }
 0xa02   :  { %9565 = vmatpush1.bf16.msra.mxu0 %v12416_v17  ;;  %9597 = vmatpush1.bf16.msra.mxu1 %v12419_v36 }
 0xa03   :  { %9567 = vmatprep.subr.bf16.mxu0 %v12421_v63  ;;  %9599 = vmatprep.subr.bf16.mxu1 %v12424_v7 }
 0xa04   :  { %3221 = vmatprep.mubr.f32.mxu0 %v11691_v10  ;;  %3292 = vmatprep.mubr.f32.mxu1 %v11691_v10 }
 0xa06   :  { %9569 = vmatpush1.bf16.msra.mxu0 %v12427_v26  ;;  %9601 = vmatpush1.bf16.msra.mxu1 %v12431_v38 }
 0xa07   :  { %9571 = vmatprep.subr.bf16.mxu0 %v12433_v52  ;;  %9603 = vmatprep.subr.bf16.mxu1 %v12436_v25 }
 0xa0a   :  { %9573 = vmatpush1.bf16.msra.mxu0 %v12441_v57  ;;  %9605 = vmatpush1.bf16.msra.mxu1 %v12445_v6 }
 0xa0b   :  { %9575 = vmatprep.subr.bf16.mxu0 %v12447_v30  ;;  %9607 = vmatprep.subr.bf16.mxu1 %v12450_v23 }
 0xa0e   :  { %9577 = vmatpush1.bf16.msra.mxu0 %v12453_v2  ;;  %9609 = vmatpush1.bf16.msra.mxu1 %v12457_v5 }
 0xa0f   :  { %9579 = vmatprep.subr.bf16.mxu0 %v12459_v18  ;;  %9611 = vmatprep.subr.bf16.mxu1 %v12462_v19 }
 0xa12   :  { %9581 = vmatpush1.bf16.msra.mxu0 %v12465_v46  ;;  %9613 = vmatpush1.bf16.msra.mxu1 %v12469_v0 }
 0xa13   :  { %9583 = vmatprep.subr.bf16.mxu0 %v12471_v20  ;;  %9615 = vmatprep.subr.bf16.mxu1 %v12474_v56 }
 0xa16   :  { %9585 = vmatpush1.bf16.msra.mxu0 %v12477_v11  ;;  %9617 = vmatpush1.bf16.msra.mxu1 %v12481_v53 }
 0xa17   :  { %9587 = vmatprep.subr.bf16.mxu0 %v12483_v1  ;;  %9619 = vmatprep.subr.bf16.mxu1 %v12486_v8 }
 0xa1a   :  { %9589 = vmatpush1.bf16.msra.mxu0 %v12489_v16  ;;  %9621 = vmatpush1.bf16.msra.mxu1 %v12493_v31 }
 0xa1b   :  { %9591 = vmatprep.subr.bf16.mxu0 %v12495_v43  ;;  %9623 = vmatprep.subr.bf16.mxu1 %v12498_v28 }
 0xa1e   :  { %9593 = vmatpush1.bf16.msra.mxu0 %v12501_v58  ;;  %9625 = vmatpush1.bf16.msra.mxu1 %v12505_v24 }
 0xa1f   :  { %9627 = vmatprep.subr.bf16.mxu0 %v12412_v21  ;;  %9659 = vmatprep.subr.bf16.mxu1 %v12414_v45 }
 0xad4   :  { %v3041_v4 = vpop.f32.mrb[22].mxu0  ;;  %v3112_v14 = vpop.f32.mrb[22].mxu1 }
 0xad5   :  { %v3121_v55 = vrot.slane %v3041_v4, 7  ;;  %v3043_v22 = vpop.f32.mrb[23].mxu0  ;;  %v3114_v29 = vpop.f32.mrb[23].mxu1  ;;  %v3123_v13 = vrot.slane %v3112_v14, 7 }
 0xad6   :  { %v3122_v32 = vrot.slane %v3043_v22, 7  ;;  %v3124_v9 = vrot.slane %v3114_v29, 7 }
 0xad7   :  { %v3129_v3 = vadd.f32 %v3121_v55, %v12550_v40  ;;  %v3131_v34 = vadd.f32 %v3123_v13, %v12557_v15 }
 0xad8   :  { %v3130_v44 = vadd.f32 %v3122_v32, %v12553_v50  ;;  %v3132_v27 = vadd.f32 %v3124_v9, %v12561_v51 }
 0xad9   :  { %v3133_v39 = vmul.f32 0.5, %v3129_v3 }
 0xada   :  { %v3137_v54 = vmul.f32 0.5, %v3130_v44  ;;  %v3142_v60 = vmul.f32 0.5, %v3132_v27 }
 0xadb   :  { %11226 = vtanh.f32 %v3133_v39 }
 0xadc   :  { %11228 = vtanh.f32 %v3137_v54 }
 0xadd   :  { %11230 = vtanh.f32 %v3131_v34 }
 0xade   :  { %11232 = vtanh.f32 %v3142_v60 }
 0xae5   :  { %v11227_v61 = vpop.eup %11226 }
 0xae6   :  { %v11229_v12 = vpop.eup %11228  ;;  %v3135_v42 = vmul.f32 0.5, %v11227_v61 }
 0xae7   :  { %v3139_v48 = vmul.f32 0.5, %v11229_v12  ;;  %v11231_v49 = vpop.eup %11230 }
 0xae8   :  { %v3136_v62 = vadd.f32 0.5, %v3135_v42  ;;  %v11233_v29 = vpop.eup %11232 }
 0xae9   :  { %v3140_v4 = vadd.f32 0.5, %v3139_v48  ;;  %v3144_v32 = vmul.f32 0.5, %v11233_v29 }
 0xaea   :  { %v3150_v14 = vmul.f32 %v11231_v49, %v3136_v62 }
 0xaeb   :  { %v3149_v55 = vmul.f32 %v3147_v59, %v3140_v4  ;;  %v3145_v3 = vadd.f32 0.5, %v3144_v32 }
 0xaed   :  { %v12606_v22 = vadd.f32 %v3150_v14, %v3149_v55 }
 0xaef   :  { %11234 = vtanh.f32 %v12606_v22 }
 0xaf9   :  { %v11235_v13 = vpop.eup %11234 }
 0xafa   :  { %v3153_v44 = vmul.f32 %v11235_v13, %v3145_v3 }
 0xafc   :  { %v3155_v39 = vrot.slane %v3153_v44, 1 }
 0xafe   :  { %3222 = vmatmul.mubr.f32.vlgmr.msra.gmra.mrb[24].mxu0 %v3155_v39  ;;  %3293 = vmatmul.mubr.f32.vlgmr.msra.gmra.mrb[24].mxu1 %v3155_v39 }
 0xaff   :  { %9629 = vmatpush1.bf16.msra.mxu0 %v12416_v17  ;;  %9661 = vmatpush1.bf16.msra.mxu1 %v12419_v36 }
 0xb00   :  { %9631 = vmatprep.subr.bf16.mxu0 %v12421_v63  ;;  %9663 = vmatprep.subr.bf16.mxu1 %v12424_v7 }
 0xb01   :  { %3403 = vmatprep.mubr.f32.mxu0 %v11691_v10  ;;  %3474 = vmatprep.mubr.f32.mxu1 %v11691_v10 }
 0xb03   :  { %9633 = vmatpush1.bf16.msra.mxu0 %v12427_v26  ;;  %9665 = vmatpush1.bf16.msra.mxu1 %v12431_v38 }
 0xb04   :  { %9635 = vmatprep.subr.bf16.mxu0 %v12433_v52  ;;  %9667 = vmatprep.subr.bf16.mxu1 %v12436_v25 }
 0xb07   :  { %9637 = vmatpush1.bf16.msra.mxu0 %v12441_v57  ;;  %9669 = vmatpush1.bf16.msra.mxu1 %v12445_v6 }
 0xb08   :  { %9639 = vmatprep.subr.bf16.mxu0 %v12447_v30  ;;  %9671 = vmatprep.subr.bf16.mxu1 %v12450_v23 }
 0xb0b   :  { %9641 = vmatpush1.bf16.msra.mxu0 %v12453_v2  ;;  %9673 = vmatpush1.bf16.msra.mxu1 %v12457_v5 }
 0xb0c   :  { %9643 = vmatprep.subr.bf16.mxu0 %v12459_v18  ;;  %9675 = vmatprep.subr.bf16.mxu1 %v12462_v19 }
 0xb0f   :  { %9645 = vmatpush1.bf16.msra.mxu0 %v12465_v46  ;;  %9677 = vmatpush1.bf16.msra.mxu1 %v12469_v0 }
 0xb10   :  { %9647 = vmatprep.subr.bf16.mxu0 %v12471_v20  ;;  %9679 = vmatprep.subr.bf16.mxu1 %v12474_v56 }
 0xb13   :  { %9649 = vmatpush1.bf16.msra.mxu0 %v12477_v11  ;;  %9681 = vmatpush1.bf16.msra.mxu1 %v12481_v53 }
 0xb14   :  { %9651 = vmatprep.subr.bf16.mxu0 %v12483_v1  ;;  %9683 = vmatprep.subr.bf16.mxu1 %v12486_v8 }
 0xb17   :  { %9653 = vmatpush1.bf16.msra.mxu0 %v12489_v16  ;;  %9685 = vmatpush1.bf16.msra.mxu1 %v12493_v31 }
 0xb18   :  { %9655 = vmatprep.subr.bf16.mxu0 %v12495_v43  ;;  %9687 = vmatprep.subr.bf16.mxu1 %v12498_v28 }
 0xb1b   :  { %9657 = vmatpush1.bf16.msra.mxu0 %v12501_v58  ;;  %9689 = vmatpush1.bf16.msra.mxu1 %v12505_v24 }
 0xb1c   :  { %9691 = vmatprep.subr.bf16.mxu0 %v12412_v21  ;;  %9723 = vmatprep.subr.bf16.mxu1 %v12414_v45 }
 0xbd1   :  { %v3223_v41 = vpop.f32.mrb[24].mxu0  ;;  %v3294_v54 = vpop.f32.mrb[24].mxu1 }
 0xbd2   :  { %v3303_v34 = vrot.slane %v3223_v41, 6  ;;  %v3225_v9 = vpop.f32.mrb[25].mxu0  ;;  %v3296_v27 = vpop.f32.mrb[25].mxu1  ;;  %v3305_v12 = vrot.slane %v3294_v54, 6  ;;  %v3329_v41 = vrot.slane %v12606_v22, 7 }
 0xbd3   :  { %v3304_v60 = vrot.slane %v3225_v9, 6  ;;  %v3306_v59 = vrot.slane %v3296_v27, 6 }
 0xbd4   :  { %v3311_v61 = vadd.f32 %v3303_v34, %v12550_v40  ;;  %v3313_v49 = vadd.f32 %v3305_v12, %v12557_v15 }
 0xbd5   :  { %v3312_v42 = vadd.f32 %v3304_v60, %v12553_v50  ;;  %v3314_v4 = vadd.f32 %v3306_v59, %v12561_v51 }
 0xbd6   :  { %v3315_v48 = vmul.f32 0.5, %v3311_v61 }
 0xbd7   :  { %v3319_v62 = vmul.f32 0.5, %v3312_v42  ;;  %v3324_v14 = vmul.f32 0.5, %v3314_v4 }
 0xbd8   :  { %11236 = vtanh.f32 %v3315_v48 }
 0xbd9   :  { %11238 = vtanh.f32 %v3319_v62 }
 0xbda   :  { %11240 = vtanh.f32 %v3313_v49 }
 0xbdb   :  { %11242 = vtanh.f32 %v3324_v14 }
 0xbe2   :  { %v11237_v55 = vpop.eup %11236 }
 0xbe3   :  { %v11239_v29 = vpop.eup %11238  ;;  %v3317_v32 = vmul.f32 0.5, %v11237_v55 }
 0xbe4   :  { %v3321_v3 = vmul.f32 0.5, %v11239_v29  ;;  %v11241_v44 = vpop.eup %11240 }
 0xbe5   :  { %v3318_v13 = vadd.f32 0.5, %v3317_v32  ;;  %v11243_v27 = vpop.eup %11242 }
 0xbe6   :  { %v3322_v39 = vadd.f32 0.5, %v3321_v3  ;;  %v3326_v60 = vmul.f32 0.5, %v11243_v27 }
 0xbe7   :  { %v3332_v54 = vmul.f32 %v11241_v44, %v3318_v13 }
 0xbe8   :  { %v3331_v34 = vmul.f32 %v3329_v41, %v3322_v39  ;;  %v3327_v61 = vadd.f32 0.5, %v3326_v60 }
 0xbea   :  { %v12648_v9 = vadd.f32 %v3332_v54, %v3331_v34 }
 0xbec   :  { %11244 = vtanh.f32 %v12648_v9 }
 0xbf6   :  { %v11245_v12 = vpop.eup %11244 }
 0xbf7   :  { %v3335_v42 = vmul.f32 %v11245_v12, %v3327_v61 }
 0xbf9   :  { %v3337_v48 = vrot.slane %v3335_v42, 2 }
 0xbfb   :  { %3404 = vmatmul.mubr.f32.vlgmr.msra.gmra.mrb[26].mxu0 %v3337_v48  ;;  %3475 = vmatmul.mubr.f32.vlgmr.msra.gmra.mrb[26].mxu1 %v3337_v48 }
 0xbfc   :  { %9693 = vmatpush1.bf16.msra.mxu0 %v12416_v17  ;;  %9725 = vmatpush1.bf16.msra.mxu1 %v12419_v36 }
 0xbfd   :  { %9695 = vmatprep.subr.bf16.mxu0 %v12421_v63  ;;  %9727 = vmatprep.subr.bf16.mxu1 %v12424_v7 }
 0xbfe   :  { %3585 = vmatprep.mubr.f32.mxu0 %v11691_v10  ;;  %3656 = vmatprep.mubr.f32.mxu1 %v11691_v10 }
 0xc00   :  { %9697 = vmatpush1.bf16.msra.mxu0 %v12427_v26  ;;  %9729 = vmatpush1.bf16.msra.mxu1 %v12431_v38 }
 0xc01   :  { %9699 = vmatprep.subr.bf16.mxu0 %v12433_v52  ;;  %9731 = vmatprep.subr.bf16.mxu1 %v12436_v25 }
 0xc04   :  { %9701 = vmatpush1.bf16.msra.mxu0 %v12441_v57  ;;  %9733 = vmatpush1.bf16.msra.mxu1 %v12445_v6 }
 0xc05   :  { %9703 = vmatprep.subr.bf16.mxu0 %v12447_v30  ;;  %9735 = vmatprep.subr.bf16.mxu1 %v12450_v23 }
 0xc08   :  { %9705 = vmatpush1.bf16.msra.mxu0 %v12453_v2  ;;  %9737 = vmatpush1.bf16.msra.mxu1 %v12457_v5 }
 0xc09   :  { %9707 = vmatprep.subr.bf16.mxu0 %v12459_v18  ;;  %9739 = vmatprep.subr.bf16.mxu1 %v12462_v19 }
 0xc0c   :  { %9709 = vmatpush1.bf16.msra.mxu0 %v12465_v46  ;;  %9741 = vmatpush1.bf16.msra.mxu1 %v12469_v0 }
 0xc0d   :  { %9711 = vmatprep.subr.bf16.mxu0 %v12471_v20  ;;  %9743 = vmatprep.subr.bf16.mxu1 %v12474_v56 }
 0xc10   :  { %9713 = vmatpush1.bf16.msra.mxu0 %v12477_v11  ;;  %9745 = vmatpush1.bf16.msra.mxu1 %v12481_v53 }
 0xc11   :  { %9715 = vmatprep.subr.bf16.mxu0 %v12483_v1  ;;  %9747 = vmatprep.subr.bf16.mxu1 %v12486_v8 }
 0xc14   :  { %9717 = vmatpush1.bf16.msra.mxu0 %v12489_v16  ;;  %9749 = vmatpush1.bf16.msra.mxu1 %v12493_v31 }
 0xc15   :  { %9719 = vmatprep.subr.bf16.mxu0 %v12495_v43  ;;  %9751 = vmatprep.subr.bf16.mxu1 %v12498_v28 }
 0xc18   :  { %9721 = vmatpush1.bf16.msra.mxu0 %v12501_v58  ;;  %9753 = vmatpush1.bf16.msra.mxu1 %v12505_v24 }
 0xc19   :  { %9755 = vmatprep.subr.bf16.mxu0 %v12412_v21  ;;  %9787 = vmatprep.subr.bf16.mxu1 %v12414_v45 }
 0xcce   :  { %v3405_v22 = vpop.f32.mrb[26].mxu0  ;;  %v3476_v62 = vpop.f32.mrb[26].mxu1 }
 0xccf   :  { %v3485_v49 = vrot.slane %v3405_v22, 5  ;;  %v3407_v59 = vpop.f32.mrb[27].mxu0  ;;  %v3478_v4 = vpop.f32.mrb[27].mxu1  ;;  %v3487_v29 = vrot.slane %v3476_v62, 5  ;;  %v3511_v22 = vrot.slane %v12648_v9, 7 }
 0xcd0   :  { %v3486_v14 = vrot.slane %v3407_v59, 5  ;;  %v3488_v39 = vrot.slane %v3478_v4, 5 }
 0xcd1   :  { %v3493_v55 = vadd.f32 %v3485_v49, %v12550_v40  ;;  %v3495_v44 = vadd.f32 %v3487_v29, %v12557_v15 }
 0xcd2   :  { %v3494_v32 = vadd.f32 %v3486_v14, %v12553_v50  ;;  %v3496_v41 = vadd.f32 %v3488_v39, %v12561_v51 }
 0xcd3   :  { %v3497_v3 = vmul.f32 0.5, %v3493_v55 }
 0xcd4   :  { %v3501_v13 = vmul.f32 0.5, %v3494_v32  ;;  %v3506_v54 = vmul.f32 0.5, %v3496_v41 }
 0xcd5   :  { %11246 = vtanh.f32 %v3497_v3 }
 0xcd6   :  { %11248 = vtanh.f32 %v3501_v13 }
 0xcd7   :  { %11250 = vtanh.f32 %v3495_v44 }
 0xcd8   :  { %11252 = vtanh.f32 %v3506_v54 }
 0xcdf   :  { %v11247_v34 = vpop.eup %11246 }
 0xce0   :  { %v11249_v27 = vpop.eup %11248  ;;  %v3499_v60 = vmul.f32 0.5, %v11247_v34 }
 0xce1   :  { %v3503_v61 = vmul.f32 0.5, %v11249_v27  ;;  %v11251_v42 = vpop.eup %11250 }
 0xce2   :  { %v3500_v12 = vadd.f32 0.5, %v3499_v60  ;;  %v11253_v4 = vpop.eup %11252 }
 0xce3   :  { %v3504_v48 = vadd.f32 0.5, %v3503_v61  ;;  %v3508_v14 = vmul.f32 0.5, %v11253_v4 }
 0xce4   :  { %v3514_v62 = vmul.f32 %v11251_v42, %v3500_v12 }
 0xce5   :  { %v3513_v49 = vmul.f32 %v3511_v22, %v3504_v48  ;;  %v3509_v55 = vadd.f32 0.5, %v3508_v14 }
 0xce7   :  { %v12690_v59 = vadd.f32 %v3514_v62, %v3513_v49 }
 0xce9   :  { %11254 = vtanh.f32 %v12690_v59 }
 0xcf3   :  { %v11255_v29 = vpop.eup %11254 }
 0xcf4   :  { %v3517_v32 = vmul.f32 %v11255_v29, %v3509_v55 }
 0xcf6   :  { %v3519_v3 = vrot.slane %v3517_v32, 3 }
 0xcf8   :  { %3586 = vmatmul.mubr.f32.vlgmr.msra.gmra.mrb[28].mxu0 %v3519_v3  ;;  %3657 = vmatmul.mubr.f32.vlgmr.msra.gmra.mrb[28].mxu1 %v3519_v3 }
 0xcf9   :  { %9757 = vmatpush1.bf16.msra.mxu0 %v12416_v17  ;;  %9789 = vmatpush1.bf16.msra.mxu1 %v12419_v36 }
 0xcfa   :  { %9759 = vmatprep.subr.bf16.mxu0 %v12421_v63  ;;  %9791 = vmatprep.subr.bf16.mxu1 %v12424_v7 }
 0xcfb   :  { %3767 = vmatprep.mubr.f32.mxu0 %v11691_v10  ;;  %3838 = vmatprep.mubr.f32.mxu1 %v11691_v10 }
 0xcfd   :  { %9761 = vmatpush1.bf16.msra.mxu0 %v12427_v26  ;;  %9793 = vmatpush1.bf16.msra.mxu1 %v12431_v38 }
 0xcfe   :  { %9763 = vmatprep.subr.bf16.mxu0 %v12433_v52  ;;  %9795 = vmatprep.subr.bf16.mxu1 %v12436_v25 }
 0xd01   :  { %9765 = vmatpush1.bf16.msra.mxu0 %v12441_v57  ;;  %9797 = vmatpush1.bf16.msra.mxu1 %v12445_v6 }
 0xd02   :  { %9767 = vmatprep.subr.bf16.mxu0 %v12447_v30  ;;  %9799 = vmatprep.subr.bf16.mxu1 %v12450_v23 }
 0xd05   :  { %9769 = vmatpush1.bf16.msra.mxu0 %v12453_v2  ;;  %9801 = vmatpush1.bf16.msra.mxu1 %v12457_v5 }
 0xd06   :  { %9771 = vmatprep.subr.bf16.mxu0 %v12459_v18  ;;  %9803 = vmatprep.subr.bf16.mxu1 %v12462_v19 }
 0xd09   :  { %9773 = vmatpush1.bf16.msra.mxu0 %v12465_v46  ;;  %9805 = vmatpush1.bf16.msra.mxu1 %v12469_v0 }
 0xd0a   :  { %9775 = vmatprep.subr.bf16.mxu0 %v12471_v20  ;;  %9807 = vmatprep.subr.bf16.mxu1 %v12474_v56 }
 0xd0d   :  { %9777 = vmatpush1.bf16.msra.mxu0 %v12477_v11  ;;  %9809 = vmatpush1.bf16.msra.mxu1 %v12481_v53 }
 0xd0e   :  { %9779 = vmatprep.subr.bf16.mxu0 %v12483_v1  ;;  %9811 = vmatprep.subr.bf16.mxu1 %v12486_v8 }
 0xd11   :  { %9781 = vmatpush1.bf16.msra.mxu0 %v12489_v16  ;;  %9813 = vmatpush1.bf16.msra.mxu1 %v12493_v31 }
 0xd12   :  { %9783 = vmatprep.subr.bf16.mxu0 %v12495_v43  ;;  %9815 = vmatprep.subr.bf16.mxu1 %v12498_v28 }
 0xd15   :  { %9785 = vmatpush1.bf16.msra.mxu0 %v12501_v58  ;;  %9817 = vmatpush1.bf16.msra.mxu1 %v12505_v24 }
 0xd16   :  { %9819 = vmatprep.subr.bf16.mxu0 %v12412_v21  ;;  %9851 = vmatprep.subr.bf16.mxu1 %v12414_v45 }
 0xdcb   :  { %v3587_v9 = vpop.f32.mrb[28].mxu0  ;;  %v3658_v13 = vpop.f32.mrb[28].mxu1 }
 0xdcc   :  { %v3667_v44 = vrot.slane %v3587_v9, 4  ;;  %v3589_v39 = vpop.f32.mrb[29].mxu0  ;;  %v3660_v41 = vpop.f32.mrb[29].mxu1  ;;  %v3669_v27 = vrot.slane %v3658_v13, 4  ;;  %v3693_v9 = vrot.slane %v12690_v59, 7 }
 0xdcd   :  { %v3668_v54 = vrot.slane %v3589_v39, 4  ;;  %v3670_v48 = vrot.slane %v3660_v41, 4 }
 0xdce   :  { %v3675_v34 = vadd.f32 %v3667_v44, %v12550_v40  ;;  %v3677_v42 = vadd.f32 %v3669_v27, %v12557_v15 }
 0xdcf   :  { %v3676_v60 = vadd.f32 %v3668_v54, %v12553_v50  ;;  %v3678_v22 = vadd.f32 %v3670_v48, %v12561_v51 }
 0xdd0   :  { %v3679_v61 = vmul.f32 0.5, %v3675_v34 }
 0xdd1   :  { %v3683_v12 = vmul.f32 0.5, %v3676_v60  ;;  %v3688_v62 = vmul.f32 0.5, %v3678_v22 }
 0xdd2   :  { %11256 = vtanh.f32 %v3679_v61 }
 0xdd3   :  { %11258 = vtanh.f32 %v3683_v12 }
 0xdd4   :  { %11260 = vtanh.f32 %v3677_v42 }
 0xdd5   :  { %11262 = vtanh.f32 %v3688_v62 }
 0xddc   :  { %v11257_v49 = vpop.eup %11256 }
 0xddd   :  { %v11259_v4 = vpop.eup %11258  ;;  %v3681_v14 = vmul.f32 0.5, %v11257_v49 }
 0xdde   :  { %v3685_v55 = vmul.f32 0.5, %v11259_v4  ;;  %v11261_v32 = vpop.eup %11260 }
 0xddf   :  { %v3682_v29 = vadd.f32 0.5, %v3681_v14  ;;  %v11263_v41 = vpop.eup %11262 }
 0xde0   :  { %v3686_v3 = vadd.f32 0.5, %v3685_v55  ;;  %v3690_v54 = vmul.f32 0.5, %v11263_v41 }
 0xde1   :  { %v3696_v13 = vmul.f32 %v11261_v32, %v3682_v29 }
 0xde2   :  { %v3695_v44 = vmul.f32 %v3693_v9, %v3686_v3  ;;  %v3691_v34 = vadd.f32 0.5, %v3690_v54 }
 0xde4   :  { %v12732_v39 = vadd.f32 %v3696_v13, %v3695_v44 }
 0xde6   :  { %11264 = vtanh.f32 %v12732_v39 }
 0xdf0   :  { %v11265_v27 = vpop.eup %11264 }
 0xdf1   :  { %v3699_v60 = vmul.f32 %v11265_v27, %v3691_v34 }
 0xdf3   :  { %v3701_v61 = vrot.slane %v3699_v60, 4  ;;  %v3875_v60 = vrot.slane %v12732_v39, 7 }
 0xdf5   :  { %3768 = vmatmul.mubr.f32.vlgmr.msra.gmra.mrb[30].mxu0 %v3701_v61  ;;  %3839 = vmatmul.mubr.f32.vlgmr.msra.gmra.mrb[30].mxu1 %v3701_v61 }
 0xdf6   :  { %9821 = vmatpush1.bf16.msra.mxu0 %v12416_v17  ;;  %9853 = vmatpush1.bf16.msra.mxu1 %v12419_v36 }
 0xdf7   :  { %9823 = vmatprep.subr.bf16.mxu0 %v12421_v63  ;;  %9855 = vmatprep.subr.bf16.mxu1 %v12424_v7 }
 0xdf8   :  { %3949 = vmatprep.mubr.f32.mxu0 %v11691_v10  ;;  %4020 = vmatprep.mubr.f32.mxu1 %v11691_v10 }
 0xdfa   :  { %9825 = vmatpush1.bf16.msra.mxu0 %v12427_v26  ;;  %9857 = vmatpush1.bf16.msra.mxu1 %v12431_v38 }
 0xdfb   :  { %9827 = vmatprep.subr.bf16.mxu0 %v12433_v52  ;;  %9859 = vmatprep.subr.bf16.mxu1 %v12436_v25 }
 0xdfe   :  { %9829 = vmatpush1.bf16.msra.mxu0 %v12441_v57  ;;  %9861 = vmatpush1.bf16.msra.mxu1 %v12445_v6 }
 0xdff   :  { %9831 = vmatprep.subr.bf16.mxu0 %v12447_v30  ;;  %9863 = vmatprep.subr.bf16.mxu1 %v12450_v23 }
 0xe02   :  { %9833 = vmatpush1.bf16.msra.mxu0 %v12453_v2  ;;  %9865 = vmatpush1.bf16.msra.mxu1 %v12457_v5 }
 0xe03   :  { %9835 = vmatprep.subr.bf16.mxu0 %v12459_v18  ;;  %9867 = vmatprep.subr.bf16.mxu1 %v12462_v19 }
 0xe06   :  { %9837 = vmatpush1.bf16.msra.mxu0 %v12465_v46  ;;  %9869 = vmatpush1.bf16.msra.mxu1 %v12469_v0 }
 0xe07   :  { %9839 = vmatprep.subr.bf16.mxu0 %v12471_v20  ;;  %9871 = vmatprep.subr.bf16.mxu1 %v12474_v56 }
 0xe0a   :  { %9841 = vmatpush1.bf16.msra.mxu0 %v12477_v11  ;;  %9873 = vmatpush1.bf16.msra.mxu1 %v12481_v53 }
 0xe0b   :  { %9843 = vmatprep.subr.bf16.mxu0 %v12483_v1  ;;  %9875 = vmatprep.subr.bf16.mxu1 %v12486_v8 }
 0xe0e   :  { %9845 = vmatpush1.bf16.msra.mxu0 %v12489_v16  ;;  %9877 = vmatpush1.bf16.msra.mxu1 %v12493_v31 }
 0xe0f   :  { %9847 = vmatprep.subr.bf16.mxu0 %v12495_v43  ;;  %9879 = vmatprep.subr.bf16.mxu1 %v12498_v28 }
 0xe12   :  { %9849 = vmatpush1.bf16.msra.mxu0 %v12501_v58  ;;  %9881 = vmatpush1.bf16.msra.mxu1 %v12505_v24 }
 0xe13   :  { %9883 = vmatprep.subr.bf16.mxu0 %v12412_v21  ;;  %9915 = vmatprep.subr.bf16.mxu1 %v12414_v45 }
 0xec8   :  { %v3769_v59 = vpop.f32.mrb[30].mxu0  ;;  %v3840_v12 = vpop.f32.mrb[30].mxu1 }
 0xec9   :  { %v3849_v42 = vrot.slane %v3769_v59, 3  ;;  %v3771_v48 = vpop.f32.mrb[31].mxu0  ;;  %v3842_v22 = vpop.f32.mrb[31].mxu1  ;;  %v3851_v4 = vrot.slane %v3840_v12, 3 }
 0xeca   :  { %v3850_v62 = vrot.slane %v3771_v48, 3  ;;  %v3852_v3 = vrot.slane %v3842_v22, 3 }
 0xecb   :  { %v3857_v49 = vadd.f32 %v3849_v42, %v12550_v40  ;;  %v3859_v32 = vadd.f32 %v3851_v4, %v12557_v15 }
 0xecc   :  { %v3858_v14 = vadd.f32 %v3850_v62, %v12553_v50  ;;  %v3860_v21 = vadd.f32 %v3852_v3, %v12561_v51 }
 0xecd   :  { %v3861_v55 = vmul.f32 0.5, %v3857_v49 }
 0xece   :  { %v3865_v29 = vmul.f32 0.5, %v3858_v14  ;;  %v3870_v45 = vmul.f32 0.5, %v3860_v21 }
 0xecf   :  { %11266 = vtanh.f32 %v3861_v55 }
 0xed0   :  { %11268 = vtanh.f32 %v3865_v29 }
 0xed1   :  { %11270 = vtanh.f32 %v3859_v32 }
 0xed2   :  { %11272 = vtanh.f32 %v3870_v45 }
 0xed9   :  { %v11267_v9 = vpop.eup %11266 }
 0xeda   :  { %v11269_v13 = vpop.eup %11268  ;;  %v3863_v44 = vmul.f32 0.5, %v11267_v9 }
 0xedb   :  { %v3867_v41 = vmul.f32 0.5, %v11269_v13  ;;  %v11271_v34 = vpop.eup %11270 }
 0xedc   :  { %v3864_v54 = vadd.f32 0.5, %v3863_v44  ;;  %v11273_v42 = vpop.eup %11272 }
 0xedd   :  { %v3868_v27 = vadd.f32 0.5, %v3867_v41  ;;  %v3872_v48 = vmul.f32 0.5, %v11273_v42 }
 0xede   :  { %v3878_v61 = vmul.f32 %v11271_v34, %v3864_v54 }
 0xedf   :  { %v3877_v59 = vmul.f32 %v3875_v60, %v3868_v27  ;;  %v3873_v22 = vadd.f32 0.5, %v3872_v48 }
 0xee1   :  { %v12774_v12 = vadd.f32 %v3878_v61, %v3877_v59 }
 0xee3   :  { %11274 = vtanh.f32 %v12774_v12 }
 0xeed   :  { %v11275_v62 = vpop.eup %11274 }
 0xeee   :  { %v3881_v49 = vmul.f32 %v11275_v62, %v3873_v22 }
 0xef0   :  { %v3883_v4 = vrot.slane %v3881_v49, 5 }
 0xef2   :  { %3950 = vmatmul.mubr.f32.vlgmr.msra.gmra.mrb[32].mxu0 %v3883_v4  ;;  %4021 = vmatmul.mubr.f32.vlgmr.msra.gmra.mrb[32].mxu1 %v3883_v4 }
 0xef3   :  { %9885 = vmatpush1.bf16.msra.mxu0 %v12416_v17  ;;  %9917 = vmatpush1.bf16.msra.mxu1 %v12419_v36 }
 0xef4   :  { %9887 = vmatprep.subr.bf16.mxu0 %v12421_v63  ;;  %9919 = vmatprep.subr.bf16.mxu1 %v12424_v7 }
 0xef5   :  { %4131 = vmatprep.mubr.f32.mxu0 %v11691_v10  ;;  %4202 = vmatprep.mubr.f32.mxu1 %v11691_v10 }
 0xef7   :  { %9889 = vmatpush1.bf16.msra.mxu0 %v12427_v26  ;;  %9921 = vmatpush1.bf16.msra.mxu1 %v12431_v38 }
 0xef8   :  { %9891 = vmatprep.subr.bf16.mxu0 %v12433_v52  ;;  %9923 = vmatprep.subr.bf16.mxu1 %v12436_v25 }
 0xefb   :  { %9893 = vmatpush1.bf16.msra.mxu0 %v12441_v57  ;;  %9925 = vmatpush1.bf16.msra.mxu1 %v12445_v6 }
 0xefc   :  { %9895 = vmatprep.subr.bf16.mxu0 %v12447_v30  ;;  %9927 = vmatprep.subr.bf16.mxu1 %v12450_v23 }
 0xeff   :  { %9897 = vmatpush1.bf16.msra.mxu0 %v12453_v2  ;;  %9929 = vmatpush1.bf16.msra.mxu1 %v12457_v5 }
 0xf00   :  { %9899 = vmatprep.subr.bf16.mxu0 %v12459_v18  ;;  %9931 = vmatprep.subr.bf16.mxu1 %v12462_v19 }
 0xf03   :  { %9901 = vmatpush1.bf16.msra.mxu0 %v12465_v46  ;;  %9933 = vmatpush1.bf16.msra.mxu1 %v12469_v0 }
 0xf04   :  { %9903 = vmatprep.subr.bf16.mxu0 %v12471_v20  ;;  %9935 = vmatprep.subr.bf16.mxu1 %v12474_v56 }
 0xf07   :  { %9905 = vmatpush1.bf16.msra.mxu0 %v12477_v11  ;;  %9937 = vmatpush1.bf16.msra.mxu1 %v12481_v53 }
 0xf08   :  { %9907 = vmatprep.subr.bf16.mxu0 %v12483_v1  ;;  %9939 = vmatprep.subr.bf16.mxu1 %v12486_v8  ;;  %v4057_v1 = vrot.slane %v12774_v12, 7 }
 0xf0b   :  { %9909 = vmatpush1.bf16.msra.mxu0 %v12489_v16  ;;  %9941 = vmatpush1.bf16.msra.mxu1 %v12493_v31 }
 0xf0c   :  { %9911 = vmatprep.subr.bf16.mxu0 %v12495_v43  ;;  %9943 = vmatprep.subr.bf16.mxu1 %v12498_v28 }
 0xf0f   :  { %9913 = vmatpush1.bf16.msra.mxu0 %v12501_v58  ;;  %9945 = vmatpush1.bf16.msra.mxu1 %v12505_v24 }
 0xfc5   :  { %v3951_v17 = vpop.f32.mrb[32].mxu0  ;;  %v4022_v36 = vpop.f32.mrb[32].mxu1 }
 0xfc6   :  { %v4031_v63 = vrot.slane %v3951_v17, 2  ;;  %v3953_v7 = vpop.f32.mrb[33].mxu0  ;;  %v4024_v26 = vpop.f32.mrb[33].mxu1  ;;  %v4033_v25 = vrot.slane %v4022_v36, 2 }
 0xfc7   :  { %v4032_v38 = vrot.slane %v3953_v7, 2  ;;  %v4034_v2 = vrot.slane %v4024_v26, 2 }
 0xfc8   :  { %v4039_v52 = vadd.f32 %v4031_v63, %v12550_v40  ;;  %v4041_v23 = vadd.f32 %v4033_v25, %v12557_v15 }
 0xfc9   :  { %v4040_v57 = vadd.f32 %v4032_v38, %v12553_v50  ;;  %v4042_v5 = vadd.f32 %v4034_v2, %v12561_v51 }
 0xfca   :  { %v4043_v6 = vmul.f32 0.5, %v4039_v52 }
 0xfcb   :  { %v4047_v30 = vmul.f32 0.5, %v4040_v57  ;;  %v4052_v18 = vmul.f32 0.5, %v4042_v5 }
 0xfcc   :  { %11276 = vtanh.f32 %v4043_v6 }
 0xfcd   :  { %11278 = vtanh.f32 %v4047_v30 }
 0xfce   :  { %11280 = vtanh.f32 %v4041_v23 }
 0xfcf   :  { %11282 = vtanh.f32 %v4052_v18 }
 0xfd6   :  { %v11277_v19 = vpop.eup %11276 }
 0xfd7   :  { %v11279_v46 = vpop.eup %11278  ;;  %v4045_v0 = vmul.f32 0.5, %v11277_v19 }
 0xfd8   :  { %v4049_v20 = vmul.f32 0.5, %v11279_v46  ;;  %v11281_v11 = vpop.eup %11280 }
 0xfd9   :  { %v4046_v56 = vadd.f32 0.5, %v4045_v0  ;;  %v11283_v43 = vpop.eup %11282 }
 0xfda   :  { %v4050_v53 = vadd.f32 0.5, %v4049_v20  ;;  %v4054_v28 = vmul.f32 0.5, %v11283_v43 }
 0xfdb   :  { %v4060_v8 = vmul.f32 %v11281_v11, %v4046_v56 }
 0xfdc   :  { %v4059_v16 = vmul.f32 %v4057_v1, %v4050_v53  ;;  %v4055_v58 = vadd.f32 0.5, %v4054_v28 }
 0xfde   :  { %v4061_v31 = vadd.f32 %v4060_v8, %v4059_v16 }
 0xfe0   :  { %11284 = vtanh.f32 %v4061_v31 }
 0xfea   :  { %v11285_v24 = vpop.eup %11284 }
 0xfeb   :  { %v4063_v39 = vmul.f32 %v11285_v24, %v4055_v58 }
 0xfed   :  { %v4065_v14 = vrot.slane %v4063_v39, 6 }
 0xfef   :  { %4132 = vmatmul.mubr.f32.vlgmr.msra.gmra.mrb[34].mxu0 %v4065_v14  ;;  %4203 = vmatmul.mubr.f32.vlgmr.msra.gmra.mrb[34].mxu1 %v4065_v14 }
0x10c2   :  { %v4133_v55 = vpop.f32.mrb[34].mxu0  ;;  %v4204_v29 = vpop.f32.mrb[34].mxu1 }
0x10c3   :  { %v4213_v32 = vrot.slane %v4133_v55, 1  ;;  %v4135_v3 = vpop.f32.mrb[35].mxu0  ;;  %v4206_v21 = vpop.f32.mrb[35].mxu1  ;;  %v4215_v13 = vrot.slane %v4204_v29, 1 }
0x10c4   :  { %v4214_v45 = vrot.slane %v4135_v3, 1  ;;  %v4216_v27 = vrot.slane %v4206_v21, 1 }
0x10c5   :  { %v4221_v9 = vadd.f32 %v4213_v32, %v12550_v40  ;;  %v4223_v34 = vadd.f32 %v4215_v13, %v12557_v15 }
0x10c6   :  { %v4222_v44 = vadd.f32 %v4214_v45, %v12553_v50  ;;  %v4224_v60 = vadd.f32 %v4216_v27, %v12561_v51  ;;  %v4239_v50 = vrot.slane %v4061_v31, 7 }
0x10c7   :  { %v4225_v41 = vmul.f32 0.5, %v4221_v9 }
0x10c8   :  { %v4229_v54 = vmul.f32 0.5, %v4222_v44  ;;  %v4234_v61 = vmul.f32 0.5, %v4224_v60 }
0x10c9   :  { %11286 = vtanh.f32 %v4225_v41 }
0x10ca   :  { %11288 = vtanh.f32 %v4229_v54 }
0x10cb   :  { %11290 = vtanh.f32 %v4223_v34 }
0x10cc   :  { %11292 = vtanh.f32 %v4234_v61 }
0x10d3   :  { %v11287_v59 = vpop.eup %11286 }
0x10d4   :  { %v11289_v12 = vpop.eup %11288  ;;  %v4227_v42 = vmul.f32 0.5, %v11287_v59 }
0x10d5   :  { %v4231_v48 = vmul.f32 0.5, %v11289_v12  ;;  %v11291_v22 = vpop.eup %11290 }
0x10d6   :  { %v4228_v40 = vadd.f32 0.5, %v4227_v42  ;;  %v11293_v15 = vpop.eup %11292 }
0x10d7   :  { %v4232_v62 = vadd.f32 0.5, %v4231_v48  ;;  %v4236_v36 = vmul.f32 0.5, %v11293_v15 }
0x10d8   :  { %v4242_v49 = vmul.f32 %v11291_v22, %v4228_v40 }
0x10d9   :  { %v4241_v4 = vmul.f32 %v4239_v50, %v4232_v62  ;;  %v4237_v63 = vadd.f32 0.5, %v4236_v36 }
0x10db   :  { %v4243_v17 = vadd.f32 %v4242_v49, %v4241_v4 }
0x10dd   :  { %11294 = vtanh.f32 %v4243_v17 }
0x10e7   :  { %v11295_v7 = vpop.eup %11294 }
0x10e8   :  { %v12818_v26 = vmul.f32 %v11295_v7, %v4237_v63 }
0x10e9   :  { %11664 = dma.done.wait [#allocation9 + $0x3], 8192 }
0x10ea   :  { %11665 = vsyncadd [#allocation9 + $0x3], 4294959104 }
0x10eb   :  { %11666 = dma.done.wait [#allocation9 + $0x4], 8192 }
0x10ec   :  { %11667 = vsyncadd [#allocation9 + $0x4], 4294959104 }
0x10ed   :  { %11668 = dma.done.wait [#allocation9 + $0x5], 64 }
0x10ee   :  { %11669 = vsyncadd [#allocation9 + $0x5], 4294967232  ;;  %4405 = vmatprep.mubr.f32.mxu0 %v11691_v10  ;;  %4476 = vmatprep.mubr.f32.mxu1 %v11691_v10  ;;  %v4253_v51 = vld [vmem:[#allocation4 + $0x208] sm:$0xff]  ;;  %v4255_v52 = vld [vmem:[#allocation4 + $0x218] sm:$0xff] }
0x10ef   :  { %v4257_v38 = vld [vmem:[#allocation4 + $0x228] sm:$0xff]  ;;  %v4259_v57 = vld [vmem:[#allocation4 + $0x238] sm:$0xff]  ;;  %v4252_v6 = vld [vmem:[#allocation4 + $0x200] sm:$0xff] }
0x10f0   :  { %v9946_v25 = vpack.c.bf16 %v4257_v38, %v4253_v51  ;;  %v4256_v30 = vld [vmem:[#allocation4 + $0x220] sm:$0xff]  ;;  %v9978_v23 = vpack.c.bf16 %v4259_v57, %v4255_v52  ;;  %v4254_v5 = vld [vmem:[#allocation4 + $0x210] sm:$0xff]  ;;  %v4261_v19 = vld [vmem:[#allocation4 + $0x248] sm:$0xff] }
0x10f1   :  { %v9948_v2 = vpack.c.bf16 %v4256_v30, %v4252_v6  ;;  %v4258_v18 = vld [vmem:[#allocation4 + $0x230] sm:$0xff]  ;;  %v4265_v0 = vld [vmem:[#allocation4 + $0x268] sm:$0xff]  ;;  %v4263_v20 = vld [vmem:[#allocation4 + $0x258] sm:$0xff] }
0x10f2   :  { %9947 = vmatprep.subr.bf16.mxu0 %v9946_v25  ;;  %v9980_v46 = vpack.c.bf16 %v4258_v18, %v4254_v5  ;;  %v4267_v56 = vld [vmem:[#allocation4 + $0x278] sm:$0xff]  ;;  %9979 = vmatprep.subr.bf16.mxu1 %v9978_v23  ;;  %v9950_v11 = vpack.c.bf16 %v4265_v0, %v4261_v19  ;;  %v4260_v1 = vld [vmem:[#allocation4 + $0x240] sm:$0xff]  ;;  %v4262_v16 = vld [vmem:[#allocation4 + $0x250] sm:$0xff] }
0x10f3   :  { %9949 = vmatpush1.bf16.msra.mxu0 %v9948_v2  ;;  %v9982_v53 = vpack.c.bf16 %v4267_v56, %v4263_v20  ;;  %v4264_v8 = vld [vmem:[#allocation4 + $0x260] sm:$0xff]  ;;  %v4266_v43 = vld [vmem:[#allocation4 + $0x270] sm:$0xff]  ;;  %v4269_v28 = vld [vmem:[#allocation4 + $0x288] sm:$0xff] }
0x10f4   :  { %9981 = vmatpush1.bf16.msra.mxu1 %v9980_v46  ;;  %v9952_v31 = vpack.c.bf16 %v4264_v8, %v4260_v1  ;;  %v4273_v58 = vld [vmem:[#allocation4 + $0x2a8] sm:$0xff]  ;;  %9951 = vmatprep.subr.bf16.mxu0 %v9950_v11  ;;  %v9984_v24 = vpack.c.bf16 %v4266_v43, %v4262_v16  ;;  %v4271_v14 = vld [vmem:[#allocation4 + $0x298] sm:$0xff]  ;;  %v4268_v29 = vld [vmem:[#allocation4 + $0x280] sm:$0xff] }
0x10f5   :  { %9983 = vmatprep.subr.bf16.mxu1 %v9982_v53  ;;  %v9954_v39 = vpack.c.bf16 %v4273_v58, %v4269_v28  ;;  %v4275_v55 = vld [vmem:[#allocation4 + $0x2b8] sm:$0xff]  ;;  %v4272_v3 = vld [vmem:[#allocation4 + $0x2a0] sm:$0xff]  ;;  %v4270_v21 = vld [vmem:[#allocation4 + $0x290] sm:$0xff] }
0x10f6   :  { %v9986_v32 = vpack.c.bf16 %v4275_v55, %v4271_v14  ;;  %v4274_v45 = vld [vmem:[#allocation4 + $0x2b0] sm:$0xff]  ;;  %v9956_v9 = vpack.c.bf16 %v4272_v3, %v4268_v29  ;;  %v4277_v13 = vld [vmem:[#allocation4 + $0x2c8] sm:$0xff]  ;;  %v4279_v41 = vld [vmem:[#allocation4 + $0x2d8] sm:$0xff] }
0x10f7   :  { %9953 = vmatpush1.bf16.msra.mxu0 %v9952_v31  ;;  %v4281_v44 = vld [vmem:[#allocation4 + $0x2e8] sm:$0xff]  ;;  %v9988_v54 = vpack.c.bf16 %v4274_v45, %v4270_v21  ;;  %v4283_v27 = vld [vmem:[#allocation4 + $0x2f8] sm:$0xff]  ;;  %v4276_v60 = vld [vmem:[#allocation4 + $0x2c0] sm:$0xff] }
0x10f8   :  { %9985 = vmatpush1.bf16.msra.mxu1 %v9984_v24  ;;  %9955 = vmatprep.subr.bf16.mxu0 %v9954_v39  ;;  %v9958_v34 = vpack.c.bf16 %v4281_v44, %v4277_v13  ;;  %v4280_v61 = vld [vmem:[#allocation4 + $0x2e0] sm:$0xff]  ;;  %v9990_v59 = vpack.c.bf16 %v4283_v27, %v4279_v41  ;;  %v4278_v12 = vld [vmem:[#allocation4 + $0x2d0] sm:$0xff]  ;;  %v4285_v48 = vld [vmem:[#allocation4 + $0x308] sm:$0xff] }
0x10f9   :  { %9987 = vmatprep.subr.bf16.mxu1 %v9986_v32  ;;  %v4282_v42 = vld [vmem:[#allocation4 + $0x2f0] sm:$0xff]  ;;  %v4289_v40 = vld [vmem:[#allocation4 + $0x328] sm:$0xff]  ;;  %v4287_v22 = vld [vmem:[#allocation4 + $0x318] sm:$0xff]  ;;  %v9960_v50 = vpack.c.bf16 %v4280_v61, %v4276_v60 }
0x10fa   :  { %v4291_v62 = vld [vmem:[#allocation4 + $0x338] sm:$0xff]  ;;  %v9992_v49 = vpack.c.bf16 %v4282_v42, %v4278_v12  ;;  %v9962_v4 = vpack.c.bf16 %v4289_v40, %v4285_v48  ;;  %v4284_v17 = vld [vmem:[#allocation4 + $0x300] sm:$0xff]  ;;  %v4286_v36 = vld [vmem:[#allocation4 + $0x310] sm:$0xff] }
0x10fb   :  { %9957 = vmatpush1.bf16.msra.mxu0 %v9956_v9  ;;  %v4288_v15 = vld [vmem:[#allocation4 + $0x320] sm:$0xff]  ;;  %v9994_v63 = vpack.c.bf16 %v4291_v62, %v4287_v22  ;;  %v4290_v7 = vld [vmem:[#allocation4 + $0x330] sm:$0xff]  ;;  %v4293_v51 = vld [vmem:[#allocation4 + $0x348] sm:$0xff] }
0x10fc   :  { %9989 = vmatpush1.bf16.msra.mxu1 %v9988_v54  ;;  %9959 = vmatprep.subr.bf16.mxu0 %v9958_v34  ;;  %v4297_v38 = vld [vmem:[#allocation4 + $0x368] sm:$0xff]  ;;  %v4295_v52 = vld [vmem:[#allocation4 + $0x358] sm:$0xff]  ;;  %v9964_v57 = vpack.c.bf16 %v4288_v15, %v4284_v17  ;;  %v9996_v6 = vpack.c.bf16 %v4290_v7, %v4286_v36  ;;  %v4292_v23 = vld [vmem:[#allocation4 + $0x340] sm:$0xff] }
0x10fd   :  { %9991 = vmatprep.subr.bf16.mxu1 %v9990_v59  ;;  %v4299_v25 = vld [vmem:[#allocation4 + $0x378] sm:$0xff]  ;;  %v9966_v30 = vpack.c.bf16 %v4297_v38, %v4293_v51  ;;  %v4296_v2 = vld [vmem:[#allocation4 + $0x360] sm:$0xff]  ;;  %v4294_v5 = vld [vmem:[#allocation4 + $0x350] sm:$0xff] }
0x10fe   :  { %v9998_v18 = vpack.c.bf16 %v4299_v25, %v4295_v52  ;;  %v4298_v19 = vld [vmem:[#allocation4 + $0x370] sm:$0xff]  ;;  %v4301_v46 = vld [vmem:[#allocation4 + $0x388] sm:$0xff]  ;;  %v4303_v20 = vld [vmem:[#allocation4 + $0x398] sm:$0xff]  ;;  %v9968_v11 = vpack.c.bf16 %v4296_v2, %v4292_v23 }
0x10ff   :  { %9961 = vmatpush1.bf16.msra.mxu0 %v9960_v50  ;;  %v4305_v0 = vld [vmem:[#allocation4 + $0x3a8] sm:$0xff]  ;;  %v4307_v56 = vld [vmem:[#allocation4 + $0x3b8] sm:$0xff]  ;;  %v10000_v53 = vpack.c.bf16 %v4298_v19, %v4294_v5  ;;  %v4300_v8 = vld [vmem:[#allocation4 + $0x380] sm:$0xff]  ;;  %v4318_v50 = vrot.slane %v12818_v26, 7 }
0x1100   :  { %9993 = vmatpush1.bf16.msra.mxu1 %v9992_v49  ;;  %9963 = vmatprep.subr.bf16.mxu0 %v9962_v4  ;;  %v9970_v1 = vpack.c.bf16 %v4305_v0, %v4301_v46  ;;  %v4304_v16 = vld [vmem:[#allocation4 + $0x3a0] sm:$0xff]  ;;  %v4302_v31 = vld [vmem:[#allocation4 + $0x390] sm:$0xff]  ;;  %v10002_v43 = vpack.c.bf16 %v4307_v56, %v4303_v20  ;;  %v4309_v58 = vld [vmem:[#allocation4 + $0x3c8] sm:$0xff] }
0x1101   :  { %9995 = vmatprep.subr.bf16.mxu1 %v9994_v63  ;;  %v4306_v28 = vld [vmem:[#allocation4 + $0x3b0] sm:$0xff]  ;;  %v4313_v24 = vld [vmem:[#allocation4 + $0x3e8] sm:$0xff]  ;;  %v4311_v39 = vld [vmem:[#allocation4 + $0x3d8] sm:$0xff]  ;;  %v9972_v55 = vpack.c.bf16 %v4304_v16, %v4300_v8 }
0x1102   :  { %v4315_v14 = vld [vmem:[#allocation4 + $0x3f8] sm:$0xff]  ;;  %v10004_v29 = vpack.c.bf16 %v4306_v28, %v4302_v31  ;;  %v9974_v32 = vpack.c.bf16 %v4313_v24, %v4309_v58  ;;  %v4308_v3 = vld [vmem:[#allocation4 + $0x3c0] sm:$0xff]  ;;  %v4310_v45 = vld [vmem:[#allocation4 + $0x3d0] sm:$0xff] }
0x1103   :  { %9965 = vmatpush1.bf16.msra.mxu0 %v9964_v57  ;;  %v4312_v21 = vld [vmem:[#allocation4 + $0x3e0] sm:$0xff]  ;;  %v10006_v9 = vpack.c.bf16 %v4315_v14, %v4311_v39  ;;  %v4314_v13 = vld [vmem:[#allocation4 + $0x3f0] sm:$0xff]  ;;  %v4484_v44 = vld [vmem:[#allocation5 + $0x208] sm:$0xff] }
0x1104   :  { %9997 = vmatpush1.bf16.msra.mxu1 %v9996_v6  ;;  %9967 = vmatprep.subr.bf16.mxu0 %v9966_v30  ;;  %v4488_v41 = vld [vmem:[#allocation5 + $0x228] sm:$0xff]  ;;  %v4486_v54 = vld [vmem:[#allocation5 + $0x218] sm:$0xff]  ;;  %v9976_v27 = vpack.c.bf16 %v4312_v21, %v4308_v3  ;;  %v10008_v60 = vpack.c.bf16 %v4314_v13, %v4310_v45  ;;  %v4483_v59 = vld [vmem:[#allocation5 + $0x200] sm:$0xff] }
0x1105   :  { %9999 = vmatprep.subr.bf16.mxu1 %v9998_v18  ;;  %v4490_v34 = vld [vmem:[#allocation5 + $0x238] sm:$0xff]  ;;  %v12822_v61 = vpack.c.bf16 %v4488_v41, %v4484_v44  ;;  %v4487_v12 = vld [vmem:[#allocation5 + $0x220] sm:$0xff]  ;;  %v4485_v42 = vld [vmem:[#allocation5 + $0x210] sm:$0xff] }
0x1106   :  { %v12824_v48 = vpack.c.bf16 %v4490_v34, %v4486_v54  ;;  %v4489_v40 = vld [vmem:[#allocation5 + $0x230] sm:$0xff]  ;;  %v4492_v22 = vld [vmem:[#allocation5 + $0x248] sm:$0xff]  ;;  %v4494_v49 = vld [vmem:[#allocation5 + $0x258] sm:$0xff]  ;;  %v12827_v17 = vpack.c.bf16 %v4487_v12, %v4483_v59 }
0x1107   :  { %9969 = vmatpush1.bf16.msra.mxu0 %v9968_v11  ;;  %v4496_v62 = vld [vmem:[#allocation5 + $0x268] sm:$0xff]  ;;  %v4498_v4 = vld [vmem:[#allocation5 + $0x278] sm:$0xff]  ;;  %v12830_v15 = vpack.c.bf16 %v4489_v40, %v4485_v42  ;;  %v4491_v63 = vld [vmem:[#allocation5 + $0x240] sm:$0xff] }
0x1108   :  { %10001 = vmatpush1.bf16.msra.mxu1 %v10000_v53  ;;  %9971 = vmatprep.subr.bf16.mxu0 %v9970_v1  ;;  %v12832_v36 = vpack.c.bf16 %v4496_v62, %v4492_v22  ;;  %v4495_v7 = vld [vmem:[#allocation5 + $0x260] sm:$0xff]  ;;  %v4493_v51 = vld [vmem:[#allocation5 + $0x250] sm:$0xff]  ;;  %v12835_v38 = vpack.c.bf16 %v4498_v4, %v4494_v49  ;;  %v4500_v52 = vld [vmem:[#allocation5 + $0x288] sm:$0xff] }
0x1109   :  { %10003 = vmatprep.subr.bf16.mxu1 %v10002_v43  ;;  %v4497_v26 = vld [vmem:[#allocation5 + $0x270] sm:$0xff]  ;;  %v4504_v25 = vld [vmem:[#allocation5 + $0x2a8] sm:$0xff]  ;;  %v4502_v57 = vld [vmem:[#allocation5 + $0x298] sm:$0xff]  ;;  %v12838_v30 = vpack.c.bf16 %v4495_v7, %v4491_v63 }
0x110a   :  { %v4506_v6 = vld [vmem:[#allocation5 + $0x2b8] sm:$0xff]  ;;  %v12842_v23 = vpack.c.bf16 %v4497_v26, %v4493_v51  ;;  %v12844_v2 = vpack.c.bf16 %v4504_v25, %v4500_v52  ;;  %v4499_v5 = vld [vmem:[#allocation5 + $0x280] sm:$0xff]  ;;  %v4501_v19 = vld [vmem:[#allocation5 + $0x290] sm:$0xff] }
0x110b   :  { %9973 = vmatpush1.bf16.msra.mxu0 %v9972_v55  ;;  %v4503_v18 = vld [vmem:[#allocation5 + $0x2a0] sm:$0xff]  ;;  %v12847_v46 = vpack.c.bf16 %v4506_v6, %v4502_v57  ;;  %v4505_v0 = vld [vmem:[#allocation5 + $0x2b0] sm:$0xff]  ;;  %v4508_v20 = vld [vmem:[#allocation5 + $0x2c8] sm:$0xff] }
0x110c   :  { %10005 = vmatpush1.bf16.msra.mxu1 %v10004_v29  ;;  %9975 = vmatprep.subr.bf16.mxu0 %v9974_v32  ;;  %v4512_v56 = vld [vmem:[#allocation5 + $0x2e8] sm:$0xff]  ;;  %v4510_v11 = vld [vmem:[#allocation5 + $0x2d8] sm:$0xff]  ;;  %v12852_v1 = vpack.c.bf16 %v4503_v18, %v4499_v5  ;;  %v12856_v8 = vpack.c.bf16 %v4505_v0, %v4501_v19  ;;  %v4507_v31 = vld [vmem:[#allocation5 + $0x2c0] sm:$0xff] }
0x110d   :  { %10007 = vmatprep.subr.bf16.mxu1 %v10006_v9  ;;  %v4514_v53 = vld [vmem:[#allocation5 + $0x2f8] sm:$0xff]  ;;  %v12858_v16 = vpack.c.bf16 %v4512_v56, %v4508_v20  ;;  %v4511_v43 = vld [vmem:[#allocation5 + $0x2e0] sm:$0xff]  ;;  %v4509_v28 = vld [vmem:[#allocation5 + $0x2d0] sm:$0xff] }
0x110e   :  { %v12861_v58 = vpack.c.bf16 %v4514_v53, %v4510_v11  ;;  %v4513_v24 = vld [vmem:[#allocation5 + $0x2f0] sm:$0xff]  ;;  %v4516_v39 = vld [vmem:[#allocation5 + $0x308] sm:$0xff]  ;;  %v4518_v55 = vld [vmem:[#allocation5 + $0x318] sm:$0xff]  ;;  %v12864_v32 = vpack.c.bf16 %v4511_v43, %v4507_v31 }
0x110f   :  { %9977 = vmatpush1.bf16.msra.mxu0 %v9976_v27  ;;  %v4520_v14 = vld [vmem:[#allocation5 + $0x328] sm:$0xff]  ;;  %v4522_v29 = vld [vmem:[#allocation5 + $0x338] sm:$0xff]  ;;  %v12868_v3 = vpack.c.bf16 %v4513_v24, %v4509_v28  ;;  %v4515_v45 = vld [vmem:[#allocation5 + $0x300] sm:$0xff] }
0x1110   :  { %10009 = vmatpush1.bf16.msra.mxu1 %v10008_v60  ;;  %10011 = vmatprep.subr.bf16.mxu0 %v12822_v61  ;;  %v12870_v21 = vpack.c.bf16 %v4520_v14, %v4516_v39  ;;  %v4519_v9 = vld [vmem:[#allocation5 + $0x320] sm:$0xff]  ;;  %v4517_v13 = vld [vmem:[#allocation5 + $0x310] sm:$0xff]  ;;  %v12873_v44 = vpack.c.bf16 %v4522_v29, %v4518_v55  ;;  %v4524_v54 = vld [vmem:[#allocation5 + $0x348] sm:$0xff] }
0x1111   :  { %10043 = vmatprep.subr.bf16.mxu1 %v12824_v48  ;;  %v4521_v41 = vld [vmem:[#allocation5 + $0x330] sm:$0xff]  ;;  %v4528_v34 = vld [vmem:[#allocation5 + $0x368] sm:$0xff]  ;;  %v4526_v27 = vld [vmem:[#allocation5 + $0x358] sm:$0xff]  ;;  %v12876_v59 = vpack.c.bf16 %v4519_v9, %v4515_v45 }
0x1112   :  { %4406 = vmatmul.mubr.f32.vlgmr.msra.gmra.mrb[36].mxu0 %v4318_v50  ;;  %v4530_v60 = vld [vmem:[#allocation5 + $0x378] sm:$0xff]  ;;  %v12880_v12 = vpack.c.bf16 %v4521_v41, %v4517_v13  ;;  %v12882_v42 = vpack.c.bf16 %v4528_v34, %v4524_v54  ;;  %v4523_v40 = vld [vmem:[#allocation5 + $0x340] sm:$0xff]  ;;  %v4525_v62 = vld [vmem:[#allocation5 + $0x350] sm:$0xff] }
0x1113   :  { %4477 = vmatmul.mubr.f32.vlgmr.msra.gmra.mrb[36].mxu1 %v4318_v50  ;;  %10013 = vmatpush1.bf16.msra.mxu0 %v12827_v17  ;;  %v4527_v22 = vld [vmem:[#allocation5 + $0x360] sm:$0xff]  ;;  %v12885_v50 = vpack.c.bf16 %v4530_v60, %v4526_v27  ;;  %v4529_v49 = vld [vmem:[#allocation5 + $0x370] sm:$0xff]  ;;  %v4532_v4 = vld [vmem:[#allocation5 + $0x388] sm:$0xff] }
0x1114   :  { %10045 = vmatpush1.bf16.msra.mxu1 %v12830_v15  ;;  %10015 = vmatprep.subr.bf16.mxu0 %v12832_v36  ;;  %v4536_v63 = vld [vmem:[#allocation5 + $0x3a8] sm:$0xff]  ;;  %v4534_v7 = vld [vmem:[#allocation5 + $0x398] sm:$0xff]  ;;  %v12888_v26 = vpack.c.bf16 %v4527_v22, %v4523_v40  ;;  %v12892_v52 = vpack.c.bf16 %v4529_v49, %v4525_v62  ;;  %v4531_v57 = vld [vmem:[#allocation5 + $0x380] sm:$0xff] }
0x1115   :  { %10047 = vmatprep.subr.bf16.mxu1 %v12835_v38  ;;  %4611 = vmatprep.mubr.f32.mxu0 %v11691_v10  ;;  %v4538_v51 = vld [vmem:[#allocation5 + $0x3b8] sm:$0xff]  ;;  %v12894_v25 = vpack.c.bf16 %v4536_v63, %v4532_v4  ;;  %v4535_v6 = vld [vmem:[#allocation5 + $0x3a0] sm:$0xff]  ;;  %v4533_v5 = vld [vmem:[#allocation5 + $0x390] sm:$0xff] }
0x1116   :  { %4682 = vmatprep.mubr.f32.mxu1 %v11691_v10  ;;  %v12897_v18 = vpack.c.bf16 %v4538_v51, %v4534_v7  ;;  %v4537_v19 = vld [vmem:[#allocation5 + $0x3b0] sm:$0xff]  ;;  %v4540_v0 = vld [vmem:[#allocation5 + $0x3c8] sm:$0xff]  ;;  %v4542_v56 = vld [vmem:[#allocation5 + $0x3d8] sm:$0xff]  ;;  %v12900_v53 = vpack.c.bf16 %v4535_v6, %v4531_v57 }
0x1117   :  { %10017 = vmatpush1.bf16.msra.mxu0 %v12838_v30  ;;  %v4544_v20 = vld [vmem:[#allocation5 + $0x3e8] sm:$0xff]  ;;  %v4546_v11 = vld [vmem:[#allocation5 + $0x3f8] sm:$0xff]  ;;  %v12904_v31 = vpack.c.bf16 %v4537_v19, %v4533_v5  ;;  %v4539_v28 = vld [vmem:[#allocation5 + $0x3c0] sm:$0xff] }
0x1118   :  { %10049 = vmatpush1.bf16.msra.mxu1 %v12842_v23  ;;  %10019 = vmatprep.subr.bf16.mxu0 %v12844_v2  ;;  %v12906_v43 = vpack.c.bf16 %v4544_v20, %v4540_v0  ;;  %v4543_v24 = vld [vmem:[#allocation5 + $0x3e0] sm:$0xff]  ;;  %v12909_v39 = vpack.c.bf16 %v4546_v11, %v4542_v56  ;;  %v4541_v14 = vld [vmem:[#allocation5 + $0x3d0] sm:$0xff] }
0x1119   :  { %10051 = vmatprep.subr.bf16.mxu1 %v12847_v46  ;;  %v4545_v55 = vld [vmem:[#allocation5 + $0x3f0] sm:$0xff]  ;;  %v12912_v29 = vpack.c.bf16 %v4543_v24, %v4539_v28  ;;  %v4316_v34 = vld [vmem:[#allocation6 + $0x4] sm:$0xf] }
0x111a   :  { %v12916_v45 = vpack.c.bf16 %v4545_v55, %v4541_v14  ;;  %v4324_v27 = vrot.slane %v4316_v34, %v12065_v33  ;;  %v4328_v60 = vrot.slane %v4316_v34, %v12070_v35  ;;  %v4332_v22 = vrot.slane %v4316_v34, %v12073_v37 }
0x111b   :  { %10021 = vmatpush1.bf16.msra.mxu0 %v12852_v1  ;;  %v4336_v5 = vrot.slane %v4316_v34, %v12079_v47 }
0x111c   :  { %10053 = vmatpush1.bf16.msra.mxu1 %v12856_v8  ;;  %10023 = vmatprep.subr.bf16.mxu0 %v12858_v16 }
0x111d   :  { %10055 = vmatprep.subr.bf16.mxu1 %v12861_v58 }
0x111f   :  { %10025 = vmatpush1.bf16.msra.mxu0 %v12864_v32 }
0x1120   :  { %10057 = vmatpush1.bf16.msra.mxu1 %v12868_v3  ;;  %10027 = vmatprep.subr.bf16.mxu0 %v12870_v21 }
0x1121   :  { %10059 = vmatprep.subr.bf16.mxu1 %v12873_v44 }
0x1123   :  { %10029 = vmatpush1.bf16.msra.mxu0 %v12876_v59 }
0x1124   :  { %10061 = vmatpush1.bf16.msra.mxu1 %v12880_v12  ;;  %10031 = vmatprep.subr.bf16.mxu0 %v12882_v42 }
0x1125   :  { %10063 = vmatprep.subr.bf16.mxu1 %v12885_v50 }
0x1127   :  { %10033 = vmatpush1.bf16.msra.mxu0 %v12888_v26 }
0x1128   :  { %10065 = vmatpush1.bf16.msra.mxu1 %v12892_v52  ;;  %10035 = vmatprep.subr.bf16.mxu0 %v12894_v25 }
0x1129   :  { %10067 = vmatprep.subr.bf16.mxu1 %v12897_v18 }
0x112b   :  { %10037 = vmatpush1.bf16.msra.mxu0 %v12900_v53 }
0x112c   :  { %10069 = vmatpush1.bf16.msra.mxu1 %v12904_v31  ;;  %10039 = vmatprep.subr.bf16.mxu0 %v12906_v43 }
0x112d   :  { %10071 = vmatprep.subr.bf16.mxu1 %v12909_v39 }
0x112f   :  { %10041 = vmatpush1.bf16.msra.mxu0 %v12912_v29 }
0x1130   :  { %10073 = vmatpush1.bf16.msra.mxu1 %v12916_v45  ;;  %10075 = vmatprep.subr.bf16.mxu0 %v12822_v61 }
0x1131   :  { %10107 = vmatprep.subr.bf16.mxu1 %v12824_v48 }
0x1132   :  { %4612 = vmatmul.mubr.f32.vlgmr.msra.gmra.mrb[38].mxu0 %v11691_v10 }
0x1133   :  { %4683 = vmatmul.mubr.f32.vlgmr.msra.gmra.mrb[38].mxu1 %v11691_v10  ;;  %10077 = vmatpush1.bf16.msra.mxu0 %v12827_v17 }
0x1134   :  { %10109 = vmatpush1.bf16.msra.mxu1 %v12830_v15  ;;  %10079 = vmatprep.subr.bf16.mxu0 %v12832_v36 }
0x1135   :  { %10111 = vmatprep.subr.bf16.mxu1 %v12835_v38  ;;  %4840 = vmatprep.mubr.f32.mxu0 %v11691_v10 }
0x1136   :  { %4911 = vmatprep.mubr.f32.mxu1 %v11691_v10 }
0x1137   :  { %10081 = vmatpush1.bf16.msra.mxu0 %v12838_v30 }
0x1138   :  { %10113 = vmatpush1.bf16.msra.mxu1 %v12842_v23  ;;  %10083 = vmatprep.subr.bf16.mxu0 %v12844_v2 }
0x1139   :  { %10115 = vmatprep.subr.bf16.mxu1 %v12847_v46 }
0x113b   :  { %10085 = vmatpush1.bf16.msra.mxu0 %v12852_v1 }
0x113c   :  { %10117 = vmatpush1.bf16.msra.mxu1 %v12856_v8  ;;  %10087 = vmatprep.subr.bf16.mxu0 %v12858_v16 }
0x113d   :  { %10119 = vmatprep.subr.bf16.mxu1 %v12861_v58 }
0x113f   :  { %10089 = vmatpush1.bf16.msra.mxu0 %v12864_v32 }
0x1140   :  { %10121 = vmatpush1.bf16.msra.mxu1 %v12868_v3  ;;  %10091 = vmatprep.subr.bf16.mxu0 %v12870_v21 }
0x1141   :  { %10123 = vmatprep.subr.bf16.mxu1 %v12873_v44 }
0x1143   :  { %10093 = vmatpush1.bf16.msra.mxu0 %v12876_v59 }
0x1144   :  { %10125 = vmatpush1.bf16.msra.mxu1 %v12880_v12  ;;  %10095 = vmatprep.subr.bf16.mxu0 %v12882_v42 }
0x1145   :  { %10127 = vmatprep.subr.bf16.mxu1 %v12885_v50 }
0x1147   :  { %10097 = vmatpush1.bf16.msra.mxu0 %v12888_v26 }
0x1148   :  { %10129 = vmatpush1.bf16.msra.mxu1 %v12892_v52  ;;  %10099 = vmatprep.subr.bf16.mxu0 %v12894_v25 }
0x1149   :  { %10131 = vmatprep.subr.bf16.mxu1 %v12897_v18 }
0x114b   :  { %10101 = vmatpush1.bf16.msra.mxu0 %v12900_v53 }
0x114c   :  { %10133 = vmatpush1.bf16.msra.mxu1 %v12904_v31  ;;  %10103 = vmatprep.subr.bf16.mxu0 %v12906_v43 }
0x114d   :  { %10135 = vmatprep.subr.bf16.mxu1 %v12909_v39 }
0x114f   :  { %10105 = vmatpush1.bf16.msra.mxu0 %v12912_v29 }
0x1150   :  { %10137 = vmatpush1.bf16.msra.mxu1 %v12916_v45  ;;  %10139 = vmatprep.subr.bf16.mxu0 %v12822_v61 }
0x1151   :  { %10171 = vmatprep.subr.bf16.mxu1 %v12824_v48 }
0x11e5   :  { %v4407_v9 = vpop.f32.mrb[36].mxu0 }
0x11e6   :  { %v4409_v13 = vpop.f32.mrb[37].mxu0  ;;  %v4478_v41 = vpop.f32.mrb[36].mxu1  ;;  %v12961_v40 = vadd.f32 %v4407_v9, %v4324_v27 }
0x11e7   :  { %v4480_v54 = vpop.f32.mrb[37].mxu1  ;;  %v12964_v62 = vadd.f32 %v4409_v13, %v4328_v60  ;;  %v12968_v6 = vadd.f32 %v4478_v41, %v4332_v22 }
0x11e8   :  { %v12972_v56 = vadd.f32 %v4480_v54, %v4336_v5 }
0x1205   :  { %v4613_v49 = vpop.f32.mrb[38].mxu0 }
0x1206   :  { %v4689_v4 = vadd.f32 %v4613_v49, %v12961_v40  ;;  %v4684_v63 = vpop.f32.mrb[38].mxu1  ;;  %v4615_v7 = vpop.f32.mrb[39].mxu0 }
0x1207   :  { %v4690_v51 = vadd.f32 %v4615_v7, %v12964_v62  ;;  %v4686_v57 = vpop.f32.mrb[39].mxu1  ;;  %v4691_v20 = vadd.f32 %v4684_v63, %v12968_v6 }
0x1208   :  { %v4693_v19 = vmul.f32 0.5, %v4689_v4  ;;  %v4692_v11 = vadd.f32 %v4686_v57, %v12972_v56 }
0x1209   :  { %v4697_v0 = vmul.f32 0.5, %v4690_v51 }
0x120a   :  { %11296 = vtanh.f32 %v4693_v19  ;;  %v4702_v28 = vmul.f32 0.5, %v4692_v11 }
0x120b   :  { %11298 = vtanh.f32 %v4697_v0 }
0x120c   :  { %11300 = vtanh.f32 %v4691_v20 }
0x120d   :  { %11302 = vtanh.f32 %v4702_v28 }
0x1214   :  { %v11297_v24 = vpop.eup %11296 }
0x1215   :  { %v11299_v14 = vpop.eup %11298  ;;  %v4695_v55 = vmul.f32 0.5, %v11297_v24 }
0x1216   :  { %v4699_v9 = vmul.f32 0.5, %v11299_v14  ;;  %v11301_v41 = vpop.eup %11300 }
0x1217   :  { %v4696_v13 = vadd.f32 0.5, %v4695_v55  ;;  %v11303_v54 = vpop.eup %11302 }
0x1218   :  { %v4700_v34 = vadd.f32 0.5, %v4699_v9  ;;  %v4704_v49 = vmul.f32 0.5, %v11303_v54 }
0x1219   :  { %v4707_v27 = vmul.f32 %v11301_v41, %v4696_v13 }
0x121a   :  { %v4706_v60 = vmul.f32 0.0, %v4700_v34  ;;  %v4705_v4 = vadd.f32 0.5, %v4704_v49 }
0x121c   :  { %v12975_v22 = vadd.f32 %v4707_v27, %v4706_v60 }
0x121e   :  { %11304 = vtanh.f32 %v12975_v22 }
0x1228   :  { %v11305_v63 = vpop.eup %11304 }
0x1229   :  { %v4710_v7 = vmul.f32 %v11305_v63, %v4705_v4 }
0x122b   :  { %4711 = vst [vmem:[#allocation3] sm:$0x1] %v4710_v7  ;;  %4841 = vmatmul.mubr.f32.vlgmr.msra.gmra.mrb[40].mxu0 %v4710_v7  ;;  %4912 = vmatmul.mubr.f32.vlgmr.msra.gmra.mrb[40].mxu1 %v4710_v7 }
0x122c   :  { %10141 = vmatpush1.bf16.msra.mxu0 %v12827_v17  ;;  %10173 = vmatpush1.bf16.msra.mxu1 %v12830_v15 }
0x122d   :  { %10143 = vmatprep.subr.bf16.mxu0 %v12832_v36  ;;  %10175 = vmatprep.subr.bf16.mxu1 %v12835_v38 }
0x122e   :  { %5069 = vmatprep.mubr.f32.mxu0 %v11691_v10  ;;  %5140 = vmatprep.mubr.f32.mxu1 %v11691_v10 }
0x1230   :  { %10145 = vmatpush1.bf16.msra.mxu0 %v12838_v30  ;;  %10177 = vmatpush1.bf16.msra.mxu1 %v12842_v23 }
0x1231   :  { %10147 = vmatprep.subr.bf16.mxu0 %v12844_v2  ;;  %10179 = vmatprep.subr.bf16.mxu1 %v12847_v46 }
0x1234   :  { %10149 = vmatpush1.bf16.msra.mxu0 %v12852_v1  ;;  %10181 = vmatpush1.bf16.msra.mxu1 %v12856_v8 }
0x1235   :  { %10151 = vmatprep.subr.bf16.mxu0 %v12858_v16  ;;  %10183 = vmatprep.subr.bf16.mxu1 %v12861_v58 }
0x1238   :  { %10153 = vmatpush1.bf16.msra.mxu0 %v12864_v32  ;;  %10185 = vmatpush1.bf16.msra.mxu1 %v12868_v3 }
0x1239   :  { %10155 = vmatprep.subr.bf16.mxu0 %v12870_v21  ;;  %10187 = vmatprep.subr.bf16.mxu1 %v12873_v44 }
0x123c   :  { %10157 = vmatpush1.bf16.msra.mxu0 %v12876_v59  ;;  %10189 = vmatpush1.bf16.msra.mxu1 %v12880_v12 }
0x123d   :  { %10159 = vmatprep.subr.bf16.mxu0 %v12882_v42  ;;  %10191 = vmatprep.subr.bf16.mxu1 %v12885_v50 }
0x1240   :  { %10161 = vmatpush1.bf16.msra.mxu0 %v12888_v26  ;;  %10193 = vmatpush1.bf16.msra.mxu1 %v12892_v52 }
0x1241   :  { %10163 = vmatprep.subr.bf16.mxu0 %v12894_v25  ;;  %10195 = vmatprep.subr.bf16.mxu1 %v12897_v18 }
0x1244   :  { %10165 = vmatpush1.bf16.msra.mxu0 %v12900_v53  ;;  %10197 = vmatpush1.bf16.msra.mxu1 %v12904_v31 }
0x1245   :  { %10167 = vmatprep.subr.bf16.mxu0 %v12906_v43  ;;  %10199 = vmatprep.subr.bf16.mxu1 %v12909_v39 }
0x1248   :  { %10169 = vmatpush1.bf16.msra.mxu0 %v12912_v29  ;;  %10201 = vmatpush1.bf16.msra.mxu1 %v12916_v45 }
0x1249   :  { %10203 = vmatprep.subr.bf16.mxu0 %v12822_v61  ;;  %10235 = vmatprep.subr.bf16.mxu1 %v12824_v48 }
0x12fe   :  { %v4842_v51 = vpop.f32.mrb[40].mxu0  ;;  %v4913_v57 = vpop.f32.mrb[40].mxu1 }
0x12ff   :  { %v4918_v5 = vadd.f32 %v4842_v51, %v12961_v40  ;;  %v4844_v19 = vpop.f32.mrb[41].mxu0  ;;  %v4915_v0 = vpop.f32.mrb[41].mxu1  ;;  %v4920_v24 = vadd.f32 %v4913_v57, %v12968_v6 }
0x1300   :  { %v4919_v20 = vadd.f32 %v4844_v19, %v12964_v62  ;;  %v4921_v14 = vadd.f32 %v4915_v0, %v12972_v56  ;;  %v5403_v19 = vld [vmem:[#allocation5 + $0x220] sm:$0xff] }
0x1301   :  { %v4922_v11 = vmul.f32 0.5, %v4918_v5  ;;  %v5399_v5 = vld [vmem:[#allocation5 + $0x200] sm:$0xff] }
0x1302   :  { %v4926_v28 = vmul.f32 0.5, %v4919_v20  ;;  %v4931_v61 = vmul.f32 0.5, %v4921_v14  ;;  %v13066_v20 = vpack.c.bf16 %v5403_v19, %v5399_v5  ;;  %v5408_v14 = vld [vmem:[#allocation5 + $0x248] sm:$0xff]  ;;  %v5437_v5 = vld [vmem:[#allocation5 + $0x330] sm:$0xff] }
0x1303   :  { %11306 = vtanh.f32 %v4922_v11  ;;  %v5401_v11 = vld [vmem:[#allocation5 + $0x210] sm:$0xff] }
0x1304   :  { %11308 = vtanh.f32 %v4926_v28  ;;  %v5405_v28 = vld [vmem:[#allocation5 + $0x230] sm:$0xff] }
0x1305   :  { %11310 = vtanh.f32 %v4920_v24  ;;  %v13069_v24 = vpack.c.bf16 %v5405_v28, %v5401_v11  ;;  %v5440_v11 = vld [vmem:[#allocation5 + $0x348] sm:$0xff] }
0x1306   :  { %11312 = vtanh.f32 %v4931_v61  ;;  %v5412_v61 = vld [vmem:[#allocation5 + $0x268] sm:$0xff] }
0x1307   :  { %v5444_v28 = vld [vmem:[#allocation5 + $0x368] sm:$0xff] }
0x130d   :  { %v11307_v55 = vpop.eup %11306 }
0x130e   :  { %v11309_v48 = vpop.eup %11308  ;;  %v4924_v9 = vmul.f32 0.5, %v11307_v55  ;;  %v5410_v55 = vld [vmem:[#allocation5 + $0x258] sm:$0xff] }
0x130f   :  { %v4928_v13 = vmul.f32 0.5, %v11309_v48  ;;  %v11311_v34 = vpop.eup %11310  ;;  %v13074_v48 = vpack.c.bf16 %v5412_v61, %v5408_v14  ;;  %v5442_v14 = vld [vmem:[#allocation5 + $0x358] sm:$0xff]  ;;  %v13122_v61 = vpack.c.bf16 %v5444_v28, %v5440_v11  ;;  %v5461_v11 = vld [vmem:[#allocation5 + $0x3f0] sm:$0xff] }
0x1310   :  { %v4925_v41 = vadd.f32 0.5, %v4924_v9  ;;  %v11313_v4 = vpop.eup %11312  ;;  %v5414_v9 = vld [vmem:[#allocation5 + $0x278] sm:$0xff] }
0x1311   :  { %v4929_v27 = vadd.f32 0.5, %v4928_v13  ;;  %v4933_v63 = vmul.f32 0.5, %v11313_v4  ;;  %v5407_v13 = vld [vmem:[#allocation5 + $0x240] sm:$0xff]  ;;  %v5416_v4 = vld [vmem:[#allocation5 + $0x288] sm:$0xff] }
0x1312   :  { %v4936_v60 = vmul.f32 %v11311_v34, %v4925_v41  ;;  %v5411_v41 = vld [vmem:[#allocation5 + $0x260] sm:$0xff]  ;;  %v13076_v34 = vpack.c.bf16 %v5414_v9, %v5410_v55  ;;  %v5446_v55 = vld [vmem:[#allocation5 + $0x378] sm:$0xff] }
0x1313   :  { %v4935_v54 = vmul.f32 %v4929_v27, %v12975_v22  ;;  %v4934_v7 = vadd.f32 0.5, %v4933_v63  ;;  %v5406_v22 = vld [vmem:[#allocation5 + $0x238] sm:$0xff]  ;;  %v13078_v27 = vpack.c.bf16 %v5411_v41, %v5407_v13  ;;  %v5420_v63 = vld [vmem:[#allocation5 + $0x2a8] sm:$0xff]  ;;  %v5439_v9 = vld [vmem:[#allocation5 + $0x340] sm:$0xff]  ;;  %v13124_v41 = vpack.c.bf16 %v5446_v55, %v5442_v14 }
0x1314   :  { %v5443_v13 = vld [vmem:[#allocation5 + $0x360] sm:$0xff] }
0x1315   :  { %v13017_v49 = vadd.f32 %v4936_v60, %v4935_v54  ;;  %v5409_v60 = vld [vmem:[#allocation5 + $0x250] sm:$0xff] }
0x1316   :  { %v5413_v54 = vld [vmem:[#allocation5 + $0x270] sm:$0xff] }
0x1317   :  { %11314 = vtanh.f32 %v13017_v49 }
0x1321   :  { %v11315_v51 = vpop.eup %11314 }
0x1322   :  { %v4939_v57 = vmul.f32 %v11315_v51, %v4934_v7  ;;  %v5418_v7 = vld [vmem:[#allocation5 + $0x298] sm:$0xff]  ;;  %v13086_v51 = vpack.c.bf16 %v5420_v63, %v5416_v4  ;;  %v5445_v4 = vld [vmem:[#allocation5 + $0x370] sm:$0xff] }
0x1324   :  { %4940 = vst [vmem:[#allocation3 + $0x1] sm:$0x1] %v4939_v57  ;;  %5070 = vmatmul.mubr.f32.vlgmr.msra.gmra.mrb[42].mxu0 %v4939_v57  ;;  %5141 = vmatmul.mubr.f32.vlgmr.msra.gmra.mrb[42].mxu1 %v4939_v57  ;;  %v5422_v57 = vld [vmem:[#allocation5 + $0x2b8] sm:$0xff] }
0x1325   :  { %10205 = vmatpush1.bf16.msra.mxu0 %v12827_v17  ;;  %10237 = vmatpush1.bf16.msra.mxu1 %v12830_v15 }
0x1326   :  { %10207 = vmatprep.subr.bf16.mxu0 %v12832_v36  ;;  %10239 = vmatprep.subr.bf16.mxu1 %v12835_v38 }
0x1327   :  { %5298 = vmatprep.mubr.f32.mxu0 %v11691_v10  ;;  %5369 = vmatprep.mubr.f32.mxu1 %v11691_v10 }
0x1329   :  { %10209 = vmatpush1.bf16.msra.mxu0 %v12838_v30  ;;  %10241 = vmatpush1.bf16.msra.mxu1 %v12842_v23 }
0x132a   :  { %10211 = vmatprep.subr.bf16.mxu0 %v12844_v2  ;;  %10243 = vmatprep.subr.bf16.mxu1 %v12847_v46 }
0x132d   :  { %10213 = vmatpush1.bf16.msra.mxu0 %v12852_v1  ;;  %10245 = vmatpush1.bf16.msra.mxu1 %v12856_v8 }
0x132e   :  { %10215 = vmatprep.subr.bf16.mxu0 %v12858_v16  ;;  %10247 = vmatprep.subr.bf16.mxu1 %v12861_v58 }
0x1331   :  { %10217 = vmatpush1.bf16.msra.mxu0 %v12864_v32  ;;  %10249 = vmatpush1.bf16.msra.mxu1 %v12868_v3 }
0x1332   :  { %10219 = vmatprep.subr.bf16.mxu0 %v12870_v21  ;;  %10251 = vmatprep.subr.bf16.mxu1 %v12873_v44 }
0x1335   :  { %10221 = vmatpush1.bf16.msra.mxu0 %v12876_v59  ;;  %10253 = vmatpush1.bf16.msra.mxu1 %v12880_v12 }
0x1336   :  { %10223 = vmatprep.subr.bf16.mxu0 %v12882_v42  ;;  %10255 = vmatprep.subr.bf16.mxu1 %v12885_v50 }
0x1339   :  { %10225 = vmatpush1.bf16.msra.mxu0 %v12888_v26  ;;  %10257 = vmatpush1.bf16.msra.mxu1 %v12892_v52 }
0x133a   :  { %10227 = vmatprep.subr.bf16.mxu0 %v12894_v25  ;;  %10259 = vmatprep.subr.bf16.mxu1 %v12897_v18 }
0x133d   :  { %10229 = vmatpush1.bf16.msra.mxu0 %v12900_v53  ;;  %10261 = vmatpush1.bf16.msra.mxu1 %v12904_v31 }
0x133e   :  { %10231 = vmatprep.subr.bf16.mxu0 %v12906_v43  ;;  %10263 = vmatprep.subr.bf16.mxu1 %v12909_v39  ;;  %v5400_v43 = vld [vmem:[#allocation5 + $0x208] sm:$0xff] }
0x133f   :  { %v5404_v39 = vld [vmem:[#allocation5 + $0x228] sm:$0xff] }
0x1341   :  { %10233 = vmatpush1.bf16.msra.mxu0 %v12912_v29  ;;  %10265 = vmatpush1.bf16.msra.mxu1 %v12916_v45  ;;  %v5402_v29 = vld [vmem:[#allocation5 + $0x218] sm:$0xff]  ;;  %v13062_v45 = vpack.c.bf16 %v5404_v39, %v5400_v43  ;;  %v5435_v43 = vld [vmem:[#allocation5 + $0x320] sm:$0xff] }
0x1342   :  { %v13064_v0 = vpack.c.bf16 %v5406_v22, %v5402_v29  ;;  %v5433_v22 = vld [vmem:[#allocation5 + $0x310] sm:$0xff] }
0x1343   :  { %10267 = vmatprep.subr.bf16.mxu0 %v13062_v45  ;;  %v13117_v19 = vpack.c.bf16 %v5437_v5, %v5433_v22  ;;  %v5457_v5 = vld [vmem:[#allocation5 + $0x3d0] sm:$0xff] }
0x1344   :  { %10299 = vmatprep.subr.bf16.mxu1 %v13064_v0  ;;  %v13153_v28 = vpack.c.bf16 %v5461_v11, %v5457_v5 }
0x13f7   :  { %v5071_v17 = vpop.f32.mrb[42].mxu0  ;;  %v5142_v15 = vpop.f32.mrb[42].mxu1 }
0x13f8   :  { %v5147_v36 = vadd.f32 %v5071_v17, %v12961_v40  ;;  %v5073_v38 = vpop.f32.mrb[43].mxu0  ;;  %v5144_v30 = vpop.f32.mrb[43].mxu1  ;;  %v5149_v1 = vadd.f32 %v5142_v15, %v12968_v6  ;;  %v5415_v17 = vld [vmem:[#allocation5 + $0x280] sm:$0xff] }
0x13f9   :  { %v5148_v23 = vadd.f32 %v5073_v38, %v12964_v62  ;;  %v5150_v8 = vadd.f32 %v5144_v30, %v12972_v56  ;;  %v5419_v15 = vld [vmem:[#allocation5 + $0x2a0] sm:$0xff]  ;;  %v5417_v30 = vld [vmem:[#allocation5 + $0x290] sm:$0xff] }
0x13fa   :  { %v5151_v2 = vmul.f32 0.5, %v5147_v36  ;;  %v13088_v36 = vpack.c.bf16 %v5422_v57, %v5418_v7  ;;  %v13090_v38 = vpack.c.bf16 %v5419_v15, %v5415_v17  ;;  %v5448_v7 = vld [vmem:[#allocation5 + $0x388] sm:$0xff]  ;;  %v5450_v17 = vld [vmem:[#allocation5 + $0x398] sm:$0xff] }
0x13fb   :  { %v5155_v46 = vmul.f32 0.5, %v5148_v23  ;;  %v5160_v16 = vmul.f32 0.5, %v5150_v8  ;;  %v5421_v23 = vld [vmem:[#allocation5 + $0x2b0] sm:$0xff]  ;;  %v5426_v8 = vld [vmem:[#allocation5 + $0x2d8] sm:$0xff]  ;;  %v5452_v57 = vld [vmem:[#allocation5 + $0x3a8] sm:$0xff] }
0x13fc   :  { %11316 = vtanh.f32 %v5151_v2  ;;  %v13093_v2 = vpack.c.bf16 %v5421_v23, %v5417_v30  ;;  %v13134_v15 = vpack.c.bf16 %v5452_v57, %v5448_v7  ;;  %v5454_v30 = vld [vmem:[#allocation5 + $0x3b8] sm:$0xff]  ;;  %v5447_v23 = vld [vmem:[#allocation5 + $0x380] sm:$0xff] }
0x13fd   :  { %11318 = vtanh.f32 %v5155_v46  ;;  %v5424_v46 = vld [vmem:[#allocation5 + $0x2c8] sm:$0xff] }
0x13fe   :  { %11320 = vtanh.f32 %v5149_v1  ;;  %v5428_v1 = vld [vmem:[#allocation5 + $0x2e8] sm:$0xff] }
0x13ff   :  { %11322 = vtanh.f32 %v5160_v16  ;;  %v13098_v16 = vpack.c.bf16 %v5428_v1, %v5424_v46  ;;  %v5451_v46 = vld [vmem:[#allocation5 + $0x3a0] sm:$0xff]  ;;  %v13136_v1 = vpack.c.bf16 %v5454_v30, %v5450_v17 }
0x1406   :  { %v11317_v58 = vpop.eup %11316 }
0x1407   :  { %v11319_v32 = vpop.eup %11318  ;;  %v5153_v3 = vmul.f32 0.5, %v11317_v58  ;;  %v5430_v58 = vld [vmem:[#allocation5 + $0x2f8] sm:$0xff] }
0x1408   :  { %v5157_v21 = vmul.f32 0.5, %v11319_v32  ;;  %v11321_v59 = vpop.eup %11320  ;;  %v5423_v32 = vld [vmem:[#allocation5 + $0x2c0] sm:$0xff] }
0x1409   :  { %v5154_v44 = vadd.f32 0.5, %v5153_v3  ;;  %v11323_v52 = vpop.eup %11322  ;;  %v5427_v3 = vld [vmem:[#allocation5 + $0x2e0] sm:$0xff] }
0x140a   :  { %v5158_v12 = vadd.f32 0.5, %v5157_v21  ;;  %v5162_v25 = vmul.f32 0.5, %v11323_v52  ;;  %v13100_v21 = vpack.c.bf16 %v5430_v58, %v5426_v8  ;;  %v5436_v52 = vld [vmem:[#allocation5 + $0x328] sm:$0xff]  ;;  %v13138_v8 = vpack.c.bf16 %v5451_v46, %v5447_v23  ;;  %v5449_v58 = vld [vmem:[#allocation5 + $0x390] sm:$0xff] }
0x140b   :  { %v5165_v42 = vmul.f32 %v11321_v59, %v5154_v44  ;;  %v13102_v44 = vpack.c.bf16 %v5427_v3, %v5423_v32  ;;  %v5425_v59 = vld [vmem:[#allocation5 + $0x2d0] sm:$0xff] }
0x140c   :  { %v5164_v50 = vmul.f32 %v5158_v12, %v13017_v49  ;;  %v5163_v18 = vadd.f32 0.5, %v5162_v25  ;;  %v13081_v49 = vpack.c.bf16 %v5413_v54, %v5409_v60  ;;  %v5429_v12 = vld [vmem:[#allocation5 + $0x2f0] sm:$0xff]  ;;  %v5434_v25 = vld [vmem:[#allocation5 + $0x318] sm:$0xff]  ;;  %v13126_v60 = vpack.c.bf16 %v5443_v13, %v5439_v9 }
0x140d   :  { %v5441_v54 = vld [vmem:[#allocation5 + $0x350] sm:$0xff] }
0x140e   :  { %v13057_v26 = vadd.f32 %v5165_v42, %v5164_v50  ;;  %v13105_v42 = vpack.c.bf16 %v5429_v12, %v5425_v59  ;;  %v5432_v50 = vld [vmem:[#allocation5 + $0x308] sm:$0xff]  ;;  %v13129_v63 = vpack.c.bf16 %v5445_v4, %v5441_v54  ;;  %v5453_v32 = vld [vmem:[#allocation5 + $0x3b0] sm:$0xff] }
0x140f   :  { %v13141_v3 = vpack.c.bf16 %v5453_v32, %v5449_v58  ;;  %v5456_v59 = vld [vmem:[#allocation5 + $0x3c8] sm:$0xff] }
0x1410   :  { %11324 = vtanh.f32 %v13057_v26  ;;  %v5460_v12 = vld [vmem:[#allocation5 + $0x3e8] sm:$0xff] }
0x141a   :  { %v11325_v53 = vpop.eup %11324 }
0x141b   :  { %v5168_v31 = vmul.f32 %v11325_v53, %v5163_v18  ;;  %v13110_v18 = vpack.c.bf16 %v5436_v52, %v5432_v50  ;;  %v5438_v53 = vld [vmem:[#allocation5 + $0x338] sm:$0xff]  ;;  %v13146_v52 = vpack.c.bf16 %v5460_v12, %v5456_v59 }
0x141c   :  { %v13112_v39 = vpack.c.bf16 %v5438_v53, %v5434_v25  ;;  %v5458_v50 = vld [vmem:[#allocation5 + $0x3d8] sm:$0xff]  ;;  %v5455_v53 = vld [vmem:[#allocation5 + $0x3c0] sm:$0xff] }
0x141d   :  { %5169 = vst [vmem:[#allocation3 + $0x2] sm:$0x1] %v5168_v31  ;;  %5299 = vmatmul.mubr.f32.vlgmr.msra.gmra.mrb[44].mxu0 %v5168_v31  ;;  %5370 = vmatmul.mubr.f32.vlgmr.msra.gmra.mrb[44].mxu1 %v5168_v31  ;;  %v5431_v31 = vld [vmem:[#allocation5 + $0x300] sm:$0xff]  ;;  %v5462_v25 = vld [vmem:[#allocation5 + $0x3f8] sm:$0xff] }
0x141e   :  { %5527 = vmatprep.mubr.f32.mxu0 %v11691_v10  ;;  %5598 = vmatprep.mubr.f32.mxu1 %v11691_v10  ;;  %v13114_v29 = vpack.c.bf16 %v5435_v43, %v5431_v31  ;;  %v5459_v31 = vld [vmem:[#allocation5 + $0x3e0] sm:$0xff]  ;;  %v13148_v43 = vpack.c.bf16 %v5462_v25, %v5458_v50 }
0x141f   :  { %10269 = vmatpush1.bf16.msra.mxu0 %v13066_v20  ;;  %10301 = vmatpush1.bf16.msra.mxu1 %v13069_v24  ;;  %v13150_v22 = vpack.c.bf16 %v5459_v31, %v5455_v53 }
0x1420   :  { %10271 = vmatprep.subr.bf16.mxu0 %v13074_v48  ;;  %10303 = vmatprep.subr.bf16.mxu1 %v13076_v34 }
0x1423   :  { %10273 = vmatpush1.bf16.msra.mxu0 %v13078_v27  ;;  %10305 = vmatpush1.bf16.msra.mxu1 %v13081_v49 }
0x1424   :  { %10275 = vmatprep.subr.bf16.mxu0 %v13086_v51  ;;  %10307 = vmatprep.subr.bf16.mxu1 %v13088_v36 }
0x1427   :  { %10277 = vmatpush1.bf16.msra.mxu0 %v13090_v38  ;;  %10309 = vmatpush1.bf16.msra.mxu1 %v13093_v2 }
0x1428   :  { %10279 = vmatprep.subr.bf16.mxu0 %v13098_v16  ;;  %10311 = vmatprep.subr.bf16.mxu1 %v13100_v21 }
0x142b   :  { %10281 = vmatpush1.bf16.msra.mxu0 %v13102_v44  ;;  %10313 = vmatpush1.bf16.msra.mxu1 %v13105_v42 }
0x142c   :  { %10283 = vmatprep.subr.bf16.mxu0 %v13110_v18  ;;  %10315 = vmatprep.subr.bf16.mxu1 %v13112_v39 }
0x142f   :  { %10285 = vmatpush1.bf16.msra.mxu0 %v13114_v29  ;;  %10317 = vmatpush1.bf16.msra.mxu1 %v13117_v19 }
0x1430   :  { %10287 = vmatprep.subr.bf16.mxu0 %v13122_v61  ;;  %10319 = vmatprep.subr.bf16.mxu1 %v13124_v41 }
0x1433   :  { %10289 = vmatpush1.bf16.msra.mxu0 %v13126_v60  ;;  %10321 = vmatpush1.bf16.msra.mxu1 %v13129_v63 }
0x1434   :  { %10291 = vmatprep.subr.bf16.mxu0 %v13134_v15  ;;  %10323 = vmatprep.subr.bf16.mxu1 %v13136_v1 }
0x1437   :  { %10293 = vmatpush1.bf16.msra.mxu0 %v13138_v8  ;;  %10325 = vmatpush1.bf16.msra.mxu1 %v13141_v3 }
0x1438   :  { %10295 = vmatprep.subr.bf16.mxu0 %v13146_v52  ;;  %10327 = vmatprep.subr.bf16.mxu1 %v13148_v43 }
0x143b   :  { %10297 = vmatpush1.bf16.msra.mxu0 %v13150_v22  ;;  %10329 = vmatpush1.bf16.msra.mxu1 %v13153_v28 }
0x143c   :  { %10331 = vmatprep.subr.bf16.mxu0 %v13062_v45  ;;  %10363 = vmatprep.subr.bf16.mxu1 %v13064_v0 }
0x14f0   :  { %v5300_v14 = vpop.f32.mrb[44].mxu0  ;;  %v5371_v55 = vpop.f32.mrb[44].mxu1 }
0x14f1   :  { %v5376_v9 = vadd.f32 %v5300_v14, %v12961_v40  ;;  %v5302_v13 = vpop.f32.mrb[45].mxu0  ;;  %v5373_v54 = vpop.f32.mrb[45].mxu1  ;;  %v5378_v17 = vadd.f32 %v5371_v55, %v12968_v6 }
0x14f2   :  { %v5377_v4 = vadd.f32 %v5302_v13, %v12964_v62  ;;  %v5379_v30 = vadd.f32 %v5373_v54, %v12972_v56 }
0x14f3   :  { %v5380_v7 = vmul.f32 0.5, %v5376_v9 }
0x14f4   :  { %v5384_v57 = vmul.f32 0.5, %v5377_v4  ;;  %v5389_v23 = vmul.f32 0.5, %v5379_v30 }
0x14f5   :  { %11326 = vtanh.f32 %v5380_v7 }
0x14f6   :  { %11328 = vtanh.f32 %v5384_v57 }
0x14f7   :  { %11330 = vtanh.f32 %v5378_v17 }
0x14f8   :  { %11332 = vtanh.f32 %v5389_v23 }
0x14ff   :  { %v11327_v46 = vpop.eup %11326 }
0x1500   :  { %v11329_v58 = vpop.eup %11328  ;;  %v5382_v32 = vmul.f32 0.5, %v11327_v46 }
0x1501   :  { %v5386_v59 = vmul.f32 0.5, %v11329_v58  ;;  %v11331_v50 = vpop.eup %11330 }
0x1502   :  { %v5383_v12 = vadd.f32 0.5, %v5382_v32  ;;  %v11333_v11 = vpop.eup %11332 }
0x1503   :  { %v5387_v25 = vadd.f32 0.5, %v5386_v59  ;;  %v5391_v14 = vmul.f32 0.5, %v11333_v11 }
0x1504   :  { %v5394_v53 = vmul.f32 %v11331_v50, %v5383_v12 }
0x1505   :  { %v5393_v31 = vmul.f32 %v5387_v25, %v13057_v26  ;;  %v5392_v55 = vadd.f32 0.5, %v5391_v14 }
0x1507   :  { %v13165_v5 = vadd.f32 %v5394_v53, %v5393_v31 }
0x1509   :  { %11334 = vtanh.f32 %v13165_v5 }
0x1513   :  { %v11335_v9 = vpop.eup %11334 }
0x1514   :  { %v5397_v13 = vmul.f32 %v11335_v9, %v5392_v55 }
0x1516   :  { %5398 = vst [vmem:[#allocation3 + $0x3] sm:$0x1] %v5397_v13  ;;  %5528 = vmatmul.mubr.f32.vlgmr.msra.gmra.mrb[46].mxu0 %v5397_v13  ;;  %5599 = vmatmul.mubr.f32.vlgmr.msra.gmra.mrb[46].mxu1 %v5397_v13 }
0x1517   :  { %10333 = vmatpush1.bf16.msra.mxu0 %v13066_v20  ;;  %10365 = vmatpush1.bf16.msra.mxu1 %v13069_v24 }
0x1518   :  { %10335 = vmatprep.subr.bf16.mxu0 %v13074_v48  ;;  %10367 = vmatprep.subr.bf16.mxu1 %v13076_v34 }
0x1519   :  { %5756 = vmatprep.mubr.f32.mxu0 %v11691_v10  ;;  %5827 = vmatprep.mubr.f32.mxu1 %v11691_v10 }
0x151b   :  { %10337 = vmatpush1.bf16.msra.mxu0 %v13078_v27  ;;  %10369 = vmatpush1.bf16.msra.mxu1 %v13081_v49 }
0x151c   :  { %10339 = vmatprep.subr.bf16.mxu0 %v13086_v51  ;;  %10371 = vmatprep.subr.bf16.mxu1 %v13088_v36 }
0x151f   :  { %10341 = vmatpush1.bf16.msra.mxu0 %v13090_v38  ;;  %10373 = vmatpush1.bf16.msra.mxu1 %v13093_v2 }
0x1520   :  { %10343 = vmatprep.subr.bf16.mxu0 %v13098_v16  ;;  %10375 = vmatprep.subr.bf16.mxu1 %v13100_v21 }
0x1523   :  { %10345 = vmatpush1.bf16.msra.mxu0 %v13102_v44  ;;  %10377 = vmatpush1.bf16.msra.mxu1 %v13105_v42 }
0x1524   :  { %10347 = vmatprep.subr.bf16.mxu0 %v13110_v18  ;;  %10379 = vmatprep.subr.bf16.mxu1 %v13112_v39 }
0x1527   :  { %10349 = vmatpush1.bf16.msra.mxu0 %v13114_v29  ;;  %10381 = vmatpush1.bf16.msra.mxu1 %v13117_v19 }
0x1528   :  { %10351 = vmatprep.subr.bf16.mxu0 %v13122_v61  ;;  %10383 = vmatprep.subr.bf16.mxu1 %v13124_v41 }
0x152b   :  { %10353 = vmatpush1.bf16.msra.mxu0 %v13126_v60  ;;  %10385 = vmatpush1.bf16.msra.mxu1 %v13129_v63 }
0x152c   :  { %10355 = vmatprep.subr.bf16.mxu0 %v13134_v15  ;;  %10387 = vmatprep.subr.bf16.mxu1 %v13136_v1 }
0x152f   :  { %10357 = vmatpush1.bf16.msra.mxu0 %v13138_v8  ;;  %10389 = vmatpush1.bf16.msra.mxu1 %v13141_v3 }
0x1530   :  { %10359 = vmatprep.subr.bf16.mxu0 %v13146_v52  ;;  %10391 = vmatprep.subr.bf16.mxu1 %v13148_v43 }
0x1533   :  { %10361 = vmatpush1.bf16.msra.mxu0 %v13150_v22  ;;  %10393 = vmatpush1.bf16.msra.mxu1 %v13153_v28 }
0x1534   :  { %10395 = vmatprep.subr.bf16.mxu0 %v13062_v45  ;;  %10427 = vmatprep.subr.bf16.mxu1 %v13064_v0 }
0x15e9   :  { %v5529_v26 = vpop.f32.mrb[46].mxu0  ;;  %v5600_v54 = vpop.f32.mrb[46].mxu1 }
0x15ea   :  { %v5605_v4 = vadd.f32 %v5529_v26, %v12961_v40  ;;  %v5531_v7 = vpop.f32.mrb[47].mxu0  ;;  %v5602_v57 = vpop.f32.mrb[47].mxu1  ;;  %v5607_v46 = vadd.f32 %v5600_v54, %v12968_v6 }
0x15eb   :  { %v5606_v17 = vadd.f32 %v5531_v7, %v12964_v62  ;;  %v5608_v58 = vadd.f32 %v5602_v57, %v12972_v56 }
0x15ec   :  { %v5609_v30 = vmul.f32 0.5, %v5605_v4 }
0x15ed   :  { %v5613_v23 = vmul.f32 0.5, %v5606_v17  ;;  %v5618_v32 = vmul.f32 0.5, %v5608_v58 }
0x15ee   :  { %11336 = vtanh.f32 %v5609_v30 }
0x15ef   :  { %11338 = vtanh.f32 %v5613_v23 }
0x15f0   :  { %11340 = vtanh.f32 %v5607_v46 }
0x15f1   :  { %11342 = vtanh.f32 %v5618_v32 }
0x15f8   :  { %v11337_v59 = vpop.eup %11336 }
0x15f9   :  { %v11339_v12 = vpop.eup %11338  ;;  %v5611_v50 = vmul.f32 0.5, %v11337_v59 }
0x15fa   :  { %v5615_v25 = vmul.f32 0.5, %v11339_v12  ;;  %v11341_v31 = vpop.eup %11340 }
0x15fb   :  { %v5612_v53 = vadd.f32 0.5, %v5611_v50  ;;  %v11343_v13 = vpop.eup %11342 }
0x15fc   :  { %v5616_v11 = vadd.f32 0.5, %v5615_v25  ;;  %v5620_v26 = vmul.f32 0.5, %v11343_v13 }
0x15fd   :  { %v5623_v14 = vmul.f32 %v11341_v31, %v5612_v53 }
0x15fe   :  { %v5622_v55 = vmul.f32 %v5616_v11, %v13165_v5  ;;  %v5621_v54 = vadd.f32 0.5, %v5620_v26 }
0x1600   :  { %v13207_v9 = vadd.f32 %v5623_v14, %v5622_v55 }
0x1602   :  { %11344 = vtanh.f32 %v13207_v9 }
0x160c   :  { %v11345_v4 = vpop.eup %11344 }
0x160d   :  { %v5626_v7 = vmul.f32 %v11345_v4, %v5621_v54 }
0x160f   :  { %5627 = vst [vmem:[#allocation3 + $0x4] sm:$0x1] %v5626_v7  ;;  %5757 = vmatmul.mubr.f32.vlgmr.msra.gmra.mrb[48].mxu0 %v5626_v7  ;;  %5828 = vmatmul.mubr.f32.vlgmr.msra.gmra.mrb[48].mxu1 %v5626_v7 }
0x1610   :  { %10397 = vmatpush1.bf16.msra.mxu0 %v13066_v20  ;;  %10429 = vmatpush1.bf16.msra.mxu1 %v13069_v24 }
0x1611   :  { %10399 = vmatprep.subr.bf16.mxu0 %v13074_v48  ;;  %10431 = vmatprep.subr.bf16.mxu1 %v13076_v34 }
0x1612   :  { %5985 = vmatprep.mubr.f32.mxu0 %v11691_v10  ;;  %6056 = vmatprep.mubr.f32.mxu1 %v11691_v10 }
0x1614   :  { %10401 = vmatpush1.bf16.msra.mxu0 %v13078_v27  ;;  %10433 = vmatpush1.bf16.msra.mxu1 %v13081_v49 }
0x1615   :  { %10403 = vmatprep.subr.bf16.mxu0 %v13086_v51  ;;  %10435 = vmatprep.subr.bf16.mxu1 %v13088_v36 }
0x1618   :  { %10405 = vmatpush1.bf16.msra.mxu0 %v13090_v38  ;;  %10437 = vmatpush1.bf16.msra.mxu1 %v13093_v2 }
0x1619   :  { %10407 = vmatprep.subr.bf16.mxu0 %v13098_v16  ;;  %10439 = vmatprep.subr.bf16.mxu1 %v13100_v21 }
0x161c   :  { %10409 = vmatpush1.bf16.msra.mxu0 %v13102_v44  ;;  %10441 = vmatpush1.bf16.msra.mxu1 %v13105_v42 }
0x161d   :  { %10411 = vmatprep.subr.bf16.mxu0 %v13110_v18  ;;  %10443 = vmatprep.subr.bf16.mxu1 %v13112_v39 }
0x1620   :  { %10413 = vmatpush1.bf16.msra.mxu0 %v13114_v29  ;;  %10445 = vmatpush1.bf16.msra.mxu1 %v13117_v19 }
0x1621   :  { %10415 = vmatprep.subr.bf16.mxu0 %v13122_v61  ;;  %10447 = vmatprep.subr.bf16.mxu1 %v13124_v41 }
0x1624   :  { %10417 = vmatpush1.bf16.msra.mxu0 %v13126_v60  ;;  %10449 = vmatpush1.bf16.msra.mxu1 %v13129_v63 }
0x1625   :  { %10419 = vmatprep.subr.bf16.mxu0 %v13134_v15  ;;  %10451 = vmatprep.subr.bf16.mxu1 %v13136_v1 }
0x1628   :  { %10421 = vmatpush1.bf16.msra.mxu0 %v13138_v8  ;;  %10453 = vmatpush1.bf16.msra.mxu1 %v13141_v3 }
0x1629   :  { %10423 = vmatprep.subr.bf16.mxu0 %v13146_v52  ;;  %10455 = vmatprep.subr.bf16.mxu1 %v13148_v43 }
0x162c   :  { %10425 = vmatpush1.bf16.msra.mxu0 %v13150_v22  ;;  %10457 = vmatpush1.bf16.msra.mxu1 %v13153_v28 }
0x162d   :  { %10459 = vmatprep.subr.bf16.mxu0 %v13062_v45  ;;  %10491 = vmatprep.subr.bf16.mxu1 %v13064_v0 }
0x16e2   :  { %v5758_v5 = vpop.f32.mrb[48].mxu0  ;;  %v5829_v57 = vpop.f32.mrb[48].mxu1 }
0x16e3   :  { %v5834_v17 = vadd.f32 %v5758_v5, %v12961_v40  ;;  %v5760_v30 = vpop.f32.mrb[49].mxu0  ;;  %v5831_v23 = vpop.f32.mrb[49].mxu1  ;;  %v5836_v59 = vadd.f32 %v5829_v57, %v12968_v6 }
0x16e4   :  { %v5835_v46 = vadd.f32 %v5760_v30, %v12964_v62  ;;  %v5837_v12 = vadd.f32 %v5831_v23, %v12972_v56 }
0x16e5   :  { %v5838_v58 = vmul.f32 0.5, %v5834_v17 }
0x16e6   :  { %v5842_v32 = vmul.f32 0.5, %v5835_v46  ;;  %v5847_v45 = vmul.f32 0.5, %v5837_v12 }
0x16e7   :  { %11346 = vtanh.f32 %v5838_v58 }
0x16e8   :  { %11348 = vtanh.f32 %v5842_v32 }
0x16e9   :  { %11350 = vtanh.f32 %v5836_v59 }
0x16ea   :  { %11352 = vtanh.f32 %v5847_v45 }
0x16f1   :  { %v11347_v50 = vpop.eup %11346 }
0x16f2   :  { %v11349_v0 = vpop.eup %11348  ;;  %v5840_v25 = vmul.f32 0.5, %v11347_v50 }
0x16f3   :  { %v5844_v53 = vmul.f32 0.5, %v11349_v0  ;;  %v11351_v11 = vpop.eup %11350 }
0x16f4   :  { %v5841_v31 = vadd.f32 0.5, %v5840_v25  ;;  %v11353_v54 = vpop.eup %11352 }
0x16f5   :  { %v5845_v14 = vadd.f32 0.5, %v5844_v53  ;;  %v5849_v4 = vmul.f32 0.5, %v11353_v54 }
0x16f6   :  { %v5852_v55 = vmul.f32 %v11351_v11, %v5841_v31 }
0x16f7   :  { %v5851_v13 = vmul.f32 %v5845_v14, %v13207_v9  ;;  %v5850_v7 = vadd.f32 0.5, %v5849_v4 }
0x16f9   :  { %v13249_v26 = vadd.f32 %v5852_v55, %v5851_v13 }
0x16fb   :  { %11354 = vtanh.f32 %v13249_v26 }
0x1705   :  { %v11355_v5 = vpop.eup %11354 }
0x1706   :  { %v5855_v57 = vmul.f32 %v11355_v5, %v5850_v7 }
0x1708   :  { %5856 = vst [vmem:[#allocation3 + $0x5] sm:$0x1] %v5855_v57  ;;  %5986 = vmatmul.mubr.f32.vlgmr.msra.gmra.mrb[50].mxu0 %v5855_v57  ;;  %6057 = vmatmul.mubr.f32.vlgmr.msra.gmra.mrb[50].mxu1 %v5855_v57 }
0x1709   :  { %10461 = vmatpush1.bf16.msra.mxu0 %v13066_v20  ;;  %10493 = vmatpush1.bf16.msra.mxu1 %v13069_v24 }
0x170a   :  { %10463 = vmatprep.subr.bf16.mxu0 %v13074_v48  ;;  %10495 = vmatprep.subr.bf16.mxu1 %v13076_v34 }
0x170b   :  { %6214 = vmatprep.mubr.f32.mxu0 %v11691_v10  ;;  %6285 = vmatprep.mubr.f32.mxu1 %v11691_v10 }
0x170d   :  { %10465 = vmatpush1.bf16.msra.mxu0 %v13078_v27  ;;  %10497 = vmatpush1.bf16.msra.mxu1 %v13081_v49 }
0x170e   :  { %10467 = vmatprep.subr.bf16.mxu0 %v13086_v51  ;;  %10499 = vmatprep.subr.bf16.mxu1 %v13088_v36 }
0x1711   :  { %10469 = vmatpush1.bf16.msra.mxu0 %v13090_v38  ;;  %10501 = vmatpush1.bf16.msra.mxu1 %v13093_v2 }
0x1712   :  { %10471 = vmatprep.subr.bf16.mxu0 %v13098_v16  ;;  %10503 = vmatprep.subr.bf16.mxu1 %v13100_v21 }
0x1715   :  { %10473 = vmatpush1.bf16.msra.mxu0 %v13102_v44  ;;  %10505 = vmatpush1.bf16.msra.mxu1 %v13105_v42 }
0x1716   :  { %10475 = vmatprep.subr.bf16.mxu0 %v13110_v18  ;;  %10507 = vmatprep.subr.bf16.mxu1 %v13112_v39 }
0x1719   :  { %10477 = vmatpush1.bf16.msra.mxu0 %v13114_v29  ;;  %10509 = vmatpush1.bf16.msra.mxu1 %v13117_v19 }
0x171a   :  { %10479 = vmatprep.subr.bf16.mxu0 %v13122_v61  ;;  %10511 = vmatprep.subr.bf16.mxu1 %v13124_v41 }
0x171d   :  { %10481 = vmatpush1.bf16.msra.mxu0 %v13126_v60  ;;  %10513 = vmatpush1.bf16.msra.mxu1 %v13129_v63 }
0x171e   :  { %10483 = vmatprep.subr.bf16.mxu0 %v13134_v15  ;;  %10515 = vmatprep.subr.bf16.mxu1 %v13136_v1 }
0x1721   :  { %10485 = vmatpush1.bf16.msra.mxu0 %v13138_v8  ;;  %10517 = vmatpush1.bf16.msra.mxu1 %v13141_v3 }
0x1722   :  { %10487 = vmatprep.subr.bf16.mxu0 %v13146_v52  ;;  %10519 = vmatprep.subr.bf16.mxu1 %v13148_v43 }
0x1725   :  { %10489 = vmatpush1.bf16.msra.mxu0 %v13150_v22  ;;  %10521 = vmatpush1.bf16.msra.mxu1 %v13153_v28 }
0x17db   :  { %v5987_v20 = vpop.f32.mrb[50].mxu0  ;;  %v6058_v24 = vpop.f32.mrb[50].mxu1 }
0x17dc   :  { %v6063_v48 = vadd.f32 %v5987_v20, %v12961_v40  ;;  %v5989_v34 = vpop.f32.mrb[51].mxu0  ;;  %v6060_v27 = vpop.f32.mrb[51].mxu1  ;;  %v6065_v38 = vadd.f32 %v6058_v24, %v12968_v6 }
0x17dd   :  { %v6064_v49 = vadd.f32 %v5989_v34, %v12964_v62  ;;  %v6066_v2 = vadd.f32 %v6060_v27, %v12972_v56 }
0x17de   :  { %v6067_v51 = vmul.f32 0.5, %v6063_v48 }
0x17df   :  { %v6071_v36 = vmul.f32 0.5, %v6064_v49  ;;  %v6076_v16 = vmul.f32 0.5, %v6066_v2 }
0x17e0   :  { %11356 = vtanh.f32 %v6067_v51 }
0x17e1   :  { %11358 = vtanh.f32 %v6071_v36 }
0x17e2   :  { %11360 = vtanh.f32 %v6065_v38 }
0x17e3   :  { %11362 = vtanh.f32 %v6076_v16 }
0x17ea   :  { %v11357_v21 = vpop.eup %11356 }
0x17eb   :  { %v11359_v44 = vpop.eup %11358  ;;  %v6069_v42 = vmul.f32 0.5, %v11357_v21 }
0x17ec   :  { %v6073_v18 = vmul.f32 0.5, %v11359_v44  ;;  %v11361_v29 = vpop.eup %11360 }
0x17ed   :  { %v6070_v39 = vadd.f32 0.5, %v6069_v42  ;;  %v11363_v63 = vpop.eup %11362 }
0x17ee   :  { %v6074_v19 = vadd.f32 0.5, %v6073_v18  ;;  %v6078_v15 = vmul.f32 0.5, %v11363_v63 }
0x17ef   :  { %v6081_v61 = vmul.f32 %v11361_v29, %v6070_v39 }
0x17f0   :  { %v6080_v41 = vmul.f32 %v6074_v19, %v13249_v26  ;;  %v6079_v1 = vadd.f32 0.5, %v6078_v15 }
0x17f2   :  { %v6082_v60 = vadd.f32 %v6081_v61, %v6080_v41 }
0x17f4   :  { %11364 = vtanh.f32 %v6082_v60 }
0x17fe   :  { %v11365_v8 = vpop.eup %11364 }
0x17ff   :  { %v6084_v3 = vmul.f32 %v11365_v8, %v6079_v1 }
0x1801   :  { %6085 = vst [vmem:[#allocation3 + $0x6] sm:$0x1] %v6084_v3  ;;  %6215 = vmatmul.mubr.f32.vlgmr.msra.gmra.mrb[52].mxu0 %v6084_v3  ;;  %6286 = vmatmul.mubr.f32.vlgmr.msra.gmra.mrb[52].mxu1 %v6084_v3 }
0x18d4   :  { %v6216_v52 = vpop.f32.mrb[52].mxu0  ;;  %v6287_v43 = vpop.f32.mrb[52].mxu1 }
0x18d5   :  { %v6292_v22 = vadd.f32 %v6216_v52, %v12961_v40  ;;  %v6218_v28 = vpop.f32.mrb[53].mxu0  ;;  %v6289_v9 = vpop.f32.mrb[53].mxu1  ;;  %v6294_v46 = vadd.f32 %v6287_v43, %v12968_v6 }
0x18d6   :  { %v6293_v17 = vadd.f32 %v6218_v28, %v12964_v62  ;;  %v6295_v58 = vadd.f32 %v6289_v9, %v12972_v56 }
0x18d7   :  { %v6296_v30 = vmul.f32 0.5, %v6292_v22 }
0x18d8   :  { %v6300_v23 = vmul.f32 0.5, %v6293_v17  ;;  %v6305_v32 = vmul.f32 0.5, %v6295_v58 }
0x18d9   :  { %11366 = vtanh.f32 %v6296_v30 }
0x18da   :  { %11368 = vtanh.f32 %v6300_v23 }
0x18db   :  { %11370 = vtanh.f32 %v6294_v46 }
0x18dc   :  { %11372 = vtanh.f32 %v6305_v32 }
0x18e3   :  { %v11367_v59 = vpop.eup %11366 }
0x18e4   :  { %v11369_v12 = vpop.eup %11368  ;;  %v6298_v45 = vmul.f32 0.5, %v11367_v59 }
0x18e5   :  { %v6302_v50 = vmul.f32 0.5, %v11369_v12  ;;  %v11371_v0 = vpop.eup %11370 }
0x18e6   :  { %v6299_v40 = vadd.f32 0.5, %v6298_v45  ;;  %v11373_v11 = vpop.eup %11372 }
0x18e7   :  { %v6303_v25 = vadd.f32 0.5, %v6302_v50  ;;  %v6307_v14 = vmul.f32 0.5, %v11373_v11 }
0x18e8   :  { %v6310_v53 = vmul.f32 %v11371_v0, %v6299_v40 }
0x18e9   :  { %v6309_v62 = vmul.f32 %v6303_v25, %v6082_v60  ;;  %v6308_v6 = vadd.f32 0.5, %v6307_v14 }
0x18eb   :  { %v6311_v31 = vadd.f32 %v6310_v53, %v6309_v62 }
0x18ed   :  { %11374 = vtanh.f32 %v6311_v31 }
0x18f7   :  { %v11375_v55 = vpop.eup %11374 }
0x18f8   :  { %v6313_v13 = vmul.f32 %v11375_v55, %v6308_v6 }
0x18fa   :  { %6314 = vst [vmem:[#allocation3 + $0x7] sm:$0x1] %v6313_v13 }
0x18fb   :  { %11670 = dma.done.wait [#allocation9 + $0x6], 8192 }
0x18fc   :  { %11671 = vsyncadd [#allocation9 + $0x6], 4294959104 }
0x18fd   :  { %11672 = dma.done.wait [#allocation9 + $0x7], 8192 }
0x18fe   :  { %11673 = vsyncadd [#allocation9 + $0x7], 4294959104 }
0x18ff   :  { %11674 = dma.done.wait [#allocation9 + $0x8], 64 }
0x1900   :  { %11675 = vsyncadd [#allocation9 + $0x8], 4294967232  ;;  %6472 = vmatprep.mubr.f32.mxu0 %v11691_v10  ;;  %6543 = vmatprep.mubr.f32.mxu1 %v11691_v10  ;;  %v6323_v56 = vld [vmem:[#allocation4 + $0x408] sm:$0xff]  ;;  %v6325_v54 = vld [vmem:[#allocation4 + $0x418] sm:$0xff] }
0x1901   :  { %v6327_v26 = vld [vmem:[#allocation4 + $0x428] sm:$0xff]  ;;  %v6329_v7 = vld [vmem:[#allocation4 + $0x438] sm:$0xff]  ;;  %v6322_v5 = vld [vmem:[#allocation4 + $0x400] sm:$0xff] }
0x1902   :  { %v10522_v4 = vpack.c.bf16 %v6327_v26, %v6323_v56  ;;  %v6326_v57 = vld [vmem:[#allocation4 + $0x420] sm:$0xff]  ;;  %v10554_v20 = vpack.c.bf16 %v6329_v7, %v6325_v54  ;;  %v6324_v48 = vld [vmem:[#allocation4 + $0x410] sm:$0xff]  ;;  %v6331_v27 = vld [vmem:[#allocation4 + $0x448] sm:$0xff] }
0x1903   :  { %v10524_v24 = vpack.c.bf16 %v6326_v57, %v6322_v5  ;;  %v6328_v34 = vld [vmem:[#allocation4 + $0x430] sm:$0xff]  ;;  %v6335_v51 = vld [vmem:[#allocation4 + $0x468] sm:$0xff]  ;;  %v6333_v36 = vld [vmem:[#allocation4 + $0x458] sm:$0xff] }
0x1904   :  { %10523 = vmatprep.subr.bf16.mxu0 %v10522_v4  ;;  %v10556_v49 = vpack.c.bf16 %v6328_v34, %v6324_v48  ;;  %v6337_v38 = vld [vmem:[#allocation4 + $0x478] sm:$0xff]  ;;  %10555 = vmatprep.subr.bf16.mxu1 %v10554_v20  ;;  %v10526_v2 = vpack.c.bf16 %v6335_v51, %v6331_v27  ;;  %v6330_v21 = vld [vmem:[#allocation4 + $0x440] sm:$0xff]  ;;  %v6332_v42 = vld [vmem:[#allocation4 + $0x450] sm:$0xff] }
0x1905   :  { %10525 = vmatpush1.bf16.msra.mxu0 %v10524_v24  ;;  %v10558_v16 = vpack.c.bf16 %v6337_v38, %v6333_v36  ;;  %v6334_v44 = vld [vmem:[#allocation4 + $0x460] sm:$0xff]  ;;  %v6336_v39 = vld [vmem:[#allocation4 + $0x470] sm:$0xff]  ;;  %v6339_v29 = vld [vmem:[#allocation4 + $0x488] sm:$0xff] }
0x1906   :  { %10557 = vmatpush1.bf16.msra.mxu1 %v10556_v49  ;;  %v10528_v18 = vpack.c.bf16 %v6334_v44, %v6330_v21  ;;  %v6343_v19 = vld [vmem:[#allocation4 + $0x4a8] sm:$0xff]  ;;  %10527 = vmatprep.subr.bf16.mxu0 %v10526_v2  ;;  %v10560_v61 = vpack.c.bf16 %v6336_v39, %v6332_v42  ;;  %v6341_v60 = vld [vmem:[#allocation4 + $0x498] sm:$0xff]  ;;  %v6338_v15 = vld [vmem:[#allocation4 + $0x480] sm:$0xff] }
0x1907   :  { %10559 = vmatprep.subr.bf16.mxu1 %v10558_v16  ;;  %v10530_v41 = vpack.c.bf16 %v6343_v19, %v6339_v29  ;;  %v6345_v63 = vld [vmem:[#allocation4 + $0x4b8] sm:$0xff]  ;;  %v6342_v8 = vld [vmem:[#allocation4 + $0x4a0] sm:$0xff]  ;;  %v6340_v3 = vld [vmem:[#allocation4 + $0x490] sm:$0xff] }
0x1908   :  { %v10562_v1 = vpack.c.bf16 %v6345_v63, %v6341_v60  ;;  %v6344_v52 = vld [vmem:[#allocation4 + $0x4b0] sm:$0xff]  ;;  %v10532_v43 = vpack.c.bf16 %v6342_v8, %v6338_v15  ;;  %v6347_v22 = vld [vmem:[#allocation4 + $0x4c8] sm:$0xff]  ;;  %v6349_v9 = vld [vmem:[#allocation4 + $0x4d8] sm:$0xff] }
0x1909   :  { %10529 = vmatpush1.bf16.msra.mxu0 %v10528_v18  ;;  %v6351_v28 = vld [vmem:[#allocation4 + $0x4e8] sm:$0xff]  ;;  %v10564_v17 = vpack.c.bf16 %v6344_v52, %v6340_v3  ;;  %v6353_v23 = vld [vmem:[#allocation4 + $0x4f8] sm:$0xff]  ;;  %v6346_v46 = vld [vmem:[#allocation4 + $0x4c0] sm:$0xff] }
0x190a   :  { %10561 = vmatpush1.bf16.msra.mxu1 %v10560_v61  ;;  %10531 = vmatprep.subr.bf16.mxu0 %v10530_v41  ;;  %v10534_v30 = vpack.c.bf16 %v6351_v28, %v6347_v22  ;;  %v6350_v58 = vld [vmem:[#allocation4 + $0x4e0] sm:$0xff]  ;;  %v10566_v32 = vpack.c.bf16 %v6353_v23, %v6349_v9  ;;  %v6348_v59 = vld [vmem:[#allocation4 + $0x4d0] sm:$0xff]  ;;  %v6355_v45 = vld [vmem:[#allocation4 + $0x508] sm:$0xff] }
0x190b   :  { %10563 = vmatprep.subr.bf16.mxu1 %v10562_v1  ;;  %v6352_v12 = vld [vmem:[#allocation4 + $0x4f0] sm:$0xff]  ;;  %v6359_v50 = vld [vmem:[#allocation4 + $0x528] sm:$0xff]  ;;  %v6357_v40 = vld [vmem:[#allocation4 + $0x518] sm:$0xff]  ;;  %v10536_v25 = vpack.c.bf16 %v6350_v58, %v6346_v46 }
0x190c   :  { %v6361_v0 = vld [vmem:[#allocation4 + $0x538] sm:$0xff]  ;;  %v10568_v53 = vpack.c.bf16 %v6352_v12, %v6348_v59  ;;  %v10538_v62 = vpack.c.bf16 %v6359_v50, %v6355_v45  ;;  %v6354_v31 = vld [vmem:[#allocation4 + $0x500] sm:$0xff]  ;;  %v6356_v14 = vld [vmem:[#allocation4 + $0x510] sm:$0xff] }
0x190d   :  { %10533 = vmatpush1.bf16.msra.mxu0 %v10532_v43  ;;  %v6358_v11 = vld [vmem:[#allocation4 + $0x520] sm:$0xff]  ;;  %v10570_v6 = vpack.c.bf16 %v6361_v0, %v6357_v40  ;;  %v6360_v55 = vld [vmem:[#allocation4 + $0x530] sm:$0xff]  ;;  %v6363_v13 = vld [vmem:[#allocation4 + $0x548] sm:$0xff] }
0x190e   :  { %10565 = vmatpush1.bf16.msra.mxu1 %v10564_v17  ;;  %10535 = vmatprep.subr.bf16.mxu0 %v10534_v30  ;;  %v6367_v56 = vld [vmem:[#allocation4 + $0x568] sm:$0xff]  ;;  %v6365_v26 = vld [vmem:[#allocation4 + $0x558] sm:$0xff]  ;;  %v10540_v4 = vpack.c.bf16 %v6358_v11, %v6354_v31  ;;  %v10572_v7 = vpack.c.bf16 %v6360_v55, %v6356_v14  ;;  %v6362_v57 = vld [vmem:[#allocation4 + $0x540] sm:$0xff] }
0x190f   :  { %10567 = vmatprep.subr.bf16.mxu1 %v10566_v32  ;;  %v6369_v54 = vld [vmem:[#allocation4 + $0x578] sm:$0xff]  ;;  %v10542_v5 = vpack.c.bf16 %v6367_v56, %v6363_v13  ;;  %v6366_v20 = vld [vmem:[#allocation4 + $0x560] sm:$0xff]  ;;  %v6364_v24 = vld [vmem:[#allocation4 + $0x550] sm:$0xff] }
0x1910   :  { %v10574_v48 = vpack.c.bf16 %v6369_v54, %v6365_v26  ;;  %v6368_v34 = vld [vmem:[#allocation4 + $0x570] sm:$0xff]  ;;  %v6371_v27 = vld [vmem:[#allocation4 + $0x588] sm:$0xff]  ;;  %v6373_v51 = vld [vmem:[#allocation4 + $0x598] sm:$0xff]  ;;  %v10544_v38 = vpack.c.bf16 %v6366_v20, %v6362_v57 }
0x1911   :  { %10537 = vmatpush1.bf16.msra.mxu0 %v10536_v25  ;;  %v6375_v49 = vld [vmem:[#allocation4 + $0x5a8] sm:$0xff]  ;;  %v6377_v36 = vld [vmem:[#allocation4 + $0x5b8] sm:$0xff]  ;;  %v10576_v2 = vpack.c.bf16 %v6368_v34, %v6364_v24  ;;  %v6370_v21 = vld [vmem:[#allocation4 + $0x580] sm:$0xff] }
0x1912   :  { %10569 = vmatpush1.bf16.msra.mxu1 %v10568_v53  ;;  %10539 = vmatprep.subr.bf16.mxu0 %v10538_v62  ;;  %v10546_v16 = vpack.c.bf16 %v6375_v49, %v6371_v27  ;;  %v6374_v44 = vld [vmem:[#allocation4 + $0x5a0] sm:$0xff]  ;;  %v6372_v42 = vld [vmem:[#allocation4 + $0x590] sm:$0xff]  ;;  %v10578_v18 = vpack.c.bf16 %v6377_v36, %v6373_v51  ;;  %v6379_v29 = vld [vmem:[#allocation4 + $0x5c8] sm:$0xff] }
0x1913   :  { %10571 = vmatprep.subr.bf16.mxu1 %v10570_v6  ;;  %v6376_v39 = vld [vmem:[#allocation4 + $0x5b0] sm:$0xff]  ;;  %v6383_v19 = vld [vmem:[#allocation4 + $0x5e8] sm:$0xff]  ;;  %v6381_v61 = vld [vmem:[#allocation4 + $0x5d8] sm:$0xff]  ;;  %v10548_v60 = vpack.c.bf16 %v6374_v44, %v6370_v21 }
0x1914   :  { %v6385_v41 = vld [vmem:[#allocation4 + $0x5f8] sm:$0xff]  ;;  %v10580_v63 = vpack.c.bf16 %v6376_v39, %v6372_v42  ;;  %v10550_v15 = vpack.c.bf16 %v6383_v19, %v6379_v29  ;;  %v6378_v1 = vld [vmem:[#allocation4 + $0x5c0] sm:$0xff]  ;;  %v6380_v3 = vld [vmem:[#allocation4 + $0x5d0] sm:$0xff] }
0x1915   :  { %10541 = vmatpush1.bf16.msra.mxu0 %v10540_v4  ;;  %v6382_v8 = vld [vmem:[#allocation4 + $0x5e0] sm:$0xff]  ;;  %v10582_v52 = vpack.c.bf16 %v6385_v41, %v6381_v61  ;;  %v6384_v43 = vld [vmem:[#allocation4 + $0x5f0] sm:$0xff]  ;;  %v6551_v22 = vld [vmem:[#allocation5 + $0x408] sm:$0xff] }
0x1916   :  { %10573 = vmatpush1.bf16.msra.mxu1 %v10572_v7  ;;  %10543 = vmatprep.subr.bf16.mxu0 %v10542_v5  ;;  %v6555_v28 = vld [vmem:[#allocation5 + $0x428] sm:$0xff]  ;;  %v6553_v9 = vld [vmem:[#allocation5 + $0x418] sm:$0xff]  ;;  %v10552_v30 = vpack.c.bf16 %v6382_v8, %v6378_v1  ;;  %v10584_v23 = vpack.c.bf16 %v6384_v43, %v6380_v3  ;;  %v6550_v58 = vld [vmem:[#allocation5 + $0x400] sm:$0xff] }
0x1917   :  { %10575 = vmatprep.subr.bf16.mxu1 %v10574_v48  ;;  %v6557_v17 = vld [vmem:[#allocation5 + $0x438] sm:$0xff]  ;;  %v13295_v46 = vpack.c.bf16 %v6555_v28, %v6551_v22  ;;  %v6554_v32 = vld [vmem:[#allocation5 + $0x420] sm:$0xff]  ;;  %v6552_v59 = vld [vmem:[#allocation5 + $0x410] sm:$0xff] }
0x1918   :  { %v13297_v12 = vpack.c.bf16 %v6557_v17, %v6553_v9  ;;  %v6556_v45 = vld [vmem:[#allocation5 + $0x430] sm:$0xff]  ;;  %v6559_v50 = vld [vmem:[#allocation5 + $0x448] sm:$0xff]  ;;  %v6561_v0 = vld [vmem:[#allocation5 + $0x458] sm:$0xff]  ;;  %v13299_v62 = vpack.c.bf16 %v6554_v32, %v6550_v58 }
0x1919   :  { %10545 = vmatpush1.bf16.msra.mxu0 %v10544_v38  ;;  %v6563_v40 = vld [vmem:[#allocation5 + $0x468] sm:$0xff]  ;;  %v6565_v25 = vld [vmem:[#allocation5 + $0x478] sm:$0xff]  ;;  %v13302_v31 = vpack.c.bf16 %v6556_v45, %v6552_v59  ;;  %v6558_v14 = vld [vmem:[#allocation5 + $0x440] sm:$0xff] }
0x191a   :  { %10577 = vmatpush1.bf16.msra.mxu1 %v10576_v2  ;;  %10547 = vmatprep.subr.bf16.mxu0 %v10546_v16  ;;  %v6321_v53 = vld [vmem:[#allocation3] sm:$0xff]  ;;  %v13304_v11 = vpack.c.bf16 %v6563_v40, %v6559_v50  ;;  %v6562_v6 = vld [vmem:[#allocation5 + $0x460] sm:$0xff]  ;;  %v6560_v55 = vld [vmem:[#allocation5 + $0x450] sm:$0xff]  ;;  %v13307_v13 = vpack.c.bf16 %v6565_v25, %v6561_v0 }
0x191b   :  { %10579 = vmatprep.subr.bf16.mxu1 %v10578_v18  ;;  %v6564_v56 = vld [vmem:[#allocation5 + $0x470] sm:$0xff]  ;;  %v6567_v26 = vld [vmem:[#allocation5 + $0x488] sm:$0xff]  ;;  %v6569_v4 = vld [vmem:[#allocation5 + $0x498] sm:$0xff]  ;;  %v13310_v5 = vpack.c.bf16 %v6562_v6, %v6558_v14 }
0x191c   :  { %v6571_v54 = vld [vmem:[#allocation5 + $0x4a8] sm:$0xff]  ;;  %v6573_v7 = vld [vmem:[#allocation5 + $0x4b8] sm:$0xff]  ;;  %v13314_v57 = vpack.c.bf16 %v6564_v56, %v6560_v55  ;;  %v6566_v24 = vld [vmem:[#allocation5 + $0x480] sm:$0xff] }
0x191d   :  { %10549 = vmatpush1.bf16.msra.mxu0 %v10548_v60  ;;  %v13316_v20 = vpack.c.bf16 %v6571_v54, %v6567_v26  ;;  %v6570_v48 = vld [vmem:[#allocation5 + $0x4a0] sm:$0xff]  ;;  %v6568_v34 = vld [vmem:[#allocation5 + $0x490] sm:$0xff]  ;;  %v13319_v27 = vpack.c.bf16 %v6573_v7, %v6569_v4  ;;  %v6575_v51 = vld [vmem:[#allocation5 + $0x4c8] sm:$0xff] }
0x191e   :  { %10581 = vmatpush1.bf16.msra.mxu1 %v10580_v63  ;;  %10551 = vmatprep.subr.bf16.mxu0 %v10550_v15  ;;  %v6572_v49 = vld [vmem:[#allocation5 + $0x4b0] sm:$0xff]  ;;  %v6579_v36 = vld [vmem:[#allocation5 + $0x4e8] sm:$0xff]  ;;  %v6577_v38 = vld [vmem:[#allocation5 + $0x4d8] sm:$0xff]  ;;  %v13324_v16 = vpack.c.bf16 %v6570_v48, %v6566_v24 }
0x191f   :  { %10583 = vmatprep.subr.bf16.mxu1 %v10582_v52  ;;  %v6581_v2 = vld [vmem:[#allocation5 + $0x4f8] sm:$0xff]  ;;  %v13328_v21 = vpack.c.bf16 %v6572_v49, %v6568_v34  ;;  %v13330_v44 = vpack.c.bf16 %v6579_v36, %v6575_v51  ;;  %v6574_v42 = vld [vmem:[#allocation5 + $0x4c0] sm:$0xff]  ;;  %v6576_v39 = vld [vmem:[#allocation5 + $0x4d0] sm:$0xff] }
0x1920   :  { %v6578_v18 = vld [vmem:[#allocation5 + $0x4e0] sm:$0xff]  ;;  %v13333_v29 = vpack.c.bf16 %v6581_v2, %v6577_v38  ;;  %v6580_v19 = vld [vmem:[#allocation5 + $0x4f0] sm:$0xff]  ;;  %v6583_v61 = vld [vmem:[#allocation5 + $0x508] sm:$0xff] }
0x1921   :  { %10553 = vmatpush1.bf16.msra.mxu0 %v10552_v30  ;;  %v6587_v41 = vld [vmem:[#allocation5 + $0x528] sm:$0xff]  ;;  %v6585_v60 = vld [vmem:[#allocation5 + $0x518] sm:$0xff]  ;;  %v13336_v15 = vpack.c.bf16 %v6578_v18, %v6574_v42  ;;  %v13340_v1 = vpack.c.bf16 %v6580_v19, %v6576_v39  ;;  %v6582_v3 = vld [vmem:[#allocation5 + $0x500] sm:$0xff] }
0x1922   :  { %10585 = vmatpush1.bf16.msra.mxu1 %v10584_v23  ;;  %10587 = vmatprep.subr.bf16.mxu0 %v13295_v46  ;;  %v6589_v63 = vld [vmem:[#allocation5 + $0x538] sm:$0xff]  ;;  %v13342_v8 = vpack.c.bf16 %v6587_v41, %v6583_v61  ;;  %v6586_v52 = vld [vmem:[#allocation5 + $0x520] sm:$0xff]  ;;  %v6584_v43 = vld [vmem:[#allocation5 + $0x510] sm:$0xff] }
0x1923   :  { %10619 = vmatprep.subr.bf16.mxu1 %v13297_v12  ;;  %v13345_v22 = vpack.c.bf16 %v6589_v63, %v6585_v60  ;;  %v6588_v28 = vld [vmem:[#allocation5 + $0x530] sm:$0xff]  ;;  %v6591_v9 = vld [vmem:[#allocation5 + $0x548] sm:$0xff]  ;;  %v6593_v30 = vld [vmem:[#allocation5 + $0x558] sm:$0xff]  ;;  %v13348_v58 = vpack.c.bf16 %v6586_v52, %v6582_v3 }
0x1924   :  { %6473 = vmatmul.mubr.f32.vlgmr.msra.gmra.mrb[54].mxu0 %v6321_v53  ;;  %v6595_v17 = vld [vmem:[#allocation5 + $0x568] sm:$0xff]  ;;  %v6597_v23 = vld [vmem:[#allocation5 + $0x578] sm:$0xff]  ;;  %v13352_v32 = vpack.c.bf16 %v6588_v28, %v6584_v43  ;;  %v6590_v45 = vld [vmem:[#allocation5 + $0x540] sm:$0xff] }
0x1925   :  { %6544 = vmatmul.mubr.f32.vlgmr.msra.gmra.mrb[54].mxu1 %v6321_v53  ;;  %10589 = vmatpush1.bf16.msra.mxu0 %v13299_v62  ;;  %v13354_v59 = vpack.c.bf16 %v6595_v17, %v6591_v9  ;;  %v6594_v50 = vld [vmem:[#allocation5 + $0x560] sm:$0xff]  ;;  %v6592_v40 = vld [vmem:[#allocation5 + $0x550] sm:$0xff]  ;;  %v13357_v0 = vpack.c.bf16 %v6597_v23, %v6593_v30  ;;  %v6599_v53 = vld [vmem:[#allocation5 + $0x588] sm:$0xff] }
0x1926   :  { %10621 = vmatpush1.bf16.msra.mxu1 %v13302_v31  ;;  %10591 = vmatprep.subr.bf16.mxu0 %v13304_v11  ;;  %v6596_v25 = vld [vmem:[#allocation5 + $0x570] sm:$0xff]  ;;  %v6603_v14 = vld [vmem:[#allocation5 + $0x5a8] sm:$0xff]  ;;  %v6601_v6 = vld [vmem:[#allocation5 + $0x598] sm:$0xff]  ;;  %v13360_v56 = vpack.c.bf16 %v6594_v50, %v6590_v45 }
0x1927   :  { %10623 = vmatprep.subr.bf16.mxu1 %v13307_v13  ;;  %6678 = vmatprep.mubr.f32.mxu0 %v11691_v10  ;;  %v6605_v55 = vld [vmem:[#allocation5 + $0x5b8] sm:$0xff]  ;;  %v13364_v26 = vpack.c.bf16 %v6596_v25, %v6592_v40  ;;  %v13366_v54 = vpack.c.bf16 %v6603_v14, %v6599_v53  ;;  %v6598_v4 = vld [vmem:[#allocation5 + $0x580] sm:$0xff]  ;;  %v6600_v24 = vld [vmem:[#allocation5 + $0x590] sm:$0xff] }
0x1928   :  { %6749 = vmatprep.mubr.f32.mxu1 %v11691_v10  ;;  %v6602_v7 = vld [vmem:[#allocation5 + $0x5a0] sm:$0xff]  ;;  %v13369_v48 = vpack.c.bf16 %v6605_v55, %v6601_v6  ;;  %v6604_v34 = vld [vmem:[#allocation5 + $0x5b0] sm:$0xff]  ;;  %v6607_v49 = vld [vmem:[#allocation5 + $0x5c8] sm:$0xff] }
0x1929   :  { %10593 = vmatpush1.bf16.msra.mxu0 %v13310_v5  ;;  %v6611_v51 = vld [vmem:[#allocation5 + $0x5e8] sm:$0xff]  ;;  %v6609_v36 = vld [vmem:[#allocation5 + $0x5d8] sm:$0xff]  ;;  %v13372_v2 = vpack.c.bf16 %v6602_v7, %v6598_v4  ;;  %v13376_v42 = vpack.c.bf16 %v6604_v34, %v6600_v24  ;;  %v6606_v39 = vld [vmem:[#allocation5 + $0x5c0] sm:$0xff] }
0x192a   :  { %10625 = vmatpush1.bf16.msra.mxu1 %v13314_v57  ;;  %10595 = vmatprep.subr.bf16.mxu0 %v13316_v20  ;;  %v6613_v38 = vld [vmem:[#allocation5 + $0x5f8] sm:$0xff]  ;;  %v13378_v18 = vpack.c.bf16 %v6611_v51, %v6607_v49  ;;  %v6610_v19 = vld [vmem:[#allocation5 + $0x5e0] sm:$0xff]  ;;  %v6608_v41 = vld [vmem:[#allocation5 + $0x5d0] sm:$0xff] }
0x192b   :  { %10627 = vmatprep.subr.bf16.mxu1 %v13319_v27  ;;  %v13381_v61 = vpack.c.bf16 %v6613_v38, %v6609_v36  ;;  %v6612_v60 = vld [vmem:[#allocation5 + $0x5f0] sm:$0xff]  ;;  %v13384_v63 = vpack.c.bf16 %v6610_v19, %v6606_v39  ;;  %v6386_v17 = vld [vmem:[#allocation6 + $0x8] sm:$0xf] }
0x192c   :  { %v13388_v3 = vpack.c.bf16 %v6612_v60, %v6608_v41  ;;  %v6391_v30 = vrot.slane %v6386_v17, %v12065_v33  ;;  %v6395_v23 = vrot.slane %v6386_v17, %v12070_v35  ;;  %v6399_v50 = vrot.slane %v6386_v17, %v12073_v37 }
0x192d   :  { %10597 = vmatpush1.bf16.msra.mxu0 %v13324_v16  ;;  %v6403_v33 = vrot.slane %v6386_v17, %v12079_v47 }
0x192e   :  { %10629 = vmatpush1.bf16.msra.mxu1 %v13328_v21  ;;  %10599 = vmatprep.subr.bf16.mxu0 %v13330_v44 }
0x192f   :  { %10631 = vmatprep.subr.bf16.mxu1 %v13333_v29 }
0x1931   :  { %10601 = vmatpush1.bf16.msra.mxu0 %v13336_v15 }
0x1932   :  { %10633 = vmatpush1.bf16.msra.mxu1 %v13340_v1  ;;  %10603 = vmatprep.subr.bf16.mxu0 %v13342_v8 }
0x1933   :  { %10635 = vmatprep.subr.bf16.mxu1 %v13345_v22 }
0x1935   :  { %10605 = vmatpush1.bf16.msra.mxu0 %v13348_v58 }
0x1936   :  { %10637 = vmatpush1.bf16.msra.mxu1 %v13352_v32  ;;  %10607 = vmatprep.subr.bf16.mxu0 %v13354_v59 }
0x1937   :  { %10639 = vmatprep.subr.bf16.mxu1 %v13357_v0 }
0x1939   :  { %10609 = vmatpush1.bf16.msra.mxu0 %v13360_v56 }
0x193a   :  { %10641 = vmatpush1.bf16.msra.mxu1 %v13364_v26  ;;  %10611 = vmatprep.subr.bf16.mxu0 %v13366_v54 }
0x193b   :  { %10643 = vmatprep.subr.bf16.mxu1 %v13369_v48 }
0x193d   :  { %10613 = vmatpush1.bf16.msra.mxu0 %v13372_v2 }
0x193e   :  { %10645 = vmatpush1.bf16.msra.mxu1 %v13376_v42  ;;  %10615 = vmatprep.subr.bf16.mxu0 %v13378_v18 }
0x193f   :  { %10647 = vmatprep.subr.bf16.mxu1 %v13381_v61 }
0x1941   :  { %10617 = vmatpush1.bf16.msra.mxu0 %v13384_v63 }
0x1942   :  { %10649 = vmatpush1.bf16.msra.mxu1 %v13388_v3  ;;  %10651 = vmatprep.subr.bf16.mxu0 %v13295_v46 }
0x1943   :  { %10683 = vmatprep.subr.bf16.mxu1 %v13297_v12 }
0x1944   :  { %6679 = vmatmul.mubr.f32.vlgmr.msra.gmra.mrb[56].mxu0 %v11691_v10 }
0x1945   :  { %6750 = vmatmul.mubr.f32.vlgmr.msra.gmra.mrb[56].mxu1 %v11691_v10  ;;  %10653 = vmatpush1.bf16.msra.mxu0 %v13299_v62 }
0x1946   :  { %10685 = vmatpush1.bf16.msra.mxu1 %v13302_v31  ;;  %10655 = vmatprep.subr.bf16.mxu0 %v13304_v11 }
0x1947   :  { %10687 = vmatprep.subr.bf16.mxu1 %v13307_v13  ;;  %6907 = vmatprep.mubr.f32.mxu0 %v11691_v10 }
0x1948   :  { %6978 = vmatprep.mubr.f32.mxu1 %v11691_v10 }
0x1949   :  { %10657 = vmatpush1.bf16.msra.mxu0 %v13310_v5 }
0x194a   :  { %10689 = vmatpush1.bf16.msra.mxu1 %v13314_v57  ;;  %10659 = vmatprep.subr.bf16.mxu0 %v13316_v20 }
0x194b   :  { %10691 = vmatprep.subr.bf16.mxu1 %v13319_v27 }
0x194d   :  { %10661 = vmatpush1.bf16.msra.mxu0 %v13324_v16 }
0x194e   :  { %10693 = vmatpush1.bf16.msra.mxu1 %v13328_v21  ;;  %10663 = vmatprep.subr.bf16.mxu0 %v13330_v44 }
0x194f   :  { %10695 = vmatprep.subr.bf16.mxu1 %v13333_v29 }
0x1951   :  { %10665 = vmatpush1.bf16.msra.mxu0 %v13336_v15 }
0x1952   :  { %10697 = vmatpush1.bf16.msra.mxu1 %v13340_v1  ;;  %10667 = vmatprep.subr.bf16.mxu0 %v13342_v8 }
0x1953   :  { %10699 = vmatprep.subr.bf16.mxu1 %v13345_v22 }
0x1955   :  { %10669 = vmatpush1.bf16.msra.mxu0 %v13348_v58 }
0x1956   :  { %10701 = vmatpush1.bf16.msra.mxu1 %v13352_v32  ;;  %10671 = vmatprep.subr.bf16.mxu0 %v13354_v59 }
0x1957   :  { %10703 = vmatprep.subr.bf16.mxu1 %v13357_v0 }
0x1959   :  { %10673 = vmatpush1.bf16.msra.mxu0 %v13360_v56 }
0x195a   :  { %10705 = vmatpush1.bf16.msra.mxu1 %v13364_v26  ;;  %10675 = vmatprep.subr.bf16.mxu0 %v13366_v54 }
0x195b   :  { %10707 = vmatprep.subr.bf16.mxu1 %v13369_v48 }
0x195d   :  { %10677 = vmatpush1.bf16.msra.mxu0 %v13372_v2 }
0x195e   :  { %10709 = vmatpush1.bf16.msra.mxu1 %v13376_v42  ;;  %10679 = vmatprep.subr.bf16.mxu0 %v13378_v18 }
0x195f   :  { %10711 = vmatprep.subr.bf16.mxu1 %v13381_v61 }
0x1961   :  { %10681 = vmatpush1.bf16.msra.mxu0 %v13384_v63 }
0x1962   :  { %10713 = vmatpush1.bf16.msra.mxu1 %v13388_v3  ;;  %10715 = vmatprep.subr.bf16.mxu0 %v13295_v46 }
0x1963   :  { %10747 = vmatprep.subr.bf16.mxu1 %v13297_v12 }
0x19f7   :  { %v6474_v52 = vpop.f32.mrb[54].mxu0 }
0x19f8   :  { %v6476_v43 = vpop.f32.mrb[55].mxu0  ;;  %v6545_v28 = vpop.f32.mrb[54].mxu1  ;;  %v13433_v45 = vadd.f32 %v6474_v52, %v6391_v30 }
0x19f9   :  { %v6547_v9 = vpop.f32.mrb[55].mxu1  ;;  %v13436_v40 = vadd.f32 %v6476_v43, %v6395_v23  ;;  %v13440_v7 = vadd.f32 %v6545_v28, %v6399_v50 }
0x19fa   :  { %v13444_v37 = vadd.f32 %v6547_v9, %v6403_v33 }
0x1a17   :  { %v6680_v25 = vpop.f32.mrb[56].mxu0 }
0x1a18   :  { %v6756_v53 = vadd.f32 %v6680_v25, %v13433_v45  ;;  %v6751_v14 = vpop.f32.mrb[56].mxu1  ;;  %v6682_v6 = vpop.f32.mrb[57].mxu0 }
0x1a19   :  { %v6757_v55 = vadd.f32 %v6682_v6, %v13436_v40  ;;  %v6753_v4 = vpop.f32.mrb[57].mxu1  ;;  %v6758_v34 = vadd.f32 %v6751_v14, %v13440_v7 }
0x1a1a   :  { %v6760_v24 = vmul.f32 0.5, %v6756_v53  ;;  %v6759_v49 = vadd.f32 %v6753_v4, %v13444_v37 }
0x1a1b   :  { %v6764_v35 = vmul.f32 0.5, %v6757_v55 }
0x1a1c   :  { %11376 = vtanh.f32 %v6760_v24  ;;  %v6769_v51 = vmul.f32 0.5, %v6759_v49 }
0x1a1d   :  { %11378 = vtanh.f32 %v6764_v35 }
0x1a1e   :  { %11380 = vtanh.f32 %v6758_v34 }
0x1a1f   :  { %11382 = vtanh.f32 %v6769_v51 }
0x1a26   :  { %v11377_v36 = vpop.eup %11376 }
0x1a27   :  { %v11379_v38 = vpop.eup %11378  ;;  %v6762_v39 = vmul.f32 0.5, %v11377_v36 }
0x1a28   :  { %v6766_v19 = vmul.f32 0.5, %v11379_v38  ;;  %v11381_v60 = vpop.eup %11380 }
0x1a29   :  { %v6763_v41 = vadd.f32 0.5, %v6762_v39  ;;  %v11383_v9 = vpop.eup %11382 }
0x1a2a   :  { %v6767_v47 = vadd.f32 0.5, %v6766_v19  ;;  %v6771_v17 = vmul.f32 0.5, %v11383_v9 }
0x1a2b   :  { %v6774_v52 = vmul.f32 %v11381_v60, %v6763_v41 }
0x1a2c   :  { %v6773_v43 = vmul.f32 0.0, %v6767_v47  ;;  %v6772_v30 = vadd.f32 0.5, %v6771_v17 }
0x1a2e   :  { %v13447_v28 = vadd.f32 %v6774_v52, %v6773_v43 }
0x1a30   :  { %11384 = vtanh.f32 %v13447_v28  ;;  %v7015_v52 = vrot.slane %v13447_v28, 7 }
0x1a3a   :  { %v11385_v23 = vpop.eup %11384 }
0x1a3b   :  { %v6777_v50 = vmul.f32 %v11385_v23, %v6772_v30 }
0x1a3d   :  { %6778 = vst [vmem:[#allocation2] sm:$0x1] %v6777_v50  ;;  %6908 = vmatmul.mubr.f32.vlgmr.msra.gmra.mrb[58].mxu0 %v6777_v50  ;;  %6979 = vmatmul.mubr.f32.vlgmr.msra.gmra.mrb[58].mxu1 %v6777_v50 }
0x1a3e   :  { %10717 = vmatpush1.bf16.msra.mxu0 %v13299_v62  ;;  %10749 = vmatpush1.bf16.msra.mxu1 %v13302_v31 }
0x1a3f   :  { %10719 = vmatprep.subr.bf16.mxu0 %v13304_v11  ;;  %10751 = vmatprep.subr.bf16.mxu1 %v13307_v13 }
0x1a40   :  { %7154 = vmatprep.mubr.f32.mxu0 %v11691_v10  ;;  %7225 = vmatprep.mubr.f32.mxu1 %v11691_v10 }
0x1a42   :  { %10721 = vmatpush1.bf16.msra.mxu0 %v13310_v5  ;;  %10753 = vmatpush1.bf16.msra.mxu1 %v13314_v57 }
0x1a43   :  { %10723 = vmatprep.subr.bf16.mxu0 %v13316_v20  ;;  %10755 = vmatprep.subr.bf16.mxu1 %v13319_v27 }
0x1a46   :  { %10725 = vmatpush1.bf16.msra.mxu0 %v13324_v16  ;;  %10757 = vmatpush1.bf16.msra.mxu1 %v13328_v21 }
0x1a47   :  { %10727 = vmatprep.subr.bf16.mxu0 %v13330_v44  ;;  %10759 = vmatprep.subr.bf16.mxu1 %v13333_v29 }
0x1a4a   :  { %10729 = vmatpush1.bf16.msra.mxu0 %v13336_v15  ;;  %10761 = vmatpush1.bf16.msra.mxu1 %v13340_v1 }
0x1a4b   :  { %10731 = vmatprep.subr.bf16.mxu0 %v13342_v8  ;;  %10763 = vmatprep.subr.bf16.mxu1 %v13345_v22 }
0x1a4e   :  { %10733 = vmatpush1.bf16.msra.mxu0 %v13348_v58  ;;  %10765 = vmatpush1.bf16.msra.mxu1 %v13352_v32 }
0x1a4f   :  { %10735 = vmatprep.subr.bf16.mxu0 %v13354_v59  ;;  %10767 = vmatprep.subr.bf16.mxu1 %v13357_v0 }
0x1a52   :  { %10737 = vmatpush1.bf16.msra.mxu0 %v13360_v56  ;;  %10769 = vmatpush1.bf16.msra.mxu1 %v13364_v26 }
0x1a53   :  { %10739 = vmatprep.subr.bf16.mxu0 %v13366_v54  ;;  %10771 = vmatprep.subr.bf16.mxu1 %v13369_v48 }
0x1a56   :  { %10741 = vmatpush1.bf16.msra.mxu0 %v13372_v2  ;;  %10773 = vmatpush1.bf16.msra.mxu1 %v13376_v42 }
0x1a57   :  { %10743 = vmatprep.subr.bf16.mxu0 %v13378_v18  ;;  %10775 = vmatprep.subr.bf16.mxu1 %v13381_v61 }
0x1a5a   :  { %10745 = vmatpush1.bf16.msra.mxu0 %v13384_v63  ;;  %10777 = vmatpush1.bf16.msra.mxu1 %v13388_v3 }
0x1a5b   :  { %10779 = vmatprep.subr.bf16.mxu0 %v13295_v46  ;;  %10811 = vmatprep.subr.bf16.mxu1 %v13297_v12 }
0x1b10   :  { %v6909_v25 = vpop.f32.mrb[58].mxu0  ;;  %v6980_v53 = vpop.f32.mrb[58].mxu1 }
0x1b11   :  { %v6989_v14 = vrot.slane %v6909_v25, 7  ;;  %v6911_v6 = vpop.f32.mrb[59].mxu0  ;;  %v6982_v55 = vpop.f32.mrb[59].mxu1  ;;  %v6991_v24 = vrot.slane %v6980_v53, 7 }
0x1b12   :  { %v6990_v4 = vrot.slane %v6911_v6, 7  ;;  %v6992_v36 = vrot.slane %v6982_v55, 7 }
0x1b13   :  { %v6997_v33 = vadd.f32 %v6989_v14, %v13433_v45  ;;  %v6999_v51 = vadd.f32 %v6991_v24, %v13440_v7  ;;  %v7520_v24 = vld [vmem:[#allocation5 + $0x418] sm:$0xff] }
0x1b14   :  { %v6998_v35 = vadd.f32 %v6990_v4, %v13436_v40  ;;  %v7000_v46 = vadd.f32 %v6992_v36, %v13444_v37  ;;  %v7518_v4 = vld [vmem:[#allocation5 + $0x408] sm:$0xff] }
0x1b15   :  { %v7001_v34 = vmul.f32 0.5, %v6997_v33  ;;  %v7522_v33 = vld [vmem:[#allocation5 + $0x428] sm:$0xff] }
0x1b16   :  { %v7005_v49 = vmul.f32 0.5, %v6998_v35  ;;  %v7010_v12 = vmul.f32 0.5, %v7000_v46  ;;  %v13534_v35 = vpack.c.bf16 %v7522_v33, %v7518_v4  ;;  %v7555_v4 = vld [vmem:[#allocation5 + $0x530] sm:$0xff] }
0x1b17   :  { %11386 = vtanh.f32 %v7001_v34  ;;  %v7524_v34 = vld [vmem:[#allocation5 + $0x438] sm:$0xff] }
0x1b18   :  { %11388 = vtanh.f32 %v7005_v49  ;;  %v7517_v49 = vld [vmem:[#allocation5 + $0x400] sm:$0xff]  ;;  %v13536_v36 = vpack.c.bf16 %v7524_v34, %v7520_v24  ;;  %v7558_v24 = vld [vmem:[#allocation5 + $0x548] sm:$0xff] }
0x1b19   :  { %11390 = vtanh.f32 %v6999_v51  ;;  %v7521_v51 = vld [vmem:[#allocation5 + $0x420] sm:$0xff]  ;;  %v7562_v34 = vld [vmem:[#allocation5 + $0x568] sm:$0xff] }
0x1b1a   :  { %11392 = vtanh.f32 %v7010_v12  ;;  %v13538_v46 = vpack.c.bf16 %v7521_v51, %v7517_v49  ;;  %v7519_v12 = vld [vmem:[#allocation5 + $0x410] sm:$0xff]  ;;  %v7560_v49 = vld [vmem:[#allocation5 + $0x558] sm:$0xff]  ;;  %v13594_v51 = vpack.c.bf16 %v7562_v34, %v7558_v24 }
0x1b21   :  { %v11387_v38 = vpop.eup %11386 }
0x1b22   :  { %v11389_v39 = vpop.eup %11388  ;;  %v7003_v19 = vmul.f32 0.5, %v11387_v38  ;;  %v7523_v38 = vld [vmem:[#allocation5 + $0x430] sm:$0xff] }
0x1b23   :  { %v7007_v41 = vmul.f32 0.5, %v11389_v39  ;;  %v11391_v47 = vpop.eup %11390  ;;  %v13541_v39 = vpack.c.bf16 %v7523_v38, %v7519_v12  ;;  %v7564_v12 = vld [vmem:[#allocation5 + $0x578] sm:$0xff]  ;;  %v7557_v38 = vld [vmem:[#allocation5 + $0x540] sm:$0xff] }
0x1b24   :  { %v7004_v60 = vadd.f32 0.5, %v7003_v19  ;;  %v11393_v23 = vpop.eup %11392  ;;  %v7526_v19 = vld [vmem:[#allocation5 + $0x448] sm:$0xff] }
0x1b25   :  { %v7008_v43 = vadd.f32 0.5, %v7007_v41  ;;  %v7012_v50 = vmul.f32 0.5, %v11393_v23  ;;  %v7530_v41 = vld [vmem:[#allocation5 + $0x468] sm:$0xff]  ;;  %v7527_v23 = vld [vmem:[#allocation5 + $0x450] sm:$0xff] }
0x1b26   :  { %v7018_v9 = vmul.f32 %v11391_v47, %v7004_v60  ;;  %v7528_v60 = vld [vmem:[#allocation5 + $0x458] sm:$0xff]  ;;  %v13546_v47 = vpack.c.bf16 %v7530_v41, %v7526_v19  ;;  %v7561_v19 = vld [vmem:[#allocation5 + $0x560] sm:$0xff]  ;;  %v13596_v41 = vpack.c.bf16 %v7564_v12, %v7560_v49 }
0x1b27   :  { %v7017_v17 = vmul.f32 %v7015_v52, %v7008_v43  ;;  %v7013_v25 = vadd.f32 0.5, %v7012_v50  ;;  %v7532_v52 = vld [vmem:[#allocation5 + $0x478] sm:$0xff]  ;;  %v7525_v43 = vld [vmem:[#allocation5 + $0x440] sm:$0xff]  ;;  %v7531_v50 = vld [vmem:[#allocation5 + $0x470] sm:$0xff] }
0x1b29   :  { %v13489_v30 = vadd.f32 %v7018_v9, %v7017_v17  ;;  %v7529_v9 = vld [vmem:[#allocation5 + $0x460] sm:$0xff]  ;;  %v13548_v17 = vpack.c.bf16 %v7532_v52, %v7528_v60  ;;  %v13598_v60 = vpack.c.bf16 %v7561_v19, %v7557_v38  ;;  %v7559_v52 = vld [vmem:[#allocation5 + $0x550] sm:$0xff] }
0x1b2b   :  { %11394 = vtanh.f32 %v13489_v30 }
0x1b35   :  { %v11395_v53 = vpop.eup %11394 }
0x1b36   :  { %v7021_v14 = vmul.f32 %v11395_v53, %v7013_v25  ;;  %v13553_v25 = vpack.c.bf16 %v7531_v50, %v7527_v23  ;;  %v7534_v53 = vld [vmem:[#allocation5 + $0x488] sm:$0xff] }
0x1b37   :  { %v7566_v23 = vld [vmem:[#allocation5 + $0x588] sm:$0xff] }
0x1b38   :  { %7022 = vst [vmem:[#allocation2] sm:$0x2] %v7021_v14  ;;  %v7088_v6 = vrot.slane %v7021_v14, 1  ;;  %v7538_v14 = vld [vmem:[#allocation5 + $0x4a8] sm:$0xff] }
0x1b39   :  { %v7570_v50 = vld [vmem:[#allocation5 + $0x5a8] sm:$0xff] }
0x1b3a   :  { %7155 = vmatmul.mubr.f32.vlgmr.msra.gmra.mrb[60].mxu0 %v7088_v6  ;;  %7226 = vmatmul.mubr.f32.vlgmr.msra.gmra.mrb[60].mxu1 %v7088_v6  ;;  %v7536_v6 = vld [vmem:[#allocation5 + $0x498] sm:$0xff] }
0x1b3b   :  { %10781 = vmatpush1.bf16.msra.mxu0 %v13299_v62  ;;  %10813 = vmatpush1.bf16.msra.mxu1 %v13302_v31 }
0x1b3c   :  { %10783 = vmatprep.subr.bf16.mxu0 %v13304_v11  ;;  %10815 = vmatprep.subr.bf16.mxu1 %v13307_v13 }
0x1b3d   :  { %7401 = vmatprep.mubr.f32.mxu0 %v11691_v10  ;;  %7472 = vmatprep.mubr.f32.mxu1 %v11691_v10 }
0x1b3f   :  { %10785 = vmatpush1.bf16.msra.mxu0 %v13310_v5  ;;  %10817 = vmatpush1.bf16.msra.mxu1 %v13314_v57 }
0x1b40   :  { %10787 = vmatprep.subr.bf16.mxu0 %v13316_v20  ;;  %10819 = vmatprep.subr.bf16.mxu1 %v13319_v27 }
0x1b43   :  { %10789 = vmatpush1.bf16.msra.mxu0 %v13324_v16  ;;  %10821 = vmatpush1.bf16.msra.mxu1 %v13328_v21 }
0x1b44   :  { %10791 = vmatprep.subr.bf16.mxu0 %v13330_v44  ;;  %10823 = vmatprep.subr.bf16.mxu1 %v13333_v29 }
0x1b47   :  { %10793 = vmatpush1.bf16.msra.mxu0 %v13336_v15  ;;  %10825 = vmatpush1.bf16.msra.mxu1 %v13340_v1 }
0x1b48   :  { %10795 = vmatprep.subr.bf16.mxu0 %v13342_v8  ;;  %10827 = vmatprep.subr.bf16.mxu1 %v13345_v22 }
0x1b4b   :  { %10797 = vmatpush1.bf16.msra.mxu0 %v13348_v58  ;;  %10829 = vmatpush1.bf16.msra.mxu1 %v13352_v32 }
0x1b4c   :  { %10799 = vmatprep.subr.bf16.mxu0 %v13354_v59  ;;  %10831 = vmatprep.subr.bf16.mxu1 %v13357_v0 }
0x1b4f   :  { %10801 = vmatpush1.bf16.msra.mxu0 %v13360_v56  ;;  %10833 = vmatpush1.bf16.msra.mxu1 %v13364_v26 }
0x1b50   :  { %10803 = vmatprep.subr.bf16.mxu0 %v13366_v54  ;;  %10835 = vmatprep.subr.bf16.mxu1 %v13369_v48  ;;  %v7262_v54 = vrot.slane %v13489_v30, 7  ;;  %v13550_v30 = vpack.c.bf16 %v7529_v9, %v7525_v43  ;;  %v7563_v43 = vld [vmem:[#allocation5 + $0x570] sm:$0xff] }
0x1b51   :  { %v13601_v9 = vpack.c.bf16 %v7563_v43, %v7559_v52 }
0x1b53   :  { %10805 = vmatpush1.bf16.msra.mxu0 %v13372_v2  ;;  %10837 = vmatpush1.bf16.msra.mxu1 %v13376_v42 }
0x1b54   :  { %10807 = vmatprep.subr.bf16.mxu0 %v13378_v18  ;;  %10839 = vmatprep.subr.bf16.mxu1 %v13381_v61 }
0x1b57   :  { %10809 = vmatpush1.bf16.msra.mxu0 %v13384_v63  ;;  %10841 = vmatpush1.bf16.msra.mxu1 %v13388_v3 }
0x1b58   :  { %10843 = vmatprep.subr.bf16.mxu0 %v13534_v35  ;;  %10875 = vmatprep.subr.bf16.mxu1 %v13536_v36 }
0x1c0d   :  { %v7156_v62 = vpop.f32.mrb[60].mxu0  ;;  %v7227_v31 = vpop.f32.mrb[60].mxu1 }
0x1c0e   :  { %v7236_v11 = vrot.slane %v7156_v62, 6  ;;  %v7158_v13 = vpop.f32.mrb[61].mxu0  ;;  %v7229_v5 = vpop.f32.mrb[61].mxu1  ;;  %v7238_v27 = vrot.slane %v7227_v31, 6  ;;  %v13558_v62 = vpack.c.bf16 %v7538_v14, %v7534_v53  ;;  %v7540_v31 = vld [vmem:[#allocation5 + $0x4b8] sm:$0xff]  ;;  %v13606_v14 = vpack.c.bf16 %v7570_v50, %v7566_v23 }
0x1c0f   :  { %v7237_v57 = vrot.slane %v7158_v13, 6  ;;  %v7239_v15 = vrot.slane %v7229_v5, 6  ;;  %v7537_v13 = vld [vmem:[#allocation5 + $0x4a0] sm:$0xff]  ;;  %v13560_v5 = vpack.c.bf16 %v7540_v31, %v7536_v6  ;;  %v7568_v53 = vld [vmem:[#allocation5 + $0x598] sm:$0xff] }
0x1c10   :  { %v7244_v20 = vadd.f32 %v7236_v11, %v13433_v45  ;;  %v7246_v29 = vadd.f32 %v7238_v27, %v13440_v7  ;;  %v7533_v11 = vld [vmem:[#allocation5 + $0x480] sm:$0xff]  ;;  %v7539_v27 = vld [vmem:[#allocation5 + $0x4b0] sm:$0xff]  ;;  %v7572_v6 = vld [vmem:[#allocation5 + $0x5b8] sm:$0xff] }
0x1c11   :  { %v7245_v16 = vadd.f32 %v7237_v57, %v13436_v40  ;;  %v7247_v1 = vadd.f32 %v7239_v15, %v13444_v37  ;;  %v13562_v57 = vpack.c.bf16 %v7537_v13, %v7533_v11  ;;  %v7565_v31 = vld [vmem:[#allocation5 + $0x580] sm:$0xff]  ;;  %v13608_v13 = vpack.c.bf16 %v7572_v6, %v7568_v53 }
0x1c12   :  { %v7248_v21 = vmul.f32 0.5, %v7244_v20  ;;  %v7535_v20 = vld [vmem:[#allocation5 + $0x490] sm:$0xff]  ;;  %v7569_v11 = vld [vmem:[#allocation5 + $0x5a0] sm:$0xff] }
0x1c13   :  { %v7252_v44 = vmul.f32 0.5, %v7245_v16  ;;  %v7257_v8 = vmul.f32 0.5, %v7247_v1  ;;  %v13565_v16 = vpack.c.bf16 %v7539_v27, %v7535_v20  ;;  %v7548_v1 = vld [vmem:[#allocation5 + $0x4f8] sm:$0xff]  ;;  %v13610_v20 = vpack.c.bf16 %v7569_v11, %v7565_v31  ;;  %v7567_v27 = vld [vmem:[#allocation5 + $0x590] sm:$0xff] }
0x1c14   :  { %11396 = vtanh.f32 %v7248_v21  ;;  %v7542_v21 = vld [vmem:[#allocation5 + $0x4c8] sm:$0xff] }
0x1c15   :  { %11398 = vtanh.f32 %v7252_v44  ;;  %v7546_v44 = vld [vmem:[#allocation5 + $0x4e8] sm:$0xff] }
0x1c16   :  { %11400 = vtanh.f32 %v7246_v29  ;;  %v7544_v29 = vld [vmem:[#allocation5 + $0x4d8] sm:$0xff]  ;;  %v13570_v15 = vpack.c.bf16 %v7546_v44, %v7542_v21  ;;  %v7571_v21 = vld [vmem:[#allocation5 + $0x5b0] sm:$0xff] }
0x1c17   :  { %11402 = vtanh.f32 %v7257_v8  ;;  %v7541_v8 = vld [vmem:[#allocation5 + $0x4c0] sm:$0xff]  ;;  %v13613_v44 = vpack.c.bf16 %v7571_v21, %v7567_v27 }
0x1c1e   :  { %v11397_v22 = vpop.eup %11396 }
0x1c1f   :  { %v11399_v58 = vpop.eup %11398  ;;  %v7250_v32 = vmul.f32 0.5, %v11397_v22  ;;  %v7545_v22 = vld [vmem:[#allocation5 + $0x4e0] sm:$0xff] }
0x1c20   :  { %v7254_v59 = vmul.f32 0.5, %v11399_v58  ;;  %v11401_v56 = vpop.eup %11400  ;;  %v13572_v58 = vpack.c.bf16 %v7548_v1, %v7544_v29  ;;  %v7574_v29 = vld [vmem:[#allocation5 + $0x5c8] sm:$0xff] }
0x1c21   :  { %v7251_v0 = vadd.f32 0.5, %v7250_v32  ;;  %v11403_v18 = vpop.eup %11402  ;;  %v13574_v32 = vpack.c.bf16 %v7545_v22, %v7541_v8  ;;  %v7578_v1 = vld [vmem:[#allocation5 + $0x5e8] sm:$0xff]  ;;  %v7576_v8 = vld [vmem:[#allocation5 + $0x5d8] sm:$0xff] }
0x1c22   :  { %v7255_v26 = vadd.f32 0.5, %v7254_v59  ;;  %v7259_v61 = vmul.f32 0.5, %v11403_v18  ;;  %v7543_v59 = vld [vmem:[#allocation5 + $0x4d0] sm:$0xff]  ;;  %v7556_v18 = vld [vmem:[#allocation5 + $0x538] sm:$0xff]  ;;  %v13618_v22 = vpack.c.bf16 %v7578_v1, %v7574_v29 }
0x1c23   :  { %v7265_v48 = vmul.f32 %v11401_v56, %v7251_v0  ;;  %v7547_v0 = vld [vmem:[#allocation5 + $0x4f0] sm:$0xff] }
0x1c24   :  { %v7264_v2 = vmul.f32 %v7262_v54, %v7255_v26  ;;  %v7260_v63 = vadd.f32 0.5, %v7259_v61  ;;  %v13577_v56 = vpack.c.bf16 %v7547_v0, %v7543_v59  ;;  %v7550_v26 = vld [vmem:[#allocation5 + $0x508] sm:$0xff]  ;;  %v7549_v61 = vld [vmem:[#allocation5 + $0x500] sm:$0xff]  ;;  %v7580_v59 = vld [vmem:[#allocation5 + $0x5f8] sm:$0xff] }
0x1c25   :  { %v7554_v54 = vld [vmem:[#allocation5 + $0x528] sm:$0xff]  ;;  %v7573_v0 = vld [vmem:[#allocation5 + $0x5c0] sm:$0xff] }
0x1c26   :  { %v13529_v42 = vadd.f32 %v7265_v48, %v7264_v2  ;;  %v7552_v48 = vld [vmem:[#allocation5 + $0x518] sm:$0xff]  ;;  %v13582_v2 = vpack.c.bf16 %v7554_v54, %v7550_v26  ;;  %v7577_v26 = vld [vmem:[#allocation5 + $0x5e0] sm:$0xff]  ;;  %v13620_v54 = vpack.c.bf16 %v7580_v59, %v7576_v8 }
0x1c28   :  { %11404 = vtanh.f32 %v13529_v42 }
0x1c32   :  { %v11405_v3 = vpop.eup %11404 }
0x1c33   :  { %v7268_v28 = vmul.f32 %v11405_v3, %v7260_v63  ;;  %v7553_v63 = vld [vmem:[#allocation5 + $0x520] sm:$0xff]  ;;  %v13584_v3 = vpack.c.bf16 %v7556_v18, %v7552_v48  ;;  %v13622_v48 = vpack.c.bf16 %v7577_v26, %v7573_v0  ;;  %v7575_v18 = vld [vmem:[#allocation5 + $0x5d0] sm:$0xff]  ;;  %v7509_v0 = vrot.slane %v13529_v42, 7 }
0x1c35   :  { %7269 = vst [vmem:[#allocation2] sm:$0x4] %v7268_v28  ;;  %v7335_v55 = vrot.slane %v7268_v28, 2  ;;  %v13586_v28 = vpack.c.bf16 %v7553_v63, %v7549_v61  ;;  %v7579_v61 = vld [vmem:[#allocation5 + $0x5f0] sm:$0xff] }
0x1c36   :  { %v13625_v63 = vpack.c.bf16 %v7579_v61, %v7575_v18 }
0x1c37   :  { %7402 = vmatmul.mubr.f32.vlgmr.msra.gmra.mrb[62].mxu0 %v7335_v55  ;;  %7473 = vmatmul.mubr.f32.vlgmr.msra.gmra.mrb[62].mxu1 %v7335_v55  ;;  %v7551_v55 = vld [vmem:[#allocation5 + $0x510] sm:$0xff] }
0x1c38   :  { %7648 = vmatprep.mubr.f32.mxu0 %v11691_v10  ;;  %7719 = vmatprep.mubr.f32.mxu1 %v11691_v10  ;;  %v13589_v33 = vpack.c.bf16 %v7555_v4, %v7551_v55 }
0x1c39   :  { %10845 = vmatpush1.bf16.msra.mxu0 %v13538_v46  ;;  %10877 = vmatpush1.bf16.msra.mxu1 %v13541_v39 }
0x1c3a   :  { %10847 = vmatprep.subr.bf16.mxu0 %v13546_v47  ;;  %10879 = vmatprep.subr.bf16.mxu1 %v13548_v17 }
0x1c3d   :  { %10849 = vmatpush1.bf16.msra.mxu0 %v13550_v30  ;;  %10881 = vmatpush1.bf16.msra.mxu1 %v13553_v25 }
0x1c3e   :  { %10851 = vmatprep.subr.bf16.mxu0 %v13558_v62  ;;  %10883 = vmatprep.subr.bf16.mxu1 %v13560_v5 }
0x1c41   :  { %10853 = vmatpush1.bf16.msra.mxu0 %v13562_v57  ;;  %10885 = vmatpush1.bf16.msra.mxu1 %v13565_v16 }
0x1c42   :  { %10855 = vmatprep.subr.bf16.mxu0 %v13570_v15  ;;  %10887 = vmatprep.subr.bf16.mxu1 %v13572_v58 }
0x1c45   :  { %10857 = vmatpush1.bf16.msra.mxu0 %v13574_v32  ;;  %10889 = vmatpush1.bf16.msra.mxu1 %v13577_v56 }
0x1c46   :  { %10859 = vmatprep.subr.bf16.mxu0 %v13582_v2  ;;  %10891 = vmatprep.subr.bf16.mxu1 %v13584_v3 }
0x1c49   :  { %10861 = vmatpush1.bf16.msra.mxu0 %v13586_v28  ;;  %10893 = vmatpush1.bf16.msra.mxu1 %v13589_v33 }
0x1c4a   :  { %10863 = vmatprep.subr.bf16.mxu0 %v13594_v51  ;;  %10895 = vmatprep.subr.bf16.mxu1 %v13596_v41 }
0x1c4d   :  { %10865 = vmatpush1.bf16.msra.mxu0 %v13598_v60  ;;  %10897 = vmatpush1.bf16.msra.mxu1 %v13601_v9 }
0x1c4e   :  { %10867 = vmatprep.subr.bf16.mxu0 %v13606_v14  ;;  %10899 = vmatprep.subr.bf16.mxu1 %v13608_v13 }
0x1c51   :  { %10869 = vmatpush1.bf16.msra.mxu0 %v13610_v20  ;;  %10901 = vmatpush1.bf16.msra.mxu1 %v13613_v44 }
0x1c52   :  { %10871 = vmatprep.subr.bf16.mxu0 %v13618_v22  ;;  %10903 = vmatprep.subr.bf16.mxu1 %v13620_v54 }
0x1c55   :  { %10873 = vmatpush1.bf16.msra.mxu0 %v13622_v48  ;;  %10905 = vmatpush1.bf16.msra.mxu1 %v13625_v63 }
0x1c56   :  { %10907 = vmatprep.subr.bf16.mxu0 %v13534_v35  ;;  %10939 = vmatprep.subr.bf16.mxu1 %v13536_v36 }
0x1d0a   :  { %v7403_v55 = vpop.f32.mrb[62].mxu0  ;;  %v7474_v4 = vpop.f32.mrb[62].mxu1 }
0x1d0b   :  { %v7483_v24 = vrot.slane %v7403_v55, 5  ;;  %v7405_v34 = vpop.f32.mrb[63].mxu0  ;;  %v7476_v49 = vpop.f32.mrb[63].mxu1  ;;  %v7485_v19 = vrot.slane %v7474_v4, 5 }
0x1d0c   :  { %v7484_v12 = vrot.slane %v7405_v34, 5  ;;  %v7486_v53 = vrot.slane %v7476_v49, 5 }
0x1d0d   :  { %v7491_v38 = vadd.f32 %v7483_v24, %v13433_v45  ;;  %v7493_v50 = vadd.f32 %v7485_v19, %v13440_v7 }
0x1d0e   :  { %v7492_v52 = vadd.f32 %v7484_v12, %v13436_v40  ;;  %v7494_v6 = vadd.f32 %v7486_v53, %v13444_v37 }
0x1d0f   :  { %v7495_v43 = vmul.f32 0.5, %v7491_v38 }
0x1d10   :  { %v7499_v23 = vmul.f32 0.5, %v7492_v52  ;;  %v7504_v31 = vmul.f32 0.5, %v7494_v6 }
0x1d11   :  { %11406 = vtanh.f32 %v7495_v43 }
0x1d12   :  { %11408 = vtanh.f32 %v7499_v23 }
0x1d13   :  { %11410 = vtanh.f32 %v7493_v50 }
0x1d14   :  { %11412 = vtanh.f32 %v7504_v31 }
0x1d1b   :  { %v11407_v11 = vpop.eup %11406 }
0x1d1c   :  { %v11409_v27 = vpop.eup %11408  ;;  %v7497_v21 = vmul.f32 0.5, %v11407_v11 }
0x1d1d   :  { %v7501_v29 = vmul.f32 0.5, %v11409_v27  ;;  %v11411_v8 = vpop.eup %11410 }
0x1d1e   :  { %v7498_v1 = vadd.f32 0.5, %v7497_v21  ;;  %v11413_v55 = vpop.eup %11412 }
0x1d1f   :  { %v7502_v59 = vadd.f32 0.5, %v7501_v29  ;;  %v7506_v4 = vmul.f32 0.5, %v11413_v55 }
0x1d20   :  { %v7512_v26 = vmul.f32 %v11411_v8, %v7498_v1 }
0x1d21   :  { %v7511_v18 = vmul.f32 %v7509_v0, %v7502_v59  ;;  %v7507_v24 = vadd.f32 0.5, %v7506_v4 }
0x1d23   :  { %v13637_v61 = vadd.f32 %v7512_v26, %v7511_v18 }
0x1d25   :  { %11414 = vtanh.f32 %v13637_v61 }
0x1d2f   :  { %v11415_v34 = vpop.eup %11414 }
0x1d30   :  { %v7515_v49 = vmul.f32 %v11415_v34, %v7507_v24  ;;  %v7756_v24 = vrot.slane %v13637_v61, 7 }
0x1d32   :  { %7516 = vst [vmem:[#allocation2] sm:$0x8] %v7515_v49  ;;  %v7582_v12 = vrot.slane %v7515_v49, 3 }
0x1d34   :  { %7649 = vmatmul.mubr.f32.vlgmr.msra.gmra.mrb[64].mxu0 %v7582_v12  ;;  %7720 = vmatmul.mubr.f32.vlgmr.msra.gmra.mrb[64].mxu1 %v7582_v12 }
0x1d35   :  { %10909 = vmatpush1.bf16.msra.mxu0 %v13538_v46  ;;  %10941 = vmatpush1.bf16.msra.mxu1 %v13541_v39 }
0x1d36   :  { %10911 = vmatprep.subr.bf16.mxu0 %v13546_v47  ;;  %10943 = vmatprep.subr.bf16.mxu1 %v13548_v17 }
0x1d37   :  { %7895 = vmatprep.mubr.f32.mxu0 %v11691_v10  ;;  %7966 = vmatprep.mubr.f32.mxu1 %v11691_v10 }
0x1d39   :  { %10913 = vmatpush1.bf16.msra.mxu0 %v13550_v30  ;;  %10945 = vmatpush1.bf16.msra.mxu1 %v13553_v25 }
0x1d3a   :  { %10915 = vmatprep.subr.bf16.mxu0 %v13558_v62  ;;  %10947 = vmatprep.subr.bf16.mxu1 %v13560_v5 }
0x1d3d   :  { %10917 = vmatpush1.bf16.msra.mxu0 %v13562_v57  ;;  %10949 = vmatpush1.bf16.msra.mxu1 %v13565_v16 }
0x1d3e   :  { %10919 = vmatprep.subr.bf16.mxu0 %v13570_v15  ;;  %10951 = vmatprep.subr.bf16.mxu1 %v13572_v58 }
0x1d41   :  { %10921 = vmatpush1.bf16.msra.mxu0 %v13574_v32  ;;  %10953 = vmatpush1.bf16.msra.mxu1 %v13577_v56 }
0x1d42   :  { %10923 = vmatprep.subr.bf16.mxu0 %v13582_v2  ;;  %10955 = vmatprep.subr.bf16.mxu1 %v13584_v3 }
0x1d45   :  { %10925 = vmatpush1.bf16.msra.mxu0 %v13586_v28  ;;  %10957 = vmatpush1.bf16.msra.mxu1 %v13589_v33 }
0x1d46   :  { %10927 = vmatprep.subr.bf16.mxu0 %v13594_v51  ;;  %10959 = vmatprep.subr.bf16.mxu1 %v13596_v41 }
0x1d49   :  { %10929 = vmatpush1.bf16.msra.mxu0 %v13598_v60  ;;  %10961 = vmatpush1.bf16.msra.mxu1 %v13601_v9 }
0x1d4a   :  { %10931 = vmatprep.subr.bf16.mxu0 %v13606_v14  ;;  %10963 = vmatprep.subr.bf16.mxu1 %v13608_v13 }
0x1d4d   :  { %10933 = vmatpush1.bf16.msra.mxu0 %v13610_v20  ;;  %10965 = vmatpush1.bf16.msra.mxu1 %v13613_v44 }
0x1d4e   :  { %10935 = vmatprep.subr.bf16.mxu0 %v13618_v22  ;;  %10967 = vmatprep.subr.bf16.mxu1 %v13620_v54 }
0x1d51   :  { %10937 = vmatpush1.bf16.msra.mxu0 %v13622_v48  ;;  %10969 = vmatpush1.bf16.msra.mxu1 %v13625_v63 }
0x1d52   :  { %10971 = vmatprep.subr.bf16.mxu0 %v13534_v35  ;;  %11003 = vmatprep.subr.bf16.mxu1 %v13536_v36 }
0x1e07   :  { %v7650_v42 = vpop.f32.mrb[64].mxu0  ;;  %v7721_v38 = vpop.f32.mrb[64].mxu1 }
0x1e08   :  { %v7730_v19 = vrot.slane %v7650_v42, 4  ;;  %v7652_v52 = vpop.f32.mrb[65].mxu0  ;;  %v7723_v43 = vpop.f32.mrb[65].mxu1  ;;  %v7732_v53 = vrot.slane %v7721_v38, 4 }
0x1e09   :  { %v7731_v23 = vrot.slane %v7652_v52, 4  ;;  %v7733_v21 = vrot.slane %v7723_v43, 4 }
0x1e0a   :  { %v7738_v50 = vadd.f32 %v7730_v19, %v13433_v45  ;;  %v7740_v27 = vadd.f32 %v7732_v53, %v13440_v7 }
0x1e0b   :  { %v7739_v6 = vadd.f32 %v7731_v23, %v13436_v40  ;;  %v7741_v29 = vadd.f32 %v7733_v21, %v13444_v37 }
0x1e0c   :  { %v7742_v31 = vmul.f32 0.5, %v7738_v50 }
0x1e0d   :  { %v7746_v11 = vmul.f32 0.5, %v7739_v6  ;;  %v7751_v1 = vmul.f32 0.5, %v7741_v29 }
0x1e0e   :  { %11416 = vtanh.f32 %v7742_v31 }
0x1e0f   :  { %11418 = vtanh.f32 %v7746_v11 }
0x1e10   :  { %11420 = vtanh.f32 %v7740_v27 }
0x1e11   :  { %11422 = vtanh.f32 %v7751_v1 }
0x1e18   :  { %v11417_v8 = vpop.eup %11416 }
0x1e19   :  { %v11419_v59 = vpop.eup %11418  ;;  %v7744_v0 = vmul.f32 0.5, %v11417_v8 }
0x1e1a   :  { %v7748_v26 = vmul.f32 0.5, %v11419_v59  ;;  %v11421_v55 = vpop.eup %11420 }
0x1e1b   :  { %v7745_v18 = vadd.f32 0.5, %v7744_v0  ;;  %v11423_v42 = vpop.eup %11422 }
0x1e1c   :  { %v7749_v4 = vadd.f32 0.5, %v7748_v26  ;;  %v7753_v38 = vmul.f32 0.5, %v11423_v42 }
0x1e1d   :  { %v7759_v34 = vmul.f32 %v11421_v55, %v7745_v18 }
0x1e1e   :  { %v7758_v49 = vmul.f32 %v7756_v24, %v7749_v4  ;;  %v7754_v19 = vadd.f32 0.5, %v7753_v38 }
0x1e20   :  { %v13679_v12 = vadd.f32 %v7759_v34, %v7758_v49 }
0x1e22   :  { %11424 = vtanh.f32 %v13679_v12  ;;  %v8003_v42 = vrot.slane %v13679_v12, 7 }
0x1e2c   :  { %v11425_v52 = vpop.eup %11424 }
0x1e2d   :  { %v7762_v43 = vmul.f32 %v11425_v52, %v7754_v19 }
0x1e2f   :  { %7763 = vst [vmem:[#allocation2] sm:$0x10] %v7762_v43  ;;  %v7829_v23 = vrot.slane %v7762_v43, 4 }
0x1e31   :  { %7896 = vmatmul.mubr.f32.vlgmr.msra.gmra.mrb[66].mxu0 %v7829_v23  ;;  %7967 = vmatmul.mubr.f32.vlgmr.msra.gmra.mrb[66].mxu1 %v7829_v23 }
0x1e32   :  { %10973 = vmatpush1.bf16.msra.mxu0 %v13538_v46  ;;  %11005 = vmatpush1.bf16.msra.mxu1 %v13541_v39 }
0x1e33   :  { %10975 = vmatprep.subr.bf16.mxu0 %v13546_v47  ;;  %11007 = vmatprep.subr.bf16.mxu1 %v13548_v17 }
0x1e34   :  { %8142 = vmatprep.mubr.f32.mxu0 %v11691_v10  ;;  %8213 = vmatprep.mubr.f32.mxu1 %v11691_v10 }
0x1e36   :  { %10977 = vmatpush1.bf16.msra.mxu0 %v13550_v30  ;;  %11009 = vmatpush1.bf16.msra.mxu1 %v13553_v25 }
0x1e37   :  { %10979 = vmatprep.subr.bf16.mxu0 %v13558_v62  ;;  %11011 = vmatprep.subr.bf16.mxu1 %v13560_v5 }
0x1e3a   :  { %10981 = vmatpush1.bf16.msra.mxu0 %v13562_v57  ;;  %11013 = vmatpush1.bf16.msra.mxu1 %v13565_v16 }
0x1e3b   :  { %10983 = vmatprep.subr.bf16.mxu0 %v13570_v15  ;;  %11015 = vmatprep.subr.bf16.mxu1 %v13572_v58 }
0x1e3e   :  { %10985 = vmatpush1.bf16.msra.mxu0 %v13574_v32  ;;  %11017 = vmatpush1.bf16.msra.mxu1 %v13577_v56 }
0x1e3f   :  { %10987 = vmatprep.subr.bf16.mxu0 %v13582_v2  ;;  %11019 = vmatprep.subr.bf16.mxu1 %v13584_v3 }
0x1e42   :  { %10989 = vmatpush1.bf16.msra.mxu0 %v13586_v28  ;;  %11021 = vmatpush1.bf16.msra.mxu1 %v13589_v33 }
0x1e43   :  { %10991 = vmatprep.subr.bf16.mxu0 %v13594_v51  ;;  %11023 = vmatprep.subr.bf16.mxu1 %v13596_v41 }
0x1e46   :  { %10993 = vmatpush1.bf16.msra.mxu0 %v13598_v60  ;;  %11025 = vmatpush1.bf16.msra.mxu1 %v13601_v9 }
0x1e47   :  { %10995 = vmatprep.subr.bf16.mxu0 %v13606_v14  ;;  %11027 = vmatprep.subr.bf16.mxu1 %v13608_v13 }
0x1e4a   :  { %10997 = vmatpush1.bf16.msra.mxu0 %v13610_v20  ;;  %11029 = vmatpush1.bf16.msra.mxu1 %v13613_v44 }
0x1e4b   :  { %10999 = vmatprep.subr.bf16.mxu0 %v13618_v22  ;;  %11031 = vmatprep.subr.bf16.mxu1 %v13620_v54 }
0x1e4e   :  { %11001 = vmatpush1.bf16.msra.mxu0 %v13622_v48  ;;  %11033 = vmatpush1.bf16.msra.mxu1 %v13625_v63 }
0x1e4f   :  { %11035 = vmatprep.subr.bf16.mxu0 %v13534_v35  ;;  %11067 = vmatprep.subr.bf16.mxu1 %v13536_v36 }
0x1f04   :  { %v7897_v61 = vpop.f32.mrb[66].mxu0  ;;  %v7968_v50 = vpop.f32.mrb[66].mxu1 }
0x1f05   :  { %v7977_v53 = vrot.slane %v7897_v61, 3  ;;  %v7899_v6 = vpop.f32.mrb[67].mxu0  ;;  %v7970_v31 = vpop.f32.mrb[67].mxu1  ;;  %v7979_v21 = vrot.slane %v7968_v50, 3 }
0x1f06   :  { %v7978_v11 = vrot.slane %v7899_v6, 3  ;;  %v7980_v0 = vrot.slane %v7970_v31, 3 }
0x1f07   :  { %v7985_v27 = vadd.f32 %v7977_v53, %v13433_v45  ;;  %v7987_v59 = vadd.f32 %v7979_v21, %v13440_v7 }
0x1f08   :  { %v7986_v29 = vadd.f32 %v7978_v11, %v13436_v40  ;;  %v7988_v35 = vadd.f32 %v7980_v0, %v13444_v37 }
0x1f09   :  { %v7989_v1 = vmul.f32 0.5, %v7985_v27 }
0x1f0a   :  { %v7993_v8 = vmul.f32 0.5, %v7986_v29  ;;  %v7998_v36 = vmul.f32 0.5, %v7988_v35 }
0x1f0b   :  { %11426 = vtanh.f32 %v7989_v1 }
0x1f0c   :  { %11428 = vtanh.f32 %v7993_v8 }
0x1f0d   :  { %11430 = vtanh.f32 %v7987_v59 }
0x1f0e   :  { %11432 = vtanh.f32 %v7998_v36 }
0x1f15   :  { %v11427_v26 = vpop.eup %11426 }
0x1f16   :  { %v11429_v18 = vpop.eup %11428  ;;  %v7991_v55 = vmul.f32 0.5, %v11427_v26 }
0x1f17   :  { %v7995_v4 = vmul.f32 0.5, %v11429_v18  ;;  %v11431_v34 = vpop.eup %11430 }
0x1f18   :  { %v7992_v24 = vadd.f32 0.5, %v7991_v55  ;;  %v11433_v43 = vpop.eup %11432 }
0x1f19   :  { %v7996_v49 = vadd.f32 0.5, %v7995_v4  ;;  %v8000_v23 = vmul.f32 0.5, %v11433_v43 }
0x1f1a   :  { %v8006_v38 = vmul.f32 %v11431_v34, %v7992_v24 }
0x1f1b   :  { %v8005_v19 = vmul.f32 %v8003_v42, %v7996_v49  ;;  %v8001_v61 = vadd.f32 0.5, %v8000_v23 }
0x1f1d   :  { %v13721_v52 = vadd.f32 %v8006_v38, %v8005_v19 }
0x1f1f   :  { %11434 = vtanh.f32 %v13721_v52 }
0x1f29   :  { %v11435_v50 = vpop.eup %11434 }
0x1f2a   :  { %v8009_v53 = vmul.f32 %v11435_v50, %v8001_v61 }
0x1f2c   :  { %8010 = vst [vmem:[#allocation2] sm:$0x20] %v8009_v53  ;;  %v8076_v6 = vrot.slane %v8009_v53, 5 }
0x1f2e   :  { %8143 = vmatmul.mubr.f32.vlgmr.msra.gmra.mrb[68].mxu0 %v8076_v6  ;;  %8214 = vmatmul.mubr.f32.vlgmr.msra.gmra.mrb[68].mxu1 %v8076_v6 }
0x1f2f   :  { %11037 = vmatpush1.bf16.msra.mxu0 %v13538_v46  ;;  %11069 = vmatpush1.bf16.msra.mxu1 %v13541_v39 }
0x1f30   :  { %11039 = vmatprep.subr.bf16.mxu0 %v13546_v47  ;;  %11071 = vmatprep.subr.bf16.mxu1 %v13548_v17 }
0x1f31   :  { %8389 = vmatprep.mubr.f32.mxu0 %v11691_v10  ;;  %8460 = vmatprep.mubr.f32.mxu1 %v11691_v10 }
0x1f33   :  { %11041 = vmatpush1.bf16.msra.mxu0 %v13550_v30  ;;  %11073 = vmatpush1.bf16.msra.mxu1 %v13553_v25 }
0x1f34   :  { %11043 = vmatprep.subr.bf16.mxu0 %v13558_v62  ;;  %11075 = vmatprep.subr.bf16.mxu1 %v13560_v5 }
0x1f37   :  { %11045 = vmatpush1.bf16.msra.mxu0 %v13562_v57  ;;  %11077 = vmatpush1.bf16.msra.mxu1 %v13565_v16 }
0x1f38   :  { %11047 = vmatprep.subr.bf16.mxu0 %v13570_v15  ;;  %11079 = vmatprep.subr.bf16.mxu1 %v13572_v58 }
0x1f3b   :  { %11049 = vmatpush1.bf16.msra.mxu0 %v13574_v32  ;;  %11081 = vmatpush1.bf16.msra.mxu1 %v13577_v56 }
0x1f3c   :  { %11051 = vmatprep.subr.bf16.mxu0 %v13582_v2  ;;  %11083 = vmatprep.subr.bf16.mxu1 %v13584_v3 }
0x1f3f   :  { %11053 = vmatpush1.bf16.msra.mxu0 %v13586_v28  ;;  %11085 = vmatpush1.bf16.msra.mxu1 %v13589_v33 }
0x1f40   :  { %11055 = vmatprep.subr.bf16.mxu0 %v13594_v51  ;;  %11087 = vmatprep.subr.bf16.mxu1 %v13596_v41 }
0x1f43   :  { %11057 = vmatpush1.bf16.msra.mxu0 %v13598_v60  ;;  %11089 = vmatpush1.bf16.msra.mxu1 %v13601_v9 }
0x1f44   :  { %11059 = vmatprep.subr.bf16.mxu0 %v13606_v14  ;;  %11091 = vmatprep.subr.bf16.mxu1 %v13608_v13  ;;  %v8250_v14 = vrot.slane %v13721_v52, 7 }
0x1f47   :  { %11061 = vmatpush1.bf16.msra.mxu0 %v13610_v20  ;;  %11093 = vmatpush1.bf16.msra.mxu1 %v13613_v44 }
0x1f48   :  { %11063 = vmatprep.subr.bf16.mxu0 %v13618_v22  ;;  %11095 = vmatprep.subr.bf16.mxu1 %v13620_v54 }
0x1f4b   :  { %11065 = vmatpush1.bf16.msra.mxu0 %v13622_v48  ;;  %11097 = vmatpush1.bf16.msra.mxu1 %v13625_v63 }
0x2001   :  { %v8144_v46 = vpop.f32.mrb[68].mxu0  ;;  %v8215_v39 = vpop.f32.mrb[68].mxu1 }
0x2002   :  { %v8224_v47 = vrot.slane %v8144_v46, 2  ;;  %v8146_v17 = vpop.f32.mrb[69].mxu0  ;;  %v8217_v30 = vpop.f32.mrb[69].mxu1  ;;  %v8226_v5 = vrot.slane %v8215_v39, 2 }
0x2003   :  { %v8225_v25 = vrot.slane %v8146_v17, 2  ;;  %v8227_v32 = vrot.slane %v8217_v30, 2 }
0x2004   :  { %v8232_v62 = vadd.f32 %v8224_v47, %v13433_v45  ;;  %v8234_v58 = vadd.f32 %v8226_v5, %v13440_v7 }
0x2005   :  { %v8233_v57 = vadd.f32 %v8225_v25, %v13436_v40  ;;  %v8235_v56 = vadd.f32 %v8227_v32, %v13444_v37 }
0x2006   :  { %v8236_v16 = vmul.f32 0.5, %v8232_v62 }
0x2007   :  { %v8240_v15 = vmul.f32 0.5, %v8233_v57  ;;  %v8245_v2 = vmul.f32 0.5, %v8235_v56 }
0x2008   :  { %11436 = vtanh.f32 %v8236_v16 }
0x2009   :  { %11438 = vtanh.f32 %v8240_v15 }
0x200a   :  { %11440 = vtanh.f32 %v8234_v58 }
0x200b   :  { %11442 = vtanh.f32 %v8245_v2 }
0x2012   :  { %v11437_v3 = vpop.eup %11436 }
0x2013   :  { %v11439_v28 = vpop.eup %11438  ;;  %v8238_v33 = vmul.f32 0.5, %v11437_v3 }
0x2014   :  { %v8242_v51 = vmul.f32 0.5, %v11439_v28  ;;  %v11441_v60 = vpop.eup %11440 }
0x2015   :  { %v8239_v41 = vadd.f32 0.5, %v8238_v33  ;;  %v11443_v22 = vpop.eup %11442 }
0x2016   :  { %v8243_v9 = vadd.f32 0.5, %v8242_v51  ;;  %v8247_v54 = vmul.f32 0.5, %v11443_v22 }
0x2017   :  { %v8253_v13 = vmul.f32 %v11441_v60, %v8239_v41 }
0x2018   :  { %v8252_v20 = vmul.f32 %v8250_v14, %v8243_v9  ;;  %v8248_v48 = vadd.f32 0.5, %v8247_v54 }
0x201a   :  { %v8254_v44 = vadd.f32 %v8253_v13, %v8252_v20 }
0x201c   :  { %11444 = vtanh.f32 %v8254_v44 }
0x2026   :  { %v11445_v63 = vpop.eup %11444 }
0x2027   :  { %v8256_v12 = vmul.f32 %v11445_v63, %v8248_v48 }
0x2029   :  { %8257 = vst [vmem:[#allocation2] sm:$0x40] %v8256_v12  ;;  %v8323_v31 = vrot.slane %v8256_v12, 6 }
0x202b   :  { %8390 = vmatmul.mubr.f32.vlgmr.msra.gmra.mrb[70].mxu0 %v8323_v31  ;;  %8461 = vmatmul.mubr.f32.vlgmr.msra.gmra.mrb[70].mxu1 %v8323_v31 }
0x20fe   :  { %v8391_v11 = vpop.f32.mrb[70].mxu0  ;;  %v8462_v27 = vpop.f32.mrb[70].mxu1 }
0x20ff   :  { %v8471_v21 = vrot.slane %v8391_v11, 1  ;;  %v8393_v29 = vpop.f32.mrb[71].mxu0  ;;  %v8464_v1 = vpop.f32.mrb[71].mxu1  ;;  %v8473_v0 = vrot.slane %v8462_v27, 1 }
0x2100   :  { %v8472_v8 = vrot.slane %v8393_v29, 1  ;;  %v8474_v55 = vrot.slane %v8464_v1, 1 }
0x2101   :  { %v8479_v59 = vadd.f32 %v8471_v21, %v13433_v45  ;;  %v8481_v18 = vadd.f32 %v8473_v0, %v13440_v7 }
0x2102   :  { %v8480_v35 = vadd.f32 %v8472_v8, %v13436_v40  ;;  %v8482_v4 = vadd.f32 %v8474_v55, %v13444_v37  ;;  %v8497_v40 = vrot.slane %v8254_v44, 7 }
0x2103   :  { %v8483_v36 = vmul.f32 0.5, %v8479_v59 }
0x2104   :  { %v8487_v26 = vmul.f32 0.5, %v8480_v35  ;;  %v8492_v24 = vmul.f32 0.5, %v8482_v4 }
0x2105   :  { %11446 = vtanh.f32 %v8483_v36 }
0x2106   :  { %11448 = vtanh.f32 %v8487_v26 }
0x2107   :  { %11450 = vtanh.f32 %v8481_v18 }
0x2108   :  { %11452 = vtanh.f32 %v8492_v24 }
0x210f   :  { %v11447_v34 = vpop.eup %11446 }
0x2110   :  { %v11449_v49 = vpop.eup %11448  ;;  %v8485_v42 = vmul.f32 0.5, %v11447_v34 }
0x2111   :  { %v8489_v38 = vmul.f32 0.5, %v11449_v49  ;;  %v11451_v19 = vpop.eup %11450 }
0x2112   :  { %v8486_v45 = vadd.f32 0.5, %v8485_v42  ;;  %v11453_v7 = vpop.eup %11452 }
0x2113   :  { %v8490_v52 = vadd.f32 0.5, %v8489_v38  ;;  %v8494_v50 = vmul.f32 0.5, %v11453_v7 }
0x2114   :  { %v8500_v43 = vmul.f32 %v11451_v19, %v8486_v45 }
0x2115   :  { %v8499_v23 = vmul.f32 %v8497_v40, %v8490_v52  ;;  %v8495_v53 = vadd.f32 0.5, %v8494_v50 }
0x2117   :  { %v8501_v61 = vadd.f32 %v8500_v43, %v8499_v23 }
0x2119   :  { %11454 = vtanh.f32 %v8501_v61 }
0x2123   :  { %v11455_v6 = vpop.eup %11454 }
0x2124   :  { %v8503_v46 = vmul.f32 %v11455_v6, %v8495_v53 }
0x2126   :  { %8504 = vst [vmem:[#allocation2] sm:$0x80] %v8503_v46 }
0x2127   :  { %11676 = dma.done.wait [#allocation9 + $0x9], 2048 }
0x2128   :  { %11677 = vsyncadd [#allocation9 + $0x9], 4294965248 }
0x2129   :  { %11678 = dma.done.wait [#allocation9 + $0xa], 16 }
0x212a   :  { %11679 = vsyncadd [#allocation9 + $0xa], 4294967280  ;;  %v11692_v37 = vmov 0.0|0.0   ;;  %vm11693_vm0 = vmmov 0   ;;  %v8512_v39 = vld [vmem:[#allocation7] sm:$0xff]  ;;  %v8513_v47 = vld [vmem:[#allocation7 + $0x8] sm:$0xff] }
0x212b   :  { %11098 = vmatprep.subr.bf16.mxu0 %v11692_v37  ;;  %8791 = vmatprep.mubr.msk.f32.mxu0 %vm11693_vm0, %v11691_v10  ;;  %v8514_v17 = vld [vmem:[#allocation7 + $0x10] sm:$0xff]  ;;  %v11099_v30 = vpack.c.bf16 %v8513_v47, %v8512_v39  ;;  %v8515_v25 = vld [vmem:[#allocation7 + $0x18] sm:$0xff]  ;;  %v8516_v5 = vld [vmem:[#allocation7 + $0x20] sm:$0xff] }
0x212c   :  { %v11102_v62 = vpack.c.bf16 %v8515_v25, %v8514_v17  ;;  %v8517_v57 = vld [vmem:[#allocation7 + $0x28] sm:$0xff]  ;;  %v8518_v15 = vld [vmem:[#allocation7 + $0x30] sm:$0xff]  ;;  %v8519_v58 = vld [vmem:[#allocation7 + $0x38] sm:$0xff] }
0x212d   :  { %11100 = vmatpush3.bf16.msra.mxu0 %v11099_v30  ;;  %v11105_v16 = vpack.c.bf16 %v8517_v57, %v8516_v5  ;;  %v11108_v32 = vpack.c.bf16 %v8519_v58, %v8518_v15  ;;  %v8520_v56 = vld [vmem:[#allocation7 + $0x40] sm:$0xff]  ;;  %v8521_v10 = vld [vmem:[#allocation7 + $0x48] sm:$0xff]  ;;  %v8522_v3 = vld [vmem:[#allocation7 + $0x50] sm:$0xff] }
0x212e   :  { %11101 = vmatprep.subr.bf16.mxu0 %v11692_v37  ;;  %v11111_v2 = vpack.c.bf16 %v8521_v10, %v8520_v56  ;;  %v8523_v28 = vld [vmem:[#allocation7 + $0x58] sm:$0xff]  ;;  %v8524_v51 = vld [vmem:[#allocation7 + $0x60] sm:$0xff]  ;;  %v8525_v41 = vld [vmem:[#allocation7 + $0x68] sm:$0xff] }
0x212f   :  { %v11114_v33 = vpack.c.bf16 %v8523_v28, %v8522_v3  ;;  %v11117_v60 = vpack.c.bf16 %v8525_v41, %v8524_v51  ;;  %v8526_v9 = vld [vmem:[#allocation7 + $0x70] sm:$0xff]  ;;  %v8527_v14 = vld [vmem:[#allocation7 + $0x78] sm:$0xff]  ;;  %v8511_v20 = vld [vmem:[#allocation2] sm:$0xff] }
0x2130   :  { %v11120_v13 = vpack.c.bf16 %v8527_v14, %v8526_v9  ;;  %v8730_v44 = vld [vmem:[#allocation8] ss:$0 sm:$0xff] }
0x2131   :  { %11103 = vmatpush3.bf16.msra.mxu0 %v11102_v62 }
0x2132   :  { %11104 = vmatprep.subr.bf16.mxu0 %v11692_v37 }
0x2135   :  { %11106 = vmatpush3.bf16.msra.mxu0 %v11105_v16 }
0x2136   :  { %11107 = vmatprep.subr.bf16.mxu0 %v11692_v37 }
0x2139   :  { %11109 = vmatpush3.bf16.msra.mxu0 %v11108_v32 }
0x213a   :  { %11110 = vmatprep.subr.bf16.mxu0 %v11692_v37 }
0x213d   :  { %11112 = vmatpush3.bf16.msra.mxu0 %v11111_v2 }
0x213e   :  { %11113 = vmatprep.subr.bf16.mxu0 %v11692_v37 }
0x2141   :  { %11115 = vmatpush3.bf16.msra.mxu0 %v11114_v33 }
0x2142   :  { %11116 = vmatprep.subr.bf16.mxu0 %v11692_v37 }
0x2145   :  { %11118 = vmatpush3.bf16.msra.mxu0 %v11117_v60 }
0x2146   :  { %11119 = vmatprep.subr.bf16.mxu0 %v11692_v37 }
0x2149   :  { %11121 = vmatpush3.bf16.msra.mxu0 %v11120_v13 }
0x214c   :  { %8792 = vmatmul.mubr.f32.vlgmr.msra.gmra.mrb[72].mxu0 %v8511_v20 }
0x221f   :  { %v8601_v22 = vpop.f32.mrb[72].mxu0 }
0x2220   :  { %v8602_v54 = vadd.f32 %v8730_v44, %v8601_v22  ;;  %v8793_v48 = vpop.f32.mrb[73].mxu0 }
0x2222   :  { %8605 = vst [vmem:[%s13784_s15] sm:$0xff] %v8602_v54 }
0x2223   :  { %8610 = vsyncpa [#allocation11], 1 }
0x2224   :  { %8611 = vsyncpa [#allocation13], 1 }
0x2225   :  { %8612 = vsyncmov [#allocation9] }
0x2228   :  { %s8613_s22 = vpop.sfrf %8612 }
0x2229   :  { %p8731_p2 = scmp.ne.s32.totalorder %s8613_s22, 0 }
0x222b   :  { %8617 = shalt.err (%p8731_p2)  }
0x222c   :  { %8619 = vsyncmov [#allocation9 + $0x1] }
0x222f   :  { %s8620_s5 = vpop.sfrf %8619 }
0x2230   :  { %p8732_p3 = scmp.ne.s32.totalorder %s8620_s5, 0 }
0x2232   :  { %8624 = shalt.err (%p8732_p3)  }
0x2233   :  { %8626 = vsyncmov [#allocation9 + $0x2] }
0x2236   :  { %s8627_s7 = vpop.sfrf %8626 }
0x2237   :  { %p8733_p4 = scmp.ne.s32.totalorder %s8627_s7, 0 }
0x2239   :  { %8631 = shalt.err (%p8733_p4)  }
0x223a   :  { %8633 = vsyncmov [#allocation9 + $0x3] }
0x223d   :  { %s8634_s19 = vpop.sfrf %8633 }
0x223e   :  { %p8734_p5 = scmp.ne.s32.totalorder %s8634_s19, 0 }
0x2240   :  { %8638 = shalt.err (%p8734_p5)  }
0x2241   :  { %8640 = vsyncmov [#allocation9 + $0x4] }
0x2244   :  { %s8641_s15 = vpop.sfrf %8640 }
0x2245   :  { %p8735_p6 = scmp.ne.s32.totalorder %s8641_s15, 0 }
0x2247   :  { %8645 = shalt.err (%p8735_p6)  }
0x2248   :  { %8647 = vsyncmov [#allocation9 + $0x5] }
0x224b   :  { %s8648_s23 = vpop.sfrf %8647 }
0x224c   :  { %p8736_p7 = scmp.ne.s32.totalorder %s8648_s23, 0 }
0x224e   :  { %8652 = shalt.err (%p8736_p7)  }
0x224f   :  { %8654 = vsyncmov [#allocation9 + $0x6] }
0x2252   :  { %s8655_s24 = vpop.sfrf %8654 }
0x2253   :  { %p8737_p8 = scmp.ne.s32.totalorder %s8655_s24, 0 }
0x2255   :  { %8659 = shalt.err (%p8737_p8)  }
0x2256   :  { %8661 = vsyncmov [#allocation9 + $0x7] }
0x2259   :  { %s8662_s6 = vpop.sfrf %8661 }
0x225a   :  { %p8738_p9 = scmp.ne.s32.totalorder %s8662_s6, 0 }
0x225c   :  { %8666 = shalt.err (%p8738_p9)  }
0x225d   :  { %8668 = vsyncmov [#allocation9 + $0x8] }
0x2260   :  { %s8669_s16 = vpop.sfrf %8668 }
0x2261   :  { %p8739_p10 = scmp.ne.s32.totalorder %s8669_s16, 0 }
0x2263   :  { %8673 = shalt.err (%p8739_p10)  }
0x2264   :  { %8675 = vsyncmov [#allocation9 + $0x9] }
0x2267   :  { %s8676_s10 = vpop.sfrf %8675 }
0x2268   :  { %p8740_p11 = scmp.ne.s32.totalorder %s8676_s10, 0 }
0x226a   :  { %8680 = shalt.err (%p8740_p11)  }
0x226b   :  { %8682 = vsyncmov [#allocation9 + $0xa] }
0x226e   :  { %s8683_s18 = vpop.sfrf %8682 }
0x226f   :  { %p8741_p12 = scmp.ne.s32.totalorder %s8683_s18, 0 }
0x2271   :  { %8687 = shalt.err (%p8741_p12)  }

</bundles_post_ra>
